<compile_context>
chip_gen: v7x
topology: tpu7x:2x2x1
jax: 0.10.0
libtpu: 0.0.40
codegen_flags: <defaults>
</compile_context>

<pallas_src>
import functools

import jax
import jax.numpy as jnp
from jax.experimental import pallas as pl
from jax.experimental.pallas import tpu as pltpu


def _round_up(x, m):
    return ((x + m - 1) // m) * m


# ----------------------------------------------------------------------------
# Pallas kernels
# ----------------------------------------------------------------------------
def _stable_sigmoid(z):
    # z is f32.  exp(-|z|) <= 1 so no overflow; reciprocal goes to the EUP (approx).
    ez = jnp.exp(-jnp.abs(z))
    inv = pl.reciprocal(1.0 + ez, approx=True)
    return jnp.where(z >= 0.0, inv, ez * inv)


def _gemm_swish_kernel(a_ref, b_ref, bias_ref, o_ref):
    # a: (tm, K) bf16, b: (K, N) bf16, bias: (1, N) f32 -> o: (tm, N) f32
    z = jnp.dot(a_ref[...], b_ref[...], preferred_element_type=jnp.float32)
    z = z + bias_ref[...]
    z = z * _stable_sigmoid(z)            # Swish / SiLU fused in the epilogue
    o_ref[...] = z.astype(o_ref.dtype)


def _gemm_prelu_kernel(a_ref, b_ref, bias_ref, alpha_ref, o_ref):
    # a: (tm, K) bf16, b: (K, N) bf16, bias: (1, N) f32, alpha: (1, 1) f32
    z = jnp.dot(a_ref[...], b_ref[...], preferred_element_type=jnp.float32)
    z = z + bias_ref[...]
    z = jnp.where(z >= 0.0, z, alpha_ref[...] * z)   # PReLU (single shared parameter)
    o_ref[...] = z.astype(o_ref.dtype)


def _max4_kernel(a_ref, b_ref, c_ref, d_ref, o_ref):
    o_ref[...] = jnp.maximum(jnp.maximum(a_ref[...], b_ref[...]),
                             jnp.maximum(c_ref[...], d_ref[...]))


# ----------------------------------------------------------------------------
# Pallas wrappers
# ----------------------------------------------------------------------------
def _gemm_bias_act(a, b, bias, *, act, alpha=None, tm=256):
    """Tiled GEMM over the M axis with a fused bias + activation epilogue.

    a: (M, K) bf16, b: (K, N) bf16, bias: (N,) f32.  K and N are kept as full-array
    block dims (no 128 padding); M is padded to the row-tile size and sliced back.
    """
    M, K = a.shape
    Kb, N = b.shape
    assert K == Kb
    tm = min(tm, _round_up(M, 8))
    Mp = _round_up(M, tm)
    if Mp != M:
        a = jnp.pad(a, ((0, Mp - M), (0, 0)))
    grid = (Mp // tm,)

    in_specs = [
        pl.BlockSpec((tm, K), lambda i: (i, 0)),   # A row tile
        pl.BlockSpec((K, N), lambda i: (0, 0)),    # weights stay VMEM-resident
        pl.BlockSpec((1, N), lambda i: (0, 0)),    # bias
    ]
    args = [a, b, bias.reshape(1, N).astype(jnp.float32)]
    if act == "prelu":
        kernel = _gemm_prelu_kernel
        in_specs.append(pl.BlockSpec((1, 1), lambda i: (0, 0)))
        args.append(alpha.reshape(1, 1).astype(jnp.float32))
    else:
        kernel = _gemm_swish_kernel

    out = pl.pallas_call(
        kernel,
        out_shape=jax.ShapeDtypeStruct((Mp, N), jnp.float32),
        grid=grid,
        in_specs=in_specs,
        out_specs=pl.BlockSpec((tm, N), lambda i: (i, 0)),
        compiler_params=pltpu.CompilerParams(
            dimension_semantics=("parallel",),     # M tiles are independent (v7x: 2 TCs)
        ),
    )(*args)
    return out[:M] if Mp != M else out


def _im2col_valid(x, k):
    # x: (N, H, W, C) -> (N*Ho*Wo, k*k*C), patch ordering (ki, kj, c); stride 1, no pad.
    n, h, w, c = x.shape
    ho, wo = h - k + 1, w - k + 1
    cols = []
    for i in range(k):
        for j in range(k):
            cols.append(x[:, i:i + ho, j:j + wo, :])
    cols = jnp.concatenate(cols, axis=-1)
    return cols.reshape(n * ho * wo, k * k * c), ho, wo


def conv_swish(x, w, b, k):
    """Conv2d (valid, stride 1) + bias + Swish as a single fused Pallas GEMM."""
    n = x.shape[0]
    cols, ho, wo = _im2col_valid(x.astype(jnp.bfloat16), k)          # bf16 patches
    w_mat = w.reshape(-1, w.shape[-1]).astype(jnp.bfloat16)          # (k*k*Cin, Cout) bf16
    y = _gemm_bias_act(cols, w_mat, b, act="swish")
    return y.reshape(n, ho, wo, -1)                                   # f32 activations


def maxpool_2x2(x):
    """MaxPool2d(kernel=2, stride=2, padding=0) — 4-tap elementwise max in Pallas."""
    n, h, w, c = x.shape
    hp, wp = h // 2, w // 2
    x = x[:, :2 * hp, :2 * wp, :]                 # floor behaviour of PyTorch MaxPool2d
    t00 = x[:, 0::2, 0::2, :].reshape(n * hp * wp, c)
    t01 = x[:, 0::2, 1::2, :].reshape(n * hp * wp, c)
    t10 = x[:, 1::2, 0::2, :].reshape(n * hp * wp, c)
    t11 = x[:, 1::2, 1::2, :].reshape(n * hp * wp, c)
    y = pl.pallas_call(
        _max4_kernel,
        out_shape=jax.ShapeDtypeStruct((n * hp * wp, c), x.dtype),
    )(t00, t01, t10, t11)
    return y.reshape(n, hp, wp, c)


def fc_prelu(x_flat, w, b, alpha):
    return _gemm_bias_act(x_flat.astype(jnp.bfloat16), w.astype(jnp.bfloat16),
                          b, act="prelu", alpha=alpha)


# ----------------------------------------------------------------------------
# Forward pass (matches OlesNetwork.forward)
# ----------------------------------------------------------------------------
def oles_forward(params, x):
    # x: (B, 3, H, W)  PyTorch NCHW
    x = jnp.transpose(x, (0, 2, 3, 1))                               # -> NHWC
    x = conv_swish(x, params["conv1_w"], params["conv1_b"], 7)       # conv1 + Swish
    x = maxpool_2x2(x)                                               # pool
    x = conv_swish(x, params["conv2_w"], params["conv2_b"], 5)       # conv2 + Swish
    x = maxpool_2x2(x)                                               # pool
    # x.view(B, -1) in PyTorch flattens NCHW -> (B, C*H*W); replicate that ordering.
    x = jnp.transpose(x, (0, 3, 1, 2)).reshape(x.shape[0], -1)
    out = fc_prelu(x, params["fc1_w"], params["fc1_b"], params["prelu_a"])
    return out                                                       # (B, n_classes)


# ----------------------------------------------------------------------------
# Deterministic parameter initialisation (synthetic weights, PyTorch-equivalent shapes)
# ----------------------------------------------------------------------------
def init_params(key, n_classes, flat_features):
    k1, k2, k3, k4, k5, k6 = jax.random.split(key, 6)

    def conv_w(k, kh, kw, cin, cout):
        fan_in = kh * kw * cin
        return jax.random.normal(k, (kh, kw, cin, cout), jnp.float32) * (2.0 / fan_in) ** 0.5

    return {
        "conv1_w": conv_w(k1, 7, 7, 3, 32),
        "conv1_b": 0.01 * jax.random.normal(k2, (32,), jnp.float32),
        "conv2_w": conv_w(k3, 5, 5, 32, 64),
        "conv2_b": 0.01 * jax.random.normal(k4, (64,), jnp.float32),
        # fc rows are ordered (C, H, W) to match PyTorch's NCHW flatten.
        "fc1_w": jax.random.normal(k5, (flat_features, n_classes), jnp.float32)
                 * (1.0 / flat_features) ** 0.5,
        "fc1_b": 0.01 * jax.random.normal(k6, (n_classes,), jnp.float32),
        "prelu_a": jnp.array(0.25, jnp.float32),      # nn.PReLU() default init
    }


if __name__ == "__main__":
    key = jax.random.PRNGKey(0)
    pkey, xkey = jax.random.split(key)

    # Small demo shapes consistent with the forward pass:
    #   (B=2, C=3, 62, 62) -> conv1 56 -> pool 28 -> conv2 24 -> pool 12 -> flatten 64*12*12
    B, H, W, n_classes = 2, 62, 62, 3
    hp1, wp1 = (H - 6) // 2, (W - 6) // 2
    hp2, wp2 = (hp1 - 4) // 2, (wp1 - 4) // 2
    flat_features = 64 * hp2 * wp2

    params = init_params(pkey, n_classes, flat_features)
    x = jax.random.normal(xkey, (B, 3, H, W), jnp.float32)

    fwd = jax.jit(oles_forward)
    out = jax.block_until_ready(fwd(params, x))

    assert out.shape == (B, n_classes) and out.dtype == jnp.float32
    assert bool(jnp.all(jnp.isfinite(out)))
    print("KERNEL_OK")
</pallas_src>

<mosaic_0001>
module attributes {stable_mosaic.version = 11 : i64} {
  func.func @_gemm_swish_kernel(%arg0: i32, %arg1: memref<256x147xbf16, #tpu.memory_space<vmem>>, %arg2: memref<147x32xbf16, #tpu.memory_space<vmem>>, %arg3: memref<1x32xf32, #tpu.memory_space<vmem>>, %arg4: memref<256x32xf32, #tpu.memory_space<vmem>>) attributes {dimension_semantics = [#tpu.dimension_semantics<parallel>], iteration_bounds = array<i64: 25>, scalar_prefetch = 0 : i64, scratch_operands = 0 : i64, tpu.core_type = #tpu.core_type<tc>, window_params = [{transform_indices = @transform_0, window_bounds = array<i64: 256, 147>}, {pipeline_mode = #tpu.pipeline_mode<synchronous>, transform_indices = @transform_1, window_bounds = array<i64: 147, 32>}, {pipeline_mode = #tpu.pipeline_mode<synchronous>, transform_indices = @transform_2, window_bounds = array<i64: 1, 32>}, {transform_indices = @transform_3, window_bounds = array<i64: 256, 32>}]} {
    %c0 = arith.constant 0 : index
    %c0_0 = arith.constant 0 : index
    %0 = vector.load %arg1[%c0, %c0_0] : memref<256x147xbf16, #tpu.memory_space<vmem>>, vector<256x147xbf16>
    %c0_1 = arith.constant 0 : index
    %c0_2 = arith.constant 0 : index
    %1 = vector.load %arg2[%c0_1, %c0_2] : memref<147x32xbf16, #tpu.memory_space<vmem>>, vector<147x32xbf16>
    %cst = arith.constant dense<0.000000e+00> : vector<256x32xf32>
    %2 = tpu.matmul %0, %1, %cst {dimension_numbers = #tpu.dot_dimension_numbers<[1], [0], [0], [1], [0, 0, 1, 1], [], []>} : vector<256x147xbf16>, vector<147x32xbf16>, vector<256x32xf32> -> vector<256x32xf32>
    %c0_3 = arith.constant 0 : index
    %c0_4 = arith.constant 0 : index
    %3 = vector.load %arg3[%c0_3, %c0_4] : memref<1x32xf32, #tpu.memory_space<vmem>>, vector<1x32xf32>
    %4 = vector.broadcast %3 : vector<1x32xf32> to vector<256x32xf32>
    %5 = arith.addf %2, %4 : vector<256x32xf32>
    %6 = math.absf %5 : vector<256x32xf32>
    %cst_5 = arith.constant 0.000000e+00 : f32
    %7 = vector.broadcast %cst_5 : f32 to vector<256x32xf32>
    %8 = arith.subf %7, %6 : vector<256x32xf32>
    %9 = math.exp %8 : vector<256x32xf32>
    %cst_6 = arith.constant 1.000000e+00 : f32
    %10 = vector.broadcast %cst_6 : f32 to vector<256x32xf32>
    %11 = arith.addf %10, %9 : vector<256x32xf32>
    %12 = tpu.reciprocal %11 {approx = true} : vector<256x32xf32> -> vector<256x32xf32>
    %cst_7 = arith.constant 0.000000e+00 : f32
    %13 = vector.broadcast %cst_7 : f32 to vector<256x32xf32>
    %14 = arith.cmpf oge, %5, %13 : vector<256x32xf32>
    %15 = arith.mulf %9, %12 : vector<256x32xf32>
    %16 = arith.select %14, %12, %15 : vector<256x32xi1>, vector<256x32xf32>
    %17 = arith.mulf %5, %16 : vector<256x32xf32>
    %c0_8 = arith.constant 0 : index
    %c0_9 = arith.constant 0 : index
    %18 = vector.load %arg4[%c0_8, %c0_9] : memref<256x32xf32, #tpu.memory_space<vmem>>, vector<256x32xf32>
    tpu.vector_store %arg4[%c0_8, %c0_9], %17 {strides = array<i32>} : memref<256x32xf32, #tpu.memory_space<vmem>>, vector<256x32xf32>,
    return
  }
  func.func @transform_0(%arg0: i32) -> (i32, i32) {
    %c0_i32 = arith.constant 0 : i32
    %c0_i32_0 = arith.constant 0 : i32
    return %arg0, %c0_i32 : i32, i32
  }
  func.func @transform_1(%arg0: i32) -> (i32, i32) {
    %c0_i32 = arith.constant 0 : i32
    %c0_i32_0 = arith.constant 0 : i32
    %c0_i32_1 = arith.constant 0 : i32
    return %c0_i32, %c0_i32_0 : i32, i32
  }
  func.func @transform_2(%arg0: i32) -> (i32, i32) {
    %c0_i32 = arith.constant 0 : i32
    %c0_i32_0 = arith.constant 0 : i32
    %c0_i32_1 = arith.constant 0 : i32
    return %c0_i32, %c0_i32_0 : i32, i32
  }
  func.func @transform_3(%arg0: i32) -> (i32, i32) {
    %c0_i32 = arith.constant 0 : i32
    %c0_i32_0 = arith.constant 0 : i32
    return %arg0, %c0_i32 : i32, i32
  }
}

module attributes {stable_mosaic.version = 11 : i64} {
  func.func @_max4_kernel(%arg0: memref<1568x32xf32, #tpu.memory_space<vmem>>, %arg1: memref<1568x32xf32, #tpu.memory_space<vmem>>, %arg2: memref<1568x32xf32, #tpu.memory_space<vmem>>, %arg3: memref<1568x32xf32, #tpu.memory_space<vmem>>, %arg4: memref<1568x32xf32, #tpu.memory_space<vmem>>) attributes {dimension_semantics = [], scalar_prefetch = 0 : i64, scratch_operands = 0 : i64, tpu.core_type = #tpu.core_type<tc>} {
    %c0 = arith.constant 0 : index
    %c0_0 = arith.constant 0 : index
    %0 = vector.load %arg0[%c0, %c0_0] : memref<1568x32xf32, #tpu.memory_space<vmem>>, vector<1568x32xf32>
    %c0_1 = arith.constant 0 : index
    %c0_2 = arith.constant 0 : index
    %1 = vector.load %arg1[%c0_1, %c0_2] : memref<1568x32xf32, #tpu.memory_space<vmem>>, vector<1568x32xf32>
    %2 = arith.maximumf %0, %1 : vector<1568x32xf32>
    %c0_3 = arith.constant 0 : index
    %c0_4 = arith.constant 0 : index
    %3 = vector.load %arg2[%c0_3, %c0_4] : memref<1568x32xf32, #tpu.memory_space<vmem>>, vector<1568x32xf32>
    %c0_5 = arith.constant 0 : index
    %c0_6 = arith.constant 0 : index
    %4 = vector.load %arg3[%c0_5, %c0_6] : memref<1568x32xf32, #tpu.memory_space<vmem>>, vector<1568x32xf32>
    %5 = arith.maximumf %3, %4 : vector<1568x32xf32>
    %6 = arith.maximumf %2, %5 : vector<1568x32xf32>
    %c0_7 = arith.constant 0 : index
    %c0_8 = arith.constant 0 : index
    %7 = vector.load %arg4[%c0_7, %c0_8] : memref<1568x32xf32, #tpu.memory_space<vmem>>, vector<1568x32xf32>
    tpu.vector_store %arg4[%c0_7, %c0_8], %6 {strides = array<i32>} : memref<1568x32xf32, #tpu.memory_space<vmem>>, vector<1568x32xf32>,
    return
  }
}

module attributes {stable_mosaic.version = 11 : i64} {
  func.func @_gemm_swish_kernel(%arg0: i32, %arg1: memref<256x800xbf16, #tpu.memory_space<vmem>>, %arg2: memref<800x64xbf16, #tpu.memory_space<vmem>>, %arg3: memref<1x64xf32, #tpu.memory_space<vmem>>, %arg4: memref<256x64xf32, #tpu.memory_space<vmem>>) attributes {dimension_semantics = [#tpu.dimension_semantics<parallel>], iteration_bounds = array<i64: 5>, scalar_prefetch = 0 : i64, scratch_operands = 0 : i64, tpu.core_type = #tpu.core_type<tc>, window_params = [{transform_indices = @transform_0, window_bounds = array<i64: 256, 800>}, {pipeline_mode = #tpu.pipeline_mode<synchronous>, transform_indices = @transform_1, window_bounds = array<i64: 800, 64>}, {pipeline_mode = #tpu.pipeline_mode<synchronous>, transform_indices = @transform_2, window_bounds = array<i64: 1, 64>}, {transform_indices = @transform_3, window_bounds = array<i64: 256, 64>}]} {
    %c0 = arith.constant 0 : index
    %c0_0 = arith.constant 0 : index
    %0 = vector.load %arg1[%c0, %c0_0] : memref<256x800xbf16, #tpu.memory_space<vmem>>, vector<256x800xbf16>
    %c0_1 = arith.constant 0 : index
    %c0_2 = arith.constant 0 : index
    %1 = vector.load %arg2[%c0_1, %c0_2] : memref<800x64xbf16, #tpu.memory_space<vmem>>, vector<800x64xbf16>
    %cst = arith.constant dense<0.000000e+00> : vector<256x64xf32>
    %2 = tpu.matmul %0, %1, %cst {dimension_numbers = #tpu.dot_dimension_numbers<[1], [0], [0], [1], [0, 0, 1, 1], [], []>} : vector<256x800xbf16>, vector<800x64xbf16>, vector<256x64xf32> -> vector<256x64xf32>
    %c0_3 = arith.constant 0 : index
    %c0_4 = arith.constant 0 : index
    %3 = vector.load %arg3[%c0_3, %c0_4] : memref<1x64xf32, #tpu.memory_space<vmem>>, vector<1x64xf32>
    %4 = vector.broadcast %3 : vector<1x64xf32> to vector<256x64xf32>
    %5 = arith.addf %2, %4 : vector<256x64xf32>
    %6 = math.absf %5 : vector<256x64xf32>
    %cst_5 = arith.constant 0.000000e+00 : f32
    %7 = vector.broadcast %cst_5 : f32 to vector<256x64xf32>
    %8 = arith.subf %7, %6 : vector<256x64xf32>
    %9 = math.exp %8 : vector<256x64xf32>
    %cst_6 = arith.constant 1.000000e+00 : f32
    %10 = vector.broadcast %cst_6 : f32 to vector<256x64xf32>
    %11 = arith.addf %10, %9 : vector<256x64xf32>
    %12 = tpu.reciprocal %11 {approx = true} : vector<256x64xf32> -> vector<256x64xf32>
    %cst_7 = arith.constant 0.000000e+00 : f32
    %13 = vector.broadcast %cst_7 : f32 to vector<256x64xf32>
    %14 = arith.cmpf oge, %5, %13 : vector<256x64xf32>
    %15 = arith.mulf %9, %12 : vector<256x64xf32>
    %16 = arith.select %14, %12, %15 : vector<256x64xi1>, vector<256x64xf32>
    %17 = arith.mulf %5, %16 : vector<256x64xf32>
    %c0_8 = arith.constant 0 : index
    %c0_9 = arith.constant 0 : index
    %18 = vector.load %arg4[%c0_8, %c0_9] : memref<256x64xf32, #tpu.memory_space<vmem>>, vector<256x64xf32>
    tpu.vector_store %arg4[%c0_8, %c0_9], %17 {strides = array<i32>} : memref<256x64xf32, #tpu.memory_space<vmem>>, vector<256x64xf32>,
    return
  }
  func.func @transform_0(%arg0: i32) -> (i32, i32) {
    %c0_i32 = arith.constant 0 : i32
    %c0_i32_0 = arith.constant 0 : i32
    return %arg0, %c0_i32 : i32, i32
  }
  func.func @transform_1(%arg0: i32) -> (i32, i32) {
    %c0_i32 = arith.constant 0 : i32
    %c0_i32_0 = arith.constant 0 : i32
    %c0_i32_1 = arith.constant 0 : i32
    return %c0_i32, %c0_i32_0 : i32, i32
  }
  func.func @transform_2(%arg0: i32) -> (i32, i32) {
    %c0_i32 = arith.constant 0 : i32
    %c0_i32_0 = arith.constant 0 : i32
    %c0_i32_1 = arith.constant 0 : i32
    return %c0_i32, %c0_i32_0 : i32, i32
  }
  func.func @transform_3(%arg0: i32) -> (i32, i32) {
    %c0_i32 = arith.constant 0 : i32
    %c0_i32_0 = arith.constant 0 : i32
    return %arg0, %c0_i32 : i32, i32
  }
}

module attributes {stable_mosaic.version = 11 : i64} {
  func.func @_max4_kernel(%arg0: memref<288x64xf32, #tpu.memory_space<vmem>>, %arg1: memref<288x64xf32, #tpu.memory_space<vmem>>, %arg2: memref<288x64xf32, #tpu.memory_space<vmem>>, %arg3: memref<288x64xf32, #tpu.memory_space<vmem>>, %arg4: memref<288x64xf32, #tpu.memory_space<vmem>>) attributes {dimension_semantics = [], scalar_prefetch = 0 : i64, scratch_operands = 0 : i64, tpu.core_type = #tpu.core_type<tc>} {
    %c0 = arith.constant 0 : index
    %c0_0 = arith.constant 0 : index
    %0 = vector.load %arg0[%c0, %c0_0] : memref<288x64xf32, #tpu.memory_space<vmem>>, vector<288x64xf32>
    %c0_1 = arith.constant 0 : index
    %c0_2 = arith.constant 0 : index
    %1 = vector.load %arg1[%c0_1, %c0_2] : memref<288x64xf32, #tpu.memory_space<vmem>>, vector<288x64xf32>
    %2 = arith.maximumf %0, %1 : vector<288x64xf32>
    %c0_3 = arith.constant 0 : index
    %c0_4 = arith.constant 0 : index
    %3 = vector.load %arg2[%c0_3, %c0_4] : memref<288x64xf32, #tpu.memory_space<vmem>>, vector<288x64xf32>
    %c0_5 = arith.constant 0 : index
    %c0_6 = arith.constant 0 : index
    %4 = vector.load %arg3[%c0_5, %c0_6] : memref<288x64xf32, #tpu.memory_space<vmem>>, vector<288x64xf32>
    %5 = arith.maximumf %3, %4 : vector<288x64xf32>
    %6 = arith.maximumf %2, %5 : vector<288x64xf32>
    %c0_7 = arith.constant 0 : index
    %c0_8 = arith.constant 0 : index
    %7 = vector.load %arg4[%c0_7, %c0_8] : memref<288x64xf32, #tpu.memory_space<vmem>>, vector<288x64xf32>
    tpu.vector_store %arg4[%c0_7, %c0_8], %6 {strides = array<i32>} : memref<288x64xf32, #tpu.memory_space<vmem>>, vector<288x64xf32>,
    return
  }
}

module attributes {stable_mosaic.version = 11 : i64} {
  func.func @_gemm_prelu_kernel(%arg0: i32, %arg1: memref<8x9216xbf16, #tpu.memory_space<vmem>>, %arg2: memref<9216x3xbf16, #tpu.memory_space<vmem>>, %arg3: memref<1x3xf32, #tpu.memory_space<vmem>>, %arg4: memref<1x1xf32, #tpu.memory_space<vmem>>, %arg5: memref<8x3xf32, #tpu.memory_space<vmem>>) attributes {dimension_semantics = [#tpu.dimension_semantics<parallel>], iteration_bounds = array<i64: 1>, scalar_prefetch = 0 : i64, scratch_operands = 0 : i64, tpu.core_type = #tpu.core_type<tc>, window_params = [{transform_indices = @transform_0, window_bounds = array<i64: 8, 9216>}, {pipeline_mode = #tpu.pipeline_mode<synchronous>, transform_indices = @transform_1, window_bounds = array<i64: 9216, 3>}, {pipeline_mode = #tpu.pipeline_mode<synchronous>, transform_indices = @transform_2, window_bounds = array<i64: 1, 3>}, {pipeline_mode = #tpu.pipeline_mode<synchronous>, transform_indices = @transform_3, window_bounds = array<i64: 1, 1>}, {transform_indices = @transform_4, window_bounds = array<i64: 8, 3>}]} {
    %c0 = arith.constant 0 : index
    %c0_0 = arith.constant 0 : index
    %0 = vector.load %arg1[%c0, %c0_0] : memref<8x9216xbf16, #tpu.memory_space<vmem>>, vector<8x9216xbf16>
    %c0_1 = arith.constant 0 : index
    %c0_2 = arith.constant 0 : index
    %1 = vector.load %arg2[%c0_1, %c0_2] : memref<9216x3xbf16, #tpu.memory_space<vmem>>, vector<9216x3xbf16>
    %cst = arith.constant dense<0.000000e+00> : vector<8x3xf32>
    %2 = tpu.matmul %0, %1, %cst {dimension_numbers = #tpu.dot_dimension_numbers<[1], [0], [0], [1], [0, 0, 1, 1], [], []>} : vector<8x9216xbf16>, vector<9216x3xbf16>, vector<8x3xf32> -> vector<8x3xf32>
    %c0_3 = arith.constant 0 : index
    %c0_4 = arith.constant 0 : index
    %3 = vector.load %arg3[%c0_3, %c0_4] : memref<1x3xf32, #tpu.memory_space<vmem>>, vector<1x3xf32>
    %4 = vector.broadcast %3 : vector<1x3xf32> to vector<8x3xf32>
    %5 = arith.addf %2, %4 : vector<8x3xf32>
    %cst_5 = arith.constant 0.000000e+00 : f32
    %6 = vector.broadcast %cst_5 : f32 to vector<8x3xf32>
    %7 = arith.cmpf oge, %5, %6 : vector<8x3xf32>
    %c0_6 = arith.constant 0 : index
    %c0_7 = arith.constant 0 : index
    %8 = vector.load %arg4[%c0_6, %c0_7] : memref<1x1xf32, #tpu.memory_space<vmem>>, vector<1x1xf32>
    %9 = vector.broadcast %8 : vector<1x1xf32> to vector<8x3xf32>
    %10 = arith.mulf %9, %5 : vector<8x3xf32>
    %11 = arith.select %7, %5, %10 : vector<8x3xi1>, vector<8x3xf32>
    %c0_8 = arith.constant 0 : index
    %c0_9 = arith.constant 0 : index
    %12 = vector.load %arg5[%c0_8, %c0_9] : memref<8x3xf32, #tpu.memory_space<vmem>>, vector<8x3xf32>
    tpu.vector_store %arg5[%c0_8, %c0_9], %11 {strides = array<i32>} : memref<8x3xf32, #tpu.memory_space<vmem>>, vector<8x3xf32>,
    return
  }
  func.func @transform_0(%arg0: i32) -> (i32, i32) {
    %c0_i32 = arith.constant 0 : i32
    %c0_i32_0 = arith.constant 0 : i32
    return %arg0, %c0_i32 : i32, i32
  }
  func.func @transform_1(%arg0: i32) -> (i32, i32) {
    %c0_i32 = arith.constant 0 : i32
    %c0_i32_0 = arith.constant 0 : i32
    %c0_i32_1 = arith.constant 0 : i32
    return %c0_i32, %c0_i32_0 : i32, i32
  }
  func.func @transform_2(%arg0: i32) -> (i32, i32) {
    %c0_i32 = arith.constant 0 : i32
    %c0_i32_0 = arith.constant 0 : i32
    %c0_i32_1 = arith.constant 0 : i32
    return %c0_i32, %c0_i32_0 : i32, i32
  }
  func.func @transform_3(%arg0: i32) -> (i32, i32) {
    %c0_i32 = arith.constant 0 : i32
    %c0_i32_0 = arith.constant 0 : i32
    %c0_i32_1 = arith.constant 0 : i32
    return %c0_i32, %c0_i32_0 : i32, i32
  }
  func.func @transform_4(%arg0: i32) -> (i32, i32) {
    %c0_i32 = arith.constant 0 : i32
    %c0_i32_0 = arith.constant 0 : i32
    return %arg0, %c0_i32 : i32, i32
  }
}

</mosaic_0001>

<bundles_post_ra>
// kernel: oles_forward.5
= control target key start
LH: loop header
LB: loop body
LE: loop exit
PB: predicated region body
PF: predicated region fallthrough
CT: control target
= control target key end

     0   :  { %s1381_s12 = smov 0   ;;  %s1905_s0 = inlined_call_operand.vmem [shape: bf16[6400,147], index: 0, kind: input, shape index: {}]   ;;  %s1906_s1 = inlined_call_operand.vmem [shape: bf16[147,32], index: 1, kind: input, shape index: {}]   ;;  %s1907_s2 = inlined_call_operand.vmem [shape: f32[1,32], index: 2, kind: input, shape index: {}]   ;;  %s1908_s3 = inlined_call_operand.vmem [shape: f32[6400,32], index: 3, kind: output, shape index: {}]  }
   0x1 LB: > { %s1063_s13 = sadd.s32 4294967295, %s1357_s12   ;;  %p1067_p0 = scmp.ge.s32.totalorder %s1357_s12, 1  ;;  %s1357_s12 = sphi %s1381_s12, %s13_s12  }
   0x2   : > { %p139_p1 = scmp.lt.s32.totalorder %s1357_s12, 26 }
   0x4   : > { %p140_p2 = pnand %p1067_p0, %p139_p1 }
   0x5   : > { %v1165_v0 = vld [vmem:[%s1906_s1] sm:$0xff] (!%p140_p2)   ;;  %v1359_v1 = vmov (!%p140_p2), 0   ;;  %v1166_v2 = vld [vmem:[%s1906_s1 + $0x8] sm:$0xff] (!%p140_p2)   ;;  %v1167_v3 = vld [vmem:[%s1906_s1 + $0x10] sm:$0xff] (!%p140_p2)   ;;  %s1068_s20 = sshll.u32 (!%p140_p2), %s1063_s13, 5  ;;  %vm437_vm0 = vcmask (!%p140_p2), 154624  }
   0x6   : > { %143 = sbr.rel (%p140_p2) target bundleno = 372 (0x174), region = 32  ;;  %493 = vmatprep.subr.bf16.mxu0 (!%p140_p2), %v1359_v1  ;;  %1135 = vmatprep.subr.bf16.mxu1 (!%p140_p2), %v1359_v1  ;;  %p165_p3 = scmp.lt.s32.totalorder (!%p140_p2), %s1068_s20, 799  ;;  %v1168_v4 = vld [vmem:[%s1906_s1 + $0x18] sm:$0xff] (!%p140_p2)   ;;  %v1169_v5 = vld [vmem:[%s1906_s1 + $0x20] sm:$0xff] (!%p140_p2)   ;;  %v1170_v8 = vld [vmem:[%s1906_s1 + $0x28] sm:$0xff] (!%p140_p2)   ;;  %vm486_vm1 = vcmask (!%p140_p2), 1040384  }
   0x7   : > { %494 = vmatpush1.bf16.msra.mxu0 (!%p140_p2), %v1165_v0  ;;  %1145 = vmatpush1.bf16.msra.mxu1 (!%p140_p2), %v1165_v0  ;;  %v1171_v9 = vld [vmem:[%s1906_s1 + $0x30] sm:$0xff] (!%p140_p2)   ;;  %v1172_v10 = vld [vmem:[%s1906_s1 + $0x38] sm:$0xff] (!%p140_p2)   ;;  %vm487_vm2 = vcmask (!%p140_p2), 1041408   ;;  %v1360_v11 = vmov (!%p140_p2), 65535   ;;  %v1173_v13 = vld [vmem:[%s1906_s1 + $0x40] sm:$0xff] (!%p140_p2)   ;;  %vm974_vm4 = vcmask (!%p140_p2), 261120  }
   0x8   : > { %495 = vmatprep.subr.bf16.mxu0 (!%p140_p2), %v1359_v1  ;;  %1136 = vmatprep.subr.bf16.mxu1 (!%p140_p2), %v1359_v1  ;;  %v488_v12 = vsel (!%p140_p2), %vm486_vm1, 4294967295, %v1360_v11  ;;  %v1174_v14 = vld [vmem:[%s1906_s1 + $0x48] ss:$0 sps:$4 sm:$0x33] (!%p140_p2)   ;;  %v1480_v47 = vld [vmem:[%s1907_s2] ss:$0 sm:$0xff] (!%p140_p2) }
   0x9   : > { %v489_v15 = vsel (!%p140_p2), %vm487_vm2, %v488_v12, 0 }
   0xa   : > { %v491_v16 = vand.u32 (!%p140_p2), %v1174_v14, %v489_v15 }
   0xb   : > { %496 = vmatpush1.bf16.msra.mxu0 (!%p140_p2), %v1166_v2  ;;  %1146 = vmatpush1.bf16.msra.mxu1 (!%p140_p2), %v1166_v2 }
   0xc   : > { %497 = vmatprep.subr.bf16.mxu0 (!%p140_p2), %v1359_v1  ;;  %1137 = vmatprep.subr.bf16.mxu1 (!%p140_p2), %v1359_v1 }
   0xd   : > { %s1910_s20 = smov (!%p165_p3, %s1068_s20), 799 }
   0xe   : > { %s1134_s23 = sshll.u32 %s1910_s20, 3 }
   0xf   : > { %498 = vmatpush1.bf16.msra.mxu0 %v1167_v3  ;;  %1147 = vmatpush1.bf16.msra.mxu1 %v1167_v3  ;;  %s1409_s26 = scalar_lea.vmem %s1905_s0, %s1134_s23  ;;  %s1585_s17 = scalar_lea.vmem %s1908_s3, %s1134_s23 }
  0x10   : > { %499 = vmatprep.subr.bf16.mxu0 %v1359_v1  ;;  %1138 = vmatprep.subr.bf16.mxu1 %v1359_v1  ;;  %v1177_v6 = vld [vmem:[%s1409_s26 + $0x4] ss:$8 sps:$4 sm:$0xff]   ;;  %v1175_v17 = vld [vmem:[%s1409_s26] ss:$8 sps:$4 sm:$0xff]   ;;  %v1181_v19 = vld [vmem:[%s1409_s26 + $0x14] ss:$8 sps:$4 sm:$0xff]  }
  0x11   : > { %v1180_v7 = vld [vmem:[%s1409_s26 + $0x84] ss:$8 sps:$4 sm:$0xff]   ;;  %1116 = vmatprep.mubr.msk.bf16.mxu0 %vm437_vm0, %v1177_v6  ;;  %v1178_v18 = vld [vmem:[%s1409_s26 + $0x80] ss:$8 sps:$4 sm:$0xff]   ;;  %v1183_v20 = vld [vmem:[%s1409_s26 + $0x94] ss:$8 sps:$4 sm:$0xff]  }
  0x12   : > { %1124 = vmatprep.mubr.msk.bf16.mxu1 %vm437_vm0, %v1180_v7  ;;  %v1185_v21 = vld [vmem:[%s1409_s26 + $0x10] ss:$8 sps:$4 sm:$0xff]   ;;  %v1187_v23 = vld [vmem:[%s1409_s26 + $0x24] ss:$8 sps:$4 sm:$0xff]   ;;  %v1191_v25 = vld [vmem:[%s1409_s26 + $0x20] ss:$8 sps:$4 sm:$0xff]  }
  0x13   : > { %500 = vmatpush1.bf16.msra.mxu0 %v1168_v4  ;;  %1148 = vmatpush1.bf16.msra.mxu1 %v1168_v4  ;;  %v1186_v22 = vld [vmem:[%s1409_s26 + $0x90] ss:$8 sps:$4 sm:$0xff]   ;;  %v1189_v24 = vld [vmem:[%s1409_s26 + $0xa4] ss:$8 sps:$4 sm:$0xff]   ;;  %v1192_v26 = vld [vmem:[%s1409_s26 + $0xa0] ss:$8 sps:$4 sm:$0xff]  }
  0x14   : > { %501 = vmatprep.subr.bf16.mxu0 %v1359_v1  ;;  %1139 = vmatprep.subr.bf16.mxu1 %v1359_v1  ;;  %v1193_v27 = vld [vmem:[%s1409_s26 + $0x34] ss:$8 sps:$4 sm:$0xff]   ;;  %v1197_v29 = vld [vmem:[%s1409_s26 + $0x30] ss:$8 sps:$4 sm:$0xff]   ;;  %v1199_v31 = vld [vmem:[%s1409_s26 + $0x44] ss:$8 sps:$4 sm:$0xff]  }
  0x15   : > { %v1195_v28 = vld [vmem:[%s1409_s26 + $0xb4] ss:$8 sps:$4 sm:$0xff]   ;;  %v1198_v30 = vld [vmem:[%s1409_s26 + $0xb0] ss:$8 sps:$4 sm:$0xff]   ;;  %v1201_v32 = vld [vmem:[%s1409_s26 + $0xc4] ss:$8 sps:$4 sm:$0xff]  }
  0x16   : > { %v1203_v33 = vld [vmem:[%s1409_s26 + $0x40] ss:$8 sps:$4 sm:$0xff]   ;;  %v1205_v35 = vld [vmem:[%s1409_s26 + $0x54] ss:$8 sps:$4 sm:$0xff]   ;;  %v1209_v37 = vld [vmem:[%s1409_s26 + $0x50] ss:$8 sps:$4 sm:$0xff]  }
  0x17   : > { %502 = vmatpush1.bf16.msra.mxu0 %v1169_v5  ;;  %1149 = vmatpush1.bf16.msra.mxu1 %v1169_v5  ;;  %v1204_v34 = vld [vmem:[%s1409_s26 + $0xc0] ss:$8 sps:$4 sm:$0xff]   ;;  %v1207_v36 = vld [vmem:[%s1409_s26 + $0xd4] ss:$8 sps:$4 sm:$0xff]   ;;  %v1210_v38 = vld [vmem:[%s1409_s26 + $0xd0] ss:$8 sps:$4 sm:$0xff]  }
  0x18   : > { %503 = vmatprep.subr.bf16.mxu0 %v1359_v1  ;;  %1140 = vmatprep.subr.bf16.mxu1 %v1359_v1  ;;  %v1211_v39 = vld [vmem:[%s1409_s26 + $0x64] ss:$8 sps:$4 sm:$0xff]   ;;  %v1215_v41 = vld [vmem:[%s1409_s26 + $0x60] ss:$8 sps:$4 sm:$0xff]   ;;  %v1217_v43 = vld [vmem:[%s1409_s26 + $0x74] ss:$8 sps:$4 sm:$0xff]  }
  0x19   : > { %v1213_v40 = vld [vmem:[%s1409_s26 + $0xe4] ss:$8 sps:$4 sm:$0xff]   ;;  %v1216_v42 = vld [vmem:[%s1409_s26 + $0xe0] ss:$8 sps:$4 sm:$0xff]   ;;  %v1219_v44 = vld [vmem:[%s1409_s26 + $0xf4] ss:$8 sps:$4 sm:$0xff]  }
  0x1a   : > { %v1221_v45 = vld [vmem:[%s1409_s26 + $0x70] ss:$8 sps:$4 sm:$0xff]  }
  0x1b   : > { %504 = vmatpush1.bf16.msra.mxu0 %v1170_v8  ;;  %1150 = vmatpush1.bf16.msra.mxu1 %v1170_v8  ;;  %v1222_v46 = vld [vmem:[%s1409_s26 + $0xf0] ss:$8 sps:$4 sm:$0xff]  }
  0x1c   : > { %505 = vmatprep.subr.bf16.mxu0 %v1359_v1  ;;  %1141 = vmatprep.subr.bf16.mxu1 %v1359_v1 }
  0x1f   : > { %506 = vmatpush1.bf16.msra.mxu0 %v1171_v9  ;;  %1151 = vmatpush1.bf16.msra.mxu1 %v1171_v9 }
  0x20   : > { %507 = vmatprep.subr.bf16.mxu0 %v1359_v1  ;;  %1142 = vmatprep.subr.bf16.mxu1 %v1359_v1 }
  0x23   : > { %508 = vmatpush1.bf16.msra.mxu0 %v1172_v10  ;;  %1152 = vmatpush1.bf16.msra.mxu1 %v1172_v10 }
  0x24   : > { %509 = vmatprep.subr.bf16.mxu0 %v1359_v1  ;;  %1143 = vmatprep.subr.bf16.mxu1 %v1359_v1 }
  0x27   : > { %510 = vmatpush1.bf16.msra.mxu0 %v1173_v13  ;;  %1153 = vmatpush1.bf16.msra.mxu1 %v1173_v13 }
  0x28   : > { %511 = vmatprep.subr.bf16.mxu0 %v1359_v1  ;;  %1144 = vmatprep.subr.bf16.mxu1 %v1359_v1 }
  0x2b   : > { %512 = vmatpush1.bf16.msra.mxu0 %v491_v16  ;;  %1154 = vmatpush1.bf16.msra.mxu1 %v491_v16 }
  0x2e   : > { %526 = vmatmul.mubr.bf16.vlgmr.msra.gmra.mrb[0].mxu0 %v1175_v17  ;;  %590 = vmatmul.mubr.bf16.vlgmr.msra.gmra.mrb[0].mxu1 %v1178_v18 }
  0x2f   : > { %1117 = vmatprep.mubr.msk.bf16.mxu0 %vm437_vm0, %v1181_v19  ;;  %1125 = vmatprep.mubr.msk.bf16.mxu1 %vm437_vm0, %v1183_v20 }
  0x36   : > { %534 = vmatmul.mubr.bf16.gmra.mrb[4].mxu0 %v1185_v21  ;;  %598 = vmatmul.mubr.bf16.gmra.mrb[4].mxu1 %v1186_v22 }
  0x37   : > { %1118 = vmatprep.mubr.msk.bf16.mxu0 %vm437_vm0, %v1187_v23  ;;  %1126 = vmatprep.mubr.msk.bf16.mxu1 %vm437_vm0, %v1189_v24 }
  0x3e   : > { %542 = vmatmul.mubr.bf16.gmra.mrb[8].mxu0 %v1191_v25  ;;  %606 = vmatmul.mubr.bf16.gmra.mrb[8].mxu1 %v1192_v26 }
  0x3f   : > { %1119 = vmatprep.mubr.msk.bf16.mxu0 %vm437_vm0, %v1193_v27  ;;  %1127 = vmatprep.mubr.msk.bf16.mxu1 %vm437_vm0, %v1195_v28 }
  0x46   : > { %550 = vmatmul.mubr.bf16.gmra.mrb[12].mxu0 %v1197_v29  ;;  %614 = vmatmul.mubr.bf16.gmra.mrb[12].mxu1 %v1198_v30 }
  0x47   : > { %1120 = vmatprep.mubr.msk.bf16.mxu0 %vm437_vm0, %v1199_v31  ;;  %1128 = vmatprep.mubr.msk.bf16.mxu1 %vm437_vm0, %v1201_v32 }
  0x4e   : > { %558 = vmatmul.mubr.bf16.gmra.mrb[16].mxu0 %v1203_v33  ;;  %622 = vmatmul.mubr.bf16.gmra.mrb[16].mxu1 %v1204_v34 }
  0x4f   : > { %1121 = vmatprep.mubr.msk.bf16.mxu0 %vm437_vm0, %v1205_v35  ;;  %1129 = vmatprep.mubr.msk.bf16.mxu1 %vm437_vm0, %v1207_v36 }
  0x56   : > { %566 = vmatmul.mubr.bf16.gmra.mrb[20].mxu0 %v1209_v37  ;;  %630 = vmatmul.mubr.bf16.gmra.mrb[20].mxu1 %v1210_v38 }
  0x57   : > { %1122 = vmatprep.mubr.msk.bf16.mxu0 %vm437_vm0, %v1211_v39  ;;  %1130 = vmatprep.mubr.msk.bf16.mxu1 %vm437_vm0, %v1213_v40 }
  0x5e   : > { %574 = vmatmul.mubr.bf16.gmra.mrb[24].mxu0 %v1215_v41  ;;  %638 = vmatmul.mubr.bf16.gmra.mrb[24].mxu1 %v1216_v42 }
  0x5f   : > { %1123 = vmatprep.mubr.msk.bf16.mxu0 %vm437_vm0, %v1217_v43  ;;  %1131 = vmatprep.mubr.msk.bf16.mxu1 %vm437_vm0, %v1219_v44 }
  0x66   : > { %582 = vmatmul.mubr.bf16.gmra.mrb[28].mxu0 %v1221_v45  ;;  %646 = vmatmul.mubr.bf16.gmra.mrb[28].mxu1 %v1222_v46 }
 0x101   : > { %v527_v48 = vpop.f32.mrb[0].mxu0  ;;  %v591_v49 = vpop.f32.mrb[0].mxu1 }
 0x102   : > { %v1483_v50 = vadd.f32 %v1480_v47, %v527_v48  ;;  %v1486_v51 = vadd.f32 %v1480_v47, %v591_v49  ;;  %v529_v52 = vpop.f32.mrb[1].mxu0  ;;  %v593_v53 = vpop.f32.mrb[1].mxu1 }
 0x103   : > { %v530_v54 = vpop.f32.mrb[2].mxu0  ;;  %v594_v55 = vpop.f32.mrb[2].mxu1 }
 0x104   : > { %v654_v56 = vand.u32 2147483647, %v1483_v50  ;;  %v670_v57 = vand.u32 2147483647, %v1486_v51  ;;  %v1491_v58 = vadd.f32 %v1480_v47, %v530_v54  ;;  %v1494_v59 = vadd.f32 %v1480_v47, %v594_v55  ;;  %v532_v60 = vpop.f32.mrb[3].mxu0  ;;  %v596_v61 = vpop.f32.mrb[3].mxu1 }
 0x105   : > { %vm846_vm3 = vcmp.ge.f32.partialorder %v1483_v50, 0.0  ;;  %vm862_vm5 = vcmp.ge.f32.partialorder %v1486_v51, 0.0 }
 0x106   : > { %v686_v62 = vsub.f32 0.0, %v654_v56  ;;  %v702_v63 = vsub.f32 0.0, %v670_v57  ;;  %v655_v0 = vand.u32 2147483647, %v1491_v58  ;;  %v671_v1 = vand.u32 2147483647, %v1494_v59 }
 0x107   : > { %vm847_vm6 = vcmp.ge.f32.partialorder %v1491_v58, 0.0  ;;  %vm863_vm7 = vcmp.ge.f32.partialorder %v1494_v59, 0.0 }
 0x108   : > { %v718_v2 = vmul.f32 1.442695, %v686_v62  ;;  %v750_v3 = vmul.f32 1.442695, %v702_v63  ;;  %v687_v4 = vsub.f32 0.0, %v655_v0  ;;  %v703_v5 = vsub.f32 0.0, %v671_v1 }
 0x109   : > { %v535_v6 = vpop.f32.mrb[4].mxu0  ;;  %v599_v7 = vpop.f32.mrb[4].mxu1 }
 0x10a   : > { %1223 = vpow2.f32 %v718_v2  ;;  %v1499_v8 = vadd.f32 %v1480_v47, %v535_v6  ;;  %v1502_v9 = vadd.f32 %v1480_v47, %v599_v7  ;;  %v537_v10 = vpop.f32.mrb[5].mxu0  ;;  %v601_v11 = vpop.f32.mrb[5].mxu1  ;;  %v720_v12 = vmul.f32 1.442695, %v687_v4 }
 0x10b   : > { %1225 = vpow2.f32 %v750_v3  ;;  %v752_v13 = vmul.f32 1.442695, %v703_v5  ;;  %v538_v14 = vpop.f32.mrb[6].mxu0  ;;  %v602_v15 = vpop.f32.mrb[6].mxu1 }
 0x10c   : > { %v656_v16 = vand.u32 2147483647, %v1499_v8  ;;  %v672_v17 = vand.u32 2147483647, %v1502_v9  ;;  %1227 = vpow2.f32 %v720_v12  ;;  %v1507_v18 = vadd.f32 %v1480_v47, %v538_v14  ;;  %v540_v20 = vpop.f32.mrb[7].mxu0  ;;  %v604_v21 = vpop.f32.mrb[7].mxu1 }
 0x10d   : > { %v1510_v19 = vadd.f32 %v1480_v47, %v602_v15  ;;  %1229 = vpow2.f32 %v752_v13  ;;  %vm848_vm8 = vcmp.ge.f32.partialorder %v1499_v8, 0.0  ;;  %vm864_vm9 = vcmp.ge.f32.partialorder %v1502_v9, 0.0 }
 0x10e   : > { %v688_v22 = vsub.f32 0.0, %v656_v16  ;;  %v704_v23 = vsub.f32 0.0, %v672_v17  ;;  %v657_v24 = vand.u32 2147483647, %v1507_v18  ;;  %vm849_vm10 = vcmp.ge.f32.partialorder %v1507_v18, 0.0 }
 0x10f   : > { %v673_v25 = vand.u32 2147483647, %v1510_v19  ;;  %vm865_vm11 = vcmp.ge.f32.partialorder %v1510_v19, 0.0 }
 0x110   : > { %v722_v26 = vmul.f32 1.442695, %v688_v22  ;;  %v754_v27 = vmul.f32 1.442695, %v704_v23  ;;  %v689_v28 = vsub.f32 0.0, %v657_v24 }
 0x111   : > { %v705_v29 = vsub.f32 0.0, %v673_v25  ;;  %v543_v30 = vpop.f32.mrb[8].mxu0  ;;  %v607_v31 = vpop.f32.mrb[8].mxu1 }
 0x112   : > { %1231 = vpow2.f32 %v722_v26  ;;  %v1515_v32 = vadd.f32 %v1480_v47, %v543_v30  ;;  %v1518_v33 = vadd.f32 %v1480_v47, %v607_v31  ;;  %v545_v34 = vpop.f32.mrb[9].mxu0  ;;  %v609_v35 = vpop.f32.mrb[9].mxu1  ;;  %v724_v36 = vmul.f32 1.442695, %v689_v28 }
 0x113   : > { %1233 = vpow2.f32 %v754_v27  ;;  %v756_v37 = vmul.f32 1.442695, %v705_v29  ;;  %v546_v38 = vpop.f32.mrb[10].mxu0  ;;  %v610_v39 = vpop.f32.mrb[10].mxu1 }
 0x114   : > { %v1520_v40 = vpop.eup %1223  ;;  %v658_v41 = vand.u32 2147483647, %v1515_v32  ;;  %v674_v42 = vand.u32 2147483647, %v1518_v33  ;;  %1235 = vpow2.f32 %v724_v36  ;;  %v1528_v45 = vadd.f32 %v1480_v47, %v546_v38  ;;  %v548_v48 = vpop.f32.mrb[11].mxu0 }
 0x115   : > { %v1524_v43 = vpop.eup %1225  ;;  %v782_v44 = vadd.f32 1.0, %v1520_v40  ;;  %v1531_v46 = vadd.f32 %v1480_v47, %v610_v39  ;;  %v612_v49 = vpop.f32.mrb[11].mxu1  ;;  %1237 = vpow2.f32 %v756_v37  ;;  %vm850_vm12 = vcmp.ge.f32.partialorder %v1515_v32, 0.0 }
 0x116   : > { %v798_v52 = vadd.f32 1.0, %v1524_v43  ;;  %v690_v53 = vsub.f32 0.0, %v658_v41  ;;  %v706_v54 = vsub.f32 0.0, %v674_v42  ;;  %v1534_v55 = vpop.eup %1227  ;;  %v659_v56 = vand.u32 2147483647, %v1528_v45 }
 0x117   : > { %1239 = vrcp.f32 %v782_v44  ;;  %v675_v57 = vand.u32 2147483647, %v1531_v46  ;;  %v1538_v60 = vpop.eup %1229  ;;  %v783_v61 = vadd.f32 1.0, %v1534_v55  ;;  %vm866_vm13 = vcmp.ge.f32.partialorder %v1518_v33, 0.0 }
 0x118   : > { %1241 = vrcp.f32 %v798_v52  ;;  %v726_v62 = vmul.f32 1.442695, %v690_v53  ;;  %v758_v63 = vmul.f32 1.442695, %v706_v54  ;;  %v799_v0 = vadd.f32 1.0, %v1538_v60 }
 0x119   : > { %v691_v1 = vsub.f32 0.0, %v659_v56  ;;  %v707_v2 = vsub.f32 0.0, %v675_v57  ;;  %v551_v3 = vpop.f32.mrb[12].mxu0  ;;  %v615_v4 = vpop.f32.mrb[12].mxu1  ;;  %1243 = vrcp.f32 %v783_v61  ;;  %vm851_vm14 = vcmp.ge.f32.partialorder %v1528_v45, 0.0 }
 0x11a   : > { %v1543_v5 = vadd.f32 %v1480_v47, %v551_v3  ;;  %v1546_v6 = vadd.f32 %v1480_v47, %v615_v4  ;;  %v553_v7 = vpop.f32.mrb[13].mxu0  ;;  %v617_v10 = vpop.f32.mrb[13].mxu1  ;;  %1245 = vrcp.f32 %v799_v0  ;;  %vm867_vm15 = vcmp.ge.f32.partialorder %v1531_v46, 0.0 }
 0x11b   : > { %v728_v11 = vmul.f32 1.442695, %v691_v1  ;;  %v554_v12 = vpop.f32.mrb[14].mxu0  ;;  %v618_v13 = vpop.f32.mrb[14].mxu1  ;;  %1247 = vpow2.f32 %v726_v62  ;;  %v760_v22 = vmul.f32 1.442695, %v707_v2 }
 0x11c   : > { %v1549_v14 = vpop.eup %1231  ;;  %v660_v15 = vand.u32 2147483647, %v1543_v5  ;;  %v676_v16 = vand.u32 2147483647, %v1546_v6  ;;  %v556_v17 = vpop.f32.mrb[15].mxu0  ;;  %1249 = vpow2.f32 %v758_v63  ;;  %v1558_v23 = vadd.f32 %v1480_v47, %v554_v12 }
 0x11d   : > { %v1554_v20 = vpop.eup %1233  ;;  %v784_v21 = vadd.f32 1.0, %v1549_v14  ;;  %v620_v24 = vpop.f32.mrb[15].mxu1  ;;  %1251 = vpow2.f32 %v728_v11  ;;  %v1566_v30 = vadd.f32 %v1480_v47, %v618_v13  ;;  %vm852_vm0 = vcmp.ge.f32.partialorder %v1543_v5, 0.0 }
 0x11e   : > { %v800_v25 = vadd.f32 1.0, %v1554_v20  ;;  %v692_v26 = vsub.f32 0.0, %v660_v15  ;;  %v708_v27 = vsub.f32 0.0, %v676_v16  ;;  %v1561_v28 = vpop.eup %1235  ;;  %v661_v29 = vand.u32 2147483647, %v1558_v23 }
 0x11f   : > { %1253 = vrcp.f32 %v784_v21  ;;  %v1568_v31 = vpop.eup %1237  ;;  %v785_v34 = vadd.f32 1.0, %v1561_v28  ;;  %v677_v41 = vand.u32 2147483647, %v1566_v30  ;;  %vm868_vm1 = vcmp.ge.f32.partialorder %v1546_v6, 0.0 }
 0x120   : > { %1255 = vrcp.f32 %v800_v25  ;;  %v730_v35 = vmul.f32 1.442695, %v692_v26  ;;  %v762_v36 = vmul.f32 1.442695, %v708_v27  ;;  %v801_v38 = vadd.f32 1.0, %v1568_v31 }
 0x121   : > { %v1240_v37 = vpop.eup %1239  ;;  %1257 = vpow2.f32 %v760_v22  ;;  %v693_v39 = vsub.f32 0.0, %v661_v29  ;;  %v559_v42 = vpop.f32.mrb[16].mxu0  ;;  %v709_v61 = vsub.f32 0.0, %v677_v41  ;;  %vm853_vm2 = vcmp.ge.f32.partialorder %v1558_v23, 0.0 }
 0x122   : > { %v623_v44 = vpop.f32.mrb[16].mxu1  ;;  %v1242_v48 = vpop.eup %1241  ;;  %v878_v49 = vmul.f32 %v1240_v37, %v1520_v40  ;;  %1259 = vrcp.f32 %v785_v34  ;;  %v1576_v52 = vadd.f32 %v1480_v47, %v559_v42 }
 0x123   : > { %v561_v53 = vpop.f32.mrb[17].mxu0  ;;  %v625_v54 = vpop.f32.mrb[17].mxu1  ;;  %v894_v56 = vmul.f32 %v1242_v48, %v1524_v43  ;;  %1261 = vrcp.f32 %v801_v38  ;;  %v732_v57 = vmul.f32 1.442695, %v693_v39  ;;  %v764_v15 = vmul.f32 1.442695, %v709_v61 }
 0x124   : > { %v562_v62 = vpop.f32.mrb[18].mxu0  ;;  %v626_v63 = vpop.f32.mrb[18].mxu1  ;;  %v910_v40 = vsel %vm846_vm3, %v1240_v37, %v878_v49  ;;  %1263 = vpow2.f32 %v730_v35  ;;  %v662_v43 = vand.u32 2147483647, %v1576_v52  ;;  %v1608_v21 = vadd.f32 %v1480_v47, %v623_v44 }
 0x125   : > { %v1244_v0 = vpop.eup %1243  ;;  %v564_v1 = vpop.f32.mrb[19].mxu0  ;;  %v942_v4 = vmul.f32 %v910_v40, %v1483_v50  ;;  %v926_v7 = vsel %vm862_vm5, %v1242_v48, %v894_v56  ;;  %1265 = vpow2.f32 %v762_v36  ;;  %v1633_v42 = vadd.f32 %v1480_v47, %v562_v62 }
 0x126   : > { %v628_v2 = vpop.f32.mrb[19].mxu1  ;;  %v1246_v3 = vpop.eup %1245  ;;  %v879_v10 = vmul.f32 %v1244_v0, %v1534_v55  ;;  %v958_v12 = vmul.f32 %v926_v7, %v1486_v51  ;;  %1267 = vpow2.f32 %v732_v57  ;;  %v694_v17 = vsub.f32 0.0, %v662_v43 }
 0x127   : > { %v1595_v11 = vpop.eup %1247  ;;  %v895_v13 = vmul.f32 %v1246_v3, %v1538_v60  ;;  %975 = vst.msk [vmem:[%s1585_s17] sm:$0xff] %vm974_vm4, %v942_v4  ;;  %1269 = vpow2.f32 %v764_v15  ;;  %v678_v37 = vand.u32 2147483647, %v1608_v21  ;;  %v1636_v44 = vadd.f32 %v1480_v47, %v626_v63 }
 0x128   : > { %v1600_v16 = vpop.eup %1249  ;;  %v911_v50 = vsel %vm847_vm6, %v1244_v0, %v879_v10  ;;  %v786_v55 = vadd.f32 1.0, %v1595_v11  ;;  %991 = vst.msk [vmem:[%s1585_s17 + $0x80] sm:$0xff] %vm974_vm4, %v958_v12  ;;  %v734_v29 = vmul.f32 1.442695, %v694_v17  ;;  %v663_v40 = vand.u32 2147483647, %v1633_v42 }
 0x129   : > { %v1610_v51 = vpop.eup %1251  ;;  %v943_v60 = vmul.f32 %v911_v50, %v1491_v58  ;;  %v927_v22 = vsel %vm863_vm7, %v1246_v3, %v895_v13  ;;  %v802_v24 = vadd.f32 1.0, %v1600_v16  ;;  %v567_v34 = vpop.f32.mrb[20].mxu0  ;;  %vm869_vm3 = vcmp.ge.f32.partialorder %v1566_v30, 0.0 }
 0x12a   : > { %v1254_v25 = vpop.eup %1253  ;;  %v959_v26 = vmul.f32 %v927_v22, %v1494_v59  ;;  %1271 = vrcp.f32 %v786_v55  ;;  %v787_v27 = vadd.f32 1.0, %v1610_v51  ;;  %v1620_v35 = vpop.f32.mrb[20].mxu1  ;;  %v695_v7 = vsub.f32 0.0, %v663_v40 }
 0x12b   : > { %v1256_v36 = vpop.eup %1255  ;;  %976 = vst.msk [vmem:[%s1585_s17 + $0x8] sm:$0xff] %vm974_vm4, %v943_v60  ;;  %v880_v58 = vmul.f32 %v1254_v25, %v1549_v14  ;;  %1273 = vrcp.f32 %v802_v24  ;;  %v569_v38 = vpop.f32.mrb[21].mxu0  ;;  %v1684_v22 = vadd.f32 %v1480_v47, %v567_v34  ;;  %vm854_vm5 = vcmp.ge.f32.partialorder %v1576_v52, 0.0 }
 0x12c   : > { %v633_v39 = vpop.f32.mrb[21].mxu1  ;;  %v1627_v59 = vpop.eup %1257  ;;  %992 = vst.msk [vmem:[%s1585_s17 + $0x88] sm:$0xff] %vm974_vm4, %v959_v26  ;;  %v896_v41 = vmul.f32 %v1256_v36, %v1554_v20  ;;  %1275 = vrcp.f32 %v787_v27  ;;  %v710_v20 = vsub.f32 0.0, %v678_v37  ;;  %v736_v50 = vmul.f32 1.442695, %v695_v7 }
 0x12d   : > { %v1638_v14 = vpop.f32.mrb[22].mxu0  ;;  %v1640_v48 = vpop.f32.mrb[22].mxu1  ;;  %v912_v53 = vsel %vm848_vm8, %v1254_v25, %v880_v58  ;;  %v803_v54 = vadd.f32 1.0, %v1627_v59  ;;  %1277 = vpow2.f32 %v734_v29  ;;  %v1692_v27 = vadd.f32 %v1480_v47, %v1620_v35 }
 0x12e   : > { %v1260_v49 = vpop.eup %1259  ;;  %v572_v56 = vpop.f32.mrb[23].mxu0  ;;  %v944_v62 = vmul.f32 %v912_v53, %v1499_v8  ;;  %v928_v63 = vsel %vm864_vm9, %v1256_v36, %v896_v41  ;;  %v766_v3 = vmul.f32 1.442695, %v710_v20  ;;  %v664_v38 = vand.u32 2147483647, %v1684_v22 }
 0x12f   : > { %v636_v57 = vpop.f32.mrb[23].mxu1  ;;  %v1262_v61 = vpop.eup %1261  ;;  %v881_v0 = vmul.f32 %v1260_v49, %v1561_v28  ;;  %v960_v1 = vmul.f32 %v928_v63, %v1502_v9  ;;  %1279 = vrcp.f32 %v803_v54  ;;  %v680_v35 = vand.u32 2147483647, %v1692_v27 }
 0x130   : > { %v1651_v43 = vpop.eup %1263  ;;  %v897_v2 = vmul.f32 %v1262_v61, %v1568_v31  ;;  %977 = vst.msk [vmem:[%s1585_s17 + $0x10] sm:$0xff] %vm974_vm4, %v944_v62  ;;  %1281 = vpow2.f32 %v766_v3  ;;  %v1705_v54 = vadd.f32 %v1480_v47, %v1638_v14  ;;  %vm870_vm6 = vcmp.ge.f32.partialorder %v1608_v21, 0.0 }
 0x131   : > { %v1655_v4 = vpop.eup %1265  ;;  %v913_v8 = vsel %vm849_vm10, %v1260_v49, %v881_v0  ;;  %v788_v28 = vadd.f32 1.0, %v1651_v43  ;;  %993 = vst.msk [vmem:[%s1585_s17 + $0x90] sm:$0xff] %vm974_vm4, %v960_v1  ;;  %v1673_v55 = vpop.f32.mrb[24].mxu0  ;;  %v712_v0 = vsub.f32 0.0, %v680_v35  ;;  %vm855_vm7 = vcmp.ge.f32.partialorder %v1633_v42, 0.0 }
 0x132   : > { %v1663_v10 = vpop.eup %1267  ;;  %v945_v9 = vmul.f32 %v913_v8, %v1507_v18  ;;  %v929_v31 = vsel %vm865_vm11, %v1262_v61, %v897_v2  ;;  %v804_v12 = vadd.f32 1.0, %v1655_v4  ;;  %v1675_v17 = vpop.f32.mrb[24].mxu1  ;;  %v679_v18 = vand.u32 2147483647, %v1636_v44 }
 0x133   : > { %v961_v13 = vmul.f32 %v929_v31, %v1510_v19  ;;  %1283 = vrcp.f32 %v788_v28  ;;  %v789_v15 = vadd.f32 1.0, %v1663_v10  ;;  %v1677_v60 = vpop.eup %1269  ;;  %v577_v19 = vpop.f32.mrb[25].mxu0  ;;  %v696_v61 = vsub.f32 0.0, %v664_v38 }
 0x134   : > { %978 = vst.msk [vmem:[%s1585_s17 + $0x18] sm:$0xff] %vm974_vm4, %v945_v9  ;;  %1285 = vrcp.f32 %v804_v12  ;;  %v641_v24 = vpop.f32.mrb[25].mxu1  ;;  %v1272_v25 = vpop.eup %1271  ;;  %v805_v26 = vadd.f32 1.0, %v1677_v60  ;;  %v711_v37 = vsub.f32 0.0, %v679_v18  ;;  %v770_v3 = vmul.f32 1.442695, %v712_v0 }
 0x135   : > { %994 = vst.msk [vmem:[%s1585_s17 + $0x98] sm:$0xff] %vm974_vm4, %v961_v13  ;;  %1287 = vrcp.f32 %v789_v15  ;;  %v1694_v29 = vpop.f32.mrb[26].mxu0  ;;  %v1696_v36 = vpop.f32.mrb[26].mxu1  ;;  %v882_v58 = vmul.f32 %v1272_v25, %v1595_v11  ;;  %v738_v2 = vmul.f32 1.442695, %v696_v61  ;;  %v1741_v13 = vadd.f32 %v1480_v47, %v1640_v48 }
 0x136   : > { %v1274_v34 = vpop.eup %1273  ;;  %1289 = vpow2.f32 %v736_v50  ;;  %v580_v39 = vpop.f32.mrb[27].mxu0  ;;  %v768_v57 = vmul.f32 1.442695, %v711_v37  ;;  %vm871_vm8 = vcmp.ge.f32.partialorder %v1636_v44, 0.0  ;;  %vm856_vm9 = vcmp.ge.f32.partialorder %v1684_v22, 0.0 }
 0x137   : > { %v644_v41 = vpop.f32.mrb[27].mxu1  ;;  %v1276_v49 = vpop.eup %1275  ;;  %v898_v53 = vmul.f32 %v1274_v34, %v1600_v16  ;;  %1291 = vrcp.f32 %v805_v26  ;;  %v914_v20 = vsel %vm850_vm12, %v1272_v25, %v882_v58  ;;  %v1751_v26 = vadd.f32 %v1480_v47, %v1673_v55 }
 0x138   : > { %v1707_v11 = vpop.eup %1277  ;;  %v883_v56 = vmul.f32 %v1276_v49, %v1610_v51  ;;  %v946_v16 = vmul.f32 %v914_v20, %v1515_v32  ;;  %1293 = vpow2.f32 %v768_v57  ;;  %v681_v38 = vand.u32 2147483647, %v1741_v13 }
 0x139   : > { %v930_v62 = vsel %vm866_vm13, %v1274_v34, %v898_v53  ;;  %v790_v63 = vadd.f32 1.0, %v1707_v11  ;;  %v1280_v14 = vpop.eup %1279  ;;  %v1723_v8 = vpop.f32.mrb[28].mxu0  ;;  %v666_v41 = vand.u32 2147483647, %v1751_v26  ;;  %vm872_vm10 = vcmp.ge.f32.partialorder %v1692_v27, 0.0 }
 0x13a   : > { %v962_v40 = vmul.f32 %v930_v62, %v1518_v33  ;;  %v915_v1 = vsel %vm851_vm14, %v1276_v49, %v883_v56  ;;  %979 = vst.msk [vmem:[%s1585_s17 + $0x20] sm:$0xff] %vm974_vm4, %v946_v16  ;;  %v899_v51 = vmul.f32 %v1280_v14, %v1627_v59  ;;  %v1725_v28 = vpop.f32.mrb[28].mxu1  ;;  %v1727_v7 = vpop.eup %1281  ;;  %v665_v33 = vand.u32 2147483647, %v1705_v54 }
 0x13b   : > { %v947_v32 = vmul.f32 %v915_v1, %v1528_v45  ;;  %1295 = vrcp.f32 %v790_v63  ;;  %v585_v45 = vpop.f32.mrb[29].mxu0  ;;  %v649_v9 = vpop.f32.mrb[29].mxu1  ;;  %v806_v12 = vadd.f32 1.0, %v1727_v7  ;;  %v713_v20 = vsub.f32 0.0, %v681_v38 }
 0x13c   : > { %995 = vst.msk [vmem:[%s1585_s17 + $0xa0] sm:$0xff] %vm974_vm4, %v962_v40  ;;  %1297 = vpow2.f32 %v738_v2  ;;  %v931_v31 = vsel %vm867_vm15, %v1280_v14, %v899_v51  ;;  %v1743_v15 = vpop.f32.mrb[30].mxu0  ;;  %v1745_v50 = vpop.f32.mrb[30].mxu1  ;;  %v697_v25 = vsub.f32 0.0, %v665_v33  ;;  %v698_v16 = vsub.f32 0.0, %v666_v41 }
 0x13d   : > { %v1284_v59 = vpop.eup %1283  ;;  %980 = vst.msk [vmem:[%s1585_s17 + $0x28] sm:$0xff] %vm974_vm4, %v947_v32  ;;  %1299 = vpow2.f32 %v770_v3  ;;  %v963_v19 = vmul.f32 %v931_v31, %v1531_v46  ;;  %v588_v34 = vpop.f32.mrb[31].mxu0  ;;  %v1783_v63 = vadd.f32 %v1480_v47, %v1675_v17  ;;  %vm857_vm11 = vcmp.ge.f32.partialorder %v1705_v54, 0.0 }
 0x13e   : > { %v1286_v18 = vpop.eup %1285  ;;  %v884_v24 = vmul.f32 %v1284_v59, %v1651_v43  ;;  %v652_v58 = vpop.f32.mrb[31].mxu1  ;;  %1301 = vrcp.f32 %v806_v12  ;;  %v740_v55 = vmul.f32 1.442695, %v697_v25  ;;  %v742_v40 = vmul.f32 1.442695, %v698_v16 }
 0x13f   : > { %v1288_v37 = vpop.eup %1287  ;;  %v900_v48 = vmul.f32 %v1286_v18, %v1655_v4  ;;  %996 = vst.msk [vmem:[%s1585_s17 + $0xa8] sm:$0xff] %vm974_vm4, %v963_v19  ;;  %v682_v17 = vand.u32 2147483647, %v1783_v63  ;;  %v1831_v58 = vadd.f32 %v1480_v47, %v1745_v50  ;;  %vm873_vm12 = vcmp.ge.f32.partialorder %v1741_v13, 0.0 }
 0x140   : > { %v1756_v39 = vpop.eup %1289  ;;  %v916_v46 = vsel %vm852_vm0, %v1284_v59, %v884_v24  ;;  %v885_v43 = vmul.f32 %v1288_v37, %v1663_v10  ;;  %1303 = vpow2.f32 %v740_v55  ;;  %v1817_v24 = vadd.f32 %v1480_v47, %v1723_v8 }
 0x141   : > { %v1292_v4 = vpop.eup %1291  ;;  %v948_v49 = vmul.f32 %v916_v46, %v1543_v5  ;;  %v932_v53 = vsel %vm868_vm1, %v1286_v18, %v900_v48  ;;  %v791_v35 = vadd.f32 1.0, %v1756_v39  ;;  %v772_v5 = vmul.f32 1.442695, %v713_v20 }
 0x142   : > { %v964_v56 = vmul.f32 %v932_v53, %v1546_v6  ;;  %v917_v57 = vsel %vm853_vm2, %v1288_v37, %v885_v43  ;;  %v901_v10 = vmul.f32 %v1292_v4, %v1677_v60  ;;  %v1775_v62 = vpop.eup %1293  ;;  %v1787_v60 = vadd.f32 %v1480_v47, %v1694_v29 }
 0x143   : > { %981 = vst.msk [vmem:[%s1585_s17 + $0x30] sm:$0xff] %vm974_vm4, %v948_v49  ;;  %v949_v61 = vmul.f32 %v917_v57, %v1558_v23  ;;  %1305 = vrcp.f32 %v791_v35  ;;  %v807_v14 = vadd.f32 1.0, %v1775_v62  ;;  %v1806_v29 = vadd.f32 %v1480_v47, %v1696_v36 }
 0x144   : > { %997 = vst.msk [vmem:[%s1585_s17 + $0xb0] sm:$0xff] %vm974_vm4, %v964_v56  ;;  %v933_v6 = vsel %vm869_vm3, %v1292_v4, %v901_v10  ;;  %1307 = vpow2.f32 %v772_v5  ;;  %v667_v32 = vand.u32 2147483647, %v1787_v60  ;;  %v714_v33 = vsub.f32 0.0, %v682_v17 }
 0x145   : > { %v1296_v23 = vpop.eup %1295  ;;  %982 = vst.msk [vmem:[%s1585_s17 + $0x38] sm:$0xff] %vm974_vm4, %v949_v61  ;;  %v965_v0 = vmul.f32 %v933_v6, %v1566_v30  ;;  %1309 = vrcp.f32 %v807_v14  ;;  %v683_v31 = vand.u32 2147483647, %v1806_v29  ;;  %v668_v46 = vand.u32 2147483647, %v1817_v24 }
 0x146   : > { %v1793_v1 = vpop.eup %1297  ;;  %v886_v2 = vmul.f32 %v1296_v23, %v1707_v11  ;;  %1311 = vpow2.f32 %v742_v40  ;;  %v699_v59 = vsub.f32 0.0, %v667_v32  ;;  %v774_v18 = vmul.f32 1.442695, %v714_v33 }
 0x147   : > { %v1798_v51 = vpop.eup %1299  ;;  %998 = vst.msk [vmem:[%s1585_s17 + $0xb8] sm:$0xff] %vm974_vm4, %v965_v0  ;;  %v792_v30 = vadd.f32 1.0, %v1793_v1  ;;  %v715_v19 = vsub.f32 0.0, %v683_v31  ;;  %v700_v50 = vsub.f32 0.0, %v668_v46  ;;  %v685_v53 = vand.u32 2147483647, %v1831_v58 }
 0x148   : > { %v918_v3 = vsel %vm854_vm5, %v1296_v23, %v886_v2  ;;  %v808_v11 = vadd.f32 1.0, %v1798_v51  ;;  %v1302_v45 = vpop.eup %1301  ;;  %v744_v36 = vmul.f32 1.442695, %v699_v59  ;;  %vm858_vm13 = vcmp.ge.f32.partialorder %v1751_v26, 0.0 }
 0x149   : > { %v950_v9 = vmul.f32 %v918_v3, %v1576_v52  ;;  %1313 = vrcp.f32 %v792_v30  ;;  %v902_v12 = vmul.f32 %v1302_v45, %v1727_v7  ;;  %v1821_v52 = vadd.f32 %v1480_v47, %v1725_v28 }
 0x14a   : > { %1315 = vrcp.f32 %v808_v11  ;;  %v1823_v25 = vpop.eup %1303  ;;  %v1827_v7 = vadd.f32 %v1480_v47, %v1743_v15  ;;  %v776_v28 = vmul.f32 1.442695, %v715_v19  ;;  %v746_v56 = vmul.f32 1.442695, %v700_v50 }
 0x14b   : > { %983 = vst.msk [vmem:[%s1585_s17 + $0x40] sm:$0xff] %vm974_vm4, %v950_v9  ;;  %v934_v34 = vsel %vm870_vm6, %v1302_v45, %v902_v12  ;;  %1317 = vpow2.f32 %v774_v18  ;;  %v793_v48 = vadd.f32 1.0, %v1823_v25  ;;  %v684_v43 = vand.u32 2147483647, %v1821_v52 }
 0x14c   : > { %v966_v8 = vmul.f32 %v934_v34, %v1608_v21  ;;  %1319 = vpow2.f32 %v744_v36  ;;  %v669_v47 = vand.u32 2147483647, %v1827_v7  ;;  %v717_v16 = vsub.f32 0.0, %v685_v53 }
 0x14d   : > { %v1306_v37 = vpop.eup %1305  ;;  %1321 = vrcp.f32 %v793_v48  ;;  %v716_v4 = vsub.f32 0.0, %v684_v43  ;;  %vm874_vm14 = vcmp.ge.f32.partialorder %v1783_v63, 0.0  ;;  %vm859_vm15 = vcmp.ge.f32.partialorder %v1787_v60, 0.0 }
 0x14e   : > { %v887_v38 = vmul.f32 %v1306_v37, %v1756_v39  ;;  %v1308_v55 = vpop.eup %1307  ;;  %999 = vst.msk [vmem:[%s1585_s17 + $0xc0] sm:$0xff] %vm974_vm4, %v966_v8  ;;  %1323 = vpow2.f32 %v776_v28  ;;  %v701_v49 = vsub.f32 0.0, %v669_v47  ;;  %v780_v14 = vmul.f32 1.442695, %v717_v16 }
 0x14f   : > { %v809_v15 = vadd.f32 1.0, %v1308_v55  ;;  %v1310_v41 = vpop.eup %1309  ;;  %v778_v61 = vmul.f32 1.442695, %v716_v4  ;;  %vm875_vm0 = vcmp.ge.f32.partialorder %v1806_v29, 0.0  ;;  %vm860_vm1 = vcmp.ge.f32.partialorder %v1817_v24, 0.0 }
 0x150   : > { %v919_v21 = vsel %vm855_vm7, %v1306_v37, %v887_v38  ;;  %v1312_v35 = vpop.eup %1311  ;;  %v903_v20 = vmul.f32 %v1310_v41, %v1775_v62  ;;  %v748_v5 = vmul.f32 1.442695, %v701_v49  ;;  %vm876_vm2 = vcmp.ge.f32.partialorder %v1821_v52, 0.0 }
 0x151   : > { %v951_v39 = vmul.f32 %v919_v21, %v1633_v42  ;;  %1325 = vrcp.f32 %v809_v15  ;;  %v794_v10 = vadd.f32 1.0, %v1312_v35  ;;  %vm861_vm3 = vcmp.ge.f32.partialorder %v1827_v7, 0.0 }
 0x152   : > { %v935_v6 = vsel %vm871_vm8, %v1310_v41, %v903_v20  ;;  %1327 = vpow2.f32 %v746_v56  ;;  %vm877_vm5 = vcmp.ge.f32.partialorder %v1831_v58, 0.0 }
 0x153   : > { %v1314_v57 = vpop.eup %1313  ;;  %984 = vst.msk [vmem:[%s1585_s17 + $0x48] sm:$0xff] %vm974_vm4, %v951_v39  ;;  %v967_v0 = vmul.f32 %v935_v6, %v1636_v44  ;;  %1329 = vrcp.f32 %v794_v10 }
 0x154   : > { %v1316_v42 = vpop.eup %1315  ;;  %v888_v23 = vmul.f32 %v1314_v57, %v1793_v1  ;;  %1331 = vpow2.f32 %v778_v61 }
 0x155   : > { %v904_v62 = vmul.f32 %v1316_v42, %v1798_v51  ;;  %v1318_v40 = vpop.eup %1317  ;;  %1000 = vst.msk [vmem:[%s1585_s17 + $0xc8] sm:$0xff] %vm974_vm4, %v967_v0  ;;  %1333 = vpow2.f32 %v748_v5 }
 0x156   : > { %v920_v2 = vsel %vm856_vm9, %v1314_v57, %v888_v23  ;;  %v1320_v17 = vpop.eup %1319  ;;  %v810_v30 = vadd.f32 1.0, %v1318_v40  ;;  %1335 = vpow2.f32 %v780_v14 }
 0x157   : > { %v952_v32 = vmul.f32 %v920_v2, %v1684_v22  ;;  %v936_v1 = vsel %vm872_vm10, %v1316_v42, %v904_v62  ;;  %v795_v51 = vadd.f32 1.0, %v1320_v17  ;;  %v1322_v3 = vpop.eup %1321 }
 0x158   : > { %v968_v44 = vmul.f32 %v936_v1, %v1692_v27  ;;  %1337 = vrcp.f32 %v810_v30  ;;  %v1324_v11 = vpop.eup %1323  ;;  %v889_v33 = vmul.f32 %v1322_v3, %v1823_v25 }
 0x159   : > { %985 = vst.msk [vmem:[%s1585_s17 + $0x50] sm:$0xff] %vm974_vm4, %v952_v32  ;;  %1339 = vrcp.f32 %v795_v51  ;;  %v811_v22 = vadd.f32 1.0, %v1324_v11 }
 0x15a   : > { %1001 = vst.msk [vmem:[%s1585_s17 + $0xd0] sm:$0xff] %vm974_vm4, %v968_v44  ;;  %v921_v9 = vsel %vm857_vm11, %v1322_v3, %v889_v33 }
 0x15b   : > { %v1326_v45 = vpop.eup %1325  ;;  %v953_v27 = vmul.f32 %v921_v9, %v1705_v54  ;;  %1341 = vrcp.f32 %v811_v22 }
 0x15c   : > { %v905_v59 = vmul.f32 %v1326_v45, %v1308_v55  ;;  %v1328_v31 = vpop.eup %1327 }
 0x15d   : > { %v1330_v12 = vpop.eup %1329  ;;  %986 = vst.msk [vmem:[%s1585_s17 + $0x58] sm:$0xff] %vm974_vm4, %v953_v27  ;;  %v796_v36 = vadd.f32 1.0, %v1328_v31 }
 0x15e   : > { %v937_v18 = vsel %vm873_vm12, %v1326_v45, %v905_v59  ;;  %v1332_v19 = vpop.eup %1331  ;;  %v890_v34 = vmul.f32 %v1330_v12, %v1312_v35 }
 0x15f   : > { %v969_v25 = vmul.f32 %v937_v18, %v1741_v13  ;;  %v1334_v37 = vpop.eup %1333  ;;  %1343 = vrcp.f32 %v796_v36  ;;  %v812_v54 = vadd.f32 1.0, %v1332_v19 }
 0x160   : > { %v1336_v8 = vpop.eup %1335  ;;  %v922_v48 = vsel %vm858_vm13, %v1330_v12, %v890_v34  ;;  %v797_v28 = vadd.f32 1.0, %v1334_v37 }
 0x161   : > { %1002 = vst.msk [vmem:[%s1585_s17 + $0xd8] sm:$0xff] %vm974_vm4, %v969_v25  ;;  %v954_v46 = vmul.f32 %v922_v48, %v1751_v26  ;;  %1345 = vrcp.f32 %v812_v54  ;;  %v813_v43 = vadd.f32 1.0, %v1336_v8 }
 0x162   : > { %v1338_v38 = vpop.eup %1337  ;;  %1347 = vrcp.f32 %v797_v28 }
 0x163   : > { %v1340_v55 = vpop.eup %1339  ;;  %v906_v13 = vmul.f32 %v1338_v38, %v1318_v40  ;;  %987 = vst.msk [vmem:[%s1585_s17 + $0x60] sm:$0xff] %vm974_vm4, %v954_v46  ;;  %1349 = vrcp.f32 %v813_v43 }
 0x164   : > { %v891_v47 = vmul.f32 %v1340_v55, %v1320_v17 }
 0x165   : > { %v938_v21 = vsel %vm874_vm14, %v1338_v38, %v906_v13  ;;  %v1342_v15 = vpop.eup %1341 }
 0x166   : > { %v970_v26 = vmul.f32 %v938_v21, %v1783_v63  ;;  %v923_v50 = vsel %vm859_vm15, %v1340_v55, %v891_v47  ;;  %v907_v39 = vmul.f32 %v1342_v15, %v1324_v11 }
 0x167   : > { %v955_v41 = vmul.f32 %v923_v50, %v1787_v60 }
 0x168   : > { %1003 = vst.msk [vmem:[%s1585_s17 + $0xe0] sm:$0xff] %vm974_vm4, %v970_v26  ;;  %v939_v4 = vsel %vm875_vm0, %v1342_v15, %v907_v39 }
 0x169   : > { %988 = vst.msk [vmem:[%s1585_s17 + $0x68] sm:$0xff] %vm974_vm4, %v955_v41  ;;  %v1344_v49 = vpop.eup %1343  ;;  %v971_v53 = vmul.f32 %v939_v4, %v1806_v29 }
 0x16a   : > { %v892_v35 = vmul.f32 %v1344_v49, %v1328_v31 }
 0x16b   : > { %v1346_v20 = vpop.eup %1345  ;;  %1004 = vst.msk [vmem:[%s1585_s17 + $0xe8] sm:$0xff] %vm974_vm4, %v971_v53 }
 0x16c   : > { %v1348_v63 = vpop.eup %1347  ;;  %v924_v60 = vsel %vm860_vm1, %v1344_v49, %v892_v35  ;;  %v908_v56 = vmul.f32 %v1346_v20, %v1332_v19 }
 0x16d   : > { %v1350_v57 = vpop.eup %1349  ;;  %v956_v10 = vmul.f32 %v924_v60, %v1817_v24  ;;  %v893_v61 = vmul.f32 %v1348_v63, %v1334_v37 }
 0x16e   : > { %v940_v5 = vsel %vm876_vm2, %v1346_v20, %v908_v56  ;;  %v909_v29 = vmul.f32 %v1350_v57, %v1336_v8 }
 0x16f   : > { %989 = vst.msk [vmem:[%s1585_s17 + $0x70] sm:$0xff] %vm974_vm4, %v956_v10  ;;  %v972_v16 = vmul.f32 %v940_v5, %v1821_v52  ;;  %v925_v42 = vsel %vm861_vm3, %v1348_v63, %v893_v61 }
 0x170   : > { %v957_v6 = vmul.f32 %v925_v42, %v1827_v7  ;;  %v941_v23 = vsel %vm877_vm5, %v1350_v57, %v909_v29 }
 0x171   : > { %1005 = vst.msk [vmem:[%s1585_s17 + $0xf0] sm:$0xff] %vm974_vm4, %v972_v16  ;;  %v973_v24 = vmul.f32 %v941_v23, %v1831_v58 }
 0x172   : > { %990 = vst.msk [vmem:[%s1585_s17 + $0x78] sm:$0xff] %vm974_vm4, %v957_v6 }
 0x173   : > { %1006 = vst.msk [vmem:[%s1585_s17 + $0xf8] sm:$0xff] %vm974_vm4, %v973_v24 }
 0x174 PF: > { %s13_s12 = sadd.s32 1, %s1357_s12  }
 0x175   : > { %p10_p4 = scmp.ge.s32.totalorder %s13_s12, 27  }
 0x177   :  { %12 = sbr.rel (!%p10_p4) target bundleno = 1 (0x1), region = 62 }

// kernel: oles_forward.6
= control target key start
LH: loop header
LB: loop body
LE: loop exit
PB: predicated region body
PF: predicated region fallthrough
CT: control target
= control target key end

     0   :  { %vm1389_vm0 = vcmask 261120   ;;  %s4751_s0 = inlined_call_operand.vmem [shape: f32[1568,32], index: 0, kind: input, shape index: {}]   ;;  %s4752_s1 = inlined_call_operand.vmem [shape: f32[1568,32], index: 1, kind: input, shape index: {}]   ;;  %s4753_s2 = inlined_call_operand.vmem [shape: f32[1568,32], index: 2, kind: input, shape index: {}]   ;;  %s4754_s3 = inlined_call_operand.vmem [shape: f32[1568,32], index: 3, kind: input, shape index: {}]   ;;  %s4755_s4 = inlined_call_operand.vmem [shape: f32[1568,32], index: 4, kind: output, shape index: {}]  }
   0x1   :  { %v17_v0 = vld [vmem:[%s4751_s0] sm:$0xff]  ;;  %v18_v5 = vld [vmem:[%s4751_s0 + $0x8] sm:$0xff]  ;;  %v19_v11 = vld [vmem:[%s4751_s0 + $0x10] sm:$0xff] }
   0x2   :  { %v213_v1 = vld [vmem:[%s4752_s1] sm:$0xff]  ;;  %v214_v6 = vld [vmem:[%s4752_s1 + $0x8] sm:$0xff]  ;;  %v215_v13 = vld [vmem:[%s4752_s1 + $0x10] sm:$0xff] }
   0x3   :  { %v605_v2 = vld [vmem:[%s4753_s2] sm:$0xff]  ;;  %v409_v3 = vmax.f32 %v17_v0, %v213_v1  ;;  %v410_v8 = vmax.f32 %v18_v5, %v214_v6  ;;  %v606_v9 = vld [vmem:[%s4753_s2 + $0x8] sm:$0xff]  ;;  %v607_v14 = vld [vmem:[%s4753_s2 + $0x10] sm:$0xff]  ;;  %v411_v17 = vmax.f32 %v19_v11, %v215_v13 }
   0x4   :  { %v801_v4 = vld [vmem:[%s4754_s3] sm:$0xff]  ;;  %v802_v10 = vld [vmem:[%s4754_s3 + $0x8] sm:$0xff]  ;;  %v803_v15 = vld [vmem:[%s4754_s3 + $0x10] sm:$0xff] }
   0x5   :  { %v997_v7 = vmax.f32 %v605_v2, %v801_v4  ;;  %v998_v12 = vmax.f32 %v606_v9, %v802_v10  ;;  %v999_v18 = vmax.f32 %v607_v14, %v803_v15  ;;  %v20_v19 = vld [vmem:[%s4751_s0 + $0x18] sm:$0xff]  ;;  %v21_v25 = vld [vmem:[%s4751_s0 + $0x20] sm:$0xff]  ;;  %v22_v32 = vld [vmem:[%s4751_s0 + $0x28] sm:$0xff] }
   0x6   :  { %v216_v20 = vld [vmem:[%s4752_s1 + $0x18] sm:$0xff]  ;;  %v217_v26 = vld [vmem:[%s4752_s1 + $0x20] sm:$0xff]  ;;  %v218_v34 = vld [vmem:[%s4752_s1 + $0x28] sm:$0xff] }
   0x7   :  { %v1193_v16 = vmax.f32 %v409_v3, %v997_v7  ;;  %v608_v21 = vld [vmem:[%s4753_s2 + $0x18] sm:$0xff]  ;;  %v1194_v22 = vmax.f32 %v410_v8, %v998_v12  ;;  %v412_v23 = vmax.f32 %v20_v19, %v216_v20  ;;  %v1195_v27 = vmax.f32 %v411_v17, %v999_v18  ;;  %v609_v30 = vld [vmem:[%s4753_s2 + $0x20] sm:$0xff]  ;;  %v610_v35 = vld [vmem:[%s4753_s2 + $0x28] sm:$0xff] }
   0x8   :  { %v804_v24 = vld [vmem:[%s4754_s3 + $0x18] sm:$0xff]  ;;  %v413_v29 = vmax.f32 %v21_v25, %v217_v26  ;;  %v805_v31 = vld [vmem:[%s4754_s3 + $0x20] sm:$0xff]  ;;  %v806_v36 = vld [vmem:[%s4754_s3 + $0x28] sm:$0xff]  ;;  %v414_v38 = vmax.f32 %v22_v32, %v218_v34 }
   0x9   :  { %1390 = vst.msk [vmem:[%s4755_s4] sm:$0xff] %vm1389_vm0, %v1193_v16  ;;  %v1000_v28 = vmax.f32 %v608_v21, %v804_v24  ;;  %1391 = vst.msk [vmem:[%s4755_s4 + $0x8] sm:$0xff] %vm1389_vm0, %v1194_v22  ;;  %v1001_v33 = vmax.f32 %v609_v30, %v805_v31  ;;  %v1002_v39 = vmax.f32 %v610_v35, %v806_v36  ;;  %v23_v40 = vld [vmem:[%s4751_s0 + $0x30] sm:$0xff]  ;;  %v24_v46 = vld [vmem:[%s4751_s0 + $0x38] sm:$0xff] }
   0xa   :  { %1392 = vst.msk [vmem:[%s4755_s4 + $0x10] sm:$0xff] %vm1389_vm0, %v1195_v27  ;;  %v219_v41 = vld [vmem:[%s4752_s1 + $0x30] sm:$0xff]  ;;  %v220_v47 = vld [vmem:[%s4752_s1 + $0x38] sm:$0xff]  ;;  %v25_v53 = vld [vmem:[%s4751_s0 + $0x40] sm:$0xff] }
   0xb   :  { %v1196_v37 = vmax.f32 %v412_v23, %v1000_v28  ;;  %v611_v42 = vld [vmem:[%s4753_s2 + $0x30] sm:$0xff]  ;;  %v1197_v43 = vmax.f32 %v413_v29, %v1001_v33  ;;  %v415_v44 = vmax.f32 %v23_v40, %v219_v41  ;;  %v1198_v48 = vmax.f32 %v414_v38, %v1002_v39  ;;  %v612_v51 = vld [vmem:[%s4753_s2 + $0x38] sm:$0xff]  ;;  %v221_v55 = vld [vmem:[%s4752_s1 + $0x40] sm:$0xff] }
   0xc   :  { %v807_v45 = vld [vmem:[%s4754_s3 + $0x30] sm:$0xff]  ;;  %v416_v50 = vmax.f32 %v24_v46, %v220_v47  ;;  %v808_v52 = vld [vmem:[%s4754_s3 + $0x38] sm:$0xff]  ;;  %v613_v56 = vld [vmem:[%s4753_s2 + $0x40] sm:$0xff]  ;;  %v417_v59 = vmax.f32 %v25_v53, %v221_v55 }
   0xd   :  { %1393 = vst.msk [vmem:[%s4755_s4 + $0x18] sm:$0xff] %vm1389_vm0, %v1196_v37  ;;  %v1003_v49 = vmax.f32 %v611_v42, %v807_v45  ;;  %1394 = vst.msk [vmem:[%s4755_s4 + $0x20] sm:$0xff] %vm1389_vm0, %v1197_v43  ;;  %v1004_v54 = vmax.f32 %v612_v51, %v808_v52  ;;  %v809_v57 = vld [vmem:[%s4754_s3 + $0x40] sm:$0xff]  ;;  %v26_v61 = vld [vmem:[%s4751_s0 + $0x48] sm:$0xff] }
   0xe   :  { %1395 = vst.msk [vmem:[%s4755_s4 + $0x28] sm:$0xff] %vm1389_vm0, %v1198_v48  ;;  %v1005_v60 = vmax.f32 %v613_v56, %v809_v57  ;;  %v222_v62 = vld [vmem:[%s4752_s1 + $0x48] sm:$0xff]  ;;  %v27_v3 = vld [vmem:[%s4751_s0 + $0x50] sm:$0xff]  ;;  %v28_v10 = vld [vmem:[%s4751_s0 + $0x58] sm:$0xff] }
   0xf   :  { %v1199_v58 = vmax.f32 %v415_v44, %v1003_v49  ;;  %v614_v63 = vld [vmem:[%s4753_s2 + $0x48] sm:$0xff]  ;;  %v1200_v0 = vmax.f32 %v416_v50, %v1004_v54  ;;  %v418_v1 = vmax.f32 %v26_v61, %v222_v62  ;;  %v223_v4 = vld [vmem:[%s4752_s1 + $0x50] sm:$0xff]  ;;  %v224_v12 = vld [vmem:[%s4752_s1 + $0x58] sm:$0xff] }
  0x10   :  { %v810_v2 = vld [vmem:[%s4754_s3 + $0x48] sm:$0xff]  ;;  %v1201_v5 = vmax.f32 %v417_v59, %v1005_v60  ;;  %v419_v7 = vmax.f32 %v27_v3, %v223_v4  ;;  %v615_v8 = vld [vmem:[%s4753_s2 + $0x50] sm:$0xff]  ;;  %v616_v13 = vld [vmem:[%s4753_s2 + $0x58] sm:$0xff]  ;;  %v420_v16 = vmax.f32 %v28_v10, %v224_v12 }
  0x11   :  { %1396 = vst.msk [vmem:[%s4755_s4 + $0x30] sm:$0xff] %vm1389_vm0, %v1199_v58  ;;  %v1006_v6 = vmax.f32 %v614_v63, %v810_v2  ;;  %v811_v9 = vld [vmem:[%s4754_s3 + $0x50] sm:$0xff]  ;;  %1397 = vst.msk [vmem:[%s4755_s4 + $0x38] sm:$0xff] %vm1389_vm0, %v1200_v0  ;;  %v812_v14 = vld [vmem:[%s4754_s3 + $0x58] sm:$0xff] }
  0x12   :  { %v1007_v11 = vmax.f32 %v615_v8, %v811_v9  ;;  %1398 = vst.msk [vmem:[%s4755_s4 + $0x40] sm:$0xff] %vm1389_vm0, %v1201_v5  ;;  %v1008_v17 = vmax.f32 %v616_v13, %v812_v14  ;;  %v29_v18 = vld [vmem:[%s4751_s0 + $0x60] sm:$0xff]  ;;  %v30_v24 = vld [vmem:[%s4751_s0 + $0x68] sm:$0xff]  ;;  %v31_v31 = vld [vmem:[%s4751_s0 + $0x70] sm:$0xff] }
  0x13   :  { %v1202_v15 = vmax.f32 %v418_v1, %v1006_v6  ;;  %v225_v19 = vld [vmem:[%s4752_s1 + $0x60] sm:$0xff]  ;;  %v226_v25 = vld [vmem:[%s4752_s1 + $0x68] sm:$0xff]  ;;  %v227_v33 = vld [vmem:[%s4752_s1 + $0x70] sm:$0xff] }
  0x14   :  { %v617_v20 = vld [vmem:[%s4753_s2 + $0x60] sm:$0xff]  ;;  %v1203_v21 = vmax.f32 %v419_v7, %v1007_v11  ;;  %v421_v22 = vmax.f32 %v29_v18, %v225_v19  ;;  %v1204_v26 = vmax.f32 %v420_v16, %v1008_v17  ;;  %v422_v28 = vmax.f32 %v30_v24, %v226_v25  ;;  %v618_v29 = vld [vmem:[%s4753_s2 + $0x68] sm:$0xff]  ;;  %v619_v34 = vld [vmem:[%s4753_s2 + $0x70] sm:$0xff] }
  0x15   :  { %v813_v23 = vld [vmem:[%s4754_s3 + $0x60] sm:$0xff]  ;;  %1399 = vst.msk [vmem:[%s4755_s4 + $0x48] sm:$0xff] %vm1389_vm0, %v1202_v15  ;;  %v814_v30 = vld [vmem:[%s4754_s3 + $0x68] sm:$0xff]  ;;  %v815_v35 = vld [vmem:[%s4754_s3 + $0x70] sm:$0xff]  ;;  %v423_v37 = vmax.f32 %v31_v31, %v227_v33 }
  0x16   :  { %v1009_v27 = vmax.f32 %v617_v20, %v813_v23  ;;  %1400 = vst.msk [vmem:[%s4755_s4 + $0x50] sm:$0xff] %vm1389_vm0, %v1203_v21  ;;  %v1010_v32 = vmax.f32 %v618_v29, %v814_v30  ;;  %1401 = vst.msk [vmem:[%s4755_s4 + $0x58] sm:$0xff] %vm1389_vm0, %v1204_v26  ;;  %v1011_v38 = vmax.f32 %v619_v34, %v815_v35  ;;  %v32_v39 = vld [vmem:[%s4751_s0 + $0x78] sm:$0xff]  ;;  %v33_v45 = vld [vmem:[%s4751_s0 + $0x80] sm:$0xff] }
  0x17   :  { %v228_v40 = vld [vmem:[%s4752_s1 + $0x78] sm:$0xff]  ;;  %v229_v46 = vld [vmem:[%s4752_s1 + $0x80] sm:$0xff]  ;;  %v34_v52 = vld [vmem:[%s4751_s0 + $0x88] sm:$0xff] }
  0x18   :  { %v1205_v36 = vmax.f32 %v421_v22, %v1009_v27  ;;  %v620_v41 = vld [vmem:[%s4753_s2 + $0x78] sm:$0xff]  ;;  %v1206_v42 = vmax.f32 %v422_v28, %v1010_v32  ;;  %v424_v43 = vmax.f32 %v32_v39, %v228_v40  ;;  %v1207_v47 = vmax.f32 %v423_v37, %v1011_v38  ;;  %v621_v50 = vld [vmem:[%s4753_s2 + $0x80] sm:$0xff]  ;;  %v230_v54 = vld [vmem:[%s4752_s1 + $0x88] sm:$0xff] }
  0x19   :  { %v816_v44 = vld [vmem:[%s4754_s3 + $0x78] sm:$0xff]  ;;  %v425_v49 = vmax.f32 %v33_v45, %v229_v46  ;;  %v817_v51 = vld [vmem:[%s4754_s3 + $0x80] sm:$0xff]  ;;  %v622_v55 = vld [vmem:[%s4753_s2 + $0x88] sm:$0xff]  ;;  %v426_v58 = vmax.f32 %v34_v52, %v230_v54 }
  0x1a   :  { %1402 = vst.msk [vmem:[%s4755_s4 + $0x60] sm:$0xff] %vm1389_vm0, %v1205_v36  ;;  %v1012_v48 = vmax.f32 %v620_v41, %v816_v44  ;;  %1403 = vst.msk [vmem:[%s4755_s4 + $0x68] sm:$0xff] %vm1389_vm0, %v1206_v42  ;;  %v1013_v53 = vmax.f32 %v621_v50, %v817_v51  ;;  %v818_v56 = vld [vmem:[%s4754_s3 + $0x88] sm:$0xff]  ;;  %v35_v60 = vld [vmem:[%s4751_s0 + $0x90] sm:$0xff] }
  0x1b   :  { %1404 = vst.msk [vmem:[%s4755_s4 + $0x70] sm:$0xff] %vm1389_vm0, %v1207_v47  ;;  %v1014_v59 = vmax.f32 %v622_v55, %v818_v56  ;;  %v231_v61 = vld [vmem:[%s4752_s1 + $0x90] sm:$0xff]  ;;  %v36_v2 = vld [vmem:[%s4751_s0 + $0x98] sm:$0xff]  ;;  %v37_v9 = vld [vmem:[%s4751_s0 + $0xa0] sm:$0xff] }
  0x1c   :  { %v1208_v57 = vmax.f32 %v424_v43, %v1012_v48  ;;  %v623_v62 = vld [vmem:[%s4753_s2 + $0x90] sm:$0xff]  ;;  %v1209_v63 = vmax.f32 %v425_v49, %v1013_v53  ;;  %v427_v0 = vmax.f32 %v35_v60, %v231_v61  ;;  %v232_v3 = vld [vmem:[%s4752_s1 + $0x98] sm:$0xff]  ;;  %v233_v11 = vld [vmem:[%s4752_s1 + $0xa0] sm:$0xff] }
  0x1d   :  { %v819_v1 = vld [vmem:[%s4754_s3 + $0x90] sm:$0xff]  ;;  %v1210_v4 = vmax.f32 %v426_v58, %v1014_v59  ;;  %v428_v6 = vmax.f32 %v36_v2, %v232_v3  ;;  %v624_v7 = vld [vmem:[%s4753_s2 + $0x98] sm:$0xff]  ;;  %v625_v12 = vld [vmem:[%s4753_s2 + $0xa0] sm:$0xff]  ;;  %v429_v15 = vmax.f32 %v37_v9, %v233_v11 }
  0x1e   :  { %1405 = vst.msk [vmem:[%s4755_s4 + $0x78] sm:$0xff] %vm1389_vm0, %v1208_v57  ;;  %v1015_v5 = vmax.f32 %v623_v62, %v819_v1  ;;  %v820_v8 = vld [vmem:[%s4754_s3 + $0x98] sm:$0xff]  ;;  %1406 = vst.msk [vmem:[%s4755_s4 + $0x80] sm:$0xff] %vm1389_vm0, %v1209_v63  ;;  %v821_v13 = vld [vmem:[%s4754_s3 + $0xa0] sm:$0xff] }
  0x1f   :  { %v1016_v10 = vmax.f32 %v624_v7, %v820_v8  ;;  %1407 = vst.msk [vmem:[%s4755_s4 + $0x88] sm:$0xff] %vm1389_vm0, %v1210_v4  ;;  %v1017_v16 = vmax.f32 %v625_v12, %v821_v13  ;;  %v38_v17 = vld [vmem:[%s4751_s0 + $0xa8] sm:$0xff]  ;;  %v39_v23 = vld [vmem:[%s4751_s0 + $0xb0] sm:$0xff]  ;;  %v40_v30 = vld [vmem:[%s4751_s0 + $0xb8] sm:$0xff] }
  0x20   :  { %v1211_v14 = vmax.f32 %v427_v0, %v1015_v5  ;;  %v234_v18 = vld [vmem:[%s4752_s1 + $0xa8] sm:$0xff]  ;;  %v235_v24 = vld [vmem:[%s4752_s1 + $0xb0] sm:$0xff]  ;;  %v236_v32 = vld [vmem:[%s4752_s1 + $0xb8] sm:$0xff] }
  0x21   :  { %v626_v19 = vld [vmem:[%s4753_s2 + $0xa8] sm:$0xff]  ;;  %v1212_v20 = vmax.f32 %v428_v6, %v1016_v10  ;;  %v430_v21 = vmax.f32 %v38_v17, %v234_v18  ;;  %v1213_v25 = vmax.f32 %v429_v15, %v1017_v16  ;;  %v431_v27 = vmax.f32 %v39_v23, %v235_v24  ;;  %v627_v28 = vld [vmem:[%s4753_s2 + $0xb0] sm:$0xff]  ;;  %v628_v33 = vld [vmem:[%s4753_s2 + $0xb8] sm:$0xff] }
  0x22   :  { %v822_v22 = vld [vmem:[%s4754_s3 + $0xa8] sm:$0xff]  ;;  %1408 = vst.msk [vmem:[%s4755_s4 + $0x90] sm:$0xff] %vm1389_vm0, %v1211_v14  ;;  %v823_v29 = vld [vmem:[%s4754_s3 + $0xb0] sm:$0xff]  ;;  %v824_v34 = vld [vmem:[%s4754_s3 + $0xb8] sm:$0xff]  ;;  %v432_v36 = vmax.f32 %v40_v30, %v236_v32 }
  0x23   :  { %v1018_v26 = vmax.f32 %v626_v19, %v822_v22  ;;  %1409 = vst.msk [vmem:[%s4755_s4 + $0x98] sm:$0xff] %vm1389_vm0, %v1212_v20  ;;  %v1019_v31 = vmax.f32 %v627_v28, %v823_v29  ;;  %1410 = vst.msk [vmem:[%s4755_s4 + $0xa0] sm:$0xff] %vm1389_vm0, %v1213_v25  ;;  %v1020_v37 = vmax.f32 %v628_v33, %v824_v34  ;;  %v41_v38 = vld [vmem:[%s4751_s0 + $0xc0] sm:$0xff]  ;;  %v42_v44 = vld [vmem:[%s4751_s0 + $0xc8] sm:$0xff] }
  0x24   :  { %v237_v39 = vld [vmem:[%s4752_s1 + $0xc0] sm:$0xff]  ;;  %v238_v45 = vld [vmem:[%s4752_s1 + $0xc8] sm:$0xff]  ;;  %v43_v51 = vld [vmem:[%s4751_s0 + $0xd0] sm:$0xff] }
  0x25   :  { %v1214_v35 = vmax.f32 %v430_v21, %v1018_v26  ;;  %v629_v40 = vld [vmem:[%s4753_s2 + $0xc0] sm:$0xff]  ;;  %v1215_v41 = vmax.f32 %v431_v27, %v1019_v31  ;;  %v433_v42 = vmax.f32 %v41_v38, %v237_v39  ;;  %v1216_v46 = vmax.f32 %v432_v36, %v1020_v37  ;;  %v630_v49 = vld [vmem:[%s4753_s2 + $0xc8] sm:$0xff]  ;;  %v239_v53 = vld [vmem:[%s4752_s1 + $0xd0] sm:$0xff] }
  0x26   :  { %v825_v43 = vld [vmem:[%s4754_s3 + $0xc0] sm:$0xff]  ;;  %v434_v48 = vmax.f32 %v42_v44, %v238_v45  ;;  %v826_v50 = vld [vmem:[%s4754_s3 + $0xc8] sm:$0xff]  ;;  %v631_v54 = vld [vmem:[%s4753_s2 + $0xd0] sm:$0xff]  ;;  %v435_v57 = vmax.f32 %v43_v51, %v239_v53 }
  0x27   :  { %1411 = vst.msk [vmem:[%s4755_s4 + $0xa8] sm:$0xff] %vm1389_vm0, %v1214_v35  ;;  %v1021_v47 = vmax.f32 %v629_v40, %v825_v43  ;;  %1412 = vst.msk [vmem:[%s4755_s4 + $0xb0] sm:$0xff] %vm1389_vm0, %v1215_v41  ;;  %v1022_v52 = vmax.f32 %v630_v49, %v826_v50  ;;  %v827_v55 = vld [vmem:[%s4754_s3 + $0xd0] sm:$0xff]  ;;  %v44_v59 = vld [vmem:[%s4751_s0 + $0xd8] sm:$0xff] }
  0x28   :  { %1413 = vst.msk [vmem:[%s4755_s4 + $0xb8] sm:$0xff] %vm1389_vm0, %v1216_v46  ;;  %v1023_v58 = vmax.f32 %v631_v54, %v827_v55  ;;  %v240_v60 = vld [vmem:[%s4752_s1 + $0xd8] sm:$0xff]  ;;  %v45_v1 = vld [vmem:[%s4751_s0 + $0xe0] sm:$0xff]  ;;  %v46_v8 = vld [vmem:[%s4751_s0 + $0xe8] sm:$0xff] }
  0x29   :  { %v1217_v56 = vmax.f32 %v433_v42, %v1021_v47  ;;  %v632_v61 = vld [vmem:[%s4753_s2 + $0xd8] sm:$0xff]  ;;  %v1218_v62 = vmax.f32 %v434_v48, %v1022_v52  ;;  %v436_v63 = vmax.f32 %v44_v59, %v240_v60  ;;  %v241_v2 = vld [vmem:[%s4752_s1 + $0xe0] sm:$0xff]  ;;  %v242_v10 = vld [vmem:[%s4752_s1 + $0xe8] sm:$0xff] }
  0x2a   :  { %v828_v0 = vld [vmem:[%s4754_s3 + $0xd8] sm:$0xff]  ;;  %v1219_v3 = vmax.f32 %v435_v57, %v1023_v58  ;;  %v437_v5 = vmax.f32 %v45_v1, %v241_v2  ;;  %v633_v6 = vld [vmem:[%s4753_s2 + $0xe0] sm:$0xff]  ;;  %v634_v11 = vld [vmem:[%s4753_s2 + $0xe8] sm:$0xff]  ;;  %v438_v14 = vmax.f32 %v46_v8, %v242_v10 }
  0x2b   :  { %1414 = vst.msk [vmem:[%s4755_s4 + $0xc0] sm:$0xff] %vm1389_vm0, %v1217_v56  ;;  %v1024_v4 = vmax.f32 %v632_v61, %v828_v0  ;;  %v829_v7 = vld [vmem:[%s4754_s3 + $0xe0] sm:$0xff]  ;;  %1415 = vst.msk [vmem:[%s4755_s4 + $0xc8] sm:$0xff] %vm1389_vm0, %v1218_v62  ;;  %v830_v12 = vld [vmem:[%s4754_s3 + $0xe8] sm:$0xff] }
  0x2c   :  { %v1025_v9 = vmax.f32 %v633_v6, %v829_v7  ;;  %1416 = vst.msk [vmem:[%s4755_s4 + $0xd0] sm:$0xff] %vm1389_vm0, %v1219_v3  ;;  %v1026_v15 = vmax.f32 %v634_v11, %v830_v12  ;;  %v47_v16 = vld [vmem:[%s4751_s0 + $0xf0] sm:$0xff]  ;;  %v48_v22 = vld [vmem:[%s4751_s0 + $0xf8] sm:$0xff]  ;;  %v49_v29 = vld [vmem:[%s4751_s0 + $0x100] sm:$0xff] }
  0x2d   :  { %v1220_v13 = vmax.f32 %v436_v63, %v1024_v4  ;;  %v243_v17 = vld [vmem:[%s4752_s1 + $0xf0] sm:$0xff]  ;;  %v244_v23 = vld [vmem:[%s4752_s1 + $0xf8] sm:$0xff]  ;;  %v245_v31 = vld [vmem:[%s4752_s1 + $0x100] sm:$0xff] }
  0x2e   :  { %v635_v18 = vld [vmem:[%s4753_s2 + $0xf0] sm:$0xff]  ;;  %v1221_v19 = vmax.f32 %v437_v5, %v1025_v9  ;;  %v439_v20 = vmax.f32 %v47_v16, %v243_v17  ;;  %v1222_v24 = vmax.f32 %v438_v14, %v1026_v15  ;;  %v440_v26 = vmax.f32 %v48_v22, %v244_v23  ;;  %v636_v27 = vld [vmem:[%s4753_s2 + $0xf8] sm:$0xff]  ;;  %v637_v32 = vld [vmem:[%s4753_s2 + $0x100] sm:$0xff] }
  0x2f   :  { %v831_v21 = vld [vmem:[%s4754_s3 + $0xf0] sm:$0xff]  ;;  %1417 = vst.msk [vmem:[%s4755_s4 + $0xd8] sm:$0xff] %vm1389_vm0, %v1220_v13  ;;  %v832_v28 = vld [vmem:[%s4754_s3 + $0xf8] sm:$0xff]  ;;  %v833_v33 = vld [vmem:[%s4754_s3 + $0x100] sm:$0xff]  ;;  %v441_v35 = vmax.f32 %v49_v29, %v245_v31 }
  0x30   :  { %v1027_v25 = vmax.f32 %v635_v18, %v831_v21  ;;  %1418 = vst.msk [vmem:[%s4755_s4 + $0xe0] sm:$0xff] %vm1389_vm0, %v1221_v19  ;;  %v1028_v30 = vmax.f32 %v636_v27, %v832_v28  ;;  %1419 = vst.msk [vmem:[%s4755_s4 + $0xe8] sm:$0xff] %vm1389_vm0, %v1222_v24  ;;  %v1029_v36 = vmax.f32 %v637_v32, %v833_v33  ;;  %v50_v37 = vld [vmem:[%s4751_s0 + $0x108] sm:$0xff]  ;;  %v51_v43 = vld [vmem:[%s4751_s0 + $0x110] sm:$0xff] }
  0x31   :  { %v246_v38 = vld [vmem:[%s4752_s1 + $0x108] sm:$0xff]  ;;  %v247_v44 = vld [vmem:[%s4752_s1 + $0x110] sm:$0xff]  ;;  %v52_v50 = vld [vmem:[%s4751_s0 + $0x118] sm:$0xff] }
  0x32   :  { %v1223_v34 = vmax.f32 %v439_v20, %v1027_v25  ;;  %v638_v39 = vld [vmem:[%s4753_s2 + $0x108] sm:$0xff]  ;;  %v1224_v40 = vmax.f32 %v440_v26, %v1028_v30  ;;  %v442_v41 = vmax.f32 %v50_v37, %v246_v38  ;;  %v1225_v45 = vmax.f32 %v441_v35, %v1029_v36  ;;  %v639_v48 = vld [vmem:[%s4753_s2 + $0x110] sm:$0xff]  ;;  %v248_v52 = vld [vmem:[%s4752_s1 + $0x118] sm:$0xff] }
  0x33   :  { %v834_v42 = vld [vmem:[%s4754_s3 + $0x108] sm:$0xff]  ;;  %v443_v47 = vmax.f32 %v51_v43, %v247_v44  ;;  %v835_v49 = vld [vmem:[%s4754_s3 + $0x110] sm:$0xff]  ;;  %v640_v53 = vld [vmem:[%s4753_s2 + $0x118] sm:$0xff]  ;;  %v444_v56 = vmax.f32 %v52_v50, %v248_v52 }
  0x34   :  { %1420 = vst.msk [vmem:[%s4755_s4 + $0xf0] sm:$0xff] %vm1389_vm0, %v1223_v34  ;;  %v1030_v46 = vmax.f32 %v638_v39, %v834_v42  ;;  %1421 = vst.msk [vmem:[%s4755_s4 + $0xf8] sm:$0xff] %vm1389_vm0, %v1224_v40  ;;  %v1031_v51 = vmax.f32 %v639_v48, %v835_v49  ;;  %v836_v54 = vld [vmem:[%s4754_s3 + $0x118] sm:$0xff]  ;;  %v53_v58 = vld [vmem:[%s4751_s0 + $0x120] sm:$0xff] }
  0x35   :  { %1422 = vst.msk [vmem:[%s4755_s4 + $0x100] sm:$0xff] %vm1389_vm0, %v1225_v45  ;;  %v1032_v57 = vmax.f32 %v640_v53, %v836_v54  ;;  %v249_v59 = vld [vmem:[%s4752_s1 + $0x120] sm:$0xff]  ;;  %v54_v0 = vld [vmem:[%s4751_s0 + $0x128] sm:$0xff]  ;;  %v55_v7 = vld [vmem:[%s4751_s0 + $0x130] sm:$0xff] }
  0x36   :  { %v1226_v55 = vmax.f32 %v442_v41, %v1030_v46  ;;  %v641_v60 = vld [vmem:[%s4753_s2 + $0x120] sm:$0xff]  ;;  %v1227_v61 = vmax.f32 %v443_v47, %v1031_v51  ;;  %v445_v62 = vmax.f32 %v53_v58, %v249_v59  ;;  %v250_v1 = vld [vmem:[%s4752_s1 + $0x128] sm:$0xff]  ;;  %v251_v9 = vld [vmem:[%s4752_s1 + $0x130] sm:$0xff] }
  0x37   :  { %v837_v63 = vld [vmem:[%s4754_s3 + $0x120] sm:$0xff]  ;;  %v1228_v2 = vmax.f32 %v444_v56, %v1032_v57  ;;  %v446_v4 = vmax.f32 %v54_v0, %v250_v1  ;;  %v642_v5 = vld [vmem:[%s4753_s2 + $0x128] sm:$0xff]  ;;  %v643_v10 = vld [vmem:[%s4753_s2 + $0x130] sm:$0xff]  ;;  %v447_v13 = vmax.f32 %v55_v7, %v251_v9 }
  0x38   :  { %1423 = vst.msk [vmem:[%s4755_s4 + $0x108] sm:$0xff] %vm1389_vm0, %v1226_v55  ;;  %v1033_v3 = vmax.f32 %v641_v60, %v837_v63  ;;  %v838_v6 = vld [vmem:[%s4754_s3 + $0x128] sm:$0xff]  ;;  %1424 = vst.msk [vmem:[%s4755_s4 + $0x110] sm:$0xff] %vm1389_vm0, %v1227_v61  ;;  %v839_v11 = vld [vmem:[%s4754_s3 + $0x130] sm:$0xff] }
  0x39   :  { %v1034_v8 = vmax.f32 %v642_v5, %v838_v6  ;;  %1425 = vst.msk [vmem:[%s4755_s4 + $0x118] sm:$0xff] %vm1389_vm0, %v1228_v2  ;;  %v1035_v14 = vmax.f32 %v643_v10, %v839_v11  ;;  %v56_v15 = vld [vmem:[%s4751_s0 + $0x138] sm:$0xff]  ;;  %v57_v21 = vld [vmem:[%s4751_s0 + $0x140] sm:$0xff]  ;;  %v58_v28 = vld [vmem:[%s4751_s0 + $0x148] sm:$0xff] }
  0x3a   :  { %v1229_v12 = vmax.f32 %v445_v62, %v1033_v3  ;;  %v252_v16 = vld [vmem:[%s4752_s1 + $0x138] sm:$0xff]  ;;  %v253_v22 = vld [vmem:[%s4752_s1 + $0x140] sm:$0xff]  ;;  %v254_v30 = vld [vmem:[%s4752_s1 + $0x148] sm:$0xff] }
  0x3b   :  { %v644_v17 = vld [vmem:[%s4753_s2 + $0x138] sm:$0xff]  ;;  %v1230_v18 = vmax.f32 %v446_v4, %v1034_v8  ;;  %v448_v19 = vmax.f32 %v56_v15, %v252_v16  ;;  %v1231_v23 = vmax.f32 %v447_v13, %v1035_v14  ;;  %v449_v25 = vmax.f32 %v57_v21, %v253_v22  ;;  %v645_v26 = vld [vmem:[%s4753_s2 + $0x140] sm:$0xff]  ;;  %v646_v31 = vld [vmem:[%s4753_s2 + $0x148] sm:$0xff] }
  0x3c   :  { %v840_v20 = vld [vmem:[%s4754_s3 + $0x138] sm:$0xff]  ;;  %1426 = vst.msk [vmem:[%s4755_s4 + $0x120] sm:$0xff] %vm1389_vm0, %v1229_v12  ;;  %v841_v27 = vld [vmem:[%s4754_s3 + $0x140] sm:$0xff]  ;;  %v842_v32 = vld [vmem:[%s4754_s3 + $0x148] sm:$0xff]  ;;  %v450_v34 = vmax.f32 %v58_v28, %v254_v30 }
  0x3d   :  { %v1036_v24 = vmax.f32 %v644_v17, %v840_v20  ;;  %1427 = vst.msk [vmem:[%s4755_s4 + $0x128] sm:$0xff] %vm1389_vm0, %v1230_v18  ;;  %v1037_v29 = vmax.f32 %v645_v26, %v841_v27  ;;  %1428 = vst.msk [vmem:[%s4755_s4 + $0x130] sm:$0xff] %vm1389_vm0, %v1231_v23  ;;  %v1038_v35 = vmax.f32 %v646_v31, %v842_v32  ;;  %v59_v36 = vld [vmem:[%s4751_s0 + $0x150] sm:$0xff]  ;;  %v60_v42 = vld [vmem:[%s4751_s0 + $0x158] sm:$0xff] }
  0x3e   :  { %v255_v37 = vld [vmem:[%s4752_s1 + $0x150] sm:$0xff]  ;;  %v256_v43 = vld [vmem:[%s4752_s1 + $0x158] sm:$0xff]  ;;  %v61_v49 = vld [vmem:[%s4751_s0 + $0x160] sm:$0xff] }
  0x3f   :  { %v1232_v33 = vmax.f32 %v448_v19, %v1036_v24  ;;  %v647_v38 = vld [vmem:[%s4753_s2 + $0x150] sm:$0xff]  ;;  %v1233_v39 = vmax.f32 %v449_v25, %v1037_v29  ;;  %v451_v40 = vmax.f32 %v59_v36, %v255_v37  ;;  %v1234_v44 = vmax.f32 %v450_v34, %v1038_v35  ;;  %v648_v47 = vld [vmem:[%s4753_s2 + $0x158] sm:$0xff]  ;;  %v257_v51 = vld [vmem:[%s4752_s1 + $0x160] sm:$0xff] }
  0x40   :  { %v843_v41 = vld [vmem:[%s4754_s3 + $0x150] sm:$0xff]  ;;  %v452_v46 = vmax.f32 %v60_v42, %v256_v43  ;;  %v844_v48 = vld [vmem:[%s4754_s3 + $0x158] sm:$0xff]  ;;  %v649_v52 = vld [vmem:[%s4753_s2 + $0x160] sm:$0xff]  ;;  %v453_v55 = vmax.f32 %v61_v49, %v257_v51 }
  0x41   :  { %1429 = vst.msk [vmem:[%s4755_s4 + $0x138] sm:$0xff] %vm1389_vm0, %v1232_v33  ;;  %v1039_v45 = vmax.f32 %v647_v38, %v843_v41  ;;  %1430 = vst.msk [vmem:[%s4755_s4 + $0x140] sm:$0xff] %vm1389_vm0, %v1233_v39  ;;  %v1040_v50 = vmax.f32 %v648_v47, %v844_v48  ;;  %v845_v53 = vld [vmem:[%s4754_s3 + $0x160] sm:$0xff]  ;;  %v62_v57 = vld [vmem:[%s4751_s0 + $0x168] sm:$0xff] }
  0x42   :  { %1431 = vst.msk [vmem:[%s4755_s4 + $0x148] sm:$0xff] %vm1389_vm0, %v1234_v44  ;;  %v1041_v56 = vmax.f32 %v649_v52, %v845_v53  ;;  %v258_v58 = vld [vmem:[%s4752_s1 + $0x168] sm:$0xff]  ;;  %v63_v63 = vld [vmem:[%s4751_s0 + $0x170] sm:$0xff]  ;;  %v64_v6 = vld [vmem:[%s4751_s0 + $0x178] sm:$0xff] }
  0x43   :  { %v1235_v54 = vmax.f32 %v451_v40, %v1039_v45  ;;  %v650_v59 = vld [vmem:[%s4753_s2 + $0x168] sm:$0xff]  ;;  %v1236_v60 = vmax.f32 %v452_v46, %v1040_v50  ;;  %v454_v61 = vmax.f32 %v62_v57, %v258_v58  ;;  %v259_v0 = vld [vmem:[%s4752_s1 + $0x170] sm:$0xff]  ;;  %v260_v8 = vld [vmem:[%s4752_s1 + $0x178] sm:$0xff] }
  0x44   :  { %v846_v62 = vld [vmem:[%s4754_s3 + $0x168] sm:$0xff]  ;;  %v1237_v1 = vmax.f32 %v453_v55, %v1041_v56  ;;  %v455_v3 = vmax.f32 %v63_v63, %v259_v0  ;;  %v651_v4 = vld [vmem:[%s4753_s2 + $0x170] sm:$0xff]  ;;  %v652_v9 = vld [vmem:[%s4753_s2 + $0x178] sm:$0xff]  ;;  %v456_v12 = vmax.f32 %v64_v6, %v260_v8 }
  0x45   :  { %1432 = vst.msk [vmem:[%s4755_s4 + $0x150] sm:$0xff] %vm1389_vm0, %v1235_v54  ;;  %v1042_v2 = vmax.f32 %v650_v59, %v846_v62  ;;  %v847_v5 = vld [vmem:[%s4754_s3 + $0x170] sm:$0xff]  ;;  %1433 = vst.msk [vmem:[%s4755_s4 + $0x158] sm:$0xff] %vm1389_vm0, %v1236_v60  ;;  %v848_v10 = vld [vmem:[%s4754_s3 + $0x178] sm:$0xff] }
  0x46   :  { %v1043_v7 = vmax.f32 %v651_v4, %v847_v5  ;;  %1434 = vst.msk [vmem:[%s4755_s4 + $0x160] sm:$0xff] %vm1389_vm0, %v1237_v1  ;;  %v1044_v13 = vmax.f32 %v652_v9, %v848_v10  ;;  %v65_v14 = vld [vmem:[%s4751_s0 + $0x180] sm:$0xff]  ;;  %v66_v20 = vld [vmem:[%s4751_s0 + $0x188] sm:$0xff]  ;;  %v67_v27 = vld [vmem:[%s4751_s0 + $0x190] sm:$0xff] }
  0x47   :  { %v1238_v11 = vmax.f32 %v454_v61, %v1042_v2  ;;  %v261_v15 = vld [vmem:[%s4752_s1 + $0x180] sm:$0xff]  ;;  %v262_v21 = vld [vmem:[%s4752_s1 + $0x188] sm:$0xff]  ;;  %v263_v29 = vld [vmem:[%s4752_s1 + $0x190] sm:$0xff] }
  0x48   :  { %v653_v16 = vld [vmem:[%s4753_s2 + $0x180] sm:$0xff]  ;;  %v1239_v17 = vmax.f32 %v455_v3, %v1043_v7  ;;  %v457_v18 = vmax.f32 %v65_v14, %v261_v15  ;;  %v1240_v22 = vmax.f32 %v456_v12, %v1044_v13  ;;  %v458_v24 = vmax.f32 %v66_v20, %v262_v21  ;;  %v654_v25 = vld [vmem:[%s4753_s2 + $0x188] sm:$0xff]  ;;  %v655_v30 = vld [vmem:[%s4753_s2 + $0x190] sm:$0xff] }
  0x49   :  { %v849_v19 = vld [vmem:[%s4754_s3 + $0x180] sm:$0xff]  ;;  %1435 = vst.msk [vmem:[%s4755_s4 + $0x168] sm:$0xff] %vm1389_vm0, %v1238_v11  ;;  %v850_v26 = vld [vmem:[%s4754_s3 + $0x188] sm:$0xff]  ;;  %v851_v31 = vld [vmem:[%s4754_s3 + $0x190] sm:$0xff]  ;;  %v459_v33 = vmax.f32 %v67_v27, %v263_v29 }
  0x4a   :  { %v1045_v23 = vmax.f32 %v653_v16, %v849_v19  ;;  %1436 = vst.msk [vmem:[%s4755_s4 + $0x170] sm:$0xff] %vm1389_vm0, %v1239_v17  ;;  %v1046_v28 = vmax.f32 %v654_v25, %v850_v26  ;;  %1437 = vst.msk [vmem:[%s4755_s4 + $0x178] sm:$0xff] %vm1389_vm0, %v1240_v22  ;;  %v1047_v34 = vmax.f32 %v655_v30, %v851_v31  ;;  %v68_v35 = vld [vmem:[%s4751_s0 + $0x198] sm:$0xff]  ;;  %v69_v41 = vld [vmem:[%s4751_s0 + $0x1a0] sm:$0xff] }
  0x4b   :  { %v264_v36 = vld [vmem:[%s4752_s1 + $0x198] sm:$0xff]  ;;  %v265_v42 = vld [vmem:[%s4752_s1 + $0x1a0] sm:$0xff]  ;;  %v70_v48 = vld [vmem:[%s4751_s0 + $0x1a8] sm:$0xff] }
  0x4c   :  { %v1241_v32 = vmax.f32 %v457_v18, %v1045_v23  ;;  %v656_v37 = vld [vmem:[%s4753_s2 + $0x198] sm:$0xff]  ;;  %v1242_v38 = vmax.f32 %v458_v24, %v1046_v28  ;;  %v460_v39 = vmax.f32 %v68_v35, %v264_v36  ;;  %v1243_v43 = vmax.f32 %v459_v33, %v1047_v34  ;;  %v657_v46 = vld [vmem:[%s4753_s2 + $0x1a0] sm:$0xff]  ;;  %v266_v50 = vld [vmem:[%s4752_s1 + $0x1a8] sm:$0xff] }
  0x4d   :  { %v852_v40 = vld [vmem:[%s4754_s3 + $0x198] sm:$0xff]  ;;  %v461_v45 = vmax.f32 %v69_v41, %v265_v42  ;;  %v853_v47 = vld [vmem:[%s4754_s3 + $0x1a0] sm:$0xff]  ;;  %v658_v51 = vld [vmem:[%s4753_s2 + $0x1a8] sm:$0xff]  ;;  %v462_v54 = vmax.f32 %v70_v48, %v266_v50 }
  0x4e   :  { %1438 = vst.msk [vmem:[%s4755_s4 + $0x180] sm:$0xff] %vm1389_vm0, %v1241_v32  ;;  %v1048_v44 = vmax.f32 %v656_v37, %v852_v40  ;;  %1439 = vst.msk [vmem:[%s4755_s4 + $0x188] sm:$0xff] %vm1389_vm0, %v1242_v38  ;;  %v1049_v49 = vmax.f32 %v657_v46, %v853_v47  ;;  %v854_v52 = vld [vmem:[%s4754_s3 + $0x1a8] sm:$0xff]  ;;  %v71_v56 = vld [vmem:[%s4751_s0 + $0x1b0] sm:$0xff] }
  0x4f   :  { %1440 = vst.msk [vmem:[%s4755_s4 + $0x190] sm:$0xff] %vm1389_vm0, %v1243_v43  ;;  %v1050_v55 = vmax.f32 %v658_v51, %v854_v52  ;;  %v267_v57 = vld [vmem:[%s4752_s1 + $0x1b0] sm:$0xff]  ;;  %v72_v62 = vld [vmem:[%s4751_s0 + $0x1b8] sm:$0xff]  ;;  %v73_v5 = vld [vmem:[%s4751_s0 + $0x1c0] sm:$0xff] }
  0x50   :  { %v1244_v53 = vmax.f32 %v460_v39, %v1048_v44  ;;  %v659_v58 = vld [vmem:[%s4753_s2 + $0x1b0] sm:$0xff]  ;;  %v1245_v59 = vmax.f32 %v461_v45, %v1049_v49  ;;  %v463_v60 = vmax.f32 %v71_v56, %v267_v57  ;;  %v268_v63 = vld [vmem:[%s4752_s1 + $0x1b8] sm:$0xff]  ;;  %v269_v7 = vld [vmem:[%s4752_s1 + $0x1c0] sm:$0xff] }
  0x51   :  { %v855_v61 = vld [vmem:[%s4754_s3 + $0x1b0] sm:$0xff]  ;;  %v1246_v0 = vmax.f32 %v462_v54, %v1050_v55  ;;  %v464_v2 = vmax.f32 %v72_v62, %v268_v63  ;;  %v660_v3 = vld [vmem:[%s4753_s2 + $0x1b8] sm:$0xff]  ;;  %v661_v8 = vld [vmem:[%s4753_s2 + $0x1c0] sm:$0xff]  ;;  %v465_v11 = vmax.f32 %v73_v5, %v269_v7 }
  0x52   :  { %1441 = vst.msk [vmem:[%s4755_s4 + $0x198] sm:$0xff] %vm1389_vm0, %v1244_v53  ;;  %v1051_v1 = vmax.f32 %v659_v58, %v855_v61  ;;  %v856_v4 = vld [vmem:[%s4754_s3 + $0x1b8] sm:$0xff]  ;;  %1442 = vst.msk [vmem:[%s4755_s4 + $0x1a0] sm:$0xff] %vm1389_vm0, %v1245_v59  ;;  %v857_v9 = vld [vmem:[%s4754_s3 + $0x1c0] sm:$0xff] }
  0x53   :  { %v1052_v6 = vmax.f32 %v660_v3, %v856_v4  ;;  %1443 = vst.msk [vmem:[%s4755_s4 + $0x1a8] sm:$0xff] %vm1389_vm0, %v1246_v0  ;;  %v1053_v12 = vmax.f32 %v661_v8, %v857_v9  ;;  %v74_v13 = vld [vmem:[%s4751_s0 + $0x1c8] sm:$0xff]  ;;  %v75_v19 = vld [vmem:[%s4751_s0 + $0x1d0] sm:$0xff]  ;;  %v76_v26 = vld [vmem:[%s4751_s0 + $0x1d8] sm:$0xff] }
  0x54   :  { %v1247_v10 = vmax.f32 %v463_v60, %v1051_v1  ;;  %v270_v14 = vld [vmem:[%s4752_s1 + $0x1c8] sm:$0xff]  ;;  %v271_v20 = vld [vmem:[%s4752_s1 + $0x1d0] sm:$0xff]  ;;  %v272_v28 = vld [vmem:[%s4752_s1 + $0x1d8] sm:$0xff] }
  0x55   :  { %v662_v15 = vld [vmem:[%s4753_s2 + $0x1c8] sm:$0xff]  ;;  %v1248_v16 = vmax.f32 %v464_v2, %v1052_v6  ;;  %v466_v17 = vmax.f32 %v74_v13, %v270_v14  ;;  %v1249_v21 = vmax.f32 %v465_v11, %v1053_v12  ;;  %v467_v23 = vmax.f32 %v75_v19, %v271_v20  ;;  %v663_v24 = vld [vmem:[%s4753_s2 + $0x1d0] sm:$0xff]  ;;  %v664_v29 = vld [vmem:[%s4753_s2 + $0x1d8] sm:$0xff] }
  0x56   :  { %v858_v18 = vld [vmem:[%s4754_s3 + $0x1c8] sm:$0xff]  ;;  %1444 = vst.msk [vmem:[%s4755_s4 + $0x1b0] sm:$0xff] %vm1389_vm0, %v1247_v10  ;;  %v859_v25 = vld [vmem:[%s4754_s3 + $0x1d0] sm:$0xff]  ;;  %v860_v30 = vld [vmem:[%s4754_s3 + $0x1d8] sm:$0xff]  ;;  %v468_v32 = vmax.f32 %v76_v26, %v272_v28 }
  0x57   :  { %v1054_v22 = vmax.f32 %v662_v15, %v858_v18  ;;  %1445 = vst.msk [vmem:[%s4755_s4 + $0x1b8] sm:$0xff] %vm1389_vm0, %v1248_v16  ;;  %v1055_v27 = vmax.f32 %v663_v24, %v859_v25  ;;  %1446 = vst.msk [vmem:[%s4755_s4 + $0x1c0] sm:$0xff] %vm1389_vm0, %v1249_v21  ;;  %v1056_v33 = vmax.f32 %v664_v29, %v860_v30  ;;  %v77_v34 = vld [vmem:[%s4751_s0 + $0x1e0] sm:$0xff]  ;;  %v78_v40 = vld [vmem:[%s4751_s0 + $0x1e8] sm:$0xff] }
  0x58   :  { %v273_v35 = vld [vmem:[%s4752_s1 + $0x1e0] sm:$0xff]  ;;  %v274_v41 = vld [vmem:[%s4752_s1 + $0x1e8] sm:$0xff]  ;;  %v79_v47 = vld [vmem:[%s4751_s0 + $0x1f0] sm:$0xff] }
  0x59   :  { %v1250_v31 = vmax.f32 %v466_v17, %v1054_v22  ;;  %v665_v36 = vld [vmem:[%s4753_s2 + $0x1e0] sm:$0xff]  ;;  %v1251_v37 = vmax.f32 %v467_v23, %v1055_v27  ;;  %v469_v38 = vmax.f32 %v77_v34, %v273_v35  ;;  %v1252_v42 = vmax.f32 %v468_v32, %v1056_v33  ;;  %v666_v45 = vld [vmem:[%s4753_s2 + $0x1e8] sm:$0xff]  ;;  %v275_v49 = vld [vmem:[%s4752_s1 + $0x1f0] sm:$0xff] }
  0x5a   :  { %v861_v39 = vld [vmem:[%s4754_s3 + $0x1e0] sm:$0xff]  ;;  %v470_v44 = vmax.f32 %v78_v40, %v274_v41  ;;  %v862_v46 = vld [vmem:[%s4754_s3 + $0x1e8] sm:$0xff]  ;;  %v667_v50 = vld [vmem:[%s4753_s2 + $0x1f0] sm:$0xff]  ;;  %v471_v53 = vmax.f32 %v79_v47, %v275_v49 }
  0x5b   :  { %1447 = vst.msk [vmem:[%s4755_s4 + $0x1c8] sm:$0xff] %vm1389_vm0, %v1250_v31  ;;  %v1057_v43 = vmax.f32 %v665_v36, %v861_v39  ;;  %1448 = vst.msk [vmem:[%s4755_s4 + $0x1d0] sm:$0xff] %vm1389_vm0, %v1251_v37  ;;  %v1058_v48 = vmax.f32 %v666_v45, %v862_v46  ;;  %v863_v51 = vld [vmem:[%s4754_s3 + $0x1f0] sm:$0xff]  ;;  %v80_v55 = vld [vmem:[%s4751_s0 + $0x1f8] sm:$0xff] }
  0x5c   :  { %1449 = vst.msk [vmem:[%s4755_s4 + $0x1d8] sm:$0xff] %vm1389_vm0, %v1252_v42  ;;  %v1059_v54 = vmax.f32 %v667_v50, %v863_v51  ;;  %v276_v56 = vld [vmem:[%s4752_s1 + $0x1f8] sm:$0xff]  ;;  %v81_v61 = vld [vmem:[%s4751_s0 + $0x200] sm:$0xff]  ;;  %v82_v4 = vld [vmem:[%s4751_s0 + $0x208] sm:$0xff] }
  0x5d   :  { %v1253_v52 = vmax.f32 %v469_v38, %v1057_v43  ;;  %v668_v57 = vld [vmem:[%s4753_s2 + $0x1f8] sm:$0xff]  ;;  %v1254_v58 = vmax.f32 %v470_v44, %v1058_v48  ;;  %v472_v59 = vmax.f32 %v80_v55, %v276_v56  ;;  %v277_v62 = vld [vmem:[%s4752_s1 + $0x200] sm:$0xff]  ;;  %v278_v6 = vld [vmem:[%s4752_s1 + $0x208] sm:$0xff] }
  0x5e   :  { %v864_v60 = vld [vmem:[%s4754_s3 + $0x1f8] sm:$0xff]  ;;  %v1255_v63 = vmax.f32 %v471_v53, %v1059_v54  ;;  %v473_v1 = vmax.f32 %v81_v61, %v277_v62  ;;  %v669_v2 = vld [vmem:[%s4753_s2 + $0x200] sm:$0xff]  ;;  %v670_v7 = vld [vmem:[%s4753_s2 + $0x208] sm:$0xff]  ;;  %v474_v10 = vmax.f32 %v82_v4, %v278_v6 }
  0x5f   :  { %1450 = vst.msk [vmem:[%s4755_s4 + $0x1e0] sm:$0xff] %vm1389_vm0, %v1253_v52  ;;  %v1060_v0 = vmax.f32 %v668_v57, %v864_v60  ;;  %v865_v3 = vld [vmem:[%s4754_s3 + $0x200] sm:$0xff]  ;;  %1451 = vst.msk [vmem:[%s4755_s4 + $0x1e8] sm:$0xff] %vm1389_vm0, %v1254_v58  ;;  %v866_v8 = vld [vmem:[%s4754_s3 + $0x208] sm:$0xff] }
  0x60   :  { %v1061_v5 = vmax.f32 %v669_v2, %v865_v3  ;;  %1452 = vst.msk [vmem:[%s4755_s4 + $0x1f0] sm:$0xff] %vm1389_vm0, %v1255_v63  ;;  %v1062_v11 = vmax.f32 %v670_v7, %v866_v8  ;;  %v83_v12 = vld [vmem:[%s4751_s0 + $0x210] sm:$0xff]  ;;  %v84_v18 = vld [vmem:[%s4751_s0 + $0x218] sm:$0xff]  ;;  %v85_v25 = vld [vmem:[%s4751_s0 + $0x220] sm:$0xff] }
  0x61   :  { %v1256_v9 = vmax.f32 %v472_v59, %v1060_v0  ;;  %v279_v13 = vld [vmem:[%s4752_s1 + $0x210] sm:$0xff]  ;;  %v280_v19 = vld [vmem:[%s4752_s1 + $0x218] sm:$0xff]  ;;  %v281_v27 = vld [vmem:[%s4752_s1 + $0x220] sm:$0xff] }
  0x62   :  { %v671_v14 = vld [vmem:[%s4753_s2 + $0x210] sm:$0xff]  ;;  %v1257_v15 = vmax.f32 %v473_v1, %v1061_v5  ;;  %v475_v16 = vmax.f32 %v83_v12, %v279_v13  ;;  %v1258_v20 = vmax.f32 %v474_v10, %v1062_v11  ;;  %v476_v22 = vmax.f32 %v84_v18, %v280_v19  ;;  %v672_v23 = vld [vmem:[%s4753_s2 + $0x218] sm:$0xff]  ;;  %v673_v28 = vld [vmem:[%s4753_s2 + $0x220] sm:$0xff] }
  0x63   :  { %v867_v17 = vld [vmem:[%s4754_s3 + $0x210] sm:$0xff]  ;;  %1453 = vst.msk [vmem:[%s4755_s4 + $0x1f8] sm:$0xff] %vm1389_vm0, %v1256_v9  ;;  %v868_v24 = vld [vmem:[%s4754_s3 + $0x218] sm:$0xff]  ;;  %v869_v29 = vld [vmem:[%s4754_s3 + $0x220] sm:$0xff]  ;;  %v477_v31 = vmax.f32 %v85_v25, %v281_v27 }
  0x64   :  { %v1063_v21 = vmax.f32 %v671_v14, %v867_v17  ;;  %1454 = vst.msk [vmem:[%s4755_s4 + $0x200] sm:$0xff] %vm1389_vm0, %v1257_v15  ;;  %v1064_v26 = vmax.f32 %v672_v23, %v868_v24  ;;  %1455 = vst.msk [vmem:[%s4755_s4 + $0x208] sm:$0xff] %vm1389_vm0, %v1258_v20  ;;  %v1065_v32 = vmax.f32 %v673_v28, %v869_v29  ;;  %v86_v33 = vld [vmem:[%s4751_s0 + $0x228] sm:$0xff]  ;;  %v87_v39 = vld [vmem:[%s4751_s0 + $0x230] sm:$0xff] }
  0x65   :  { %v282_v34 = vld [vmem:[%s4752_s1 + $0x228] sm:$0xff]  ;;  %v283_v40 = vld [vmem:[%s4752_s1 + $0x230] sm:$0xff]  ;;  %v88_v46 = vld [vmem:[%s4751_s0 + $0x238] sm:$0xff] }
  0x66   :  { %v1259_v30 = vmax.f32 %v475_v16, %v1063_v21  ;;  %v674_v35 = vld [vmem:[%s4753_s2 + $0x228] sm:$0xff]  ;;  %v1260_v36 = vmax.f32 %v476_v22, %v1064_v26  ;;  %v478_v37 = vmax.f32 %v86_v33, %v282_v34  ;;  %v1261_v41 = vmax.f32 %v477_v31, %v1065_v32  ;;  %v675_v44 = vld [vmem:[%s4753_s2 + $0x230] sm:$0xff]  ;;  %v284_v48 = vld [vmem:[%s4752_s1 + $0x238] sm:$0xff] }
  0x67   :  { %v870_v38 = vld [vmem:[%s4754_s3 + $0x228] sm:$0xff]  ;;  %v479_v43 = vmax.f32 %v87_v39, %v283_v40  ;;  %v871_v45 = vld [vmem:[%s4754_s3 + $0x230] sm:$0xff]  ;;  %v676_v49 = vld [vmem:[%s4753_s2 + $0x238] sm:$0xff]  ;;  %v480_v52 = vmax.f32 %v88_v46, %v284_v48 }
  0x68   :  { %1456 = vst.msk [vmem:[%s4755_s4 + $0x210] sm:$0xff] %vm1389_vm0, %v1259_v30  ;;  %v1066_v42 = vmax.f32 %v674_v35, %v870_v38  ;;  %1457 = vst.msk [vmem:[%s4755_s4 + $0x218] sm:$0xff] %vm1389_vm0, %v1260_v36  ;;  %v1067_v47 = vmax.f32 %v675_v44, %v871_v45  ;;  %v872_v50 = vld [vmem:[%s4754_s3 + $0x238] sm:$0xff]  ;;  %v89_v54 = vld [vmem:[%s4751_s0 + $0x240] sm:$0xff] }
  0x69   :  { %1458 = vst.msk [vmem:[%s4755_s4 + $0x220] sm:$0xff] %vm1389_vm0, %v1261_v41  ;;  %v1068_v53 = vmax.f32 %v676_v49, %v872_v50  ;;  %v285_v55 = vld [vmem:[%s4752_s1 + $0x240] sm:$0xff]  ;;  %v90_v60 = vld [vmem:[%s4751_s0 + $0x248] sm:$0xff]  ;;  %v91_v3 = vld [vmem:[%s4751_s0 + $0x250] sm:$0xff] }
  0x6a   :  { %v1262_v51 = vmax.f32 %v478_v37, %v1066_v42  ;;  %v677_v56 = vld [vmem:[%s4753_s2 + $0x240] sm:$0xff]  ;;  %v1263_v57 = vmax.f32 %v479_v43, %v1067_v47  ;;  %v481_v58 = vmax.f32 %v89_v54, %v285_v55  ;;  %v286_v61 = vld [vmem:[%s4752_s1 + $0x248] sm:$0xff]  ;;  %v287_v5 = vld [vmem:[%s4752_s1 + $0x250] sm:$0xff] }
  0x6b   :  { %v873_v59 = vld [vmem:[%s4754_s3 + $0x240] sm:$0xff]  ;;  %v1264_v62 = vmax.f32 %v480_v52, %v1068_v53  ;;  %v482_v0 = vmax.f32 %v90_v60, %v286_v61  ;;  %v678_v1 = vld [vmem:[%s4753_s2 + $0x248] sm:$0xff]  ;;  %v679_v6 = vld [vmem:[%s4753_s2 + $0x250] sm:$0xff]  ;;  %v483_v9 = vmax.f32 %v91_v3, %v287_v5 }
  0x6c   :  { %1459 = vst.msk [vmem:[%s4755_s4 + $0x228] sm:$0xff] %vm1389_vm0, %v1262_v51  ;;  %v1069_v63 = vmax.f32 %v677_v56, %v873_v59  ;;  %v874_v2 = vld [vmem:[%s4754_s3 + $0x248] sm:$0xff]  ;;  %1460 = vst.msk [vmem:[%s4755_s4 + $0x230] sm:$0xff] %vm1389_vm0, %v1263_v57  ;;  %v875_v7 = vld [vmem:[%s4754_s3 + $0x250] sm:$0xff] }
  0x6d   :  { %v1070_v4 = vmax.f32 %v678_v1, %v874_v2  ;;  %1461 = vst.msk [vmem:[%s4755_s4 + $0x238] sm:$0xff] %vm1389_vm0, %v1264_v62  ;;  %v1071_v10 = vmax.f32 %v679_v6, %v875_v7  ;;  %v92_v11 = vld [vmem:[%s4751_s0 + $0x258] sm:$0xff]  ;;  %v93_v17 = vld [vmem:[%s4751_s0 + $0x260] sm:$0xff]  ;;  %v94_v24 = vld [vmem:[%s4751_s0 + $0x268] sm:$0xff] }
  0x6e   :  { %v1265_v8 = vmax.f32 %v481_v58, %v1069_v63  ;;  %v288_v12 = vld [vmem:[%s4752_s1 + $0x258] sm:$0xff]  ;;  %v289_v18 = vld [vmem:[%s4752_s1 + $0x260] sm:$0xff]  ;;  %v290_v26 = vld [vmem:[%s4752_s1 + $0x268] sm:$0xff] }
  0x6f   :  { %v680_v13 = vld [vmem:[%s4753_s2 + $0x258] sm:$0xff]  ;;  %v1266_v14 = vmax.f32 %v482_v0, %v1070_v4  ;;  %v484_v15 = vmax.f32 %v92_v11, %v288_v12  ;;  %v1267_v19 = vmax.f32 %v483_v9, %v1071_v10  ;;  %v485_v21 = vmax.f32 %v93_v17, %v289_v18  ;;  %v681_v22 = vld [vmem:[%s4753_s2 + $0x260] sm:$0xff]  ;;  %v682_v27 = vld [vmem:[%s4753_s2 + $0x268] sm:$0xff] }
  0x70   :  { %v876_v16 = vld [vmem:[%s4754_s3 + $0x258] sm:$0xff]  ;;  %1462 = vst.msk [vmem:[%s4755_s4 + $0x240] sm:$0xff] %vm1389_vm0, %v1265_v8  ;;  %v877_v23 = vld [vmem:[%s4754_s3 + $0x260] sm:$0xff]  ;;  %v878_v28 = vld [vmem:[%s4754_s3 + $0x268] sm:$0xff]  ;;  %v486_v30 = vmax.f32 %v94_v24, %v290_v26 }
  0x71   :  { %v1072_v20 = vmax.f32 %v680_v13, %v876_v16  ;;  %1463 = vst.msk [vmem:[%s4755_s4 + $0x248] sm:$0xff] %vm1389_vm0, %v1266_v14  ;;  %v1073_v25 = vmax.f32 %v681_v22, %v877_v23  ;;  %1464 = vst.msk [vmem:[%s4755_s4 + $0x250] sm:$0xff] %vm1389_vm0, %v1267_v19  ;;  %v1074_v31 = vmax.f32 %v682_v27, %v878_v28  ;;  %v95_v32 = vld [vmem:[%s4751_s0 + $0x270] sm:$0xff]  ;;  %v96_v38 = vld [vmem:[%s4751_s0 + $0x278] sm:$0xff] }
  0x72   :  { %v291_v33 = vld [vmem:[%s4752_s1 + $0x270] sm:$0xff]  ;;  %v292_v39 = vld [vmem:[%s4752_s1 + $0x278] sm:$0xff]  ;;  %v97_v45 = vld [vmem:[%s4751_s0 + $0x280] sm:$0xff] }
  0x73   :  { %v1268_v29 = vmax.f32 %v484_v15, %v1072_v20  ;;  %v683_v34 = vld [vmem:[%s4753_s2 + $0x270] sm:$0xff]  ;;  %v1269_v35 = vmax.f32 %v485_v21, %v1073_v25  ;;  %v487_v36 = vmax.f32 %v95_v32, %v291_v33  ;;  %v1270_v40 = vmax.f32 %v486_v30, %v1074_v31  ;;  %v684_v43 = vld [vmem:[%s4753_s2 + $0x278] sm:$0xff]  ;;  %v293_v47 = vld [vmem:[%s4752_s1 + $0x280] sm:$0xff] }
  0x74   :  { %v879_v37 = vld [vmem:[%s4754_s3 + $0x270] sm:$0xff]  ;;  %v488_v42 = vmax.f32 %v96_v38, %v292_v39  ;;  %v880_v44 = vld [vmem:[%s4754_s3 + $0x278] sm:$0xff]  ;;  %v685_v48 = vld [vmem:[%s4753_s2 + $0x280] sm:$0xff]  ;;  %v489_v51 = vmax.f32 %v97_v45, %v293_v47 }
  0x75   :  { %1465 = vst.msk [vmem:[%s4755_s4 + $0x258] sm:$0xff] %vm1389_vm0, %v1268_v29  ;;  %v1075_v41 = vmax.f32 %v683_v34, %v879_v37  ;;  %1466 = vst.msk [vmem:[%s4755_s4 + $0x260] sm:$0xff] %vm1389_vm0, %v1269_v35  ;;  %v1076_v46 = vmax.f32 %v684_v43, %v880_v44  ;;  %v881_v49 = vld [vmem:[%s4754_s3 + $0x280] sm:$0xff]  ;;  %v98_v53 = vld [vmem:[%s4751_s0 + $0x288] sm:$0xff] }
  0x76   :  { %1467 = vst.msk [vmem:[%s4755_s4 + $0x268] sm:$0xff] %vm1389_vm0, %v1270_v40  ;;  %v1077_v52 = vmax.f32 %v685_v48, %v881_v49  ;;  %v294_v54 = vld [vmem:[%s4752_s1 + $0x288] sm:$0xff]  ;;  %v99_v59 = vld [vmem:[%s4751_s0 + $0x290] sm:$0xff]  ;;  %v100_v2 = vld [vmem:[%s4751_s0 + $0x298] sm:$0xff] }
  0x77   :  { %v1271_v50 = vmax.f32 %v487_v36, %v1075_v41  ;;  %v686_v55 = vld [vmem:[%s4753_s2 + $0x288] sm:$0xff]  ;;  %v1272_v56 = vmax.f32 %v488_v42, %v1076_v46  ;;  %v490_v57 = vmax.f32 %v98_v53, %v294_v54  ;;  %v295_v60 = vld [vmem:[%s4752_s1 + $0x290] sm:$0xff]  ;;  %v296_v4 = vld [vmem:[%s4752_s1 + $0x298] sm:$0xff] }
  0x78   :  { %v882_v58 = vld [vmem:[%s4754_s3 + $0x288] sm:$0xff]  ;;  %v1273_v61 = vmax.f32 %v489_v51, %v1077_v52  ;;  %v491_v63 = vmax.f32 %v99_v59, %v295_v60  ;;  %v687_v0 = vld [vmem:[%s4753_s2 + $0x290] sm:$0xff]  ;;  %v688_v5 = vld [vmem:[%s4753_s2 + $0x298] sm:$0xff]  ;;  %v492_v8 = vmax.f32 %v100_v2, %v296_v4 }
  0x79   :  { %1468 = vst.msk [vmem:[%s4755_s4 + $0x270] sm:$0xff] %vm1389_vm0, %v1271_v50  ;;  %v1078_v62 = vmax.f32 %v686_v55, %v882_v58  ;;  %v883_v1 = vld [vmem:[%s4754_s3 + $0x290] sm:$0xff]  ;;  %1469 = vst.msk [vmem:[%s4755_s4 + $0x278] sm:$0xff] %vm1389_vm0, %v1272_v56  ;;  %v884_v6 = vld [vmem:[%s4754_s3 + $0x298] sm:$0xff] }
  0x7a   :  { %v1079_v3 = vmax.f32 %v687_v0, %v883_v1  ;;  %1470 = vst.msk [vmem:[%s4755_s4 + $0x280] sm:$0xff] %vm1389_vm0, %v1273_v61  ;;  %v1080_v9 = vmax.f32 %v688_v5, %v884_v6  ;;  %v101_v10 = vld [vmem:[%s4751_s0 + $0x2a0] sm:$0xff]  ;;  %v102_v16 = vld [vmem:[%s4751_s0 + $0x2a8] sm:$0xff]  ;;  %v103_v23 = vld [vmem:[%s4751_s0 + $0x2b0] sm:$0xff] }
  0x7b   :  { %v1274_v7 = vmax.f32 %v490_v57, %v1078_v62  ;;  %v297_v11 = vld [vmem:[%s4752_s1 + $0x2a0] sm:$0xff]  ;;  %v298_v17 = vld [vmem:[%s4752_s1 + $0x2a8] sm:$0xff]  ;;  %v299_v25 = vld [vmem:[%s4752_s1 + $0x2b0] sm:$0xff] }
  0x7c   :  { %v689_v12 = vld [vmem:[%s4753_s2 + $0x2a0] sm:$0xff]  ;;  %v1275_v13 = vmax.f32 %v491_v63, %v1079_v3  ;;  %v493_v14 = vmax.f32 %v101_v10, %v297_v11  ;;  %v1276_v18 = vmax.f32 %v492_v8, %v1080_v9  ;;  %v494_v20 = vmax.f32 %v102_v16, %v298_v17  ;;  %v690_v21 = vld [vmem:[%s4753_s2 + $0x2a8] sm:$0xff]  ;;  %v691_v26 = vld [vmem:[%s4753_s2 + $0x2b0] sm:$0xff] }
  0x7d   :  { %v885_v15 = vld [vmem:[%s4754_s3 + $0x2a0] sm:$0xff]  ;;  %1471 = vst.msk [vmem:[%s4755_s4 + $0x288] sm:$0xff] %vm1389_vm0, %v1274_v7  ;;  %v886_v22 = vld [vmem:[%s4754_s3 + $0x2a8] sm:$0xff]  ;;  %v887_v27 = vld [vmem:[%s4754_s3 + $0x2b0] sm:$0xff]  ;;  %v495_v29 = vmax.f32 %v103_v23, %v299_v25 }
  0x7e   :  { %v1081_v19 = vmax.f32 %v689_v12, %v885_v15  ;;  %1472 = vst.msk [vmem:[%s4755_s4 + $0x290] sm:$0xff] %vm1389_vm0, %v1275_v13  ;;  %v1082_v24 = vmax.f32 %v690_v21, %v886_v22  ;;  %1473 = vst.msk [vmem:[%s4755_s4 + $0x298] sm:$0xff] %vm1389_vm0, %v1276_v18  ;;  %v1083_v30 = vmax.f32 %v691_v26, %v887_v27  ;;  %v104_v31 = vld [vmem:[%s4751_s0 + $0x2b8] sm:$0xff]  ;;  %v105_v37 = vld [vmem:[%s4751_s0 + $0x2c0] sm:$0xff] }
  0x7f   :  { %v300_v32 = vld [vmem:[%s4752_s1 + $0x2b8] sm:$0xff]  ;;  %v301_v38 = vld [vmem:[%s4752_s1 + $0x2c0] sm:$0xff]  ;;  %v106_v44 = vld [vmem:[%s4751_s0 + $0x2c8] sm:$0xff] }
  0x80   :  { %v1277_v28 = vmax.f32 %v493_v14, %v1081_v19  ;;  %v692_v33 = vld [vmem:[%s4753_s2 + $0x2b8] sm:$0xff]  ;;  %v1278_v34 = vmax.f32 %v494_v20, %v1082_v24  ;;  %v496_v35 = vmax.f32 %v104_v31, %v300_v32  ;;  %v1279_v39 = vmax.f32 %v495_v29, %v1083_v30  ;;  %v693_v42 = vld [vmem:[%s4753_s2 + $0x2c0] sm:$0xff]  ;;  %v302_v46 = vld [vmem:[%s4752_s1 + $0x2c8] sm:$0xff] }
  0x81   :  { %v888_v36 = vld [vmem:[%s4754_s3 + $0x2b8] sm:$0xff]  ;;  %v497_v41 = vmax.f32 %v105_v37, %v301_v38  ;;  %v889_v43 = vld [vmem:[%s4754_s3 + $0x2c0] sm:$0xff]  ;;  %v694_v47 = vld [vmem:[%s4753_s2 + $0x2c8] sm:$0xff]  ;;  %v498_v50 = vmax.f32 %v106_v44, %v302_v46 }
  0x82   :  { %1474 = vst.msk [vmem:[%s4755_s4 + $0x2a0] sm:$0xff] %vm1389_vm0, %v1277_v28  ;;  %v1084_v40 = vmax.f32 %v692_v33, %v888_v36  ;;  %1475 = vst.msk [vmem:[%s4755_s4 + $0x2a8] sm:$0xff] %vm1389_vm0, %v1278_v34  ;;  %v1085_v45 = vmax.f32 %v693_v42, %v889_v43  ;;  %v890_v48 = vld [vmem:[%s4754_s3 + $0x2c8] sm:$0xff]  ;;  %v107_v52 = vld [vmem:[%s4751_s0 + $0x2d0] sm:$0xff] }
  0x83   :  { %1476 = vst.msk [vmem:[%s4755_s4 + $0x2b0] sm:$0xff] %vm1389_vm0, %v1279_v39  ;;  %v1086_v51 = vmax.f32 %v694_v47, %v890_v48  ;;  %v303_v53 = vld [vmem:[%s4752_s1 + $0x2d0] sm:$0xff]  ;;  %v108_v58 = vld [vmem:[%s4751_s0 + $0x2d8] sm:$0xff]  ;;  %v109_v1 = vld [vmem:[%s4751_s0 + $0x2e0] sm:$0xff] }
  0x84   :  { %v1280_v49 = vmax.f32 %v496_v35, %v1084_v40  ;;  %v695_v54 = vld [vmem:[%s4753_s2 + $0x2d0] sm:$0xff]  ;;  %v1281_v55 = vmax.f32 %v497_v41, %v1085_v45  ;;  %v499_v56 = vmax.f32 %v107_v52, %v303_v53  ;;  %v304_v59 = vld [vmem:[%s4752_s1 + $0x2d8] sm:$0xff]  ;;  %v305_v3 = vld [vmem:[%s4752_s1 + $0x2e0] sm:$0xff] }
  0x85   :  { %v891_v57 = vld [vmem:[%s4754_s3 + $0x2d0] sm:$0xff]  ;;  %v1282_v60 = vmax.f32 %v498_v50, %v1086_v51  ;;  %v500_v62 = vmax.f32 %v108_v58, %v304_v59  ;;  %v696_v63 = vld [vmem:[%s4753_s2 + $0x2d8] sm:$0xff]  ;;  %v697_v4 = vld [vmem:[%s4753_s2 + $0x2e0] sm:$0xff]  ;;  %v501_v7 = vmax.f32 %v109_v1, %v305_v3 }
  0x86   :  { %1477 = vst.msk [vmem:[%s4755_s4 + $0x2b8] sm:$0xff] %vm1389_vm0, %v1280_v49  ;;  %v1087_v61 = vmax.f32 %v695_v54, %v891_v57  ;;  %v892_v0 = vld [vmem:[%s4754_s3 + $0x2d8] sm:$0xff]  ;;  %1478 = vst.msk [vmem:[%s4755_s4 + $0x2c0] sm:$0xff] %vm1389_vm0, %v1281_v55  ;;  %v893_v5 = vld [vmem:[%s4754_s3 + $0x2e0] sm:$0xff] }
  0x87   :  { %v1088_v2 = vmax.f32 %v696_v63, %v892_v0  ;;  %1479 = vst.msk [vmem:[%s4755_s4 + $0x2c8] sm:$0xff] %vm1389_vm0, %v1282_v60  ;;  %v1089_v8 = vmax.f32 %v697_v4, %v893_v5  ;;  %v110_v9 = vld [vmem:[%s4751_s0 + $0x2e8] sm:$0xff]  ;;  %v111_v15 = vld [vmem:[%s4751_s0 + $0x2f0] sm:$0xff]  ;;  %v112_v22 = vld [vmem:[%s4751_s0 + $0x2f8] sm:$0xff] }
  0x88   :  { %v1283_v6 = vmax.f32 %v499_v56, %v1087_v61  ;;  %v306_v10 = vld [vmem:[%s4752_s1 + $0x2e8] sm:$0xff]  ;;  %v307_v16 = vld [vmem:[%s4752_s1 + $0x2f0] sm:$0xff]  ;;  %v308_v24 = vld [vmem:[%s4752_s1 + $0x2f8] sm:$0xff] }
  0x89   :  { %v698_v11 = vld [vmem:[%s4753_s2 + $0x2e8] sm:$0xff]  ;;  %v1284_v12 = vmax.f32 %v500_v62, %v1088_v2  ;;  %v502_v13 = vmax.f32 %v110_v9, %v306_v10  ;;  %v1285_v17 = vmax.f32 %v501_v7, %v1089_v8  ;;  %v503_v19 = vmax.f32 %v111_v15, %v307_v16  ;;  %v699_v20 = vld [vmem:[%s4753_s2 + $0x2f0] sm:$0xff]  ;;  %v700_v25 = vld [vmem:[%s4753_s2 + $0x2f8] sm:$0xff] }
  0x8a   :  { %v894_v14 = vld [vmem:[%s4754_s3 + $0x2e8] sm:$0xff]  ;;  %1480 = vst.msk [vmem:[%s4755_s4 + $0x2d0] sm:$0xff] %vm1389_vm0, %v1283_v6  ;;  %v895_v21 = vld [vmem:[%s4754_s3 + $0x2f0] sm:$0xff]  ;;  %v896_v26 = vld [vmem:[%s4754_s3 + $0x2f8] sm:$0xff]  ;;  %v504_v28 = vmax.f32 %v112_v22, %v308_v24 }
  0x8b   :  { %v1090_v18 = vmax.f32 %v698_v11, %v894_v14  ;;  %1481 = vst.msk [vmem:[%s4755_s4 + $0x2d8] sm:$0xff] %vm1389_vm0, %v1284_v12  ;;  %v1091_v23 = vmax.f32 %v699_v20, %v895_v21  ;;  %1482 = vst.msk [vmem:[%s4755_s4 + $0x2e0] sm:$0xff] %vm1389_vm0, %v1285_v17  ;;  %v1092_v29 = vmax.f32 %v700_v25, %v896_v26  ;;  %v113_v30 = vld [vmem:[%s4751_s0 + $0x300] sm:$0xff]  ;;  %v114_v36 = vld [vmem:[%s4751_s0 + $0x308] sm:$0xff] }
  0x8c   :  { %v309_v31 = vld [vmem:[%s4752_s1 + $0x300] sm:$0xff]  ;;  %v310_v37 = vld [vmem:[%s4752_s1 + $0x308] sm:$0xff]  ;;  %v115_v43 = vld [vmem:[%s4751_s0 + $0x310] sm:$0xff] }
  0x8d   :  { %v1286_v27 = vmax.f32 %v502_v13, %v1090_v18  ;;  %v701_v32 = vld [vmem:[%s4753_s2 + $0x300] sm:$0xff]  ;;  %v1287_v33 = vmax.f32 %v503_v19, %v1091_v23  ;;  %v505_v34 = vmax.f32 %v113_v30, %v309_v31  ;;  %v1288_v38 = vmax.f32 %v504_v28, %v1092_v29  ;;  %v702_v41 = vld [vmem:[%s4753_s2 + $0x308] sm:$0xff]  ;;  %v311_v45 = vld [vmem:[%s4752_s1 + $0x310] sm:$0xff] }
  0x8e   :  { %v897_v35 = vld [vmem:[%s4754_s3 + $0x300] sm:$0xff]  ;;  %v506_v40 = vmax.f32 %v114_v36, %v310_v37  ;;  %v898_v42 = vld [vmem:[%s4754_s3 + $0x308] sm:$0xff]  ;;  %v703_v46 = vld [vmem:[%s4753_s2 + $0x310] sm:$0xff]  ;;  %v507_v49 = vmax.f32 %v115_v43, %v311_v45 }
  0x8f   :  { %1483 = vst.msk [vmem:[%s4755_s4 + $0x2e8] sm:$0xff] %vm1389_vm0, %v1286_v27  ;;  %v1093_v39 = vmax.f32 %v701_v32, %v897_v35  ;;  %1484 = vst.msk [vmem:[%s4755_s4 + $0x2f0] sm:$0xff] %vm1389_vm0, %v1287_v33  ;;  %v1094_v44 = vmax.f32 %v702_v41, %v898_v42  ;;  %v899_v47 = vld [vmem:[%s4754_s3 + $0x310] sm:$0xff]  ;;  %v116_v51 = vld [vmem:[%s4751_s0 + $0x318] sm:$0xff] }
  0x90   :  { %1485 = vst.msk [vmem:[%s4755_s4 + $0x2f8] sm:$0xff] %vm1389_vm0, %v1288_v38  ;;  %v1095_v50 = vmax.f32 %v703_v46, %v899_v47  ;;  %v312_v52 = vld [vmem:[%s4752_s1 + $0x318] sm:$0xff]  ;;  %v117_v57 = vld [vmem:[%s4751_s0 + $0x320] sm:$0xff]  ;;  %v118_v0 = vld [vmem:[%s4751_s0 + $0x328] sm:$0xff] }
  0x91   :  { %v1289_v48 = vmax.f32 %v505_v34, %v1093_v39  ;;  %v704_v53 = vld [vmem:[%s4753_s2 + $0x318] sm:$0xff]  ;;  %v1290_v54 = vmax.f32 %v506_v40, %v1094_v44  ;;  %v508_v55 = vmax.f32 %v116_v51, %v312_v52  ;;  %v313_v58 = vld [vmem:[%s4752_s1 + $0x320] sm:$0xff]  ;;  %v314_v2 = vld [vmem:[%s4752_s1 + $0x328] sm:$0xff] }
  0x92   :  { %v900_v56 = vld [vmem:[%s4754_s3 + $0x318] sm:$0xff]  ;;  %v1291_v59 = vmax.f32 %v507_v49, %v1095_v50  ;;  %v509_v61 = vmax.f32 %v117_v57, %v313_v58  ;;  %v705_v62 = vld [vmem:[%s4753_s2 + $0x320] sm:$0xff]  ;;  %v706_v3 = vld [vmem:[%s4753_s2 + $0x328] sm:$0xff]  ;;  %v510_v6 = vmax.f32 %v118_v0, %v314_v2 }
  0x93   :  { %1486 = vst.msk [vmem:[%s4755_s4 + $0x300] sm:$0xff] %vm1389_vm0, %v1289_v48  ;;  %v1096_v60 = vmax.f32 %v704_v53, %v900_v56  ;;  %v901_v63 = vld [vmem:[%s4754_s3 + $0x320] sm:$0xff]  ;;  %1487 = vst.msk [vmem:[%s4755_s4 + $0x308] sm:$0xff] %vm1389_vm0, %v1290_v54  ;;  %v902_v4 = vld [vmem:[%s4754_s3 + $0x328] sm:$0xff] }
  0x94   :  { %v1097_v1 = vmax.f32 %v705_v62, %v901_v63  ;;  %1488 = vst.msk [vmem:[%s4755_s4 + $0x310] sm:$0xff] %vm1389_vm0, %v1291_v59  ;;  %v1098_v7 = vmax.f32 %v706_v3, %v902_v4  ;;  %v119_v8 = vld [vmem:[%s4751_s0 + $0x330] sm:$0xff]  ;;  %v120_v14 = vld [vmem:[%s4751_s0 + $0x338] sm:$0xff]  ;;  %v121_v21 = vld [vmem:[%s4751_s0 + $0x340] sm:$0xff] }
  0x95   :  { %v1292_v5 = vmax.f32 %v508_v55, %v1096_v60  ;;  %v315_v9 = vld [vmem:[%s4752_s1 + $0x330] sm:$0xff]  ;;  %v316_v15 = vld [vmem:[%s4752_s1 + $0x338] sm:$0xff]  ;;  %v317_v23 = vld [vmem:[%s4752_s1 + $0x340] sm:$0xff] }
  0x96   :  { %v707_v10 = vld [vmem:[%s4753_s2 + $0x330] sm:$0xff]  ;;  %v1293_v11 = vmax.f32 %v509_v61, %v1097_v1  ;;  %v511_v12 = vmax.f32 %v119_v8, %v315_v9  ;;  %v1294_v16 = vmax.f32 %v510_v6, %v1098_v7  ;;  %v512_v18 = vmax.f32 %v120_v14, %v316_v15  ;;  %v708_v19 = vld [vmem:[%s4753_s2 + $0x338] sm:$0xff]  ;;  %v709_v24 = vld [vmem:[%s4753_s2 + $0x340] sm:$0xff] }
  0x97   :  { %v903_v13 = vld [vmem:[%s4754_s3 + $0x330] sm:$0xff]  ;;  %1489 = vst.msk [vmem:[%s4755_s4 + $0x318] sm:$0xff] %vm1389_vm0, %v1292_v5  ;;  %v904_v20 = vld [vmem:[%s4754_s3 + $0x338] sm:$0xff]  ;;  %v905_v25 = vld [vmem:[%s4754_s3 + $0x340] sm:$0xff]  ;;  %v513_v27 = vmax.f32 %v121_v21, %v317_v23 }
  0x98   :  { %v1099_v17 = vmax.f32 %v707_v10, %v903_v13  ;;  %1490 = vst.msk [vmem:[%s4755_s4 + $0x320] sm:$0xff] %vm1389_vm0, %v1293_v11  ;;  %v1100_v22 = vmax.f32 %v708_v19, %v904_v20  ;;  %1491 = vst.msk [vmem:[%s4755_s4 + $0x328] sm:$0xff] %vm1389_vm0, %v1294_v16  ;;  %v1101_v28 = vmax.f32 %v709_v24, %v905_v25  ;;  %v122_v29 = vld [vmem:[%s4751_s0 + $0x348] sm:$0xff]  ;;  %v123_v35 = vld [vmem:[%s4751_s0 + $0x350] sm:$0xff] }
  0x99   :  { %v318_v30 = vld [vmem:[%s4752_s1 + $0x348] sm:$0xff]  ;;  %v319_v36 = vld [vmem:[%s4752_s1 + $0x350] sm:$0xff]  ;;  %v124_v42 = vld [vmem:[%s4751_s0 + $0x358] sm:$0xff] }
  0x9a   :  { %v1295_v26 = vmax.f32 %v511_v12, %v1099_v17  ;;  %v710_v31 = vld [vmem:[%s4753_s2 + $0x348] sm:$0xff]  ;;  %v1296_v32 = vmax.f32 %v512_v18, %v1100_v22  ;;  %v514_v33 = vmax.f32 %v122_v29, %v318_v30  ;;  %v1297_v37 = vmax.f32 %v513_v27, %v1101_v28  ;;  %v711_v40 = vld [vmem:[%s4753_s2 + $0x350] sm:$0xff]  ;;  %v320_v44 = vld [vmem:[%s4752_s1 + $0x358] sm:$0xff] }
  0x9b   :  { %v906_v34 = vld [vmem:[%s4754_s3 + $0x348] sm:$0xff]  ;;  %v515_v39 = vmax.f32 %v123_v35, %v319_v36  ;;  %v907_v41 = vld [vmem:[%s4754_s3 + $0x350] sm:$0xff]  ;;  %v712_v45 = vld [vmem:[%s4753_s2 + $0x358] sm:$0xff]  ;;  %v516_v48 = vmax.f32 %v124_v42, %v320_v44 }
  0x9c   :  { %1492 = vst.msk [vmem:[%s4755_s4 + $0x330] sm:$0xff] %vm1389_vm0, %v1295_v26  ;;  %v1102_v38 = vmax.f32 %v710_v31, %v906_v34  ;;  %1493 = vst.msk [vmem:[%s4755_s4 + $0x338] sm:$0xff] %vm1389_vm0, %v1296_v32  ;;  %v1103_v43 = vmax.f32 %v711_v40, %v907_v41  ;;  %v908_v46 = vld [vmem:[%s4754_s3 + $0x358] sm:$0xff]  ;;  %v125_v50 = vld [vmem:[%s4751_s0 + $0x360] sm:$0xff] }
  0x9d   :  { %1494 = vst.msk [vmem:[%s4755_s4 + $0x340] sm:$0xff] %vm1389_vm0, %v1297_v37  ;;  %v1104_v49 = vmax.f32 %v712_v45, %v908_v46  ;;  %v321_v51 = vld [vmem:[%s4752_s1 + $0x360] sm:$0xff]  ;;  %v126_v56 = vld [vmem:[%s4751_s0 + $0x368] sm:$0xff]  ;;  %v127_v63 = vld [vmem:[%s4751_s0 + $0x370] sm:$0xff] }
  0x9e   :  { %v1298_v47 = vmax.f32 %v514_v33, %v1102_v38  ;;  %v713_v52 = vld [vmem:[%s4753_s2 + $0x360] sm:$0xff]  ;;  %v1299_v53 = vmax.f32 %v515_v39, %v1103_v43  ;;  %v517_v54 = vmax.f32 %v125_v50, %v321_v51  ;;  %v322_v57 = vld [vmem:[%s4752_s1 + $0x368] sm:$0xff]  ;;  %v323_v1 = vld [vmem:[%s4752_s1 + $0x370] sm:$0xff] }
  0x9f   :  { %v909_v55 = vld [vmem:[%s4754_s3 + $0x360] sm:$0xff]  ;;  %v1300_v58 = vmax.f32 %v516_v48, %v1104_v49  ;;  %v518_v60 = vmax.f32 %v126_v56, %v322_v57  ;;  %v714_v61 = vld [vmem:[%s4753_s2 + $0x368] sm:$0xff]  ;;  %v715_v2 = vld [vmem:[%s4753_s2 + $0x370] sm:$0xff]  ;;  %v519_v5 = vmax.f32 %v127_v63, %v323_v1 }
  0xa0   :  { %1495 = vst.msk [vmem:[%s4755_s4 + $0x348] sm:$0xff] %vm1389_vm0, %v1298_v47  ;;  %v1105_v59 = vmax.f32 %v713_v52, %v909_v55  ;;  %v910_v62 = vld [vmem:[%s4754_s3 + $0x368] sm:$0xff]  ;;  %1496 = vst.msk [vmem:[%s4755_s4 + $0x350] sm:$0xff] %vm1389_vm0, %v1299_v53  ;;  %v911_v3 = vld [vmem:[%s4754_s3 + $0x370] sm:$0xff] }
  0xa1   :  { %v1106_v0 = vmax.f32 %v714_v61, %v910_v62  ;;  %1497 = vst.msk [vmem:[%s4755_s4 + $0x358] sm:$0xff] %vm1389_vm0, %v1300_v58  ;;  %v1107_v6 = vmax.f32 %v715_v2, %v911_v3  ;;  %v128_v7 = vld [vmem:[%s4751_s0 + $0x378] sm:$0xff]  ;;  %v129_v13 = vld [vmem:[%s4751_s0 + $0x380] sm:$0xff]  ;;  %v130_v20 = vld [vmem:[%s4751_s0 + $0x388] sm:$0xff] }
  0xa2   :  { %v1301_v4 = vmax.f32 %v517_v54, %v1105_v59  ;;  %v324_v8 = vld [vmem:[%s4752_s1 + $0x378] sm:$0xff]  ;;  %v325_v14 = vld [vmem:[%s4752_s1 + $0x380] sm:$0xff]  ;;  %v326_v22 = vld [vmem:[%s4752_s1 + $0x388] sm:$0xff] }
  0xa3   :  { %v716_v9 = vld [vmem:[%s4753_s2 + $0x378] sm:$0xff]  ;;  %v1302_v10 = vmax.f32 %v518_v60, %v1106_v0  ;;  %v520_v11 = vmax.f32 %v128_v7, %v324_v8  ;;  %v1303_v15 = vmax.f32 %v519_v5, %v1107_v6  ;;  %v521_v17 = vmax.f32 %v129_v13, %v325_v14  ;;  %v717_v18 = vld [vmem:[%s4753_s2 + $0x380] sm:$0xff]  ;;  %v718_v23 = vld [vmem:[%s4753_s2 + $0x388] sm:$0xff] }
  0xa4   :  { %v912_v12 = vld [vmem:[%s4754_s3 + $0x378] sm:$0xff]  ;;  %1498 = vst.msk [vmem:[%s4755_s4 + $0x360] sm:$0xff] %vm1389_vm0, %v1301_v4  ;;  %v913_v19 = vld [vmem:[%s4754_s3 + $0x380] sm:$0xff]  ;;  %v914_v24 = vld [vmem:[%s4754_s3 + $0x388] sm:$0xff]  ;;  %v522_v26 = vmax.f32 %v130_v20, %v326_v22 }
  0xa5   :  { %v1108_v16 = vmax.f32 %v716_v9, %v912_v12  ;;  %1499 = vst.msk [vmem:[%s4755_s4 + $0x368] sm:$0xff] %vm1389_vm0, %v1302_v10  ;;  %v1109_v21 = vmax.f32 %v717_v18, %v913_v19  ;;  %1500 = vst.msk [vmem:[%s4755_s4 + $0x370] sm:$0xff] %vm1389_vm0, %v1303_v15  ;;  %v1110_v27 = vmax.f32 %v718_v23, %v914_v24  ;;  %v131_v28 = vld [vmem:[%s4751_s0 + $0x390] sm:$0xff]  ;;  %v132_v34 = vld [vmem:[%s4751_s0 + $0x398] sm:$0xff] }
  0xa6   :  { %v327_v29 = vld [vmem:[%s4752_s1 + $0x390] sm:$0xff]  ;;  %v328_v35 = vld [vmem:[%s4752_s1 + $0x398] sm:$0xff]  ;;  %v133_v41 = vld [vmem:[%s4751_s0 + $0x3a0] sm:$0xff] }
  0xa7   :  { %v1304_v25 = vmax.f32 %v520_v11, %v1108_v16  ;;  %v719_v30 = vld [vmem:[%s4753_s2 + $0x390] sm:$0xff]  ;;  %v1305_v31 = vmax.f32 %v521_v17, %v1109_v21  ;;  %v523_v32 = vmax.f32 %v131_v28, %v327_v29  ;;  %v1306_v36 = vmax.f32 %v522_v26, %v1110_v27  ;;  %v720_v39 = vld [vmem:[%s4753_s2 + $0x398] sm:$0xff]  ;;  %v329_v43 = vld [vmem:[%s4752_s1 + $0x3a0] sm:$0xff] }
  0xa8   :  { %v915_v33 = vld [vmem:[%s4754_s3 + $0x390] sm:$0xff]  ;;  %v524_v38 = vmax.f32 %v132_v34, %v328_v35  ;;  %v916_v40 = vld [vmem:[%s4754_s3 + $0x398] sm:$0xff]  ;;  %v721_v44 = vld [vmem:[%s4753_s2 + $0x3a0] sm:$0xff]  ;;  %v525_v47 = vmax.f32 %v133_v41, %v329_v43 }
  0xa9   :  { %1501 = vst.msk [vmem:[%s4755_s4 + $0x378] sm:$0xff] %vm1389_vm0, %v1304_v25  ;;  %v1111_v37 = vmax.f32 %v719_v30, %v915_v33  ;;  %1502 = vst.msk [vmem:[%s4755_s4 + $0x380] sm:$0xff] %vm1389_vm0, %v1305_v31  ;;  %v1112_v42 = vmax.f32 %v720_v39, %v916_v40  ;;  %v917_v45 = vld [vmem:[%s4754_s3 + $0x3a0] sm:$0xff]  ;;  %v134_v49 = vld [vmem:[%s4751_s0 + $0x3a8] sm:$0xff] }
  0xaa   :  { %1503 = vst.msk [vmem:[%s4755_s4 + $0x388] sm:$0xff] %vm1389_vm0, %v1306_v36  ;;  %v1113_v48 = vmax.f32 %v721_v44, %v917_v45  ;;  %v330_v50 = vld [vmem:[%s4752_s1 + $0x3a8] sm:$0xff]  ;;  %v135_v55 = vld [vmem:[%s4751_s0 + $0x3b0] sm:$0xff]  ;;  %v136_v62 = vld [vmem:[%s4751_s0 + $0x3b8] sm:$0xff] }
  0xab   :  { %v1307_v46 = vmax.f32 %v523_v32, %v1111_v37  ;;  %v722_v51 = vld [vmem:[%s4753_s2 + $0x3a8] sm:$0xff]  ;;  %v1308_v52 = vmax.f32 %v524_v38, %v1112_v42  ;;  %v526_v53 = vmax.f32 %v134_v49, %v330_v50  ;;  %v331_v56 = vld [vmem:[%s4752_s1 + $0x3b0] sm:$0xff]  ;;  %v332_v0 = vld [vmem:[%s4752_s1 + $0x3b8] sm:$0xff] }
  0xac   :  { %v918_v54 = vld [vmem:[%s4754_s3 + $0x3a8] sm:$0xff]  ;;  %v1309_v57 = vmax.f32 %v525_v47, %v1113_v48  ;;  %v527_v59 = vmax.f32 %v135_v55, %v331_v56  ;;  %v723_v60 = vld [vmem:[%s4753_s2 + $0x3b0] sm:$0xff]  ;;  %v724_v1 = vld [vmem:[%s4753_s2 + $0x3b8] sm:$0xff]  ;;  %v528_v4 = vmax.f32 %v136_v62, %v332_v0 }
  0xad   :  { %1504 = vst.msk [vmem:[%s4755_s4 + $0x390] sm:$0xff] %vm1389_vm0, %v1307_v46  ;;  %v1114_v58 = vmax.f32 %v722_v51, %v918_v54  ;;  %v919_v61 = vld [vmem:[%s4754_s3 + $0x3b0] sm:$0xff]  ;;  %1505 = vst.msk [vmem:[%s4755_s4 + $0x398] sm:$0xff] %vm1389_vm0, %v1308_v52  ;;  %v920_v2 = vld [vmem:[%s4754_s3 + $0x3b8] sm:$0xff] }
  0xae   :  { %v1115_v63 = vmax.f32 %v723_v60, %v919_v61  ;;  %1506 = vst.msk [vmem:[%s4755_s4 + $0x3a0] sm:$0xff] %vm1389_vm0, %v1309_v57  ;;  %v1116_v5 = vmax.f32 %v724_v1, %v920_v2  ;;  %v137_v6 = vld [vmem:[%s4751_s0 + $0x3c0] sm:$0xff]  ;;  %v138_v12 = vld [vmem:[%s4751_s0 + $0x3c8] sm:$0xff]  ;;  %v139_v19 = vld [vmem:[%s4751_s0 + $0x3d0] sm:$0xff] }
  0xaf   :  { %v1310_v3 = vmax.f32 %v526_v53, %v1114_v58  ;;  %v333_v7 = vld [vmem:[%s4752_s1 + $0x3c0] sm:$0xff]  ;;  %v334_v13 = vld [vmem:[%s4752_s1 + $0x3c8] sm:$0xff]  ;;  %v335_v21 = vld [vmem:[%s4752_s1 + $0x3d0] sm:$0xff] }
  0xb0   :  { %v725_v8 = vld [vmem:[%s4753_s2 + $0x3c0] sm:$0xff]  ;;  %v1311_v9 = vmax.f32 %v527_v59, %v1115_v63  ;;  %v529_v10 = vmax.f32 %v137_v6, %v333_v7  ;;  %v1312_v14 = vmax.f32 %v528_v4, %v1116_v5  ;;  %v530_v16 = vmax.f32 %v138_v12, %v334_v13  ;;  %v726_v17 = vld [vmem:[%s4753_s2 + $0x3c8] sm:$0xff]  ;;  %v727_v22 = vld [vmem:[%s4753_s2 + $0x3d0] sm:$0xff] }
  0xb1   :  { %v921_v11 = vld [vmem:[%s4754_s3 + $0x3c0] sm:$0xff]  ;;  %1507 = vst.msk [vmem:[%s4755_s4 + $0x3a8] sm:$0xff] %vm1389_vm0, %v1310_v3  ;;  %v922_v18 = vld [vmem:[%s4754_s3 + $0x3c8] sm:$0xff]  ;;  %v923_v23 = vld [vmem:[%s4754_s3 + $0x3d0] sm:$0xff]  ;;  %v531_v25 = vmax.f32 %v139_v19, %v335_v21 }
  0xb2   :  { %v1117_v15 = vmax.f32 %v725_v8, %v921_v11  ;;  %1508 = vst.msk [vmem:[%s4755_s4 + $0x3b0] sm:$0xff] %vm1389_vm0, %v1311_v9  ;;  %v1118_v20 = vmax.f32 %v726_v17, %v922_v18  ;;  %1509 = vst.msk [vmem:[%s4755_s4 + $0x3b8] sm:$0xff] %vm1389_vm0, %v1312_v14  ;;  %v1119_v26 = vmax.f32 %v727_v22, %v923_v23  ;;  %v140_v27 = vld [vmem:[%s4751_s0 + $0x3d8] sm:$0xff]  ;;  %v141_v33 = vld [vmem:[%s4751_s0 + $0x3e0] sm:$0xff] }
  0xb3   :  { %v336_v28 = vld [vmem:[%s4752_s1 + $0x3d8] sm:$0xff]  ;;  %v337_v34 = vld [vmem:[%s4752_s1 + $0x3e0] sm:$0xff]  ;;  %v142_v40 = vld [vmem:[%s4751_s0 + $0x3e8] sm:$0xff] }
  0xb4   :  { %v1313_v24 = vmax.f32 %v529_v10, %v1117_v15  ;;  %v728_v29 = vld [vmem:[%s4753_s2 + $0x3d8] sm:$0xff]  ;;  %v1314_v30 = vmax.f32 %v530_v16, %v1118_v20  ;;  %v532_v31 = vmax.f32 %v140_v27, %v336_v28  ;;  %v1315_v35 = vmax.f32 %v531_v25, %v1119_v26  ;;  %v729_v38 = vld [vmem:[%s4753_s2 + $0x3e0] sm:$0xff]  ;;  %v338_v42 = vld [vmem:[%s4752_s1 + $0x3e8] sm:$0xff] }
  0xb5   :  { %v924_v32 = vld [vmem:[%s4754_s3 + $0x3d8] sm:$0xff]  ;;  %v533_v37 = vmax.f32 %v141_v33, %v337_v34  ;;  %v925_v39 = vld [vmem:[%s4754_s3 + $0x3e0] sm:$0xff]  ;;  %v730_v43 = vld [vmem:[%s4753_s2 + $0x3e8] sm:$0xff]  ;;  %v534_v46 = vmax.f32 %v142_v40, %v338_v42 }
  0xb6   :  { %1510 = vst.msk [vmem:[%s4755_s4 + $0x3c0] sm:$0xff] %vm1389_vm0, %v1313_v24  ;;  %v1120_v36 = vmax.f32 %v728_v29, %v924_v32  ;;  %1511 = vst.msk [vmem:[%s4755_s4 + $0x3c8] sm:$0xff] %vm1389_vm0, %v1314_v30  ;;  %v1121_v41 = vmax.f32 %v729_v38, %v925_v39  ;;  %v926_v44 = vld [vmem:[%s4754_s3 + $0x3e8] sm:$0xff]  ;;  %v143_v48 = vld [vmem:[%s4751_s0 + $0x3f0] sm:$0xff] }
  0xb7   :  { %1512 = vst.msk [vmem:[%s4755_s4 + $0x3d0] sm:$0xff] %vm1389_vm0, %v1315_v35  ;;  %v1122_v47 = vmax.f32 %v730_v43, %v926_v44  ;;  %v339_v49 = vld [vmem:[%s4752_s1 + $0x3f0] sm:$0xff]  ;;  %v144_v54 = vld [vmem:[%s4751_s0 + $0x3f8] sm:$0xff]  ;;  %v145_v61 = vld [vmem:[%s4751_s0 + $0x400] sm:$0xff] }
  0xb8   :  { %v1316_v45 = vmax.f32 %v532_v31, %v1120_v36  ;;  %v731_v50 = vld [vmem:[%s4753_s2 + $0x3f0] sm:$0xff]  ;;  %v1317_v51 = vmax.f32 %v533_v37, %v1121_v41  ;;  %v535_v52 = vmax.f32 %v143_v48, %v339_v49  ;;  %v340_v55 = vld [vmem:[%s4752_s1 + $0x3f8] sm:$0xff]  ;;  %v341_v63 = vld [vmem:[%s4752_s1 + $0x400] sm:$0xff] }
  0xb9   :  { %v927_v53 = vld [vmem:[%s4754_s3 + $0x3f0] sm:$0xff]  ;;  %v1318_v56 = vmax.f32 %v534_v46, %v1122_v47  ;;  %v536_v58 = vmax.f32 %v144_v54, %v340_v55  ;;  %v732_v59 = vld [vmem:[%s4753_s2 + $0x3f8] sm:$0xff]  ;;  %v733_v0 = vld [vmem:[%s4753_s2 + $0x400] sm:$0xff]  ;;  %v537_v3 = vmax.f32 %v145_v61, %v341_v63 }
  0xba   :  { %1513 = vst.msk [vmem:[%s4755_s4 + $0x3d8] sm:$0xff] %vm1389_vm0, %v1316_v45  ;;  %v1123_v57 = vmax.f32 %v731_v50, %v927_v53  ;;  %v928_v60 = vld [vmem:[%s4754_s3 + $0x3f8] sm:$0xff]  ;;  %1514 = vst.msk [vmem:[%s4755_s4 + $0x3e0] sm:$0xff] %vm1389_vm0, %v1317_v51  ;;  %v929_v1 = vld [vmem:[%s4754_s3 + $0x400] sm:$0xff] }
  0xbb   :  { %v1124_v62 = vmax.f32 %v732_v59, %v928_v60  ;;  %1515 = vst.msk [vmem:[%s4755_s4 + $0x3e8] sm:$0xff] %vm1389_vm0, %v1318_v56  ;;  %v1125_v4 = vmax.f32 %v733_v0, %v929_v1  ;;  %v146_v5 = vld [vmem:[%s4751_s0 + $0x408] sm:$0xff]  ;;  %v147_v11 = vld [vmem:[%s4751_s0 + $0x410] sm:$0xff]  ;;  %v148_v18 = vld [vmem:[%s4751_s0 + $0x418] sm:$0xff] }
  0xbc   :  { %v1319_v2 = vmax.f32 %v535_v52, %v1123_v57  ;;  %v342_v6 = vld [vmem:[%s4752_s1 + $0x408] sm:$0xff]  ;;  %v343_v12 = vld [vmem:[%s4752_s1 + $0x410] sm:$0xff]  ;;  %v344_v20 = vld [vmem:[%s4752_s1 + $0x418] sm:$0xff] }
  0xbd   :  { %v734_v7 = vld [vmem:[%s4753_s2 + $0x408] sm:$0xff]  ;;  %v1320_v8 = vmax.f32 %v536_v58, %v1124_v62  ;;  %v538_v9 = vmax.f32 %v146_v5, %v342_v6  ;;  %v1321_v13 = vmax.f32 %v537_v3, %v1125_v4  ;;  %v539_v15 = vmax.f32 %v147_v11, %v343_v12  ;;  %v735_v16 = vld [vmem:[%s4753_s2 + $0x410] sm:$0xff]  ;;  %v736_v21 = vld [vmem:[%s4753_s2 + $0x418] sm:$0xff] }
  0xbe   :  { %v930_v10 = vld [vmem:[%s4754_s3 + $0x408] sm:$0xff]  ;;  %1516 = vst.msk [vmem:[%s4755_s4 + $0x3f0] sm:$0xff] %vm1389_vm0, %v1319_v2  ;;  %v931_v17 = vld [vmem:[%s4754_s3 + $0x410] sm:$0xff]  ;;  %v932_v22 = vld [vmem:[%s4754_s3 + $0x418] sm:$0xff]  ;;  %v540_v24 = vmax.f32 %v148_v18, %v344_v20 }
  0xbf   :  { %v1126_v14 = vmax.f32 %v734_v7, %v930_v10  ;;  %1517 = vst.msk [vmem:[%s4755_s4 + $0x3f8] sm:$0xff] %vm1389_vm0, %v1320_v8  ;;  %v1127_v19 = vmax.f32 %v735_v16, %v931_v17  ;;  %1518 = vst.msk [vmem:[%s4755_s4 + $0x400] sm:$0xff] %vm1389_vm0, %v1321_v13  ;;  %v1128_v25 = vmax.f32 %v736_v21, %v932_v22  ;;  %v149_v26 = vld [vmem:[%s4751_s0 + $0x420] sm:$0xff]  ;;  %v150_v32 = vld [vmem:[%s4751_s0 + $0x428] sm:$0xff] }
  0xc0   :  { %v345_v27 = vld [vmem:[%s4752_s1 + $0x420] sm:$0xff]  ;;  %v346_v33 = vld [vmem:[%s4752_s1 + $0x428] sm:$0xff]  ;;  %v151_v39 = vld [vmem:[%s4751_s0 + $0x430] sm:$0xff] }
  0xc1   :  { %v1322_v23 = vmax.f32 %v538_v9, %v1126_v14  ;;  %v737_v28 = vld [vmem:[%s4753_s2 + $0x420] sm:$0xff]  ;;  %v1323_v29 = vmax.f32 %v539_v15, %v1127_v19  ;;  %v541_v30 = vmax.f32 %v149_v26, %v345_v27  ;;  %v1324_v34 = vmax.f32 %v540_v24, %v1128_v25  ;;  %v738_v37 = vld [vmem:[%s4753_s2 + $0x428] sm:$0xff]  ;;  %v347_v41 = vld [vmem:[%s4752_s1 + $0x430] sm:$0xff] }
  0xc2   :  { %v933_v31 = vld [vmem:[%s4754_s3 + $0x420] sm:$0xff]  ;;  %v542_v36 = vmax.f32 %v150_v32, %v346_v33  ;;  %v934_v38 = vld [vmem:[%s4754_s3 + $0x428] sm:$0xff]  ;;  %v739_v42 = vld [vmem:[%s4753_s2 + $0x430] sm:$0xff]  ;;  %v543_v45 = vmax.f32 %v151_v39, %v347_v41 }
  0xc3   :  { %1519 = vst.msk [vmem:[%s4755_s4 + $0x408] sm:$0xff] %vm1389_vm0, %v1322_v23  ;;  %v1129_v35 = vmax.f32 %v737_v28, %v933_v31  ;;  %1520 = vst.msk [vmem:[%s4755_s4 + $0x410] sm:$0xff] %vm1389_vm0, %v1323_v29  ;;  %v1130_v40 = vmax.f32 %v738_v37, %v934_v38  ;;  %v935_v43 = vld [vmem:[%s4754_s3 + $0x430] sm:$0xff]  ;;  %v152_v47 = vld [vmem:[%s4751_s0 + $0x438] sm:$0xff] }
  0xc4   :  { %1521 = vst.msk [vmem:[%s4755_s4 + $0x418] sm:$0xff] %vm1389_vm0, %v1324_v34  ;;  %v1131_v46 = vmax.f32 %v739_v42, %v935_v43  ;;  %v348_v48 = vld [vmem:[%s4752_s1 + $0x438] sm:$0xff]  ;;  %v153_v53 = vld [vmem:[%s4751_s0 + $0x440] sm:$0xff]  ;;  %v154_v60 = vld [vmem:[%s4751_s0 + $0x448] sm:$0xff] }
  0xc5   :  { %v1325_v44 = vmax.f32 %v541_v30, %v1129_v35  ;;  %v740_v49 = vld [vmem:[%s4753_s2 + $0x438] sm:$0xff]  ;;  %v1326_v50 = vmax.f32 %v542_v36, %v1130_v40  ;;  %v544_v51 = vmax.f32 %v152_v47, %v348_v48  ;;  %v349_v54 = vld [vmem:[%s4752_s1 + $0x440] sm:$0xff]  ;;  %v350_v62 = vld [vmem:[%s4752_s1 + $0x448] sm:$0xff] }
  0xc6   :  { %v936_v52 = vld [vmem:[%s4754_s3 + $0x438] sm:$0xff]  ;;  %v1327_v55 = vmax.f32 %v543_v45, %v1131_v46  ;;  %v545_v57 = vmax.f32 %v153_v53, %v349_v54  ;;  %v741_v58 = vld [vmem:[%s4753_s2 + $0x440] sm:$0xff]  ;;  %v742_v63 = vld [vmem:[%s4753_s2 + $0x448] sm:$0xff]  ;;  %v546_v2 = vmax.f32 %v154_v60, %v350_v62 }
  0xc7   :  { %1522 = vst.msk [vmem:[%s4755_s4 + $0x420] sm:$0xff] %vm1389_vm0, %v1325_v44  ;;  %v1132_v56 = vmax.f32 %v740_v49, %v936_v52  ;;  %v937_v59 = vld [vmem:[%s4754_s3 + $0x440] sm:$0xff]  ;;  %1523 = vst.msk [vmem:[%s4755_s4 + $0x428] sm:$0xff] %vm1389_vm0, %v1326_v50  ;;  %v938_v0 = vld [vmem:[%s4754_s3 + $0x448] sm:$0xff] }
  0xc8   :  { %v1133_v61 = vmax.f32 %v741_v58, %v937_v59  ;;  %1524 = vst.msk [vmem:[%s4755_s4 + $0x430] sm:$0xff] %vm1389_vm0, %v1327_v55  ;;  %v1134_v3 = vmax.f32 %v742_v63, %v938_v0  ;;  %v155_v4 = vld [vmem:[%s4751_s0 + $0x450] sm:$0xff]  ;;  %v156_v10 = vld [vmem:[%s4751_s0 + $0x458] sm:$0xff]  ;;  %v157_v17 = vld [vmem:[%s4751_s0 + $0x460] sm:$0xff] }
  0xc9   :  { %v1328_v1 = vmax.f32 %v544_v51, %v1132_v56  ;;  %v351_v5 = vld [vmem:[%s4752_s1 + $0x450] sm:$0xff]  ;;  %v352_v11 = vld [vmem:[%s4752_s1 + $0x458] sm:$0xff]  ;;  %v353_v19 = vld [vmem:[%s4752_s1 + $0x460] sm:$0xff] }
  0xca   :  { %v743_v6 = vld [vmem:[%s4753_s2 + $0x450] sm:$0xff]  ;;  %v1329_v7 = vmax.f32 %v545_v57, %v1133_v61  ;;  %v547_v8 = vmax.f32 %v155_v4, %v351_v5  ;;  %v1330_v12 = vmax.f32 %v546_v2, %v1134_v3  ;;  %v548_v14 = vmax.f32 %v156_v10, %v352_v11  ;;  %v744_v15 = vld [vmem:[%s4753_s2 + $0x458] sm:$0xff]  ;;  %v745_v20 = vld [vmem:[%s4753_s2 + $0x460] sm:$0xff] }
  0xcb   :  { %v939_v9 = vld [vmem:[%s4754_s3 + $0x450] sm:$0xff]  ;;  %1525 = vst.msk [vmem:[%s4755_s4 + $0x438] sm:$0xff] %vm1389_vm0, %v1328_v1  ;;  %v940_v16 = vld [vmem:[%s4754_s3 + $0x458] sm:$0xff]  ;;  %v941_v21 = vld [vmem:[%s4754_s3 + $0x460] sm:$0xff]  ;;  %v549_v23 = vmax.f32 %v157_v17, %v353_v19 }
  0xcc   :  { %v1135_v13 = vmax.f32 %v743_v6, %v939_v9  ;;  %1526 = vst.msk [vmem:[%s4755_s4 + $0x440] sm:$0xff] %vm1389_vm0, %v1329_v7  ;;  %v1136_v18 = vmax.f32 %v744_v15, %v940_v16  ;;  %1527 = vst.msk [vmem:[%s4755_s4 + $0x448] sm:$0xff] %vm1389_vm0, %v1330_v12  ;;  %v1137_v24 = vmax.f32 %v745_v20, %v941_v21  ;;  %v158_v25 = vld [vmem:[%s4751_s0 + $0x468] sm:$0xff]  ;;  %v159_v31 = vld [vmem:[%s4751_s0 + $0x470] sm:$0xff] }
  0xcd   :  { %v354_v26 = vld [vmem:[%s4752_s1 + $0x468] sm:$0xff]  ;;  %v355_v32 = vld [vmem:[%s4752_s1 + $0x470] sm:$0xff]  ;;  %v160_v38 = vld [vmem:[%s4751_s0 + $0x478] sm:$0xff] }
  0xce   :  { %v1331_v22 = vmax.f32 %v547_v8, %v1135_v13  ;;  %v746_v27 = vld [vmem:[%s4753_s2 + $0x468] sm:$0xff]  ;;  %v1332_v28 = vmax.f32 %v548_v14, %v1136_v18  ;;  %v550_v29 = vmax.f32 %v158_v25, %v354_v26  ;;  %v1333_v33 = vmax.f32 %v549_v23, %v1137_v24  ;;  %v747_v36 = vld [vmem:[%s4753_s2 + $0x470] sm:$0xff]  ;;  %v356_v40 = vld [vmem:[%s4752_s1 + $0x478] sm:$0xff] }
  0xcf   :  { %v942_v30 = vld [vmem:[%s4754_s3 + $0x468] sm:$0xff]  ;;  %v551_v35 = vmax.f32 %v159_v31, %v355_v32  ;;  %v943_v37 = vld [vmem:[%s4754_s3 + $0x470] sm:$0xff]  ;;  %v748_v41 = vld [vmem:[%s4753_s2 + $0x478] sm:$0xff]  ;;  %v552_v44 = vmax.f32 %v160_v38, %v356_v40 }
  0xd0   :  { %1528 = vst.msk [vmem:[%s4755_s4 + $0x450] sm:$0xff] %vm1389_vm0, %v1331_v22  ;;  %v1138_v34 = vmax.f32 %v746_v27, %v942_v30  ;;  %1529 = vst.msk [vmem:[%s4755_s4 + $0x458] sm:$0xff] %vm1389_vm0, %v1332_v28  ;;  %v1139_v39 = vmax.f32 %v747_v36, %v943_v37  ;;  %v944_v42 = vld [vmem:[%s4754_s3 + $0x478] sm:$0xff]  ;;  %v161_v46 = vld [vmem:[%s4751_s0 + $0x480] sm:$0xff] }
  0xd1   :  { %1530 = vst.msk [vmem:[%s4755_s4 + $0x460] sm:$0xff] %vm1389_vm0, %v1333_v33  ;;  %v1140_v45 = vmax.f32 %v748_v41, %v944_v42  ;;  %v357_v47 = vld [vmem:[%s4752_s1 + $0x480] sm:$0xff]  ;;  %v162_v52 = vld [vmem:[%s4751_s0 + $0x488] sm:$0xff]  ;;  %v163_v59 = vld [vmem:[%s4751_s0 + $0x490] sm:$0xff] }
  0xd2   :  { %v1334_v43 = vmax.f32 %v550_v29, %v1138_v34  ;;  %v749_v48 = vld [vmem:[%s4753_s2 + $0x480] sm:$0xff]  ;;  %v1335_v49 = vmax.f32 %v551_v35, %v1139_v39  ;;  %v553_v50 = vmax.f32 %v161_v46, %v357_v47  ;;  %v358_v53 = vld [vmem:[%s4752_s1 + $0x488] sm:$0xff]  ;;  %v359_v61 = vld [vmem:[%s4752_s1 + $0x490] sm:$0xff] }
  0xd3   :  { %v945_v51 = vld [vmem:[%s4754_s3 + $0x480] sm:$0xff]  ;;  %v1336_v54 = vmax.f32 %v552_v44, %v1140_v45  ;;  %v554_v56 = vmax.f32 %v162_v52, %v358_v53  ;;  %v750_v57 = vld [vmem:[%s4753_s2 + $0x488] sm:$0xff]  ;;  %v751_v62 = vld [vmem:[%s4753_s2 + $0x490] sm:$0xff]  ;;  %v555_v1 = vmax.f32 %v163_v59, %v359_v61 }
  0xd4   :  { %1531 = vst.msk [vmem:[%s4755_s4 + $0x468] sm:$0xff] %vm1389_vm0, %v1334_v43  ;;  %v1141_v55 = vmax.f32 %v749_v48, %v945_v51  ;;  %v946_v58 = vld [vmem:[%s4754_s3 + $0x488] sm:$0xff]  ;;  %1532 = vst.msk [vmem:[%s4755_s4 + $0x470] sm:$0xff] %vm1389_vm0, %v1335_v49  ;;  %v947_v63 = vld [vmem:[%s4754_s3 + $0x490] sm:$0xff] }
  0xd5   :  { %v1142_v60 = vmax.f32 %v750_v57, %v946_v58  ;;  %1533 = vst.msk [vmem:[%s4755_s4 + $0x478] sm:$0xff] %vm1389_vm0, %v1336_v54  ;;  %v1143_v2 = vmax.f32 %v751_v62, %v947_v63  ;;  %v164_v3 = vld [vmem:[%s4751_s0 + $0x498] sm:$0xff]  ;;  %v165_v9 = vld [vmem:[%s4751_s0 + $0x4a0] sm:$0xff]  ;;  %v166_v16 = vld [vmem:[%s4751_s0 + $0x4a8] sm:$0xff] }
  0xd6   :  { %v1337_v0 = vmax.f32 %v553_v50, %v1141_v55  ;;  %v360_v4 = vld [vmem:[%s4752_s1 + $0x498] sm:$0xff]  ;;  %v361_v10 = vld [vmem:[%s4752_s1 + $0x4a0] sm:$0xff]  ;;  %v362_v18 = vld [vmem:[%s4752_s1 + $0x4a8] sm:$0xff] }
  0xd7   :  { %v752_v5 = vld [vmem:[%s4753_s2 + $0x498] sm:$0xff]  ;;  %v1338_v6 = vmax.f32 %v554_v56, %v1142_v60  ;;  %v556_v7 = vmax.f32 %v164_v3, %v360_v4  ;;  %v1339_v11 = vmax.f32 %v555_v1, %v1143_v2  ;;  %v557_v13 = vmax.f32 %v165_v9, %v361_v10  ;;  %v753_v14 = vld [vmem:[%s4753_s2 + $0x4a0] sm:$0xff]  ;;  %v754_v19 = vld [vmem:[%s4753_s2 + $0x4a8] sm:$0xff] }
  0xd8   :  { %v948_v8 = vld [vmem:[%s4754_s3 + $0x498] sm:$0xff]  ;;  %1534 = vst.msk [vmem:[%s4755_s4 + $0x480] sm:$0xff] %vm1389_vm0, %v1337_v0  ;;  %v949_v15 = vld [vmem:[%s4754_s3 + $0x4a0] sm:$0xff]  ;;  %v950_v20 = vld [vmem:[%s4754_s3 + $0x4a8] sm:$0xff]  ;;  %v558_v22 = vmax.f32 %v166_v16, %v362_v18 }
  0xd9   :  { %v1144_v12 = vmax.f32 %v752_v5, %v948_v8  ;;  %1535 = vst.msk [vmem:[%s4755_s4 + $0x488] sm:$0xff] %vm1389_vm0, %v1338_v6  ;;  %v1145_v17 = vmax.f32 %v753_v14, %v949_v15  ;;  %1536 = vst.msk [vmem:[%s4755_s4 + $0x490] sm:$0xff] %vm1389_vm0, %v1339_v11  ;;  %v1146_v23 = vmax.f32 %v754_v19, %v950_v20  ;;  %v167_v24 = vld [vmem:[%s4751_s0 + $0x4b0] sm:$0xff]  ;;  %v168_v30 = vld [vmem:[%s4751_s0 + $0x4b8] sm:$0xff] }
  0xda   :  { %v363_v25 = vld [vmem:[%s4752_s1 + $0x4b0] sm:$0xff]  ;;  %v364_v31 = vld [vmem:[%s4752_s1 + $0x4b8] sm:$0xff]  ;;  %v169_v37 = vld [vmem:[%s4751_s0 + $0x4c0] sm:$0xff] }
  0xdb   :  { %v1340_v21 = vmax.f32 %v556_v7, %v1144_v12  ;;  %v755_v26 = vld [vmem:[%s4753_s2 + $0x4b0] sm:$0xff]  ;;  %v1341_v27 = vmax.f32 %v557_v13, %v1145_v17  ;;  %v559_v28 = vmax.f32 %v167_v24, %v363_v25  ;;  %v1342_v32 = vmax.f32 %v558_v22, %v1146_v23  ;;  %v756_v35 = vld [vmem:[%s4753_s2 + $0x4b8] sm:$0xff]  ;;  %v365_v39 = vld [vmem:[%s4752_s1 + $0x4c0] sm:$0xff] }
  0xdc   :  { %v951_v29 = vld [vmem:[%s4754_s3 + $0x4b0] sm:$0xff]  ;;  %v560_v34 = vmax.f32 %v168_v30, %v364_v31  ;;  %v952_v36 = vld [vmem:[%s4754_s3 + $0x4b8] sm:$0xff]  ;;  %v757_v40 = vld [vmem:[%s4753_s2 + $0x4c0] sm:$0xff]  ;;  %v561_v43 = vmax.f32 %v169_v37, %v365_v39 }
  0xdd   :  { %1537 = vst.msk [vmem:[%s4755_s4 + $0x498] sm:$0xff] %vm1389_vm0, %v1340_v21  ;;  %v1147_v33 = vmax.f32 %v755_v26, %v951_v29  ;;  %1538 = vst.msk [vmem:[%s4755_s4 + $0x4a0] sm:$0xff] %vm1389_vm0, %v1341_v27  ;;  %v1148_v38 = vmax.f32 %v756_v35, %v952_v36  ;;  %v953_v41 = vld [vmem:[%s4754_s3 + $0x4c0] sm:$0xff]  ;;  %v170_v45 = vld [vmem:[%s4751_s0 + $0x4c8] sm:$0xff] }
  0xde   :  { %1539 = vst.msk [vmem:[%s4755_s4 + $0x4a8] sm:$0xff] %vm1389_vm0, %v1342_v32  ;;  %v1149_v44 = vmax.f32 %v757_v40, %v953_v41  ;;  %v366_v46 = vld [vmem:[%s4752_s1 + $0x4c8] sm:$0xff]  ;;  %v171_v51 = vld [vmem:[%s4751_s0 + $0x4d0] sm:$0xff]  ;;  %v172_v58 = vld [vmem:[%s4751_s0 + $0x4d8] sm:$0xff] }
  0xdf   :  { %v1343_v42 = vmax.f32 %v559_v28, %v1147_v33  ;;  %v758_v47 = vld [vmem:[%s4753_s2 + $0x4c8] sm:$0xff]  ;;  %v1344_v48 = vmax.f32 %v560_v34, %v1148_v38  ;;  %v562_v49 = vmax.f32 %v170_v45, %v366_v46  ;;  %v367_v52 = vld [vmem:[%s4752_s1 + $0x4d0] sm:$0xff]  ;;  %v368_v60 = vld [vmem:[%s4752_s1 + $0x4d8] sm:$0xff] }
  0xe0   :  { %v954_v50 = vld [vmem:[%s4754_s3 + $0x4c8] sm:$0xff]  ;;  %v1345_v53 = vmax.f32 %v561_v43, %v1149_v44  ;;  %v563_v55 = vmax.f32 %v171_v51, %v367_v52  ;;  %v759_v56 = vld [vmem:[%s4753_s2 + $0x4d0] sm:$0xff]  ;;  %v760_v61 = vld [vmem:[%s4753_s2 + $0x4d8] sm:$0xff]  ;;  %v564_v0 = vmax.f32 %v172_v58, %v368_v60 }
  0xe1   :  { %1540 = vst.msk [vmem:[%s4755_s4 + $0x4b0] sm:$0xff] %vm1389_vm0, %v1343_v42  ;;  %v1150_v54 = vmax.f32 %v758_v47, %v954_v50  ;;  %v955_v57 = vld [vmem:[%s4754_s3 + $0x4d0] sm:$0xff]  ;;  %1541 = vst.msk [vmem:[%s4755_s4 + $0x4b8] sm:$0xff] %vm1389_vm0, %v1344_v48  ;;  %v956_v62 = vld [vmem:[%s4754_s3 + $0x4d8] sm:$0xff] }
  0xe2   :  { %v1151_v59 = vmax.f32 %v759_v56, %v955_v57  ;;  %1542 = vst.msk [vmem:[%s4755_s4 + $0x4c0] sm:$0xff] %vm1389_vm0, %v1345_v53  ;;  %v1152_v1 = vmax.f32 %v760_v61, %v956_v62  ;;  %v173_v2 = vld [vmem:[%s4751_s0 + $0x4e0] sm:$0xff]  ;;  %v174_v8 = vld [vmem:[%s4751_s0 + $0x4e8] sm:$0xff]  ;;  %v175_v15 = vld [vmem:[%s4751_s0 + $0x4f0] sm:$0xff] }
  0xe3   :  { %v1346_v63 = vmax.f32 %v562_v49, %v1150_v54  ;;  %v369_v3 = vld [vmem:[%s4752_s1 + $0x4e0] sm:$0xff]  ;;  %v370_v9 = vld [vmem:[%s4752_s1 + $0x4e8] sm:$0xff]  ;;  %v371_v17 = vld [vmem:[%s4752_s1 + $0x4f0] sm:$0xff] }
  0xe4   :  { %v761_v4 = vld [vmem:[%s4753_s2 + $0x4e0] sm:$0xff]  ;;  %v1347_v5 = vmax.f32 %v563_v55, %v1151_v59  ;;  %v565_v6 = vmax.f32 %v173_v2, %v369_v3  ;;  %v1348_v10 = vmax.f32 %v564_v0, %v1152_v1  ;;  %v566_v12 = vmax.f32 %v174_v8, %v370_v9  ;;  %v762_v13 = vld [vmem:[%s4753_s2 + $0x4e8] sm:$0xff]  ;;  %v763_v18 = vld [vmem:[%s4753_s2 + $0x4f0] sm:$0xff] }
  0xe5   :  { %v957_v7 = vld [vmem:[%s4754_s3 + $0x4e0] sm:$0xff]  ;;  %1543 = vst.msk [vmem:[%s4755_s4 + $0x4c8] sm:$0xff] %vm1389_vm0, %v1346_v63  ;;  %v958_v14 = vld [vmem:[%s4754_s3 + $0x4e8] sm:$0xff]  ;;  %v959_v19 = vld [vmem:[%s4754_s3 + $0x4f0] sm:$0xff]  ;;  %v567_v21 = vmax.f32 %v175_v15, %v371_v17 }
  0xe6   :  { %v1153_v11 = vmax.f32 %v761_v4, %v957_v7  ;;  %1544 = vst.msk [vmem:[%s4755_s4 + $0x4d0] sm:$0xff] %vm1389_vm0, %v1347_v5  ;;  %v1154_v16 = vmax.f32 %v762_v13, %v958_v14  ;;  %1545 = vst.msk [vmem:[%s4755_s4 + $0x4d8] sm:$0xff] %vm1389_vm0, %v1348_v10  ;;  %v1155_v22 = vmax.f32 %v763_v18, %v959_v19  ;;  %v176_v23 = vld [vmem:[%s4751_s0 + $0x4f8] sm:$0xff]  ;;  %v177_v29 = vld [vmem:[%s4751_s0 + $0x500] sm:$0xff] }
  0xe7   :  { %v372_v24 = vld [vmem:[%s4752_s1 + $0x4f8] sm:$0xff]  ;;  %v373_v30 = vld [vmem:[%s4752_s1 + $0x500] sm:$0xff]  ;;  %v178_v36 = vld [vmem:[%s4751_s0 + $0x508] sm:$0xff] }
  0xe8   :  { %v1349_v20 = vmax.f32 %v565_v6, %v1153_v11  ;;  %v764_v25 = vld [vmem:[%s4753_s2 + $0x4f8] sm:$0xff]  ;;  %v1350_v26 = vmax.f32 %v566_v12, %v1154_v16  ;;  %v568_v27 = vmax.f32 %v176_v23, %v372_v24  ;;  %v1351_v31 = vmax.f32 %v567_v21, %v1155_v22  ;;  %v765_v34 = vld [vmem:[%s4753_s2 + $0x500] sm:$0xff]  ;;  %v374_v38 = vld [vmem:[%s4752_s1 + $0x508] sm:$0xff] }
  0xe9   :  { %v960_v28 = vld [vmem:[%s4754_s3 + $0x4f8] sm:$0xff]  ;;  %v569_v33 = vmax.f32 %v177_v29, %v373_v30  ;;  %v961_v35 = vld [vmem:[%s4754_s3 + $0x500] sm:$0xff]  ;;  %v766_v39 = vld [vmem:[%s4753_s2 + $0x508] sm:$0xff]  ;;  %v570_v42 = vmax.f32 %v178_v36, %v374_v38 }
  0xea   :  { %1546 = vst.msk [vmem:[%s4755_s4 + $0x4e0] sm:$0xff] %vm1389_vm0, %v1349_v20  ;;  %v1156_v32 = vmax.f32 %v764_v25, %v960_v28  ;;  %1547 = vst.msk [vmem:[%s4755_s4 + $0x4e8] sm:$0xff] %vm1389_vm0, %v1350_v26  ;;  %v1157_v37 = vmax.f32 %v765_v34, %v961_v35  ;;  %v962_v40 = vld [vmem:[%s4754_s3 + $0x508] sm:$0xff]  ;;  %v179_v44 = vld [vmem:[%s4751_s0 + $0x510] sm:$0xff] }
  0xeb   :  { %1548 = vst.msk [vmem:[%s4755_s4 + $0x4f0] sm:$0xff] %vm1389_vm0, %v1351_v31  ;;  %v1158_v43 = vmax.f32 %v766_v39, %v962_v40  ;;  %v375_v45 = vld [vmem:[%s4752_s1 + $0x510] sm:$0xff]  ;;  %v180_v50 = vld [vmem:[%s4751_s0 + $0x518] sm:$0xff]  ;;  %v181_v57 = vld [vmem:[%s4751_s0 + $0x520] sm:$0xff] }
  0xec   :  { %v1352_v41 = vmax.f32 %v568_v27, %v1156_v32  ;;  %v767_v46 = vld [vmem:[%s4753_s2 + $0x510] sm:$0xff]  ;;  %v1353_v47 = vmax.f32 %v569_v33, %v1157_v37  ;;  %v571_v48 = vmax.f32 %v179_v44, %v375_v45  ;;  %v376_v51 = vld [vmem:[%s4752_s1 + $0x518] sm:$0xff]  ;;  %v377_v59 = vld [vmem:[%s4752_s1 + $0x520] sm:$0xff] }
  0xed   :  { %v963_v49 = vld [vmem:[%s4754_s3 + $0x510] sm:$0xff]  ;;  %v1354_v52 = vmax.f32 %v570_v42, %v1158_v43  ;;  %v572_v54 = vmax.f32 %v180_v50, %v376_v51  ;;  %v768_v55 = vld [vmem:[%s4753_s2 + $0x518] sm:$0xff]  ;;  %v769_v60 = vld [vmem:[%s4753_s2 + $0x520] sm:$0xff]  ;;  %v573_v63 = vmax.f32 %v181_v57, %v377_v59 }
  0xee   :  { %1549 = vst.msk [vmem:[%s4755_s4 + $0x4f8] sm:$0xff] %vm1389_vm0, %v1352_v41  ;;  %v1159_v53 = vmax.f32 %v767_v46, %v963_v49  ;;  %v964_v56 = vld [vmem:[%s4754_s3 + $0x518] sm:$0xff]  ;;  %1550 = vst.msk [vmem:[%s4755_s4 + $0x500] sm:$0xff] %vm1389_vm0, %v1353_v47  ;;  %v965_v61 = vld [vmem:[%s4754_s3 + $0x520] sm:$0xff] }
  0xef   :  { %v1160_v58 = vmax.f32 %v768_v55, %v964_v56  ;;  %1551 = vst.msk [vmem:[%s4755_s4 + $0x508] sm:$0xff] %vm1389_vm0, %v1354_v52  ;;  %v1161_v0 = vmax.f32 %v769_v60, %v965_v61  ;;  %v182_v1 = vld [vmem:[%s4751_s0 + $0x528] sm:$0xff]  ;;  %v183_v7 = vld [vmem:[%s4751_s0 + $0x530] sm:$0xff]  ;;  %v184_v14 = vld [vmem:[%s4751_s0 + $0x538] sm:$0xff] }
  0xf0   :  { %v1355_v62 = vmax.f32 %v571_v48, %v1159_v53  ;;  %v378_v2 = vld [vmem:[%s4752_s1 + $0x528] sm:$0xff]  ;;  %v379_v8 = vld [vmem:[%s4752_s1 + $0x530] sm:$0xff]  ;;  %v380_v16 = vld [vmem:[%s4752_s1 + $0x538] sm:$0xff] }
  0xf1   :  { %v770_v3 = vld [vmem:[%s4753_s2 + $0x528] sm:$0xff]  ;;  %v1356_v4 = vmax.f32 %v572_v54, %v1160_v58  ;;  %v574_v5 = vmax.f32 %v182_v1, %v378_v2  ;;  %v1357_v9 = vmax.f32 %v573_v63, %v1161_v0  ;;  %v575_v11 = vmax.f32 %v183_v7, %v379_v8  ;;  %v771_v12 = vld [vmem:[%s4753_s2 + $0x530] sm:$0xff]  ;;  %v772_v17 = vld [vmem:[%s4753_s2 + $0x538] sm:$0xff] }
  0xf2   :  { %v966_v6 = vld [vmem:[%s4754_s3 + $0x528] sm:$0xff]  ;;  %1552 = vst.msk [vmem:[%s4755_s4 + $0x510] sm:$0xff] %vm1389_vm0, %v1355_v62  ;;  %v967_v13 = vld [vmem:[%s4754_s3 + $0x530] sm:$0xff]  ;;  %v968_v18 = vld [vmem:[%s4754_s3 + $0x538] sm:$0xff]  ;;  %v576_v20 = vmax.f32 %v184_v14, %v380_v16 }
  0xf3   :  { %v1162_v10 = vmax.f32 %v770_v3, %v966_v6  ;;  %1553 = vst.msk [vmem:[%s4755_s4 + $0x518] sm:$0xff] %vm1389_vm0, %v1356_v4  ;;  %v1163_v15 = vmax.f32 %v771_v12, %v967_v13  ;;  %1554 = vst.msk [vmem:[%s4755_s4 + $0x520] sm:$0xff] %vm1389_vm0, %v1357_v9  ;;  %v1164_v21 = vmax.f32 %v772_v17, %v968_v18  ;;  %v185_v22 = vld [vmem:[%s4751_s0 + $0x540] sm:$0xff]  ;;  %v186_v28 = vld [vmem:[%s4751_s0 + $0x548] sm:$0xff] }
  0xf4   :  { %v381_v23 = vld [vmem:[%s4752_s1 + $0x540] sm:$0xff]  ;;  %v382_v29 = vld [vmem:[%s4752_s1 + $0x548] sm:$0xff]  ;;  %v187_v35 = vld [vmem:[%s4751_s0 + $0x550] sm:$0xff] }
  0xf5   :  { %v1358_v19 = vmax.f32 %v574_v5, %v1162_v10  ;;  %v773_v24 = vld [vmem:[%s4753_s2 + $0x540] sm:$0xff]  ;;  %v1359_v25 = vmax.f32 %v575_v11, %v1163_v15  ;;  %v577_v26 = vmax.f32 %v185_v22, %v381_v23  ;;  %v1360_v30 = vmax.f32 %v576_v20, %v1164_v21  ;;  %v774_v33 = vld [vmem:[%s4753_s2 + $0x548] sm:$0xff]  ;;  %v383_v37 = vld [vmem:[%s4752_s1 + $0x550] sm:$0xff] }
  0xf6   :  { %v969_v27 = vld [vmem:[%s4754_s3 + $0x540] sm:$0xff]  ;;  %v578_v32 = vmax.f32 %v186_v28, %v382_v29  ;;  %v970_v34 = vld [vmem:[%s4754_s3 + $0x548] sm:$0xff]  ;;  %v775_v38 = vld [vmem:[%s4753_s2 + $0x550] sm:$0xff]  ;;  %v579_v41 = vmax.f32 %v187_v35, %v383_v37 }
  0xf7   :  { %1555 = vst.msk [vmem:[%s4755_s4 + $0x528] sm:$0xff] %vm1389_vm0, %v1358_v19  ;;  %v1165_v31 = vmax.f32 %v773_v24, %v969_v27  ;;  %1556 = vst.msk [vmem:[%s4755_s4 + $0x530] sm:$0xff] %vm1389_vm0, %v1359_v25  ;;  %v1166_v36 = vmax.f32 %v774_v33, %v970_v34  ;;  %v971_v39 = vld [vmem:[%s4754_s3 + $0x550] sm:$0xff]  ;;  %v188_v43 = vld [vmem:[%s4751_s0 + $0x558] sm:$0xff] }
  0xf8   :  { %1557 = vst.msk [vmem:[%s4755_s4 + $0x538] sm:$0xff] %vm1389_vm0, %v1360_v30  ;;  %v1167_v42 = vmax.f32 %v775_v38, %v971_v39  ;;  %v384_v44 = vld [vmem:[%s4752_s1 + $0x558] sm:$0xff]  ;;  %v189_v49 = vld [vmem:[%s4751_s0 + $0x560] sm:$0xff]  ;;  %v190_v56 = vld [vmem:[%s4751_s0 + $0x568] sm:$0xff] }
  0xf9   :  { %v1361_v40 = vmax.f32 %v577_v26, %v1165_v31  ;;  %v776_v45 = vld [vmem:[%s4753_s2 + $0x558] sm:$0xff]  ;;  %v1362_v46 = vmax.f32 %v578_v32, %v1166_v36  ;;  %v580_v47 = vmax.f32 %v188_v43, %v384_v44  ;;  %v385_v50 = vld [vmem:[%s4752_s1 + $0x560] sm:$0xff]  ;;  %v386_v58 = vld [vmem:[%s4752_s1 + $0x568] sm:$0xff] }
  0xfa   :  { %v972_v48 = vld [vmem:[%s4754_s3 + $0x558] sm:$0xff]  ;;  %v1363_v51 = vmax.f32 %v579_v41, %v1167_v42  ;;  %v581_v53 = vmax.f32 %v189_v49, %v385_v50  ;;  %v777_v54 = vld [vmem:[%s4753_s2 + $0x560] sm:$0xff]  ;;  %v778_v59 = vld [vmem:[%s4753_s2 + $0x568] sm:$0xff]  ;;  %v582_v62 = vmax.f32 %v190_v56, %v386_v58 }
  0xfb   :  { %1558 = vst.msk [vmem:[%s4755_s4 + $0x540] sm:$0xff] %vm1389_vm0, %v1361_v40  ;;  %v1168_v52 = vmax.f32 %v776_v45, %v972_v48  ;;  %v973_v55 = vld [vmem:[%s4754_s3 + $0x560] sm:$0xff]  ;;  %1559 = vst.msk [vmem:[%s4755_s4 + $0x548] sm:$0xff] %vm1389_vm0, %v1362_v46  ;;  %v974_v60 = vld [vmem:[%s4754_s3 + $0x568] sm:$0xff] }
  0xfc   :  { %v1169_v57 = vmax.f32 %v777_v54, %v973_v55  ;;  %1560 = vst.msk [vmem:[%s4755_s4 + $0x550] sm:$0xff] %vm1389_vm0, %v1363_v51  ;;  %v1170_v63 = vmax.f32 %v778_v59, %v974_v60  ;;  %v191_v0 = vld [vmem:[%s4751_s0 + $0x570] sm:$0xff]  ;;  %v192_v6 = vld [vmem:[%s4751_s0 + $0x578] sm:$0xff]  ;;  %v193_v13 = vld [vmem:[%s4751_s0 + $0x580] sm:$0xff] }
  0xfd   :  { %v1364_v61 = vmax.f32 %v580_v47, %v1168_v52  ;;  %v387_v1 = vld [vmem:[%s4752_s1 + $0x570] sm:$0xff]  ;;  %v388_v7 = vld [vmem:[%s4752_s1 + $0x578] sm:$0xff]  ;;  %v389_v15 = vld [vmem:[%s4752_s1 + $0x580] sm:$0xff] }
  0xfe   :  { %v779_v2 = vld [vmem:[%s4753_s2 + $0x570] sm:$0xff]  ;;  %v1365_v3 = vmax.f32 %v581_v53, %v1169_v57  ;;  %v583_v4 = vmax.f32 %v191_v0, %v387_v1  ;;  %v1366_v8 = vmax.f32 %v582_v62, %v1170_v63  ;;  %v584_v10 = vmax.f32 %v192_v6, %v388_v7  ;;  %v780_v11 = vld [vmem:[%s4753_s2 + $0x578] sm:$0xff]  ;;  %v781_v16 = vld [vmem:[%s4753_s2 + $0x580] sm:$0xff] }
  0xff   :  { %v975_v5 = vld [vmem:[%s4754_s3 + $0x570] sm:$0xff]  ;;  %1561 = vst.msk [vmem:[%s4755_s4 + $0x558] sm:$0xff] %vm1389_vm0, %v1364_v61  ;;  %v976_v12 = vld [vmem:[%s4754_s3 + $0x578] sm:$0xff]  ;;  %v977_v17 = vld [vmem:[%s4754_s3 + $0x580] sm:$0xff]  ;;  %v585_v19 = vmax.f32 %v193_v13, %v389_v15 }
 0x100   :  { %v1171_v9 = vmax.f32 %v779_v2, %v975_v5  ;;  %1562 = vst.msk [vmem:[%s4755_s4 + $0x560] sm:$0xff] %vm1389_vm0, %v1365_v3  ;;  %v1172_v14 = vmax.f32 %v780_v11, %v976_v12  ;;  %1563 = vst.msk [vmem:[%s4755_s4 + $0x568] sm:$0xff] %vm1389_vm0, %v1366_v8  ;;  %v1173_v20 = vmax.f32 %v781_v16, %v977_v17  ;;  %v194_v21 = vld [vmem:[%s4751_s0 + $0x588] sm:$0xff]  ;;  %v195_v27 = vld [vmem:[%s4751_s0 + $0x590] sm:$0xff] }
 0x101   :  { %v390_v22 = vld [vmem:[%s4752_s1 + $0x588] sm:$0xff]  ;;  %v391_v28 = vld [vmem:[%s4752_s1 + $0x590] sm:$0xff]  ;;  %v196_v34 = vld [vmem:[%s4751_s0 + $0x598] sm:$0xff] }
 0x102   :  { %v1367_v18 = vmax.f32 %v583_v4, %v1171_v9  ;;  %v782_v23 = vld [vmem:[%s4753_s2 + $0x588] sm:$0xff]  ;;  %v1368_v24 = vmax.f32 %v584_v10, %v1172_v14  ;;  %v586_v25 = vmax.f32 %v194_v21, %v390_v22  ;;  %v1369_v29 = vmax.f32 %v585_v19, %v1173_v20  ;;  %v783_v32 = vld [vmem:[%s4753_s2 + $0x590] sm:$0xff]  ;;  %v392_v36 = vld [vmem:[%s4752_s1 + $0x598] sm:$0xff] }
 0x103   :  { %v978_v26 = vld [vmem:[%s4754_s3 + $0x588] sm:$0xff]  ;;  %v587_v31 = vmax.f32 %v195_v27, %v391_v28  ;;  %v979_v33 = vld [vmem:[%s4754_s3 + $0x590] sm:$0xff]  ;;  %v784_v37 = vld [vmem:[%s4753_s2 + $0x598] sm:$0xff]  ;;  %v588_v40 = vmax.f32 %v196_v34, %v392_v36 }
 0x104   :  { %1564 = vst.msk [vmem:[%s4755_s4 + $0x570] sm:$0xff] %vm1389_vm0, %v1367_v18  ;;  %v1174_v30 = vmax.f32 %v782_v23, %v978_v26  ;;  %1565 = vst.msk [vmem:[%s4755_s4 + $0x578] sm:$0xff] %vm1389_vm0, %v1368_v24  ;;  %v1175_v35 = vmax.f32 %v783_v32, %v979_v33  ;;  %v980_v38 = vld [vmem:[%s4754_s3 + $0x598] sm:$0xff]  ;;  %v197_v42 = vld [vmem:[%s4751_s0 + $0x5a0] sm:$0xff] }
 0x105   :  { %1566 = vst.msk [vmem:[%s4755_s4 + $0x580] sm:$0xff] %vm1389_vm0, %v1369_v29  ;;  %v1176_v41 = vmax.f32 %v784_v37, %v980_v38  ;;  %v393_v43 = vld [vmem:[%s4752_s1 + $0x5a0] sm:$0xff]  ;;  %v198_v48 = vld [vmem:[%s4751_s0 + $0x5a8] sm:$0xff]  ;;  %v199_v55 = vld [vmem:[%s4751_s0 + $0x5b0] sm:$0xff] }
 0x106   :  { %v1370_v39 = vmax.f32 %v586_v25, %v1174_v30  ;;  %v785_v44 = vld [vmem:[%s4753_s2 + $0x5a0] sm:$0xff]  ;;  %v1371_v45 = vmax.f32 %v587_v31, %v1175_v35  ;;  %v589_v46 = vmax.f32 %v197_v42, %v393_v43  ;;  %v394_v49 = vld [vmem:[%s4752_s1 + $0x5a8] sm:$0xff]  ;;  %v395_v57 = vld [vmem:[%s4752_s1 + $0x5b0] sm:$0xff] }
 0x107   :  { %v981_v47 = vld [vmem:[%s4754_s3 + $0x5a0] sm:$0xff]  ;;  %v1372_v50 = vmax.f32 %v588_v40, %v1176_v41  ;;  %v590_v52 = vmax.f32 %v198_v48, %v394_v49  ;;  %v786_v53 = vld [vmem:[%s4753_s2 + $0x5a8] sm:$0xff]  ;;  %v787_v58 = vld [vmem:[%s4753_s2 + $0x5b0] sm:$0xff]  ;;  %v591_v61 = vmax.f32 %v199_v55, %v395_v57 }
 0x108   :  { %1567 = vst.msk [vmem:[%s4755_s4 + $0x588] sm:$0xff] %vm1389_vm0, %v1370_v39  ;;  %v1177_v51 = vmax.f32 %v785_v44, %v981_v47  ;;  %v982_v54 = vld [vmem:[%s4754_s3 + $0x5a8] sm:$0xff]  ;;  %1568 = vst.msk [vmem:[%s4755_s4 + $0x590] sm:$0xff] %vm1389_vm0, %v1371_v45  ;;  %v983_v59 = vld [vmem:[%s4754_s3 + $0x5b0] sm:$0xff] }
 0x109   :  { %v1178_v56 = vmax.f32 %v786_v53, %v982_v54  ;;  %1569 = vst.msk [vmem:[%s4755_s4 + $0x598] sm:$0xff] %vm1389_vm0, %v1372_v50  ;;  %v1179_v62 = vmax.f32 %v787_v58, %v983_v59  ;;  %v200_v63 = vld [vmem:[%s4751_s0 + $0x5b8] sm:$0xff]  ;;  %v201_v5 = vld [vmem:[%s4751_s0 + $0x5c0] sm:$0xff]  ;;  %v202_v12 = vld [vmem:[%s4751_s0 + $0x5c8] sm:$0xff] }
 0x10a   :  { %v1373_v60 = vmax.f32 %v589_v46, %v1177_v51  ;;  %v396_v0 = vld [vmem:[%s4752_s1 + $0x5b8] sm:$0xff]  ;;  %v397_v6 = vld [vmem:[%s4752_s1 + $0x5c0] sm:$0xff]  ;;  %v398_v14 = vld [vmem:[%s4752_s1 + $0x5c8] sm:$0xff] }
 0x10b   :  { %v788_v1 = vld [vmem:[%s4753_s2 + $0x5b8] sm:$0xff]  ;;  %v1374_v2 = vmax.f32 %v590_v52, %v1178_v56  ;;  %v592_v3 = vmax.f32 %v200_v63, %v396_v0  ;;  %v1375_v7 = vmax.f32 %v591_v61, %v1179_v62  ;;  %v593_v9 = vmax.f32 %v201_v5, %v397_v6  ;;  %v789_v10 = vld [vmem:[%s4753_s2 + $0x5c0] sm:$0xff]  ;;  %v790_v15 = vld [vmem:[%s4753_s2 + $0x5c8] sm:$0xff] }
 0x10c   :  { %v984_v4 = vld [vmem:[%s4754_s3 + $0x5b8] sm:$0xff]  ;;  %1570 = vst.msk [vmem:[%s4755_s4 + $0x5a0] sm:$0xff] %vm1389_vm0, %v1373_v60  ;;  %v985_v11 = vld [vmem:[%s4754_s3 + $0x5c0] sm:$0xff]  ;;  %v986_v16 = vld [vmem:[%s4754_s3 + $0x5c8] sm:$0xff]  ;;  %v594_v18 = vmax.f32 %v202_v12, %v398_v14 }
 0x10d   :  { %v1180_v8 = vmax.f32 %v788_v1, %v984_v4  ;;  %1571 = vst.msk [vmem:[%s4755_s4 + $0x5a8] sm:$0xff] %vm1389_vm0, %v1374_v2  ;;  %v1181_v13 = vmax.f32 %v789_v10, %v985_v11  ;;  %1572 = vst.msk [vmem:[%s4755_s4 + $0x5b0] sm:$0xff] %vm1389_vm0, %v1375_v7  ;;  %v1182_v19 = vmax.f32 %v790_v15, %v986_v16  ;;  %v203_v20 = vld [vmem:[%s4751_s0 + $0x5d0] sm:$0xff]  ;;  %v204_v26 = vld [vmem:[%s4751_s0 + $0x5d8] sm:$0xff] }
 0x10e   :  { %v399_v21 = vld [vmem:[%s4752_s1 + $0x5d0] sm:$0xff]  ;;  %v400_v27 = vld [vmem:[%s4752_s1 + $0x5d8] sm:$0xff]  ;;  %v205_v33 = vld [vmem:[%s4751_s0 + $0x5e0] sm:$0xff] }
 0x10f   :  { %v1376_v17 = vmax.f32 %v592_v3, %v1180_v8  ;;  %v791_v22 = vld [vmem:[%s4753_s2 + $0x5d0] sm:$0xff]  ;;  %v1377_v23 = vmax.f32 %v593_v9, %v1181_v13  ;;  %v595_v24 = vmax.f32 %v203_v20, %v399_v21  ;;  %v1378_v28 = vmax.f32 %v594_v18, %v1182_v19  ;;  %v792_v31 = vld [vmem:[%s4753_s2 + $0x5d8] sm:$0xff]  ;;  %v401_v35 = vld [vmem:[%s4752_s1 + $0x5e0] sm:$0xff] }
 0x110   :  { %v987_v25 = vld [vmem:[%s4754_s3 + $0x5d0] sm:$0xff]  ;;  %v596_v30 = vmax.f32 %v204_v26, %v400_v27  ;;  %v988_v32 = vld [vmem:[%s4754_s3 + $0x5d8] sm:$0xff]  ;;  %v793_v36 = vld [vmem:[%s4753_s2 + $0x5e0] sm:$0xff]  ;;  %v597_v39 = vmax.f32 %v205_v33, %v401_v35 }
 0x111   :  { %1573 = vst.msk [vmem:[%s4755_s4 + $0x5b8] sm:$0xff] %vm1389_vm0, %v1376_v17  ;;  %v1183_v29 = vmax.f32 %v791_v22, %v987_v25  ;;  %1574 = vst.msk [vmem:[%s4755_s4 + $0x5c0] sm:$0xff] %vm1389_vm0, %v1377_v23  ;;  %v1184_v34 = vmax.f32 %v792_v31, %v988_v32  ;;  %v989_v37 = vld [vmem:[%s4754_s3 + $0x5e0] sm:$0xff]  ;;  %v206_v41 = vld [vmem:[%s4751_s0 + $0x5e8] sm:$0xff] }
 0x112   :  { %1575 = vst.msk [vmem:[%s4755_s4 + $0x5c8] sm:$0xff] %vm1389_vm0, %v1378_v28  ;;  %v1185_v40 = vmax.f32 %v793_v36, %v989_v37  ;;  %v402_v42 = vld [vmem:[%s4752_s1 + $0x5e8] sm:$0xff]  ;;  %v207_v47 = vld [vmem:[%s4751_s0 + $0x5f0] sm:$0xff]  ;;  %v208_v54 = vld [vmem:[%s4751_s0 + $0x5f8] sm:$0xff] }
 0x113   :  { %v1379_v38 = vmax.f32 %v595_v24, %v1183_v29  ;;  %v794_v43 = vld [vmem:[%s4753_s2 + $0x5e8] sm:$0xff]  ;;  %v1380_v44 = vmax.f32 %v596_v30, %v1184_v34  ;;  %v598_v45 = vmax.f32 %v206_v41, %v402_v42  ;;  %v403_v48 = vld [vmem:[%s4752_s1 + $0x5f0] sm:$0xff]  ;;  %v404_v56 = vld [vmem:[%s4752_s1 + $0x5f8] sm:$0xff] }
 0x114   :  { %v990_v46 = vld [vmem:[%s4754_s3 + $0x5e8] sm:$0xff]  ;;  %v1381_v49 = vmax.f32 %v597_v39, %v1185_v40  ;;  %v599_v51 = vmax.f32 %v207_v47, %v403_v48  ;;  %v795_v52 = vld [vmem:[%s4753_s2 + $0x5f0] sm:$0xff]  ;;  %v796_v57 = vld [vmem:[%s4753_s2 + $0x5f8] sm:$0xff]  ;;  %v600_v60 = vmax.f32 %v208_v54, %v404_v56 }
 0x115   :  { %1576 = vst.msk [vmem:[%s4755_s4 + $0x5d0] sm:$0xff] %vm1389_vm0, %v1379_v38  ;;  %v1186_v50 = vmax.f32 %v794_v43, %v990_v46  ;;  %v991_v53 = vld [vmem:[%s4754_s3 + $0x5f0] sm:$0xff]  ;;  %1577 = vst.msk [vmem:[%s4755_s4 + $0x5d8] sm:$0xff] %vm1389_vm0, %v1380_v44  ;;  %v992_v58 = vld [vmem:[%s4754_s3 + $0x5f8] sm:$0xff] }
 0x116   :  { %v1187_v55 = vmax.f32 %v795_v52, %v991_v53  ;;  %1578 = vst.msk [vmem:[%s4755_s4 + $0x5e0] sm:$0xff] %vm1389_vm0, %v1381_v49  ;;  %v1188_v61 = vmax.f32 %v796_v57, %v992_v58  ;;  %v209_v62 = vld [vmem:[%s4751_s0 + $0x600] sm:$0xff]  ;;  %v210_v4 = vld [vmem:[%s4751_s0 + $0x608] sm:$0xff]  ;;  %v211_v11 = vld [vmem:[%s4751_s0 + $0x610] sm:$0xff] }
 0x117   :  { %v1382_v59 = vmax.f32 %v598_v45, %v1186_v50  ;;  %v405_v63 = vld [vmem:[%s4752_s1 + $0x600] sm:$0xff]  ;;  %v406_v5 = vld [vmem:[%s4752_s1 + $0x608] sm:$0xff]  ;;  %v407_v13 = vld [vmem:[%s4752_s1 + $0x610] sm:$0xff] }
 0x118   :  { %v797_v0 = vld [vmem:[%s4753_s2 + $0x600] sm:$0xff]  ;;  %v1383_v1 = vmax.f32 %v599_v51, %v1187_v55  ;;  %v601_v2 = vmax.f32 %v209_v62, %v405_v63  ;;  %v1384_v6 = vmax.f32 %v600_v60, %v1188_v61  ;;  %v602_v8 = vmax.f32 %v210_v4, %v406_v5  ;;  %v798_v9 = vld [vmem:[%s4753_s2 + $0x608] sm:$0xff]  ;;  %v799_v14 = vld [vmem:[%s4753_s2 + $0x610] sm:$0xff] }
 0x119   :  { %v993_v3 = vld [vmem:[%s4754_s3 + $0x600] sm:$0xff]  ;;  %1579 = vst.msk [vmem:[%s4755_s4 + $0x5e8] sm:$0xff] %vm1389_vm0, %v1382_v59  ;;  %v994_v10 = vld [vmem:[%s4754_s3 + $0x608] sm:$0xff]  ;;  %v995_v15 = vld [vmem:[%s4754_s3 + $0x610] sm:$0xff]  ;;  %v603_v17 = vmax.f32 %v211_v11, %v407_v13 }
 0x11a   :  { %v1189_v7 = vmax.f32 %v797_v0, %v993_v3  ;;  %1580 = vst.msk [vmem:[%s4755_s4 + $0x5f0] sm:$0xff] %vm1389_vm0, %v1383_v1  ;;  %v1190_v12 = vmax.f32 %v798_v9, %v994_v10  ;;  %1581 = vst.msk [vmem:[%s4755_s4 + $0x5f8] sm:$0xff] %vm1389_vm0, %v1384_v6  ;;  %v1191_v18 = vmax.f32 %v799_v14, %v995_v15  ;;  %v212_v19 = vld [vmem:[%s4751_s0 + $0x618] sm:$0xff] }
 0x11b   :  { %v408_v20 = vld [vmem:[%s4752_s1 + $0x618] sm:$0xff] }
 0x11c   :  { %v1385_v16 = vmax.f32 %v601_v2, %v1189_v7  ;;  %v800_v21 = vld [vmem:[%s4753_s2 + $0x618] sm:$0xff]  ;;  %v1386_v22 = vmax.f32 %v602_v8, %v1190_v12  ;;  %v604_v23 = vmax.f32 %v212_v19, %v408_v20  ;;  %v1387_v25 = vmax.f32 %v603_v17, %v1191_v18 }
 0x11d   :  { %v996_v24 = vld [vmem:[%s4754_s3 + $0x618] sm:$0xff] }
 0x11e   :  { %1582 = vst.msk [vmem:[%s4755_s4 + $0x600] sm:$0xff] %vm1389_vm0, %v1385_v16  ;;  %v1192_v26 = vmax.f32 %v800_v21, %v996_v24  ;;  %1583 = vst.msk [vmem:[%s4755_s4 + $0x608] sm:$0xff] %vm1389_vm0, %v1386_v22 }
 0x11f   :  { %1584 = vst.msk [vmem:[%s4755_s4 + $0x610] sm:$0xff] %vm1389_vm0, %v1387_v25 }
 0x120   :  { %v1388_v27 = vmax.f32 %v604_v23, %v1192_v26 }
 0x122   :  { %1585 = vst.msk [vmem:[%s4755_s4 + $0x618] sm:$0xff] %vm1389_vm0, %v1388_v27 }

// kernel: oles_forward.7
= control target key start
LH: loop header
LB: loop body
LE: loop exit
PB: predicated region body
PF: predicated region fallthrough
CT: control target
= control target key end

     0   :  { %s3346_s12 = smov 0   ;;  %s4355_s0 = inlined_call_operand.vmem [shape: bf16[1280,800], index: 0, kind: input, shape index: {}]   ;;  %s4356_s1 = inlined_call_operand.vmem [shape: bf16[800,64], index: 1, kind: input, shape index: {}]   ;;  %s4357_s2 = inlined_call_operand.vmem [shape: f32[1,64], index: 2, kind: input, shape index: {}]   ;;  %s4358_s3 = inlined_call_operand.vmem [shape: f32[1280,64], index: 3, kind: output, shape index: {}]  }
   0x1 LB: > { %s2375_s13 = sadd.s32 4294967295, %s3324_s12   ;;  %p2379_p0 = scmp.ge.s32.totalorder %s3324_s12, 1  ;;  %s3324_s12 = sphi %s3346_s12, %s13_s12  }
   0x2   : > { %p139_p1 = scmp.lt.s32.totalorder %s3324_s12, 6 }
   0x4   : > { %p140_p2 = pnand %p2379_p0, %p139_p1 }
   0x5   : > { %v2980_v0 = vld [vmem:[%s4356_s1 + $0x40] sm:$0xff] (!%p140_p2)   ;;  %s2380_s16 = sshll.u32 (!%p140_p2), %s2375_s13, 5  ;;  %v2982_v2 = vld [vmem:[%s4356_s1 + $0x48] sm:$0xff] (!%p140_p2)   ;;  %v2984_v4 = vld [vmem:[%s4356_s1 + $0x50] sm:$0xff] (!%p140_p2)   ;;  %vm1273_vm0 = vcmask (!%p140_p2), 261120   ;;  %vm2286_vm2 = vcmask (!%p140_p2), 523264  }
   0x6   : > { %143 = sbr.rel (%p140_p2) target bundleno = 535 (0x217), region = 32  ;;  %v2981_v1 = vld [vmem:[%s4356_s1] sm:$0xff] (!%p140_p2)   ;;  %2565 = vmatprep.subr.bf16.mxu0 (!%p140_p2), %v2980_v0  ;;  %2955 = vmatprep.subr.bf16.mxu1 (!%p140_p2), %v2980_v0  ;;  %p165_p3 = scmp.lt.s32.totalorder (!%p140_p2), %s2380_s16, 159  ;;  %v2983_v3 = vld [vmem:[%s4356_s1 + $0x8] sm:$0xff] (!%p140_p2)   ;;  %v2985_v5 = vld [vmem:[%s4356_s1 + $0x10] sm:$0xff] (!%p140_p2)  }
   0x7   : > { %2566 = vmatpush3.bf16.msra.mxu0 (!%p140_p2), %v2981_v1  ;;  %2963 = vmatpush3.bf16.msra.mxu1 (!%p140_p2), %v2981_v1  ;;  %v2986_v6 = vld [vmem:[%s4356_s1 + $0x58] sm:$0xff] (!%p140_p2)   ;;  %v2988_v8 = vld [vmem:[%s4356_s1 + $0x60] sm:$0xff] (!%p140_p2)   ;;  %v2990_v10 = vld [vmem:[%s4356_s1 + $0x68] sm:$0xff] (!%p140_p2)  }
   0x8   : > { %2567 = vmatprep.subr.bf16.mxu0 (!%p140_p2), %v2982_v2  ;;  %2956 = vmatprep.subr.bf16.mxu1 (!%p140_p2), %v2982_v2  ;;  %v2987_v7 = vld [vmem:[%s4356_s1 + $0x18] sm:$0xff] (!%p140_p2)   ;;  %v2989_v9 = vld [vmem:[%s4356_s1 + $0x20] sm:$0xff] (!%p140_p2)   ;;  %v2991_v13 = vld [vmem:[%s4356_s1 + $0x28] sm:$0xff] (!%p140_p2)  }
   0x9   : > { %v2992_v14 = vld [vmem:[%s4356_s1 + $0x70] sm:$0xff] (!%p140_p2)   ;;  %v2994_v16 = vld [vmem:[%s4356_s1 + $0x78] sm:$0xff] (!%p140_p2)   ;;  %v3002_v18 = vld [vmem:[%s4356_s1 + $0xc0] sm:$0xff] (!%p140_p2)  }
   0xa   : > { %v2993_v15 = vld [vmem:[%s4356_s1 + $0x30] sm:$0xff] (!%p140_p2)   ;;  %v2995_v17 = vld [vmem:[%s4356_s1 + $0x38] sm:$0xff] (!%p140_p2)   ;;  %v3003_v21 = vld [vmem:[%s4356_s1 + $0x140] sm:$0xff] (!%p140_p2)  }
   0xb   : > { %2568 = vmatpush3.bf16.msra.mxu0 (!%p140_p2), %v2983_v3  ;;  %2964 = vmatpush3.bf16.msra.mxu1 (!%p140_p2), %v2983_v3  ;;  %v3004_v22 = vld [vmem:[%s4356_s1 + $0x80] sm:$0xff] (!%p140_p2)   ;;  %v3006_v24 = vld [vmem:[%s4356_s1 + $0xc8] sm:$0xff] (!%p140_p2)   ;;  %v3014_v32 = vld [vmem:[%s4356_s1 + $0xd0] sm:$0xff] (!%p140_p2)  }
   0xc   : > { %2569 = vmatprep.subr.bf16.mxu0 (!%p140_p2), %v2984_v4  ;;  %2957 = vmatprep.subr.bf16.mxu1 (!%p140_p2), %v2984_v4  ;;  %v3005_v23 = vld [vmem:[%s4356_s1 + $0x100] sm:$0xff] (!%p140_p2)   ;;  %v3017_v27 = vld [vmem:[%s4356_s1 + $0x148] sm:$0xff] (!%p140_p2)   ;;  %v3015_v33 = vld [vmem:[%s4356_s1 + $0x90] sm:$0xff] (!%p140_p2)  }
   0xd   : > { %s4360_s16 = smov (!%p165_p3, %s2380_s16), 159  ;;  %v3007_v28 = vld [vmem:[%s4356_s1 + $0x88] sm:$0xff]   ;;  %v3016_v34 = vld [vmem:[%s4356_s1 + $0xd8] sm:$0xff]   ;;  %v3026_v38 = vld [vmem:[%s4356_s1 + $0xe0] sm:$0xff]  }
   0xe   : > { %s2971_s29 = smul.u32 28, %s4360_s16  ;;  %v3019_v29 = vld [vmem:[%s4356_s1 + $0x108] sm:$0xff]   ;;  %v3018_v37 = vld [vmem:[%s4356_s1 + $0x98] sm:$0xff]   ;;  %v3037_v41 = vld [vmem:[%s4356_s1 + $0x150] sm:$0xff]   ;;  %s2383_s23 = sshll.u32 %s4360_s16, 3 }
   0xf   : > { %2570 = vmatpush3.bf16.msra.mxu0 %v2985_v5  ;;  %2965 = vmatpush3.bf16.msra.mxu1 %v2985_v5  ;;  %v3027_v42 = vld [vmem:[%s4356_s1 + $0xa0] sm:$0xff]   ;;  %v3028_v43 = vld [vmem:[%s4356_s1 + $0xe8] sm:$0xff]   ;;  %v3039_v44 = vld [vmem:[%s4356_s1 + $0x110] sm:$0xff]   ;;  %s3968_s25 = scalar_lea.vmem %s4358_s3, %s2383_s23 }
  0x10   : > { %2571 = vmatprep.subr.bf16.mxu0 %v2986_v6  ;;  %2958 = vmatprep.subr.bf16.mxu1 %v2986_v6  ;;  %s3387_s9 = scalar_lea.vmem %s4355_s0, %s2971_s29  ;;  %v3029_v47 = vld [vmem:[%s4356_s1 + $0xa8] sm:$0xff]   ;;  %v3036_v48 = vld [vmem:[%s4356_s1 + $0xf0] sm:$0xff]   ;;  %v3048_v51 = vld [vmem:[%s4356_s1 + $0x158] sm:$0xff]  }
  0x11   : > { %v2998_v11 = vld [vmem:[%s3387_s9 + $0x4] ss:$28 sps:$4 sm:$0xff]   ;;  %v3008_v25 = vld [vmem:[%s3387_s9 + $0x3c] ss:$28 sps:$4 sm:$0xff]   ;;  %v3020_v35 = vld [vmem:[%s3387_s9 + $0x74] ss:$28 sps:$4 sm:$0xff]  }
  0x12   : > { %v3001_v12 = vld [vmem:[%s3387_s9 + $0x2a4] ss:$28 sps:$4 sm:$0xff]   ;;  %1354 = vmatprep.mubr.bf16.mxu0 %v2998_v11  ;;  %v3010_v26 = vld [vmem:[%s3387_s9 + $0x2dc] ss:$28 sps:$4 sm:$0xff]   ;;  %v3022_v36 = vld [vmem:[%s3387_s9 + $0x314] ss:$28 sps:$4 sm:$0xff]  }
  0x13   : > { %2572 = vmatpush3.bf16.msra.mxu0 %v2987_v7  ;;  %2966 = vmatpush3.bf16.msra.mxu1 %v2987_v7  ;;  %v2996_v19 = vld [vmem:[%s3387_s9] ss:$28 sps:$4 sm:$0xff]   ;;  %v3012_v30 = vld [vmem:[%s3387_s9 + $0x38] ss:$28 sps:$4 sm:$0xff]   ;;  %v3024_v39 = vld [vmem:[%s3387_s9 + $0x70] ss:$28 sps:$4 sm:$0xff]  }
  0x14   : > { %2573 = vmatprep.subr.bf16.mxu0 %v2988_v8  ;;  %2959 = vmatprep.subr.bf16.mxu1 %v2988_v8  ;;  %v2999_v20 = vld [vmem:[%s3387_s9 + $0x2a0] ss:$28 sps:$4 sm:$0xff]   ;;  %v3013_v31 = vld [vmem:[%s3387_s9 + $0x2d8] ss:$28 sps:$4 sm:$0xff]   ;;  %v3025_v40 = vld [vmem:[%s3387_s9 + $0x310] ss:$28 sps:$4 sm:$0xff]  }
  0x15   : > { %1450 = vmatprep.mubr.bf16.mxu1 %v3001_v12  ;;  %v3030_v45 = vld [vmem:[%s3387_s9 + $0xac] ss:$28 sps:$4 sm:$0xff]   ;;  %v3038_v52 = vld [vmem:[%s4356_s1 + $0xb0] sm:$0xff]   ;;  %v3050_v53 = vld [vmem:[%s4356_s1 + $0x118] sm:$0xff]  }
  0x16   : > { %v3032_v46 = vld [vmem:[%s3387_s9 + $0x34c] ss:$28 sps:$4 sm:$0xff]   ;;  %v3042_v54 = vld [vmem:[%s3387_s9 + $0xe4] ss:$28 sps:$4 sm:$0xff]   ;;  %v3040_v55 = vld [vmem:[%s4356_s1 + $0xf8] sm:$0xff]  }
  0x17   : > { %2574 = vmatpush3.bf16.msra.mxu0 %v2989_v9  ;;  %2967 = vmatpush3.bf16.msra.mxu1 %v2989_v9  ;;  %v3034_v49 = vld [vmem:[%s3387_s9 + $0xa8] ss:$28 sps:$4 sm:$0xff]   ;;  %v3041_v57 = vld [vmem:[%s4356_s1 + $0xb8] sm:$0xff]   ;;  %v3057_v5 = vld [vmem:[%s3387_s9 + $0x154] ss:$28 sps:$4 sm:$0xff]  }
  0x18   : > { %2575 = vmatprep.subr.bf16.mxu0 %v2990_v10  ;;  %2960 = vmatprep.subr.bf16.mxu1 %v2990_v10  ;;  %v3035_v50 = vld [vmem:[%s3387_s9 + $0x348] ss:$28 sps:$4 sm:$0xff]   ;;  %v3047_v62 = vld [vmem:[%s3387_s9 + $0xe0] ss:$28 sps:$4 sm:$0xff]   ;;  %v3055_v3 = vld [vmem:[%s3387_s9 + $0x118] ss:$28 sps:$4 sm:$0xff]  }
  0x19   : > { %v3046_v56 = vld [vmem:[%s3387_s9 + $0xc] ss:$28 sps:$4 sm:$0xff]   ;;  %v3049_v58 = vld [vmem:[%s4356_s1 + $0x180] sm:$0xff]   ;;  %v3051_v63 = vld [vmem:[%s3387_s9 + $0x11c] ss:$28 sps:$4 sm:$0xff]  }
  0x1a   : > { %v3044_v59 = vld [vmem:[%s3387_s9 + $0x8] ss:$28 sps:$4 sm:$0xff]   ;;  %v3056_v4 = vld [vmem:[%s3387_s9 + $0x40] ss:$28 sps:$4 sm:$0xff]   ;;  %v3085_v7 = vld [vmem:[%s4356_s1 + $0x170] sm:$0xff]  }
  0x1b   : > { %2576 = vmatpush3.bf16.msra.mxu0 %v2991_v13  ;;  %2968 = vmatpush3.bf16.msra.mxu1 %v2991_v13  ;;  %v3063_v60 = vld [vmem:[%s4356_s1 + $0x160] sm:$0xff]   ;;  %v3071_v1 = vld [vmem:[%s4356_s1 + $0x168] sm:$0xff]   ;;  %v3059_v6 = vld [vmem:[%s3387_s9 + $0x7c] ss:$28 sps:$4 sm:$0xff]  }
  0x1c   : > { %2577 = vmatprep.subr.bf16.mxu0 %v2992_v14  ;;  %2961 = vmatprep.subr.bf16.mxu1 %v2992_v14  ;;  %v3064_v61 = vld [vmem:[%s4356_s1 + $0x120] sm:$0xff]   ;;  %v3072_v2 = vld [vmem:[%s4356_s1 + $0x128] sm:$0xff]   ;;  %v3086_v8 = vld [vmem:[%s4356_s1 + $0x130] sm:$0xff]  }
  0x1d   : > { %v3053_v0 = vld [vmem:[%s3387_s9 + $0x44] ss:$28 sps:$4 sm:$0xff]   ;;  %v3061_v9 = vld [vmem:[%s3387_s9 + $0x150] ss:$28 sps:$4 sm:$0xff]   ;;  %v3062_v10 = vld [vmem:[%s3387_s9 + $0x78] ss:$28 sps:$4 sm:$0xff]  }
  0x1e   : > { %v3065_v11 = vld [vmem:[%s3387_s9 + $0x18c] ss:$28 sps:$4 sm:$0xff]   ;;  %v3093_v12 = vld [vmem:[%s4356_s1 + $0x178] sm:$0xff]   ;;  %v3067_v14 = vld [vmem:[%s3387_s9 + $0xb4] ss:$28 sps:$4 sm:$0xff]  }
  0x1f   : > { %2578 = vmatpush3.bf16.msra.mxu0 %v2993_v15  ;;  %2969 = vmatpush3.bf16.msra.mxu1 %v2993_v15  ;;  %v3094_v13 = vld [vmem:[%s4356_s1 + $0x138] sm:$0xff]   ;;  %v3107_v15 = vld [vmem:[%s4356_s1 + $0x188] sm:$0xff]  }
  0x20   : > { %2579 = vmatprep.subr.bf16.mxu0 %v2994_v16  ;;  %2962 = vmatprep.subr.bf16.mxu1 %v2994_v16  ;;  %v3069_v16 = vld [vmem:[%s3387_s9 + $0x188] ss:$28 sps:$4 sm:$0xff]  }
  0x23   : > { %2580 = vmatpush3.bf16.msra.mxu0 %v2995_v17  ;;  %2970 = vmatpush3.bf16.msra.mxu1 %v2995_v17  ;;  %v3070_v17 = vld [vmem:[%s3387_s9 + $0xb0] ss:$28 sps:$4 sm:$0xff]  }
  0x24   : > { %2677 = vmatprep.subr.bf16.mxu1 %v3002_v18  ;;  %2789 = vmatprep.subr.bf16.mxu0 %v3003_v21  ;;  %v3073_v18 = vld [vmem:[%s3387_s9 + $0x1c4] ss:$28 sps:$4 sm:$0xff]  }
  0x25   : > { %v3078_v21 = vld [vmem:[%s3387_s9 + $0xe8] ss:$28 sps:$4 sm:$0xff]  }
  0x26   : > { %1355 = vmatmul.mubr.bf16.vlgmr.msra.gmra.mrb[0].mxu0 %v2996_v19  ;;  %1451 = vmatmul.mubr.bf16.vlgmr.msra.gmra.mrb[0].mxu1 %v2999_v20  ;;  %v3075_v19 = vld [vmem:[%s3387_s9 + $0xec] ss:$28 sps:$4 sm:$0xff]   ;;  %v3077_v20 = vld [vmem:[%s3387_s9 + $0x1c0] ss:$28 sps:$4 sm:$0xff]  }
  0x27   : > { %2678 = vmatpush3.bf16.msra.mxu1 %v3004_v22  ;;  %2790 = vmatpush3.bf16.msra.mxu0 %v3005_v23  ;;  %v3079_v22 = vld [vmem:[%s3387_s9 + $0x1fc] ss:$28 sps:$4 sm:$0xff]   ;;  %v3081_v23 = vld [vmem:[%s3387_s9 + $0x124] ss:$28 sps:$4 sm:$0xff]  }
  0x28   : > { %2679 = vmatprep.subr.bf16.mxu1 %v3006_v24  ;;  %1362 = vmatprep.mubr.bf16.mxu0 %v3008_v25  ;;  %v3083_v24 = vld [vmem:[%s3387_s9 + $0x1f8] ss:$28 sps:$4 sm:$0xff]   ;;  %v3084_v25 = vld [vmem:[%s3387_s9 + $0x120] ss:$28 sps:$4 sm:$0xff]  }
  0x29   : > { %1458 = vmatprep.mubr.bf16.mxu1 %v3010_v26  ;;  %2791 = vmatprep.subr.bf16.mxu0 %v3017_v27  ;;  %v3087_v26 = vld [vmem:[%s3387_s9 + $0x234] ss:$28 sps:$4 sm:$0xff]   ;;  %v3089_v27 = vld [vmem:[%s3387_s9 + $0x15c] ss:$28 sps:$4 sm:$0xff]  }
  0x2b   : > { %2680 = vmatpush3.bf16.msra.mxu1 %v3007_v28  ;;  %2792 = vmatpush3.bf16.msra.mxu0 %v3019_v29  ;;  %v3091_v28 = vld [vmem:[%s3387_s9 + $0x230] ss:$28 sps:$4 sm:$0xff]   ;;  %v3092_v29 = vld [vmem:[%s3387_s9 + $0x158] ss:$28 sps:$4 sm:$0xff]  }
  0x2c   : > { %2681 = vmatprep.subr.bf16.mxu1 %v3014_v32  ;;  %2793 = vmatprep.subr.bf16.mxu0 %v3037_v41  ;;  %v3099_v32 = vld [vmem:[%s3387_s9 + $0x268] ss:$28 sps:$4 sm:$0xff]  }
  0x2d   : > { %v3113_v41 = vld [vmem:[%s3387_s9 + $0x48] ss:$28 sps:$4 sm:$0xff]  }
  0x2e   : > { %1363 = vmatmul.mubr.bf16.gmra.mrb[4].mxu0 %v3012_v30  ;;  %1459 = vmatmul.mubr.bf16.gmra.mrb[4].mxu1 %v3013_v31  ;;  %v3095_v30 = vld [vmem:[%s3387_s9 + $0x26c] ss:$28 sps:$4 sm:$0xff]   ;;  %v3097_v31 = vld [vmem:[%s3387_s9 + $0x194] ss:$28 sps:$4 sm:$0xff]  }
  0x2f   : > { %2682 = vmatpush3.bf16.msra.mxu1 %v3015_v33  ;;  %1370 = vmatprep.mubr.bf16.mxu0 %v3020_v35  ;;  %v3100_v33 = vld [vmem:[%s3387_s9 + $0x190] ss:$28 sps:$4 sm:$0xff]  }
  0x30   : > { %2683 = vmatprep.subr.bf16.mxu1 %v3016_v34  ;;  %1466 = vmatprep.mubr.bf16.mxu1 %v3022_v36  ;;  %v3101_v34 = vld [vmem:[%s3387_s9 + $0x1cc] ss:$28 sps:$4 sm:$0xff]   ;;  %v3105_v35 = vld [vmem:[%s3387_s9 + $0x14] ss:$28 sps:$4 sm:$0xff]  }
  0x31   : > { %2794 = vmatpush3.bf16.msra.mxu0 %v3039_v44  ;;  %v3103_v36 = vld [vmem:[%s3387_s9 + $0x10] ss:$28 sps:$4 sm:$0xff]   ;;  %v3118_v44 = vld [vmem:[%s3387_s9 + $0x238] ss:$28 sps:$4 sm:$0xff]  }
  0x32   : > { %2795 = vmatprep.subr.bf16.mxu0 %v3048_v51  ;;  %v3128_v51 = vld [vmem:[%s3387_s9 + $0xf4] ss:$28 sps:$4 sm:$0xff]  }
  0x33   : > { %2684 = vmatpush3.bf16.msra.mxu1 %v3018_v37  ;;  %v3106_v37 = vld [vmem:[%s3387_s9 + $0x1c8] ss:$28 sps:$4 sm:$0xff]  }
  0x34   : > { %2685 = vmatprep.subr.bf16.mxu1 %v3026_v38  ;;  %v3108_v38 = vld [vmem:[%s3387_s9 + $0x204] ss:$28 sps:$4 sm:$0xff]  }
  0x35   : > { %2796 = vmatpush3.bf16.msra.mxu0 %v3050_v53  ;;  %v3131_v53 = vld [vmem:[%s3387_s9 + $0xf0] ss:$28 sps:$4 sm:$0xff]  }
  0x36   : > { %1371 = vmatmul.mubr.bf16.gmra.mrb[8].mxu0 %v3024_v39  ;;  %1467 = vmatmul.mubr.bf16.gmra.mrb[8].mxu1 %v3025_v40  ;;  %v3110_v39 = vld [vmem:[%s3387_s9 + $0x4c] ss:$28 sps:$4 sm:$0xff]   ;;  %v3112_v40 = vld [vmem:[%s3387_s9 + $0x200] ss:$28 sps:$4 sm:$0xff]  }
  0x37   : > { %2686 = vmatpush3.bf16.msra.mxu1 %v3027_v42  ;;  %1378 = vmatprep.mubr.bf16.mxu0 %v3030_v45  ;;  %v3114_v42 = vld [vmem:[%s3387_s9 + $0x23c] ss:$28 sps:$4 sm:$0xff]  }
  0x38   : > { %2687 = vmatprep.subr.bf16.mxu1 %v3028_v43  ;;  %1474 = vmatprep.mubr.bf16.mxu1 %v3032_v46  ;;  %v3116_v43 = vld [vmem:[%s3387_s9 + $0x84] ss:$28 sps:$4 sm:$0xff]   ;;  %v3120_v46 = vld [vmem:[%s3387_s9 + $0x274] ss:$28 sps:$4 sm:$0xff]  }
  0x39   : > { %2797 = vmatprep.subr.bf16.mxu0 %v3063_v60  ;;  %v3119_v45 = vld [vmem:[%s3387_s9 + $0x80] ss:$28 sps:$4 sm:$0xff]   ;;  %v3142_v60 = vld [vmem:[%s3387_s9 + $0x318] ss:$28 sps:$4 sm:$0xff]  }
  0x3a   : > { %2798 = vmatpush3.bf16.msra.mxu0 %v3064_v61  ;;  %v3143_v61 = vld [vmem:[%s3387_s9 + $0x160] ss:$28 sps:$4 sm:$0xff]  }
  0x3b   : > { %2688 = vmatpush3.bf16.msra.mxu1 %v3029_v47  ;;  %2799 = vmatprep.subr.bf16.mxu0 %v3071_v1  ;;  %v3122_v47 = vld [vmem:[%s3387_s9 + $0xbc] ss:$28 sps:$4 sm:$0xff]  }
  0x3c   : > { %2689 = vmatprep.subr.bf16.mxu1 %v3036_v48  ;;  %v3124_v48 = vld [vmem:[%s3387_s9 + $0x270] ss:$28 sps:$4 sm:$0xff]   ;;  %v3149_v1 = vld [vmem:[%s3387_s9 + $0x198] ss:$28 sps:$4 sm:$0xff]  }
  0x3e   : > { %1379 = vmatmul.mubr.bf16.gmra.mrb[12].mxu0 %v3034_v49  ;;  %1475 = vmatmul.mubr.bf16.gmra.mrb[12].mxu1 %v3035_v50  ;;  %v3125_v49 = vld [vmem:[%s3387_s9 + $0xb8] ss:$28 sps:$4 sm:$0xff]   ;;  %v3126_v50 = vld [vmem:[%s3387_s9 + $0x2ac] ss:$28 sps:$4 sm:$0xff]  }
  0x3f   : > { %2690 = vmatpush3.bf16.msra.mxu1 %v3038_v52  ;;  %1386 = vmatprep.mubr.bf16.mxu0 %v3042_v54  ;;  %v3130_v52 = vld [vmem:[%s3387_s9 + $0x2a8] ss:$28 sps:$4 sm:$0xff]  }
  0x40   : > { %2691 = vmatprep.subr.bf16.mxu1 %v3040_v55  ;;  %1515 = vmatprep.mubr.bf16.mxu1 %v3046_v56  ;;  %v3132_v54 = vld [vmem:[%s3387_s9 + $0x2e4] ss:$28 sps:$4 sm:$0xff]   ;;  %v3134_v55 = vld [vmem:[%s3387_s9 + $0x12c] ss:$28 sps:$4 sm:$0xff]  }
  0x41   : > { %2800 = vmatpush3.bf16.msra.mxu0 %v3072_v2  ;;  %v3136_v56 = vld [vmem:[%s3387_s9 + $0x2e0] ss:$28 sps:$4 sm:$0xff]   ;;  %v3150_v2 = vld [vmem:[%s3387_s9 + $0x1d4] ss:$28 sps:$4 sm:$0xff]  }
  0x42   : > { %2801 = vmatprep.subr.bf16.mxu0 %v3085_v7  ;;  %v3157_v7 = vld [vmem:[%s3387_s9 + $0x88] ss:$28 sps:$4 sm:$0xff]  }
  0x43   : > { %2692 = vmatpush3.bf16.msra.mxu1 %v3041_v57  ;;  %v3137_v57 = vld [vmem:[%s3387_s9 + $0x128] ss:$28 sps:$4 sm:$0xff]  }
  0x44   : > { %2919 = vmatprep.subr.bf16.mxu1 %v3049_v58 }
  0x45   : > { %2802 = vmatpush3.bf16.msra.mxu0 %v3086_v8  ;;  %v3158_v8 = vld [vmem:[%s3387_s9 + $0x208] ss:$28 sps:$4 sm:$0xff]  }
  0x46   : > { %1387 = vmatmul.mubr.bf16.gmra.mrb[16].mxu0 %v3047_v62  ;;  %1516 = vmatmul.mubr.bf16.vlgmr.msra.gmra.mrb[16].mxu1 %v3044_v59  ;;  %v3140_v59 = vld [vmem:[%s3387_s9 + $0x164] ss:$28 sps:$4 sm:$0xff]   ;;  %v3144_v62 = vld [vmem:[%s3387_s9 + $0x354] ss:$28 sps:$4 sm:$0xff]  }
  0x47   : > { %2920 = vmatpush3.bf16.msra.mxu1 %v3049_v58  ;;  %1394 = vmatprep.mubr.bf16.mxu0 %v3051_v63  ;;  %v3138_v58 = vld [vmem:[%s3387_s9 + $0x31c] ss:$28 sps:$4 sm:$0xff]  }
  0x48   : > { %1523 = vmatprep.mubr.bf16.mxu1 %v3053_v0  ;;  %2803 = vmatprep.subr.bf16.mxu0 %v3093_v12  ;;  %v3146_v63 = vld [vmem:[%s3387_s9 + $0x19c] ss:$28 sps:$4 sm:$0xff]   ;;  %v3148_v0 = vld [vmem:[%s3387_s9 + $0x350] ss:$28 sps:$4 sm:$0xff]  }
  0x49   : > { %2804 = vmatpush3.bf16.msra.mxu0 %v3094_v13  ;;  %2921 = vmatprep.subr.bf16.mxu1 %v3107_v15  ;;  %v3163_v12 = vld [vmem:[%s3387_s9 + $0x240] ss:$28 sps:$4 sm:$0xff]   ;;  %v3164_v13 = vld [vmem:[%s3387_s9 + $0x130] ss:$28 sps:$4 sm:$0xff]  }
  0x4b   : > { %2922 = vmatpush3.bf16.msra.mxu1 %v3107_v15  ;;  %v3167_v15 = vld [vmem:[%s3387_s9 + $0x168] ss:$28 sps:$4 sm:$0xff]  }
  0x4e   : > { %1395 = vmatmul.mubr.bf16.gmra.mrb[20].mxu0 %v3055_v3  ;;  %1524 = vmatmul.mubr.bf16.gmra.mrb[20].mxu1 %v3056_v4  ;;  %v3152_v3 = vld [vmem:[%s3387_s9 + $0x18] ss:$28 sps:$4 sm:$0xff]   ;;  %v3153_v4 = vld [vmem:[%s3387_s9 + $0x1d0] ss:$28 sps:$4 sm:$0xff]  }
  0x4f   : > { %1402 = vmatprep.mubr.bf16.mxu0 %v3057_v5  ;;  %1531 = vmatprep.mubr.bf16.mxu1 %v3059_v6  ;;  %v3154_v5 = vld [vmem:[%s3387_s9 + $0x50] ss:$28 sps:$4 sm:$0xff]  }
  0x50   : > { %v3155_v6 = vld [vmem:[%s3387_s9 + $0x20c] ss:$28 sps:$4 sm:$0xff]  }
  0x56   : > { %1403 = vmatmul.mubr.bf16.gmra.mrb[24].mxu0 %v3061_v9  ;;  %1532 = vmatmul.mubr.bf16.gmra.mrb[24].mxu1 %v3062_v10  ;;  %v3159_v9 = vld [vmem:[%s3387_s9 + $0xc0] ss:$28 sps:$4 sm:$0xff]  }
  0x57   : > { %1410 = vmatprep.mubr.bf16.mxu0 %v3065_v11  ;;  %1539 = vmatprep.mubr.bf16.mxu1 %v3067_v14  ;;  %v3160_v10 = vld [vmem:[%s3387_s9 + $0x244] ss:$28 sps:$4 sm:$0xff]   ;;  %v3162_v11 = vld [vmem:[%s3387_s9 + $0xf8] ss:$28 sps:$4 sm:$0xff]  }
  0x58   : > { %v3165_v14 = vld [vmem:[%s3387_s9 + $0x27c] ss:$28 sps:$4 sm:$0xff]  }
  0x5e   : > { %1411 = vmatmul.mubr.bf16.gmra.mrb[28].mxu0 %v3069_v16  ;;  %1540 = vmatmul.mubr.bf16.gmra.mrb[28].mxu1 %v3070_v17  ;;  %v3168_v16 = vld [vmem:[%s3387_s9 + $0x278] ss:$28 sps:$4 sm:$0xff]   ;;  %v3169_v17 = vld [vmem:[%s3387_s9 + $0x1a0] ss:$28 sps:$4 sm:$0xff]  }
  0x5f   : > { %1418 = vmatprep.mubr.bf16.mxu0 %v3073_v18  ;;  %1547 = vmatprep.mubr.bf16.mxu1 %v3075_v19  ;;  %v3170_v18 = vld [vmem:[%s3387_s9 + $0x2b4] ss:$28 sps:$4 sm:$0xff]  }
  0x60   : > { %v3172_v19 = vld [vmem:[%s3387_s9 + $0x1d8] ss:$28 sps:$4 sm:$0xff]  }
  0x66   : > { %1419 = vmatmul.mubr.bf16.gmra.mrb[32].mxu0 %v3077_v20  ;;  %1548 = vmatmul.mubr.bf16.gmra.mrb[32].mxu1 %v3078_v21  ;;  %v3173_v20 = vld [vmem:[%s3387_s9 + $0x2b0] ss:$28 sps:$4 sm:$0xff]  }
  0x67   : > { %1426 = vmatprep.mubr.bf16.mxu0 %v3079_v22  ;;  %1555 = vmatprep.mubr.bf16.mxu1 %v3081_v23  ;;  %v3174_v21 = vld [vmem:[%s3387_s9 + $0x210] ss:$28 sps:$4 sm:$0xff]   ;;  %v3177_v23 = vld [vmem:[%s3387_s9 + $0x248] ss:$28 sps:$4 sm:$0xff]  }
  0x68   : > { %v3175_v22 = vld [vmem:[%s3387_s9 + $0x2ec] ss:$28 sps:$4 sm:$0xff]  }
  0x6e   : > { %1427 = vmatmul.mubr.bf16.gmra.mrb[36].mxu0 %v3083_v24  ;;  %1556 = vmatmul.mubr.bf16.gmra.mrb[36].mxu1 %v3084_v25  ;;  %v3178_v24 = vld [vmem:[%s3387_s9 + $0x2e8] ss:$28 sps:$4 sm:$0xff]   ;;  %v3179_v25 = vld [vmem:[%s3387_s9 + $0x280] ss:$28 sps:$4 sm:$0xff]  }
  0x6f   : > { %1434 = vmatprep.mubr.bf16.mxu0 %v3087_v26  ;;  %1563 = vmatprep.mubr.bf16.mxu1 %v3089_v27  ;;  %v3180_v26 = vld [vmem:[%s3387_s9 + $0x324] ss:$28 sps:$4 sm:$0xff]   ;;  %v3182_v27 = vld [vmem:[%s3387_s9 + $0x2b8] ss:$28 sps:$4 sm:$0xff]  }
  0x76   : > { %1435 = vmatmul.mubr.bf16.gmra.mrb[40].mxu0 %v3091_v28  ;;  %1564 = vmatmul.mubr.bf16.gmra.mrb[40].mxu1 %v3092_v29  ;;  %v3183_v28 = vld [vmem:[%s3387_s9 + $0x320] ss:$28 sps:$4 sm:$0xff]   ;;  %v3184_v29 = vld [vmem:[%s3387_s9 + $0x2f0] ss:$28 sps:$4 sm:$0xff]  }
  0x77   : > { %1442 = vmatprep.mubr.bf16.mxu0 %v3095_v30  ;;  %1571 = vmatprep.mubr.bf16.mxu1 %v3097_v31  ;;  %v3185_v30 = vld [vmem:[%s3387_s9 + $0x35c] ss:$28 sps:$4 sm:$0xff]   ;;  %v3187_v31 = vld [vmem:[%s3387_s9 + $0x328] ss:$28 sps:$4 sm:$0xff]  }
  0x7e   : > { %1443 = vmatmul.mubr.bf16.gmra.mrb[44].mxu0 %v3099_v32  ;;  %1572 = vmatmul.mubr.bf16.gmra.mrb[44].mxu1 %v3100_v33 }
  0x7f   : > { %1579 = vmatprep.mubr.bf16.mxu1 %v3101_v34  ;;  %1676 = vmatprep.mubr.bf16.mxu0 %v3105_v35 }
  0x86   : > { %1580 = vmatmul.mubr.bf16.gmra.mrb[48].mxu1 %v3106_v37  ;;  %1677 = vmatmul.mubr.bf16.vlgmr.msra.gmra.mrb[48].mxu0 %v3103_v36  ;;  %v3188_v36 = vld [vmem:[%s3387_s9 + $0x358] ss:$28 sps:$4 sm:$0xff]   ;;  %v3189_v37 = vld [vmem:[%s3387_s9 + $0x360] ss:$28 sps:$4 sm:$0xff]  }
  0x87   : > { %1587 = vmatprep.mubr.bf16.mxu1 %v3108_v38  ;;  %1684 = vmatprep.mubr.bf16.mxu0 %v3110_v39 }
  0x8e   : > { %1588 = vmatmul.mubr.bf16.gmra.mrb[52].mxu1 %v3112_v40  ;;  %1685 = vmatmul.mubr.bf16.gmra.mrb[52].mxu0 %v3113_v41 }
  0x8f   : > { %1595 = vmatprep.mubr.bf16.mxu1 %v3114_v42  ;;  %1692 = vmatprep.mubr.bf16.mxu0 %v3116_v43 }
  0x96   : > { %1596 = vmatmul.mubr.bf16.gmra.mrb[56].mxu1 %v3118_v44  ;;  %1693 = vmatmul.mubr.bf16.gmra.mrb[56].mxu0 %v3119_v45 }
  0x97   : > { %1603 = vmatprep.mubr.bf16.mxu1 %v3120_v46  ;;  %1700 = vmatprep.mubr.bf16.mxu0 %v3122_v47 }
  0x9e   : > { %1604 = vmatmul.mubr.bf16.gmra.mrb[60].mxu1 %v3124_v48  ;;  %1701 = vmatmul.mubr.bf16.gmra.mrb[60].mxu0 %v3125_v49 }
  0x9f   : > { %1611 = vmatprep.mubr.bf16.mxu1 %v3126_v50  ;;  %1708 = vmatprep.mubr.bf16.mxu0 %v3128_v51 }
  0xa6   : > { %1612 = vmatmul.mubr.bf16.gmra.mrb[64].mxu1 %v3130_v52  ;;  %1709 = vmatmul.mubr.bf16.gmra.mrb[64].mxu0 %v3131_v53 }
  0xa7   : > { %1619 = vmatprep.mubr.bf16.mxu1 %v3132_v54  ;;  %1716 = vmatprep.mubr.bf16.mxu0 %v3134_v55 }
  0xae   : > { %1620 = vmatmul.mubr.bf16.gmra.mrb[68].mxu1 %v3136_v56  ;;  %1717 = vmatmul.mubr.bf16.gmra.mrb[68].mxu0 %v3137_v57 }
  0xaf   : > { %1627 = vmatprep.mubr.bf16.mxu1 %v3138_v58  ;;  %1724 = vmatprep.mubr.bf16.mxu0 %v3140_v59 }
  0xb6   : > { %1628 = vmatmul.mubr.bf16.gmra.mrb[72].mxu1 %v3142_v60  ;;  %1725 = vmatmul.mubr.bf16.gmra.mrb[72].mxu0 %v3143_v61 }
  0xb7   : > { %1635 = vmatprep.mubr.bf16.mxu1 %v3144_v62  ;;  %1732 = vmatprep.mubr.bf16.mxu0 %v3146_v63 }
  0xbe   : > { %1636 = vmatmul.mubr.bf16.gmra.mrb[76].mxu1 %v3148_v0  ;;  %1733 = vmatmul.mubr.bf16.gmra.mrb[76].mxu0 %v3149_v1 }
  0xbf   : > { %1740 = vmatprep.mubr.bf16.mxu0 %v3150_v2  ;;  %2923 = vmatprep.mubr.msk.bf16.mxu1 %vm1273_vm0, %v3152_v3 }
  0xc6   : > { %1741 = vmatmul.mubr.bf16.gmra.mrb[80].mxu0 %v3153_v4  ;;  %2924 = vmatmul.mubr.msk.bf16.vlgmr.msra.gmra.mrb[80].mxu1 %vm1273_vm0, %v3154_v5 }
  0xc7   : > { %1748 = vmatprep.mubr.bf16.mxu0 %v3155_v6  ;;  %2927 = vmatprep.mubr.msk.bf16.mxu1 %vm1273_vm0, %v3157_v7 }
  0xce   : > { %1749 = vmatmul.mubr.bf16.gmra.mrb[84].mxu0 %v3158_v8  ;;  %2928 = vmatmul.mubr.msk.bf16.gmra.mrb[84].mxu1 %vm1273_vm0, %v3159_v9 }
  0xcf   : > { %1756 = vmatprep.mubr.bf16.mxu0 %v3160_v10  ;;  %2931 = vmatprep.mubr.msk.bf16.mxu1 %vm1273_vm0, %v3162_v11 }
  0xd6   : > { %1757 = vmatmul.mubr.bf16.gmra.mrb[88].mxu0 %v3163_v12  ;;  %2932 = vmatmul.mubr.msk.bf16.gmra.mrb[88].mxu1 %vm1273_vm0, %v3164_v13 }
  0xd7   : > { %1764 = vmatprep.mubr.bf16.mxu0 %v3165_v14  ;;  %2935 = vmatprep.mubr.msk.bf16.mxu1 %vm1273_vm0, %v3167_v15 }
  0xde   : > { %1765 = vmatmul.mubr.bf16.gmra.mrb[92].mxu0 %v3168_v16  ;;  %2936 = vmatmul.mubr.msk.bf16.gmra.mrb[92].mxu1 %vm1273_vm0, %v3169_v17 }
  0xdf   : > { %1772 = vmatprep.mubr.bf16.mxu0 %v3170_v18  ;;  %2939 = vmatprep.mubr.msk.bf16.mxu1 %vm1273_vm0, %v3172_v19  ;;  %v3659_v18 = vld [vmem:[%s4357_s2] ss:$0 sm:$0xff] }
  0xe6   : > { %1773 = vmatmul.mubr.bf16.gmra.mrb[96].mxu0 %v3173_v20  ;;  %2940 = vmatmul.mubr.msk.bf16.gmra.mrb[96].mxu1 %vm1273_vm0, %v3174_v21 }
  0xe7   : > { %1780 = vmatprep.mubr.bf16.mxu0 %v3175_v22  ;;  %2943 = vmatprep.mubr.msk.bf16.mxu1 %vm1273_vm0, %v3177_v23 }
  0xee   : > { %1781 = vmatmul.mubr.bf16.gmra.mrb[100].mxu0 %v3178_v24  ;;  %2944 = vmatmul.mubr.msk.bf16.gmra.mrb[100].mxu1 %vm1273_vm0, %v3179_v25 }
  0xef   : > { %1788 = vmatprep.mubr.bf16.mxu0 %v3180_v26  ;;  %2947 = vmatprep.mubr.msk.bf16.mxu1 %vm1273_vm0, %v3182_v27 }
  0xf6   : > { %1789 = vmatmul.mubr.bf16.gmra.mrb[104].mxu0 %v3183_v28  ;;  %2948 = vmatmul.mubr.msk.bf16.gmra.mrb[104].mxu1 %vm1273_vm0, %v3184_v29 }
  0xf7   : > { %1796 = vmatprep.mubr.bf16.mxu0 %v3185_v30  ;;  %2951 = vmatprep.mubr.msk.bf16.mxu1 %vm1273_vm0, %v3187_v31 }
  0xf9   : > { %v2581_v32 = vpop.f32.mrb[0].mxu0  ;;  %v2653_v33 = vpop.f32.mrb[0].mxu1 }
  0xfa   : > { %v2582_v34 = vpop.f32.mrb[1].mxu0  ;;  %v2654_v35 = vpop.f32.mrb[1].mxu1 }
  0xfb   : > { %v2583_v38 = vadd.f32 %v2582_v34, %v2581_v32  ;;  %v2584_v39 = vpop.f32.mrb[2].mxu0  ;;  %v3639_v40 = vadd.f32 %v2654_v35, %v2653_v33  ;;  %v2656_v41 = vpop.f32.mrb[2].mxu1 }
  0xfc   : > { %v2585_v42 = vpop.f32.mrb[3].mxu0  ;;  %v2657_v43 = vpop.f32.mrb[3].mxu1 }
  0xfd   : > { %v2586_v44 = vadd.f32 %v2585_v42, %v2584_v39  ;;  %v3641_v45 = vadd.f32 %v2657_v43, %v2656_v41  ;;  %v1357_v23 = vadd.f32 %v2583_v38, %v3659_v18 }
  0xfe   : > { %1797 = vmatmul.mubr.bf16.gmra.mrb[108].mxu0 %v3188_v36  ;;  %2952 = vmatmul.mubr.msk.bf16.gmra.mrb[108].mxu1 %vm1273_vm0, %v3189_v37 }
  0xff   : > { %v1360_v30 = vadd.f32 %v2586_v44, %v3659_v18 }
 0x101   : > { %v2587_v46 = vpop.f32.mrb[4].mxu0  ;;  %v2659_v47 = vpop.f32.mrb[4].mxu1 }
 0x102   : > { %v2588_v48 = vpop.f32.mrb[5].mxu0  ;;  %v2660_v49 = vpop.f32.mrb[5].mxu1 }
 0x103   : > { %v2589_v50 = vadd.f32 %v2588_v48, %v2587_v46  ;;  %v2590_v51 = vpop.f32.mrb[6].mxu0  ;;  %v3644_v52 = vadd.f32 %v2660_v49, %v2659_v47  ;;  %v2662_v53 = vpop.f32.mrb[6].mxu1 }
 0x104   : > { %v2591_v54 = vpop.f32.mrb[7].mxu0  ;;  %v2663_v55 = vpop.f32.mrb[7].mxu1 }
 0x105   : > { %v2592_v56 = vadd.f32 %v2591_v54, %v2590_v51  ;;  %v3646_v57 = vadd.f32 %v2663_v55, %v2662_v53  ;;  %v1365_v38 = vadd.f32 %v2589_v50, %v3659_v18 }
 0x107   : > { %v1368_v44 = vadd.f32 %v2592_v56, %v3659_v18 }
 0x109   : > { %v2593_v58 = vpop.f32.mrb[8].mxu0  ;;  %v2665_v59 = vpop.f32.mrb[8].mxu1 }
 0x10a   : > { %v2594_v60 = vpop.f32.mrb[9].mxu0  ;;  %v2666_v61 = vpop.f32.mrb[9].mxu1 }
 0x10b   : > { %v2595_v62 = vadd.f32 %v2594_v60, %v2593_v58  ;;  %v2596_v63 = vpop.f32.mrb[10].mxu0  ;;  %v3648_v0 = vadd.f32 %v2666_v61, %v2665_v59  ;;  %v2668_v1 = vpop.f32.mrb[10].mxu1 }
 0x10c   : > { %v2597_v2 = vpop.f32.mrb[11].mxu0  ;;  %v2669_v3 = vpop.f32.mrb[11].mxu1 }
 0x10d   : > { %v2598_v4 = vadd.f32 %v2597_v2, %v2596_v63  ;;  %v3650_v5 = vadd.f32 %v2669_v3, %v2668_v1  ;;  %v1373_v50 = vadd.f32 %v2595_v62, %v3659_v18 }
 0x10f   : > { %v1376_v56 = vadd.f32 %v2598_v4, %v3659_v18 }
 0x111   : > { %v2599_v6 = vpop.f32.mrb[12].mxu0  ;;  %v2671_v7 = vpop.f32.mrb[12].mxu1 }
 0x112   : > { %v2600_v8 = vpop.f32.mrb[13].mxu0  ;;  %v2672_v9 = vpop.f32.mrb[13].mxu1 }
 0x113   : > { %v2601_v10 = vadd.f32 %v2600_v8, %v2599_v6  ;;  %v2602_v11 = vpop.f32.mrb[14].mxu0  ;;  %v3652_v12 = vadd.f32 %v2672_v9, %v2671_v7  ;;  %v2674_v13 = vpop.f32.mrb[14].mxu1 }
 0x114   : > { %v2603_v14 = vpop.f32.mrb[15].mxu0  ;;  %v2675_v15 = vpop.f32.mrb[15].mxu1 }
 0x115   : > { %v2604_v16 = vadd.f32 %v2603_v14, %v2602_v11  ;;  %v3654_v17 = vadd.f32 %v2675_v15, %v2674_v13  ;;  %v1381_v62 = vadd.f32 %v2601_v10, %v3659_v18 }
 0x117   : > { %v1384_v4 = vadd.f32 %v2604_v16, %v3659_v18 }
 0x119   : > { %v2605_v19 = vpop.f32.mrb[16].mxu0  ;;  %v2693_v20 = vpop.f32.mrb[16].mxu1 }
 0x11a   : > { %v2606_v21 = vpop.f32.mrb[17].mxu0  ;;  %v2694_v22 = vpop.f32.mrb[17].mxu1 }
 0x11b   : > { %v3662_v24 = vadd.f32 %v2606_v21, %v2605_v19  ;;  %v2695_v25 = vadd.f32 %v2694_v22, %v2693_v20  ;;  %v2608_v26 = vpop.f32.mrb[18].mxu0  ;;  %v2696_v27 = vpop.f32.mrb[18].mxu1 }
 0x11c   : > { %v2609_v28 = vpop.f32.mrb[19].mxu0  ;;  %v2697_v29 = vpop.f32.mrb[19].mxu1 }
 0x11d   : > { %v3665_v31 = vadd.f32 %v2695_v25, %v1357_v23  ;;  %v2610_v32 = vadd.f32 %v2609_v28, %v2608_v26  ;;  %v2698_v33 = vadd.f32 %v2697_v29, %v2696_v27  ;;  %v1389_v10 = vadd.f32 %v3662_v24, %v3659_v18 }
 0x11f   : > { %v3667_v34 = vadd.f32 %v2698_v33, %v1360_v30 }
 0x121   : > { %v2611_v35 = vpop.f32.mrb[20].mxu0  ;;  %v2699_v36 = vpop.f32.mrb[20].mxu1 }
 0x122   : > { %v2612_v37 = vpop.f32.mrb[21].mxu0  ;;  %v2700_v39 = vpop.f32.mrb[21].mxu1 }
 0x123   : > { %v3670_v41 = vadd.f32 %v2612_v37, %v2611_v35  ;;  %v2701_v42 = vadd.f32 %v2700_v39, %v2699_v36  ;;  %v2614_v43 = vpop.f32.mrb[22].mxu0  ;;  %v2702_v46 = vpop.f32.mrb[22].mxu1 }
 0x124   : > { %v2615_v47 = vpop.f32.mrb[23].mxu0  ;;  %v2703_v48 = vpop.f32.mrb[23].mxu1 }
 0x125   : > { %v3673_v49 = vadd.f32 %v2701_v42, %v1365_v38  ;;  %v2616_v51 = vadd.f32 %v2615_v47, %v2614_v43  ;;  %v2704_v53 = vadd.f32 %v2703_v48, %v2702_v46  ;;  %v1392_v47 = vadd.f32 %v2610_v32, %v3659_v18 }
 0x126   : > { %v1397_v24 = vadd.f32 %v3670_v41, %v3659_v18 }
 0x127   : > { %v3675_v54 = vadd.f32 %v2704_v53, %v1368_v44 }
 0x129   : > { %v2617_v55 = vpop.f32.mrb[24].mxu0  ;;  %v2705_v58 = vpop.f32.mrb[24].mxu1 }
 0x12a   : > { %v2618_v59 = vpop.f32.mrb[25].mxu0  ;;  %v2706_v60 = vpop.f32.mrb[25].mxu1 }
 0x12b   : > { %v3678_v61 = vadd.f32 %v2618_v59, %v2617_v55  ;;  %v2707_v63 = vadd.f32 %v2706_v60, %v2705_v58  ;;  %v2620_v1 = vpop.f32.mrb[26].mxu0  ;;  %v2708_v2 = vpop.f32.mrb[26].mxu1 }
 0x12c   : > { %v2621_v3 = vpop.f32.mrb[27].mxu0  ;;  %v2709_v6 = vpop.f32.mrb[27].mxu1 }
 0x12d   : > { %v3681_v7 = vadd.f32 %v2707_v63, %v1373_v50  ;;  %v2622_v8 = vadd.f32 %v2621_v3, %v2620_v1  ;;  %v2710_v9 = vadd.f32 %v2709_v6, %v2708_v2  ;;  %v1405_v41 = vadd.f32 %v3678_v61, %v3659_v18 }
 0x12f   : > { %v3683_v11 = vadd.f32 %v2710_v9, %v1376_v56  ;;  %v1400_v56 = vadd.f32 %v2616_v51, %v3659_v18 }
 0x131   : > { %v2623_v13 = vpop.f32.mrb[28].mxu0  ;;  %v2711_v14 = vpop.f32.mrb[28].mxu1 }
 0x132   : > { %v2624_v15 = vpop.f32.mrb[29].mxu0  ;;  %v2712_v19 = vpop.f32.mrb[29].mxu1 }
 0x133   : > { %v3686_v20 = vadd.f32 %v2624_v15, %v2623_v13  ;;  %v2713_v21 = vadd.f32 %v2712_v19, %v2711_v14  ;;  %v2626_v22 = vpop.f32.mrb[30].mxu0  ;;  %v2714_v23 = vpop.f32.mrb[30].mxu1 }
 0x134   : > { %v2627_v25 = vpop.f32.mrb[31].mxu0  ;;  %v2715_v26 = vpop.f32.mrb[31].mxu1 }
 0x135   : > { %v3689_v27 = vadd.f32 %v2713_v21, %v1381_v62  ;;  %v2628_v28 = vadd.f32 %v2627_v25, %v2626_v22  ;;  %v2716_v29 = vadd.f32 %v2715_v26, %v2714_v23 }
 0x137   : > { %v3691_v30 = vadd.f32 %v2716_v29, %v1384_v4 }
 0x139   : > { %v2629_v33 = vpop.f32.mrb[32].mxu0  ;;  %v2717_v35 = vpop.f32.mrb[32].mxu1 }
 0x13a   : > { %v2630_v36 = vpop.f32.mrb[33].mxu0  ;;  %v2718_v37 = vpop.f32.mrb[33].mxu1 }
 0x13b   : > { %v3695_v39 = vadd.f32 %v2630_v36, %v2629_v33  ;;  %v2719_v38 = vadd.f32 %v2718_v37, %v2717_v35  ;;  %v2632_v42 = vpop.f32.mrb[34].mxu0  ;;  %v2720_v43 = vpop.f32.mrb[34].mxu1  ;;  %v1408_v33 = vadd.f32 %v2622_v8, %v3659_v18 }
 0x13c   : > { %v2633_v46 = vpop.f32.mrb[35].mxu0  ;;  %v2721_v16 = vpop.f32.mrb[35].mxu1 }
 0x13d   : > { %v3698_v48 = vadd.f32 %v2719_v38, %v1389_v10  ;;  %v2634_v44 = vadd.f32 %v2633_v46, %v2632_v42  ;;  %v2722_v53 = vadd.f32 %v2721_v16, %v2720_v43  ;;  %v1413_v46 = vadd.f32 %v3686_v20, %v3659_v18 }
 0x13f   : > { %v3700_v55 = vadd.f32 %v2722_v53, %v1392_v47 }
 0x141   : > { %v2635_v58 = vpop.f32.mrb[36].mxu0  ;;  %v2723_v59 = vpop.f32.mrb[36].mxu1 }
 0x142   : > { %v2636_v60 = vpop.f32.mrb[37].mxu0  ;;  %v2724_v50 = vpop.f32.mrb[37].mxu1 }
 0x143   : > { %v3704_v63 = vadd.f32 %v2636_v60, %v2635_v58  ;;  %v2725_v1 = vadd.f32 %v2724_v50, %v2723_v59  ;;  %v2638_v2 = vpop.f32.mrb[38].mxu0  ;;  %v2726_v3 = vpop.f32.mrb[38].mxu1  ;;  %v1416_v60 = vadd.f32 %v2628_v28, %v3659_v18  ;;  %v1424_v28 = vadd.f32 %v2634_v44, %v3659_v18 }
 0x144   : > { %v2639_v6 = vpop.f32.mrb[39].mxu0  ;;  %v2727_v32 = vpop.f32.mrb[39].mxu1 }
 0x145   : > { %v3707_v9 = vadd.f32 %v2725_v1, %v1397_v24  ;;  %v2640_v13 = vadd.f32 %v2639_v6, %v2638_v2  ;;  %v2728_v14 = vadd.f32 %v2727_v32, %v2726_v3  ;;  %v1429_v44 = vadd.f32 %v3704_v63, %v3659_v18 }
 0x147   : > { %v3709_v15 = vadd.f32 %v2728_v14, %v1400_v56  ;;  %v1421_v56 = vadd.f32 %v3695_v39, %v3659_v18 }
 0x149   : > { %v2641_v19 = vpop.f32.mrb[40].mxu0  ;;  %v2729_v62 = vpop.f32.mrb[40].mxu1 }
 0x14a   : > { %v2642_v21 = vpop.f32.mrb[41].mxu0  ;;  %v2730_v22 = vpop.f32.mrb[41].mxu1 }
 0x14b   : > { %v3713_v23 = vadd.f32 %v2642_v21, %v2641_v19  ;;  %v2731_v25 = vadd.f32 %v2730_v22, %v2729_v62  ;;  %v2644_v26 = vpop.f32.mrb[42].mxu0  ;;  %v2732_v4 = vpop.f32.mrb[42].mxu1 }
 0x14c   : > { %v2645_v29 = vpop.f32.mrb[43].mxu0  ;;  %v2733_v51 = vpop.f32.mrb[43].mxu1 }
 0x14d   : > { %v3716_v35 = vadd.f32 %v2731_v25, %v1405_v41  ;;  %v3718_v36 = vadd.f32 %v2645_v29, %v2644_v26  ;;  %v2734_v37 = vadd.f32 %v2733_v51, %v2732_v4 }
 0x14f   : > { %v3720_v10 = vadd.f32 %v2734_v37, %v1408_v33 }
 0x151   : > { %v2647_v38 = vpop.f32.mrb[44].mxu0  ;;  %v2735_v42 = vpop.f32.mrb[44].mxu1 }
 0x152   : > { %v2648_v43 = vpop.f32.mrb[45].mxu0  ;;  %v2736_v61 = vpop.f32.mrb[45].mxu1 }
 0x153   : > { %v3724_v16 = vadd.f32 %v2648_v43, %v2647_v38  ;;  %v2737_v47 = vadd.f32 %v2736_v61, %v2735_v42  ;;  %v2650_v53 = vpop.f32.mrb[46].mxu0  ;;  %v2738_v58 = vpop.f32.mrb[46].mxu1 }
 0x154   : > { %v2651_v8 = vpop.f32.mrb[47].mxu0  ;;  %v2739_v59 = vpop.f32.mrb[47].mxu1 }
 0x155   : > { %v3727_v50 = vadd.f32 %v2737_v47, %v1413_v46  ;;  %v3729_v24 = vadd.f32 %v2651_v8, %v2650_v53  ;;  %v2740_v1 = vadd.f32 %v2739_v59, %v2738_v58  ;;  %v1432_v53 = vadd.f32 %v2640_v13, %v3659_v18 }
 0x156   : > { %v1437_v13 = vadd.f32 %v3713_v23, %v3659_v18 }
 0x157   : > { %v3731_v2 = vadd.f32 %v2740_v1, %v1416_v60 }
 0x159   : > { %v2741_v3 = vpop.f32.mrb[48].mxu1  ;;  %v2805_v6 = vpop.f32.mrb[48].mxu0 }
 0x15a   : > { %v2742_v32 = vpop.f32.mrb[49].mxu1  ;;  %v2806_v20 = vpop.f32.mrb[49].mxu0 }
 0x15b   : > { %v2743_v14 = vadd.f32 %v2742_v32, %v2741_v3  ;;  %v2807_v19 = vadd.f32 %v2806_v20, %v2805_v6  ;;  %v2744_v62 = vpop.f32.mrb[50].mxu1  ;;  %v2808_v21 = vpop.f32.mrb[50].mxu0 }
 0x15c   : > { %v2745_v22 = vpop.f32.mrb[51].mxu1  ;;  %v2809_v41 = vpop.f32.mrb[51].mxu0 }
 0x15d   : > { %v3736_v25 = vadd.f32 %v2743_v14, %v1421_v56  ;;  %v2746_v26 = vadd.f32 %v2745_v22, %v2744_v62  ;;  %v2810_v4 = vadd.f32 %v2809_v41, %v2808_v21  ;;  %v3739_v29 = vadd.f32 %v2807_v19, %v3665_v31 }
 0x15f   : > { %v3741_v51 = vadd.f32 %v2746_v26, %v1424_v28  ;;  %v3744_v33 = vadd.f32 %v2810_v4, %v3667_v34 }
 0x161   : > { %v2747_v39 = vpop.f32.mrb[52].mxu1  ;;  %v2811_v37 = vpop.f32.mrb[52].mxu0 }
 0x162   : > { %v2748_v38 = vpop.f32.mrb[53].mxu1  ;;  %v2812_v42 = vpop.f32.mrb[53].mxu0 }
 0x163   : > { %v2749_v43 = vadd.f32 %v2748_v38, %v2747_v39  ;;  %v2813_v61 = vadd.f32 %v2812_v42, %v2811_v37  ;;  %v2750_v46 = vpop.f32.mrb[54].mxu1  ;;  %v2814_v47 = vpop.f32.mrb[54].mxu0 }
 0x164   : > { %v2751_v31 = vpop.f32.mrb[55].mxu1  ;;  %v2815_v58 = vpop.f32.mrb[55].mxu0 }
 0x165   : > { %v3749_v8 = vadd.f32 %v2749_v43, %v1429_v44  ;;  %v2752_v59 = vadd.f32 %v2751_v31, %v2750_v46  ;;  %v2816_v34 = vadd.f32 %v2815_v58, %v2814_v47  ;;  %v3752_v60 = vadd.f32 %v2813_v61, %v3673_v49 }
 0x166   : > { %v1440_v49 = vadd.f32 %v3718_v36, %v3659_v18  ;;  %v1445_v36 = vadd.f32 %v3724_v16, %v3659_v18 }
 0x167   : > { %v3754_v1 = vadd.f32 %v2752_v59, %v1432_v53  ;;  %v3757_v3 = vadd.f32 %v2816_v34, %v3675_v54 }
 0x169   : > { %v2753_v63 = vpop.f32.mrb[56].mxu1  ;;  %v2817_v6 = vpop.f32.mrb[56].mxu0 }
 0x16a   : > { %v2754_v32 = vpop.f32.mrb[57].mxu1  ;;  %v2818_v20 = vpop.f32.mrb[57].mxu0 }
 0x16b   : > { %v2755_v56 = vadd.f32 %v2754_v32, %v2753_v63  ;;  %v2819_v14 = vadd.f32 %v2818_v20, %v2817_v6  ;;  %v2756_v19 = vpop.f32.mrb[58].mxu1  ;;  %v2820_v62 = vpop.f32.mrb[58].mxu0 }
 0x16c   : > { %v2757_v21 = vpop.f32.mrb[59].mxu1  ;;  %v2821_v28 = vpop.f32.mrb[59].mxu0 }
 0x16d   : > { %v3763_v22 = vadd.f32 %v2755_v56, %v1437_v13  ;;  %v2758_v54 = vadd.f32 %v2757_v21, %v2756_v19  ;;  %v2822_v41 = vadd.f32 %v2821_v28, %v2820_v62  ;;  %v3766_v26 = vadd.f32 %v2819_v14, %v3681_v7 }
 0x16e   : > { %v1448_v7 = vadd.f32 %v3729_v24, %v3659_v18  ;;  %v1453_v24 = vadd.f32 %v3639_v40, %v3659_v18 }
 0x16f   : > { %v3768_v4 = vadd.f32 %v2758_v54, %v1440_v49  ;;  %v3771_v23 = vadd.f32 %v2822_v41, %v3683_v11 }
 0x171   : > { %v2759_v39 = vpop.f32.mrb[60].mxu1  ;;  %v2823_v37 = vpop.f32.mrb[60].mxu0 }
 0x172   : > { %v2760_v38 = vpop.f32.mrb[61].mxu1  ;;  %v2824_v42 = vpop.f32.mrb[61].mxu0 }
 0x173   : > { %v2761_v44 = vadd.f32 %v2760_v38, %v2759_v39  ;;  %v2825_v43 = vadd.f32 %v2824_v42, %v2823_v37  ;;  %v2762_v61 = vpop.f32.mrb[62].mxu1  ;;  %v2826_v46 = vpop.f32.mrb[62].mxu0 }
 0x174   : > { %v2763_v47 = vpop.f32.mrb[63].mxu1  ;;  %v2827_v53 = vpop.f32.mrb[63].mxu0 }
 0x175   : > { %v3777_v31 = vadd.f32 %v2761_v44, %v1445_v36  ;;  %v2764_v11 = vadd.f32 %v2763_v47, %v2762_v61  ;;  %v2828_v58 = vadd.f32 %v2827_v53, %v2826_v46  ;;  %v3780_v59 = vadd.f32 %v2825_v43, %v3689_v27 }
 0x176   : > { %v1456_v27 = vadd.f32 %v3641_v45, %v3659_v18  ;;  %v1461_v45 = vadd.f32 %v3644_v52, %v3659_v18 }
 0x177   : > { %v3782_v34 = vadd.f32 %v2764_v11, %v1448_v7  ;;  %v3785_v16 = vadd.f32 %v2828_v58, %v3691_v30 }
 0x179   : > { %v2765_v63 = vpop.f32.mrb[64].mxu1  ;;  %v2829_v6 = vpop.f32.mrb[64].mxu0 }
 0x17a   : > { %v2766_v32 = vpop.f32.mrb[65].mxu1  ;;  %v2830_v20 = vpop.f32.mrb[65].mxu0 }
 0x17b   : > { %v2767_v13 = vadd.f32 %v2766_v32, %v2765_v63  ;;  %v2831_v56 = vadd.f32 %v2830_v20, %v2829_v6  ;;  %v2768_v14 = vpop.f32.mrb[66].mxu1  ;;  %v2832_v19 = vpop.f32.mrb[66].mxu0 }
 0x17c   : > { %v2769_v62 = vpop.f32.mrb[67].mxu1  ;;  %v2833_v49 = vpop.f32.mrb[67].mxu0 }
 0x17d   : > { %v3791_v21 = vadd.f32 %v2767_v13, %v1453_v24  ;;  %v2770_v30 = vadd.f32 %v2769_v62, %v2768_v14  ;;  %v2834_v28 = vadd.f32 %v2833_v49, %v2832_v19  ;;  %v3794_v54 = vadd.f32 %v2831_v56, %v3698_v48 }
 0x17e   : > { %v1464_v48 = vadd.f32 %v3646_v57, %v3659_v18  ;;  %v1469_v57 = vadd.f32 %v3648_v0, %v3659_v18 }
 0x17f   : > { %v3796_v41 = vadd.f32 %v2770_v30, %v1456_v27  ;;  %v3799_v40 = vadd.f32 %v2834_v28, %v3700_v55 }
 0x181   : > { %v2771_v39 = vpop.f32.mrb[68].mxu1  ;;  %v2835_v37 = vpop.f32.mrb[68].mxu0 }
 0x182   : > { %v2772_v38 = vpop.f32.mrb[69].mxu1  ;;  %v2836_v42 = vpop.f32.mrb[69].mxu0 }
 0x183   : > { %v2773_v36 = vadd.f32 %v2772_v38, %v2771_v39  ;;  %v2837_v44 = vadd.f32 %v2836_v42, %v2835_v37  ;;  %v2774_v43 = vpop.f32.mrb[70].mxu1  ;;  %v2838_v61 = vpop.f32.mrb[70].mxu0 }
 0x184   : > { %v2775_v46 = vpop.f32.mrb[71].mxu1  ;;  %v2839_v7 = vpop.f32.mrb[71].mxu0 }
 0x185   : > { %v3805_v47 = vadd.f32 %v2773_v36, %v1461_v45  ;;  %v2776_v55 = vadd.f32 %v2775_v46, %v2774_v43  ;;  %v2840_v53 = vadd.f32 %v2839_v7, %v2838_v61  ;;  %v3808_v11 = vadd.f32 %v2837_v44, %v3707_v9 }
 0x186   : > { %v1472_v9 = vadd.f32 %v3650_v5, %v3659_v18  ;;  %v1477_v5 = vadd.f32 %v3652_v12, %v3659_v18 }
 0x187   : > { %v3810_v58 = vadd.f32 %v2776_v55, %v1464_v48  ;;  %v3813_v52 = vadd.f32 %v2840_v53, %v3709_v15 }
 0x189   : > { %v2777_v63 = vpop.f32.mrb[72].mxu1  ;;  %v2841_v6 = vpop.f32.mrb[72].mxu0 }
 0x18a   : > { %v2778_v32 = vpop.f32.mrb[73].mxu1  ;;  %v2842_v20 = vpop.f32.mrb[73].mxu0 }
 0x18b   : > { %v2779_v24 = vadd.f32 %v2778_v32, %v2777_v63  ;;  %v2843_v13 = vadd.f32 %v2842_v20, %v2841_v6  ;;  %v2780_v56 = vpop.f32.mrb[74].mxu1  ;;  %v2844_v14 = vpop.f32.mrb[74].mxu0 }
 0x18c   : > { %v2781_v19 = vpop.f32.mrb[75].mxu1  ;;  %v2845_v27 = vpop.f32.mrb[75].mxu0 }
 0x18d   : > { %v3819_v62 = vadd.f32 %v2779_v24, %v1469_v57  ;;  %v2782_v15 = vadd.f32 %v2781_v19, %v2780_v56  ;;  %v2846_v49 = vadd.f32 %v2845_v27, %v2844_v14  ;;  %v3822_v30 = vadd.f32 %v2843_v13, %v3716_v35 }
 0x18e   : > { %v1480_v35 = vadd.f32 %v3654_v17, %v3659_v18 }
 0x18f   : > { %v3824_v28 = vadd.f32 %v2782_v15, %v1472_v9  ;;  %v3827_v0 = vadd.f32 %v2846_v49, %v3720_v10 }
 0x191   : > { %v2783_v39 = vpop.f32.mrb[76].mxu1  ;;  %v2847_v37 = vpop.f32.mrb[76].mxu0 }
 0x192   : > { %v2784_v38 = vpop.f32.mrb[77].mxu1  ;;  %v2848_v42 = vpop.f32.mrb[77].mxu0 }
 0x193   : > { %v2785_v45 = vadd.f32 %v2784_v38, %v2783_v39  ;;  %v2849_v36 = vadd.f32 %v2848_v42, %v2847_v37  ;;  %v2786_v44 = vpop.f32.mrb[78].mxu1  ;;  %v2850_v43 = vpop.f32.mrb[78].mxu0 }
 0x194   : > { %v2787_v61 = vpop.f32.mrb[79].mxu1  ;;  %v2851_v48 = vpop.f32.mrb[79].mxu0 }
 0x195   : > { %v3833_v46 = vadd.f32 %v2785_v45, %v1477_v5  ;;  %v2788_v10 = vadd.f32 %v2787_v61, %v2786_v44  ;;  %v2852_v7 = vadd.f32 %v2851_v48, %v2850_v43  ;;  %v3836_v55 = vadd.f32 %v2849_v36, %v3727_v50 }
 0x197   : > { %v3838_v53 = vadd.f32 %v2788_v10, %v1480_v35  ;;  %v3841_v12 = vadd.f32 %v2852_v7, %v3731_v2 }
 0x199   : > { %v2853_v63 = vpop.f32.mrb[80].mxu0  ;;  %v2925_v6 = vpop.f32.mrb[80].mxu1 }
 0x19a   : > { %v3844_v32 = vadd.f32 %v2925_v6, %v3752_v60  ;;  %v2854_v17 = vpop.f32.mrb[81].mxu0  ;;  %v1839_v18 = vpop.f32.mrb[81].mxu1 }
 0x19b   : > { %v2855_v20 = vadd.f32 %v2854_v17, %v2853_v63  ;;  %v3847_v57 = vadd.f32 %v1839_v18, %v3739_v29  ;;  %v2856_v24 = vpop.f32.mrb[82].mxu0  ;;  %v2926_v13 = vpop.f32.mrb[82].mxu1 }
 0x19c   : > { %v1968_v50 = vand.u32 2147483647, %v3844_v32  ;;  %v3851_v56 = vadd.f32 %v2926_v13, %v3757_v3  ;;  %v2857_v2 = vpop.f32.mrb[83].mxu0  ;;  %v1842_v14 = vpop.f32.mrb[83].mxu1  ;;  %vm2160_vm1 = vcmp.ge.f32.partialorder %v3844_v32, 0.0 }
 0x19d   : > { %v1966_v9 = vand.u32 2147483647, %v3847_v57  ;;  %v2858_v19 = vadd.f32 %v2857_v2, %v2856_v24  ;;  %v3855_v60 = vadd.f32 %v1842_v14, %v3744_v33  ;;  %v3859_v29 = vadd.f32 %v2855_v20, %v3736_v25 }
 0x19e   : > { %v2000_v27 = vsub.f32 0.0, %v1968_v50  ;;  %v1969_v15 = vand.u32 2147483647, %v3851_v56  ;;  %vm2158_vm3 = vcmp.ge.f32.partialorder %v3847_v57, 0.0  ;;  %vm2161_vm4 = vcmp.ge.f32.partialorder %v3851_v56, 0.0 }
 0x19f   : > { %v1998_v49 = vsub.f32 0.0, %v1966_v9  ;;  %v1967_v39 = vand.u32 2147483647, %v3855_v60  ;;  %v3863_v3 = vadd.f32 %v2858_v19, %v3741_v51  ;;  %vm2159_vm5 = vcmp.ge.f32.partialorder %v3855_v60, 0.0 }
 0x1a0   : > { %v2034_v37 = vmul.f32 1.442695, %v2000_v27  ;;  %v2001_v38 = vsub.f32 0.0, %v1969_v15 }
 0x1a1   : > { %v2030_v42 = vmul.f32 1.442695, %v1998_v49  ;;  %v1999_v5 = vsub.f32 0.0, %v1967_v39  ;;  %v2859_v45 = vpop.f32.mrb[84].mxu0  ;;  %v2929_v36 = vpop.f32.mrb[84].mxu1 }
 0x1a2   : > { %3190 = vpow2.f32 %v2034_v37  ;;  %v2036_v33 = vmul.f32 1.442695, %v2001_v38  ;;  %v3866_v44 = vadd.f32 %v2929_v36, %v3780_v59  ;;  %v2860_v43 = vpop.f32.mrb[85].mxu0  ;;  %v1855_v25 = vpop.f32.mrb[85].mxu1 }
 0x1a3   : > { %3192 = vpow2.f32 %v2030_v42  ;;  %v2032_v35 = vmul.f32 1.442695, %v1999_v5  ;;  %v2861_v61 = vadd.f32 %v2860_v43, %v2859_v45  ;;  %v3869_v48 = vadd.f32 %v1855_v25, %v3766_v26  ;;  %v2862_v51 = vpop.f32.mrb[86].mxu0  ;;  %v2930_v10 = vpop.f32.mrb[86].mxu1 }
 0x1a4   : > { %3194 = vpow2.f32 %v2036_v33  ;;  %v1972_v7 = vand.u32 2147483647, %v3866_v44  ;;  %v3873_v63 = vadd.f32 %v2930_v10, %v3785_v16  ;;  %v2863_v6 = vpop.f32.mrb[87].mxu0  ;;  %v1858_v17 = vpop.f32.mrb[87].mxu1  ;;  %vm2164_vm6 = vcmp.ge.f32.partialorder %v3866_v44, 0.0 }
 0x1a5   : > { %3196 = vpow2.f32 %v2032_v35  ;;  %v1970_v59 = vand.u32 2147483647, %v3869_v48  ;;  %v2864_v18 = vadd.f32 %v2863_v6, %v2862_v51  ;;  %v3878_v26 = vadd.f32 %v1858_v17, %v3771_v23 }
 0x1a6   : > { %v2004_v20 = vsub.f32 0.0, %v1972_v7  ;;  %v1973_v24 = vand.u32 2147483647, %v3873_v63  ;;  %v3881_v50 = vadd.f32 %v2861_v61, %v3749_v8  ;;  %vm2162_vm7 = vcmp.ge.f32.partialorder %v3869_v48, 0.0 }
 0x1a7   : > { %v2002_v13 = vsub.f32 0.0, %v1970_v59  ;;  %v3884_v2 = vadd.f32 %v2864_v18, %v3754_v1  ;;  %v1971_v9 = vand.u32 2147483647, %v3878_v26  ;;  %vm2165_vm8 = vcmp.ge.f32.partialorder %v3873_v63, 0.0 }
 0x1a8   : > { %v2042_v16 = vmul.f32 1.442695, %v2004_v20  ;;  %v2005_v14 = vsub.f32 0.0, %v1973_v24  ;;  %vm2163_vm9 = vcmp.ge.f32.partialorder %v3878_v26, 0.0 }
 0x1a9   : > { %v2038_v19 = vmul.f32 1.442695, %v2002_v13  ;;  %v2865_v27 = vpop.f32.mrb[88].mxu0  ;;  %v2933_v15 = vpop.f32.mrb[88].mxu1  ;;  %v2003_v39 = vsub.f32 0.0, %v1971_v9 }
 0x1aa   : > { %3198 = vpow2.f32 %v2042_v16  ;;  %v2044_v49 = vmul.f32 1.442695, %v2005_v14  ;;  %v3888_v23 = vadd.f32 %v2933_v15, %v3808_v11  ;;  %v2866_v37 = vpop.f32.mrb[89].mxu0  ;;  %v1871_v38 = vpop.f32.mrb[89].mxu1 }
 0x1ab   : > { %3200 = vpow2.f32 %v2038_v19  ;;  %v2867_v8 = vadd.f32 %v2866_v37, %v2865_v27  ;;  %v3891_v1 = vadd.f32 %v1871_v38, %v3794_v54  ;;  %v2868_v42 = vpop.f32.mrb[90].mxu0  ;;  %v2934_v5 = vpop.f32.mrb[90].mxu1  ;;  %v2040_v36 = vmul.f32 1.442695, %v2003_v39 }
 0x1ac   : > { %v3893_v45 = vpop.eup %3190  ;;  %3202 = vpow2.f32 %v2044_v49  ;;  %v1976_v33 = vand.u32 2147483647, %v3888_v23  ;;  %v2869_v43 = vpop.f32.mrb[91].mxu0  ;;  %v3901_v61 = vadd.f32 %v2934_v5, %v3813_v52  ;;  %vm2168_vm10 = vcmp.ge.f32.partialorder %v3888_v23, 0.0 }
 0x1ad   : > { %v3896_v25 = vpop.eup %3192  ;;  %v2096_v11 = vadd.f32 1.0, %v3893_v45  ;;  %v1974_v35 = vand.u32 2147483647, %v3891_v1  ;;  %v1874_v54 = vpop.f32.mrb[91].mxu1  ;;  %3204 = vpow2.f32 %v2040_v36  ;;  %v2870_v6 = vadd.f32 %v2869_v43, %v2868_v42 }
 0x1ae   : > { %v3903_v51 = vpop.eup %3194  ;;  %v2094_v10 = vadd.f32 1.0, %v3896_v25  ;;  %v2008_v7 = vsub.f32 0.0, %v1976_v33  ;;  %v1977_v20 = vand.u32 2147483647, %v3901_v61  ;;  %v3912_v14 = vadd.f32 %v1874_v54, %v3799_v40 }
 0x1af   : > { %v3906_v17 = vpop.eup %3196  ;;  %3206 = vrcp.f32 %v2096_v11  ;;  %v2097_v59 = vadd.f32 1.0, %v3903_v51  ;;  %v2006_v18 = vsub.f32 0.0, %v1974_v35  ;;  %v3918_v39 = vadd.f32 %v2867_v8, %v3763_v22 }
 0x1b0   : > { %3208 = vrcp.f32 %v2094_v10  ;;  %v2095_v52 = vadd.f32 1.0, %v3906_v17  ;;  %v2050_v24 = vmul.f32 1.442695, %v2008_v7  ;;  %v2009_v16 = vsub.f32 0.0, %v1977_v20 }
 0x1b1   : > { %3210 = vrcp.f32 %v2097_v59  ;;  %v2046_v13 = vmul.f32 1.442695, %v2006_v18  ;;  %v2871_v9 = vpop.f32.mrb[92].mxu0  ;;  %v2937_v19 = vpop.f32.mrb[92].mxu1  ;;  %v3921_v37 = vadd.f32 %v2870_v6, %v3768_v4  ;;  %v1975_v40 = vand.u32 2147483647, %v3912_v14 }
 0x1b2   : > { %3212 = vrcp.f32 %v2095_v52  ;;  %v3915_v27 = vadd.f32 %v2937_v19, %v3836_v55  ;;  %v2872_v15 = vpop.f32.mrb[93].mxu0  ;;  %v1887_v49 = vpop.f32.mrb[93].mxu1  ;;  %v2052_v38 = vmul.f32 1.442695, %v2009_v16  ;;  %vm2166_vm11 = vcmp.ge.f32.partialorder %v3891_v1, 0.0 }
 0x1b3   : > { %3214 = vpow2.f32 %v2050_v24  ;;  %v2874_v42 = vpop.f32.mrb[94].mxu0  ;;  %v3929_v22 = vadd.f32 %v2872_v15, %v2871_v9  ;;  %v2938_v8 = vpop.f32.mrb[94].mxu1  ;;  %v2007_v43 = vsub.f32 0.0, %v1975_v40  ;;  %v3935_v11 = vadd.f32 %v1887_v49, %v3822_v30 }
 0x1b4   : > { %v3925_v5 = vpop.eup %3198  ;;  %3216 = vpow2.f32 %v2046_v13  ;;  %v1980_v55 = vand.u32 2147483647, %v3915_v27  ;;  %v2875_v4 = vpop.f32.mrb[95].mxu0  ;;  %v3941_v6 = vadd.f32 %v2938_v8, %v3841_v12  ;;  %vm2169_vm12 = vcmp.ge.f32.partialorder %v3901_v61, 0.0 }
 0x1b5   : > { %v3931_v36 = vpop.eup %3200  ;;  %v2100_v33 = vadd.f32 1.0, %v3925_v5  ;;  %3218 = vpow2.f32 %v2052_v38  ;;  %v1890_v35 = vpop.f32.mrb[95].mxu1  ;;  %v3943_v59 = vadd.f32 %v2875_v4, %v2874_v42  ;;  %v2048_v20 = vmul.f32 1.442695, %v2007_v43 }
 0x1b6   : > { %v3937_v54 = vpop.eup %3202  ;;  %v2098_v10 = vadd.f32 1.0, %v3931_v36  ;;  %v2012_v7 = vsub.f32 0.0, %v1980_v55  ;;  %v1978_v52 = vand.u32 2147483647, %v3935_v11  ;;  %v1981_v13 = vand.u32 2147483647, %v3941_v6 }
 0x1b7   : > { %3220 = vrcp.f32 %v2100_v33  ;;  %v2101_v18 = vadd.f32 1.0, %v3937_v54  ;;  %v3947_v30 = vpop.eup %3204  ;;  %v3956_v42 = vadd.f32 %v1890_v35, %v3827_v0  ;;  %vm2167_vm13 = vcmp.ge.f32.partialorder %v3912_v14, 0.0 }
 0x1b8   : > { %3222 = vrcp.f32 %v2098_v10  ;;  %v2058_v24 = vmul.f32 1.442695, %v2012_v7  ;;  %v2099_v12 = vadd.f32 1.0, %v3947_v30  ;;  %v2010_v9 = vsub.f32 0.0, %v1978_v52 }
 0x1b9   : > { %v3207_v16 = vpop.eup %3206  ;;  %3224 = vrcp.f32 %v2101_v18  ;;  %v2877_v19 = vpop.f32.mrb[96].mxu0  ;;  %v2013_v40 = vsub.f32 0.0, %v1981_v13  ;;  %vm2172_vm14 = vcmp.ge.f32.partialorder %v3915_v27, 0.0  ;;  %vm2170_vm15 = vcmp.ge.f32.partialorder %v3935_v11, 0.0 }
 0x1ba   : > { %v2941_v15 = vpop.f32.mrb[96].mxu1  ;;  %v3209_v49 = vpop.eup %3208  ;;  %v2192_v38 = vmul.f32 %v3207_v16, %v3893_v45  ;;  %3226 = vpow2.f32 %v2048_v20  ;;  %v2054_v43 = vmul.f32 1.442695, %v2010_v9  ;;  %vm2173_vm0 = vcmp.ge.f32.partialorder %v3941_v6, 0.0 }
 0x1bb   : > { %v2878_v55 = vpop.f32.mrb[97].mxu0  ;;  %v1903_v8 = vpop.f32.mrb[97].mxu1  ;;  %v2190_v33 = vmul.f32 %v3209_v49, %v3896_v25  ;;  %3228 = vrcp.f32 %v2099_v12  ;;  %v3961_v10 = vadd.f32 %v2941_v15, %v3881_v50  ;;  %v2060_v50 = vmul.f32 1.442695, %v2013_v40 }
 0x1bc   : > { %v3211_v4 = vpop.eup %3210  ;;  %v3963_v7 = vpop.f32.mrb[98].mxu0  ;;  %v2224_v0 = vsel %vm2160_vm1, %v3207_v16, %v2192_v38  ;;  %3230 = vpow2.f32 %v2058_v24  ;;  %vm2171_vm1 = vcmp.ge.f32.partialorder %v3956_v42, 0.0 }
 0x1bd   : > { %v2942_v45 = vpop.f32.mrb[98].mxu1  ;;  %v3213_v18 = vpop.eup %3212  ;;  %v2193_v25 = vmul.f32 %v3211_v4, %v3903_v51  ;;  %v2256_v13 = vmul.f32 %v2224_v0, %v3844_v32  ;;  %v2222_v12 = vsel %vm2158_vm3, %v3209_v49, %v2190_v33  ;;  %3232 = vpow2.f32 %v2054_v43 }
 0x1be   : > { %v3974_v35 = vpop.f32.mrb[99].mxu0  ;;  %v3976_v20 = vpop.f32.mrb[99].mxu1  ;;  %v2191_v16 = vmul.f32 %v3213_v18, %v3906_v17  ;;  %v2254_v24 = vmul.f32 %v2222_v12, %v3847_v57  ;;  %3234 = vpow2.f32 %v2060_v50  ;;  %v1979_v57 = vand.u32 2147483647, %v3956_v42 }
 0x1bf   : > { %v3978_v52 = vpop.eup %3214  ;;  %v2225_v9 = vsel %vm2161_vm4, %v3211_v4, %v2193_v25  ;;  %2289 = vst.msk [vmem:[%s3968_s25 + $0x10] sm:$0xff] %vm2286_vm2, %v2256_v13  ;;  %v1984_v43 = vand.u32 2147483647, %v3961_v10  ;;  %v4015_v50 = vadd.f32 %v2878_v55, %v2877_v19  ;;  %v4018_v13 = vadd.f32 %v1903_v8, %v3859_v29 }
 0x1c0   : > { %v3984_v51 = vpop.eup %3216  ;;  %v2104_v15 = vadd.f32 1.0, %v3978_v52  ;;  %v2257_v32 = vmul.f32 %v2225_v9, %v3851_v56  ;;  %v2223_v17 = vsel %vm2159_vm5, %v3213_v18, %v2191_v16  ;;  %2287 = vst.msk [vmem:[%s3968_s25] sm:$0xff] %vm2286_vm2, %v2254_v24  ;;  %v2011_v56 = vsub.f32 0.0, %v1979_v57 }
 0x1c1   : > { %v3990_v38 = vpop.eup %3218  ;;  %v2102_v49 = vadd.f32 1.0, %v3984_v51  ;;  %v2255_v40 = vmul.f32 %v2223_v17, %v3855_v60  ;;  %v4008_v18 = vpop.f32.mrb[100].mxu0  ;;  %v4026_v17 = vadd.f32 %v2942_v45, %v3884_v2  ;;  %vm2176_vm3 = vcmp.ge.f32.partialorder %v3961_v10, 0.0 }
 0x1c2   : > { %3236 = vrcp.f32 %v2104_v15  ;;  %v2105_v4 = vadd.f32 1.0, %v3990_v38  ;;  %v3221_v33 = vpop.eup %3220  ;;  %2290 = vst.msk [vmem:[%s3968_s25 + $0x18] sm:$0xff] %vm2286_vm2, %v2257_v32  ;;  %v4010_v0 = vpop.f32.mrb[100].mxu1  ;;  %v2056_v15 = vmul.f32 1.442695, %v2011_v56  ;;  %v2016_v32 = vsub.f32 0.0, %v1984_v43 }
 0x1c3   : > { %3238 = vrcp.f32 %v2102_v49  ;;  %v3223_v25 = vpop.eup %3222  ;;  %2288 = vst.msk [vmem:[%s3968_s25 + $0x8] sm:$0xff] %vm2286_vm2, %v2255_v40  ;;  %v2196_v60 = vmul.f32 %v3221_v33, %v3925_v5  ;;  %v4020_v12 = vpop.f32.mrb[101].mxu0  ;;  %vm2174_vm4 = vcmp.ge.f32.partialorder %v4018_v13, 0.0  ;;  %vm2177_vm5 = vcmp.ge.f32.partialorder %v4026_v17, 0.0 }
 0x1c4   : > { %3240 = vrcp.f32 %v2105_v4  ;;  %v4022_v16 = vpop.f32.mrb[101].mxu1  ;;  %v3225_v24 = vpop.eup %3224  ;;  %v2194_v9 = vmul.f32 %v3223_v25, %v3931_v36  ;;  %v1982_v36 = vand.u32 2147483647, %v4018_v13 }
 0x1c5   : > { %v4028_v49 = vpop.f32.mrb[102].mxu0  ;;  %v4030_v5 = vpop.f32.mrb[102].mxu1  ;;  %v2228_v29 = vsel %vm2164_vm6, %v3221_v33, %v2196_v60  ;;  %v2197_v55 = vmul.f32 %v3225_v24, %v3937_v54  ;;  %3242 = vpow2.f32 %v2056_v15 }
 0x1c6   : > { %v4032_v19 = vpop.eup %3226  ;;  %v4039_v8 = vpop.f32.mrb[103].mxu0  ;;  %v2260_v57 = vmul.f32 %v2228_v29, %v3866_v44  ;;  %v2226_v40 = vsel %vm2162_vm7, %v3223_v25, %v2194_v9  ;;  %v2066_v44 = vmul.f32 1.442695, %v2016_v32  ;;  %v2014_v15 = vsub.f32 0.0, %v1982_v36 }
 0x1c7   : > { %v4041_v2 = vpop.f32.mrb[103].mxu1  ;;  %v3229_v45 = vpop.eup %3228  ;;  %v2103_v54 = vadd.f32 1.0, %v4032_v19  ;;  %v2258_v33 = vmul.f32 %v2226_v40, %v3869_v48  ;;  %v2229_v56 = vsel %vm2165_vm8, %v3225_v24, %v2197_v55  ;;  %v1985_v24 = vand.u32 2147483647, %v4026_v17 }
 0x1c8   : > { %v4048_v4 = vpop.eup %3230  ;;  %v2195_v43 = vmul.f32 %v3229_v45, %v3947_v30  ;;  %2293 = vst.msk [vmem:[%s3968_s25 + $0x30] sm:$0xff] %vm2286_vm2, %v2260_v57  ;;  %v2261_v25 = vmul.f32 %v2229_v56, %v3873_v63  ;;  %v2062_v55 = vmul.f32 1.442695, %v2014_v15 }
 0x1c9   : > { %v4054_v60 = vpop.eup %3232  ;;  %3244 = vrcp.f32 %v2103_v54  ;;  %v2108_v9 = vadd.f32 1.0, %v4048_v4  ;;  %2291 = vst.msk [vmem:[%s3968_s25 + $0x20] sm:$0xff] %vm2286_vm2, %v2258_v33  ;;  %v4072_v36 = vpop.f32.mrb[104].mxu0  ;;  %v4079_v54 = vadd.f32 %v3974_v35, %v3963_v7  ;;  %v1767_v7 = vadd.f32 %v3929_v22, %v3777_v31 }
 0x1ca   : > { %v4060_v29 = vpop.eup %3234  ;;  %v2227_v48 = vsel %vm2163_vm9, %v3229_v45, %v2195_v43  ;;  %v2106_v30 = vadd.f32 1.0, %v4054_v60  ;;  %3246 = vpow2.f32 %v2066_v44  ;;  %2294 = vst.msk [vmem:[%s3968_s25 + $0x38] sm:$0xff] %vm2286_vm2, %v2261_v25  ;;  %v4074_v57 = vpop.f32.mrb[104].mxu1  ;;  %v2017_v45 = vsub.f32 0.0, %v1985_v24 }
 0x1cb   : > { %v2259_v63 = vmul.f32 %v2227_v48, %v3878_v26  ;;  %3248 = vrcp.f32 %v2108_v9  ;;  %v2109_v32 = vadd.f32 1.0, %v4060_v29  ;;  %v4081_v33 = vpop.f32.mrb[105].mxu0  ;;  %v4083_v26 = vpop.f32.mrb[105].mxu1  ;;  %v4091_v44 = vadd.f32 %v3976_v20, %v3863_v3 }
 0x1cc   : > { %v3237_v40 = vpop.eup %3236  ;;  %3250 = vrcp.f32 %v2106_v30  ;;  %v4095_v35 = vpop.f32.mrb[106].mxu0  ;;  %v2068_v48 = vmul.f32 1.442695, %v2017_v45 }
 0x1cd   : > { %v3239_v56 = vpop.eup %3238  ;;  %2292 = vst.msk [vmem:[%s3968_s25 + $0x28] sm:$0xff] %vm2286_vm2, %v2259_v63  ;;  %v2200_v43 = vmul.f32 %v3237_v40, %v3978_v52  ;;  %3252 = vrcp.f32 %v2109_v32  ;;  %v4097_v25 = vpop.f32.mrb[106].mxu1  ;;  %v4102_v52 = vadd.f32 %v4020_v12, %v4008_v18  ;;  %v1983_v20 = vand.u32 2147483647, %v4091_v44 }
 0x1ce   : > { %v3241_v9 = vpop.eup %3240  ;;  %v2198_v15 = vmul.f32 %v3239_v56, %v3984_v51  ;;  %3254 = vpow2.f32 %v2062_v55  ;;  %v4104_v30 = vpop.f32.mrb[107].mxu0  ;;  %v4117_v12 = vadd.f32 %v4010_v0, %v1767_v7  ;;  %v4126_v55 = vadd.f32 %v4022_v16, %v3918_v39 }
 0x1cf   : > { %v4106_v3 = vpop.f32.mrb[107].mxu1  ;;  %v2232_v31 = vsel %vm2168_vm10, %v3237_v40, %v2200_v43  ;;  %v2201_v22 = vmul.f32 %v3241_v9, %v3990_v38  ;;  %3256 = vpow2.f32 %v2068_v48  ;;  %v4119_v24 = vpop.eup %3242  ;;  %v2015_v32 = vsub.f32 0.0, %v1983_v20 }
 0x1d0   : > { %v2264_v51 = vmul.f32 %v2232_v31, %v3888_v23  ;;  %v2230_v18 = vsel %vm2166_vm11, %v3239_v56, %v2198_v15  ;;  %v2107_v0 = vadd.f32 1.0, %v4119_v24  ;;  %v1988_v40 = vand.u32 2147483647, %v4117_v12 }
 0x1d1   : > { %v2262_v63 = vmul.f32 %v2230_v18, %v3891_v1  ;;  %v2233_v38 = vsel %vm2169_vm12, %v3241_v9, %v2201_v22  ;;  %v2064_v45 = vmul.f32 1.442695, %v2015_v32  ;;  %v1986_v56 = vand.u32 2147483647, %v4126_v55  ;;  %v4140_v16 = vpop.f32.mrb[108].mxu0  ;;  %v4149_v15 = vpop.f32.mrb[108].mxu1 }
 0x1d2   : > { %2297 = vst.msk [vmem:[%s3968_s25 + $0x50] sm:$0xff] %vm2286_vm2, %v2264_v51  ;;  %v2265_v23 = vmul.f32 %v2233_v38, %v3901_v61  ;;  %v1770_v39 = vadd.f32 %v3943_v59, %v3782_v34  ;;  %3258 = vrcp.f32 %v2107_v0  ;;  %v2020_v7 = vsub.f32 0.0, %v1988_v40  ;;  %v4151_v48 = vpop.f32.mrb[109].mxu0  ;;  %v4157_v20 = vpop.f32.mrb[109].mxu1 }
 0x1d3   : > { %v3245_v1 = vpop.eup %3244  ;;  %2295 = vst.msk [vmem:[%s3968_s25 + $0x40] sm:$0xff] %vm2286_vm2, %v2262_v63  ;;  %v2888_v9 = vadd.f32 %v4039_v8, %v4028_v49  ;;  %3260 = vpow2.f32 %v2064_v45  ;;  %v2018_v59 = vsub.f32 0.0, %v1986_v56  ;;  %v4166_v63 = vadd.f32 %v4041_v2, %v3921_v37  ;;  %v4168_v38 = vpop.f32.mrb[110].mxu1 }
 0x1d4   : > { %v4142_v61 = vpop.eup %3246  ;;  %2298 = vst.msk [vmem:[%s3968_s25 + $0x58] sm:$0xff] %vm2286_vm2, %v2265_v23  ;;  %v2199_v43 = vmul.f32 %v3245_v1, %v4032_v19  ;;  %v4155_v22 = vadd.f32 %v4030_v5, %v1770_v39  ;;  %v4159_v19 = vpop.f32.mrb[110].mxu0  ;;  %v2074_v18 = vmul.f32 1.442695, %v2020_v7  ;;  %vm2175_vm6 = vcmp.ge.f32.partialorder %v4091_v44, 0.0 }
 0x1d5   : > { %v3249_v31 = vpop.eup %3248  ;;  %v2112_v34 = vadd.f32 1.0, %v4142_v61  ;;  %v4170_v5 = vpop.f32.mrb[111].mxu0  ;;  %v2070_v40 = vmul.f32 1.442695, %v2018_v59  ;;  %vm2180_vm7 = vcmp.ge.f32.partialorder %v4117_v12, 0.0  ;;  %vm2178_vm8 = vcmp.ge.f32.partialorder %v4126_v55, 0.0 }
 0x1d6   : > { %v3251_v51 = vpop.eup %3250  ;;  %v2231_v49 = vsel %vm2167_vm13, %v3245_v1, %v2199_v43  ;;  %v2204_v8 = vmul.f32 %v3249_v31, %v4048_v4  ;;  %v4174_v1 = vpop.f32.mrb[111].mxu1  ;;  %v1989_v45 = vand.u32 2147483647, %v4155_v22  ;;  %vm2181_vm9 = vcmp.ge.f32.partialorder %v4155_v22, 0.0 }
 0x1d7   : > { %v3253_v32 = vpop.eup %3252  ;;  %v2263_v23 = vmul.f32 %v2231_v49, %v3912_v14  ;;  %v2202_v0 = vmul.f32 %v3251_v51, %v4054_v60  ;;  %3262 = vrcp.f32 %v2112_v34  ;;  %v1987_v34 = vand.u32 2147483647, %v4166_v63 }
 0x1d8   : > { %v4176_v4 = vpop.eup %3254  ;;  %v2236_v37 = vsel %vm2172_vm14, %v3249_v31, %v2204_v8  ;;  %v2205_v2 = vmul.f32 %v3253_v32, %v4060_v29  ;;  %3264 = vpow2.f32 %v2074_v18  ;;  %v2021_v7 = vsub.f32 0.0, %v1989_v45 }
 0x1d9   : > { %2296 = vst.msk [vmem:[%s3968_s25 + $0x48] sm:$0xff] %vm2286_vm2, %v2263_v23  ;;  %v2268_v14 = vmul.f32 %v2236_v37, %v3915_v27  ;;  %v2234_v60 = vsel %vm2170_vm15, %v3251_v51, %v2202_v0  ;;  %v2110_v56 = vadd.f32 1.0, %v4176_v4  ;;  %3266 = vpow2.f32 %v2070_v40  ;;  %v4188_v39 = vpop.eup %3256 }
 0x1da   : > { %v2266_v43 = vmul.f32 %v2234_v60, %v3935_v11  ;;  %v2237_v29 = vsel %vm2173_vm0, %v3253_v32, %v2205_v2  ;;  %v2113_v27 = vadd.f32 1.0, %v4188_v39  ;;  %v2076_v59 = vmul.f32 1.442695, %v2021_v7 }
 0x1db   : > { %2301 = vst.msk [vmem:[%s3968_s25 + $0x70] sm:$0xff] %vm2286_vm2, %v2268_v14  ;;  %v2269_v31 = vmul.f32 %v2237_v29, %v3941_v6  ;;  %3268 = vrcp.f32 %v2110_v56  ;;  %v1783_v51 = vadd.f32 %v4102_v52, %v3805_v47  ;;  %v2891_v11 = vadd.f32 %v4081_v33, %v4072_v36 }
 0x1dc   : > { %2299 = vst.msk [vmem:[%s3968_s25 + $0x60] sm:$0xff] %vm2286_vm2, %v2266_v43  ;;  %3270 = vrcp.f32 %v2113_v27  ;;  %v2019_v49 = vsub.f32 0.0, %v1987_v34  ;;  %v1775_v6 = vadd.f32 %v4015_v50, %v3791_v21  ;;  %v1786_v8 = vadd.f32 %v2888_v9, %v3810_v58  ;;  %v3259_v18 = vpop.eup %3258 }
 0x1dd   : > { %2302 = vst.msk [vmem:[%s3968_s25 + $0x78] sm:$0xff] %vm2286_vm2, %v2269_v31  ;;  %3272 = vpow2.f32 %v2076_v59  ;;  %v4210_v32 = vadd.f32 %v4074_v57, %v1783_v51  ;;  %v4214_v47 = vadd.f32 %v4104_v30, %v4095_v35  ;;  %v1778_v36 = vadd.f32 %v4079_v54, %v3796_v41  ;;  %v4218_v33 = vpop.eup %3260 }
 0x1de   : > { %v2203_v52 = vmul.f32 %v3259_v18, %v4119_v24  ;;  %v2072_v23 = vmul.f32 1.442695, %v2019_v49  ;;  %v4222_v21 = vadd.f32 %v4083_v26, %v1775_v6  ;;  %v4225_v58 = vadd.f32 %v4097_v25, %v1786_v8 }
 0x1df   : > { %v2111_v50 = vadd.f32 1.0, %v4218_v33  ;;  %v1992_v57 = vand.u32 2147483647, %v4210_v32  ;;  %v4231_v35 = vadd.f32 %v4106_v3, %v1778_v36  ;;  %v2897_v34 = vadd.f32 %v4151_v48, %v4140_v16 }
 0x1e0   : > { %v2235_v54 = vsel %vm2171_vm1, %v3259_v18, %v2203_v52  ;;  %3274 = vpow2.f32 %v2072_v23  ;;  %v1990_v26 = vand.u32 2147483647, %v4222_v21  ;;  %v1993_v37 = vand.u32 2147483647, %v4225_v58 }
 0x1e1   : > { %v3263_v41 = vpop.eup %3262  ;;  %v2267_v25 = vmul.f32 %v2235_v54, %v3956_v42  ;;  %3276 = vrcp.f32 %v2111_v50  ;;  %v2024_v9 = vsub.f32 0.0, %v1992_v57  ;;  %v1799_v16 = vadd.f32 %v2897_v34, %v3833_v46 }
 0x1e2   : > { %v4235_v30 = vpop.eup %3264  ;;  %v2208_v24 = vmul.f32 %v3263_v41, %v4142_v61  ;;  %v2022_v40 = vsub.f32 0.0, %v1990_v26  ;;  %v1991_v61 = vand.u32 2147483647, %v4231_v35  ;;  %v2025_v43 = vsub.f32 0.0, %v1993_v37 }
 0x1e3   : > { %v4239_v0 = vpop.eup %3266  ;;  %v2116_v3 = vadd.f32 1.0, %v4235_v30  ;;  %2300 = vst.msk [vmem:[%s3968_s25 + $0x68] sm:$0xff] %vm2286_vm2, %v2267_v25  ;;  %v2082_v42 = vmul.f32 1.442695, %v2024_v9  ;;  %v4277_v18 = vadd.f32 %v4149_v15, %v1799_v16  ;;  %v1794_v46 = vadd.f32 %v4214_v47, %v3824_v28 }
 0x1e4   : > { %v2240_v2 = vsel %vm2176_vm3, %v3263_v41, %v2208_v24  ;;  %v2114_v45 = vadd.f32 1.0, %v4239_v0  ;;  %v2078_v56 = vmul.f32 1.442695, %v2022_v40  ;;  %v2023_v7 = vsub.f32 0.0, %v1991_v61 }
 0x1e5   : > { %v3269_v14 = vpop.eup %3268  ;;  %v2272_v60 = vmul.f32 %v2240_v2, %v3961_v10  ;;  %3278 = vrcp.f32 %v2116_v3  ;;  %v2084_v27 = vmul.f32 1.442695, %v2025_v43  ;;  %v1791_v10 = vadd.f32 %v2891_v11, %v3819_v62 }
 0x1e6   : > { %v2206_v29 = vmul.f32 %v3269_v14, %v4176_v4  ;;  %3280 = vrcp.f32 %v2114_v45  ;;  %v3271_v31 = vpop.eup %3270  ;;  %v2080_v49 = vmul.f32 1.442695, %v2023_v7  ;;  %v4289_v23 = vadd.f32 %v4174_v1, %v1794_v46 }
 0x1e7   : > { %2305 = vst.msk [vmem:[%s3968_s25 + $0x90] sm:$0xff] %vm2286_vm2, %v2272_v60  ;;  %3282 = vpow2.f32 %v2082_v42  ;;  %v4256_v59 = vpop.eup %3272  ;;  %v2209_v51 = vmul.f32 %v3271_v31, %v4188_v39  ;;  %v4267_v48 = vadd.f32 %v4157_v20, %v1791_v10  ;;  %v2900_v39 = vadd.f32 %v4170_v5, %v4159_v19 }
 0x1e8   : > { %v2238_v4 = vsel %vm2174_vm4, %v3269_v14, %v2206_v29  ;;  %3284 = vpow2.f32 %v2078_v56  ;;  %v2117_v8 = vadd.f32 1.0, %v4256_v59  ;;  %vm2179_vm10 = vcmp.ge.f32.partialorder %v4166_v63, 0.0 }
 0x1e9   : > { %v2270_v6 = vmul.f32 %v2238_v4, %v4018_v13  ;;  %3286 = vpow2.f32 %v2084_v27  ;;  %v2241_v62 = vsel %vm2177_vm5, %v3271_v31, %v2209_v51  ;;  %v1994_v52 = vand.u32 2147483647, %v4267_v48 }
 0x1ea   : > { %3288 = vpow2.f32 %v2080_v49  ;;  %v4271_v11 = vpop.eup %3274  ;;  %v2273_v13 = vmul.f32 %v2241_v62, %v4026_v17  ;;  %v1802_v19 = vadd.f32 %v2900_v39, %v3838_v53  ;;  %v1996_v17 = vand.u32 2147483647, %v4277_v18 }
 0x1eb   : > { %2303 = vst.msk [vmem:[%s3968_s25 + $0x80] sm:$0xff] %vm2286_vm2, %v2270_v6  ;;  %3290 = vrcp.f32 %v2117_v8  ;;  %v3277_v36 = vpop.eup %3276  ;;  %v2115_v20 = vadd.f32 1.0, %v4271_v11  ;;  %v2026_v28 = vsub.f32 0.0, %v1994_v52  ;;  %vm2184_vm11 = vcmp.ge.f32.partialorder %v4210_v32, 0.0 }
 0x1ec   : > { %2306 = vst.msk [vmem:[%s3968_s25 + $0x98] sm:$0xff] %vm2286_vm2, %v2273_v13  ;;  %v2207_v5 = vmul.f32 %v3277_v36, %v4218_v33  ;;  %v4293_v15 = vadd.f32 %v4168_v38, %v1802_v19  ;;  %v2028_v53 = vsub.f32 0.0, %v1996_v17  ;;  %v1995_v33 = vand.u32 2147483647, %v4289_v23 }
 0x1ed   : > { %3292 = vrcp.f32 %v2115_v20  ;;  %v2086_v54 = vmul.f32 1.442695, %v2026_v28  ;;  %vm2182_vm12 = vcmp.ge.f32.partialorder %v4222_v21, 0.0  ;;  %vm2185_vm13 = vcmp.ge.f32.partialorder %v4225_v58, 0.0 }
 0x1ee   : > { %v2239_v50 = vsel %vm2175_vm6, %v3277_v36, %v2207_v5  ;;  %v1997_v26 = vand.u32 2147483647, %v4293_v15  ;;  %v2090_v24 = vmul.f32 1.442695, %v2028_v53  ;;  %v2027_v9 = vsub.f32 0.0, %v1995_v33 }
 0x1ef   : > { %v3279_v47 = vpop.eup %3278  ;;  %v2271_v41 = vmul.f32 %v2239_v50, %v4091_v44  ;;  %3294 = vpow2.f32 %v2086_v54  ;;  %vm2183_vm14 = vcmp.ge.f32.partialorder %v4231_v35, 0.0  ;;  %vm2186_vm15 = vcmp.ge.f32.partialorder %v4267_v48, 0.0 }
 0x1f0   : > { %v3281_v57 = vpop.eup %3280  ;;  %v2212_v1 = vmul.f32 %v3279_v47, %v4235_v30  ;;  %v2029_v44 = vsub.f32 0.0, %v1997_v26  ;;  %3296 = vpow2.f32 %v2090_v24  ;;  %v2088_v29 = vmul.f32 1.442695, %v2027_v9 }
 0x1f1   : > { %v3283_v25 = vpop.eup %3282  ;;  %v2210_v38 = vmul.f32 %v3281_v57, %v4239_v0  ;;  %2304 = vst.msk [vmem:[%s3968_s25 + $0x88] sm:$0xff] %vm2286_vm2, %v2271_v41  ;;  %vm2188_vm0 = vcmp.ge.f32.partialorder %v4277_v18, 0.0  ;;  %vm2189_vm1 = vcmp.ge.f32.partialorder %v4293_v15, 0.0  ;;  %vm2187_vm3 = vcmp.ge.f32.partialorder %v4289_v23, 0.0 }
 0x1f2   : > { %v3285_v3 = vpop.eup %3284  ;;  %v2244_v40 = vsel %vm2180_vm7, %v3279_v47, %v2212_v1  ;;  %v2120_v37 = vadd.f32 1.0, %v3283_v25  ;;  %v2092_v60 = vmul.f32 1.442695, %v2029_v44 }
 0x1f3   : > { %v3287_v30 = vpop.eup %3286  ;;  %v2276_v2 = vmul.f32 %v2244_v40, %v4117_v12  ;;  %v2242_v45 = vsel %vm2178_vm8, %v3281_v57, %v2210_v38  ;;  %v2118_v42 = vadd.f32 1.0, %v3285_v3 }
 0x1f4   : > { %v3289_v61 = vpop.eup %3288  ;;  %v2274_v0 = vmul.f32 %v2242_v45, %v4126_v55  ;;  %3298 = vrcp.f32 %v2120_v37  ;;  %v2121_v14 = vadd.f32 1.0, %v3287_v30 }
 0x1f5   : > { %v3291_v56 = vpop.eup %3290  ;;  %2309 = vst.msk [vmem:[%s3968_s25 + $0xb0] sm:$0xff] %vm2286_vm2, %v2276_v2  ;;  %3300 = vrcp.f32 %v2118_v42  ;;  %v2119_v43 = vadd.f32 1.0, %v3289_v61 }
 0x1f6   : > { %2307 = vst.msk [vmem:[%s3968_s25 + $0xa0] sm:$0xff] %vm2286_vm2, %v2274_v0  ;;  %v2213_v12 = vmul.f32 %v3291_v56, %v4256_v59  ;;  %3302 = vrcp.f32 %v2121_v14 }
 0x1f7   : > { %3304 = vrcp.f32 %v2119_v43  ;;  %v3293_v55 = vpop.eup %3292 }
 0x1f8   : > { %v2245_v7 = vsel %vm2181_vm9, %v3291_v56, %v2213_v12  ;;  %3306 = vpow2.f32 %v2092_v60  ;;  %v2211_v27 = vmul.f32 %v3293_v55, %v4271_v11 }
 0x1f9   : > { %v2277_v31 = vmul.f32 %v2245_v7, %v4155_v22  ;;  %3308 = vpow2.f32 %v2088_v29  ;;  %v3295_v10 = vpop.eup %3294 }
 0x1fa   : > { %v2243_v34 = vsel %vm2179_vm10, %v3293_v55, %v2211_v27  ;;  %v3297_v4 = vpop.eup %3296  ;;  %v2122_v51 = vadd.f32 1.0, %v3295_v10 }
 0x1fb   : > { %2310 = vst.msk [vmem:[%s3968_s25 + $0xb8] sm:$0xff] %vm2286_vm2, %v2277_v31  ;;  %v2275_v59 = vmul.f32 %v2243_v34, %v4166_v63  ;;  %v2124_v6 = vadd.f32 1.0, %v3297_v4 }
 0x1fc   : > { %3310 = vrcp.f32 %v2122_v51 }
 0x1fd   : > { %2308 = vst.msk [vmem:[%s3968_s25 + $0xa8] sm:$0xff] %vm2286_vm2, %v2275_v59  ;;  %3312 = vrcp.f32 %v2124_v6 }
 0x1fe   : > { %v3299_v49 = vpop.eup %3298 }
 0x1ff   : > { %v3301_v8 = vpop.eup %3300  ;;  %v2216_v16 = vmul.f32 %v3299_v49, %v3283_v25 }
 0x200   : > { %v3303_v22 = vpop.eup %3302  ;;  %v2214_v62 = vmul.f32 %v3301_v8, %v3285_v3 }
 0x201   : > { %v3305_v39 = vpop.eup %3304  ;;  %v2248_v11 = vsel %vm2184_vm11, %v3299_v49, %v2216_v16  ;;  %v2217_v63 = vmul.f32 %v3303_v22, %v3287_v30 }
 0x202   : > { %v3307_v13 = vpop.eup %3306  ;;  %v2280_v46 = vmul.f32 %v2248_v11, %v4210_v32  ;;  %v2246_v36 = vsel %vm2182_vm12, %v3301_v8, %v2214_v62  ;;  %v2215_v20 = vmul.f32 %v3305_v39, %v3289_v61 }
 0x203   : > { %v3309_v52 = vpop.eup %3308  ;;  %v2278_v19 = vmul.f32 %v2246_v36, %v4222_v21  ;;  %v2249_v5 = vsel %vm2185_vm13, %v3303_v22, %v2217_v63  ;;  %v2125_v17 = vadd.f32 1.0, %v3307_v13 }
 0x204   : > { %2313 = vst.msk [vmem:[%s3968_s25 + $0xd0] sm:$0xff] %vm2286_vm2, %v2280_v46  ;;  %v2281_v28 = vmul.f32 %v2249_v5, %v4225_v58  ;;  %v2247_v47 = vsel %vm2183_vm14, %v3305_v39, %v2215_v20  ;;  %v2123_v50 = vadd.f32 1.0, %v3309_v52 }
 0x205   : > { %2311 = vst.msk [vmem:[%s3968_s25 + $0xc0] sm:$0xff] %vm2286_vm2, %v2278_v19  ;;  %v2279_v32 = vmul.f32 %v2247_v47, %v4231_v35  ;;  %3314 = vrcp.f32 %v2125_v17 }
 0x206   : > { %2314 = vst.msk [vmem:[%s3968_s25 + $0xd8] sm:$0xff] %vm2286_vm2, %v2281_v28  ;;  %3316 = vrcp.f32 %v2123_v50  ;;  %v3311_v21 = vpop.eup %3310 }
 0x207   : > { %2312 = vst.msk [vmem:[%s3968_s25 + $0xc8] sm:$0xff] %vm2286_vm2, %v2279_v32  ;;  %v3313_v53 = vpop.eup %3312  ;;  %v2218_v33 = vmul.f32 %v3311_v21, %v3295_v10 }
 0x208   : > { %v2220_v57 = vmul.f32 %v3313_v53, %v3297_v4 }
 0x209   : > { %v2250_v58 = vsel %vm2186_vm15, %v3311_v21, %v2218_v33 }
 0x20a   : > { %v2252_v41 = vsel %vm2188_vm0, %v3313_v53, %v2220_v57  ;;  %v2282_v35 = vmul.f32 %v2250_v58, %v4267_v48 }
 0x20b   : > { %v2284_v1 = vmul.f32 %v2252_v41, %v4277_v18 }
 0x20c   : > { %2315 = vst.msk [vmem:[%s3968_s25 + $0xe0] sm:$0xff] %vm2286_vm2, %v2282_v35 }
 0x20d   : > { %2317 = vst.msk [vmem:[%s3968_s25 + $0xf0] sm:$0xff] %vm2286_vm2, %v2284_v1 }
 0x20f   : > { %v3315_v54 = vpop.eup %3314 }
 0x210   : > { %v3317_v26 = vpop.eup %3316  ;;  %v2221_v25 = vmul.f32 %v3315_v54, %v3307_v13 }
 0x211   : > { %v2219_v38 = vmul.f32 %v3317_v26, %v3309_v52 }
 0x212   : > { %v2253_v24 = vsel %vm2189_vm1, %v3315_v54, %v2221_v25 }
 0x213   : > { %v2285_v9 = vmul.f32 %v2253_v24, %v4293_v15  ;;  %v2251_v3 = vsel %vm2187_vm3, %v3317_v26, %v2219_v38 }
 0x214   : > { %v2283_v48 = vmul.f32 %v2251_v3, %v4289_v23 }
 0x215   : > { %2318 = vst.msk [vmem:[%s3968_s25 + $0xf8] sm:$0xff] %vm2286_vm2, %v2285_v9 }
 0x216   : > { %2316 = vst.msk [vmem:[%s3968_s25 + $0xe8] sm:$0xff] %vm2286_vm2, %v2283_v48 }
 0x217 PF: > { %s13_s12 = sadd.s32 1, %s3324_s12  }
 0x218   : > { %p10_p4 = scmp.ge.s32.totalorder %s13_s12, 7  }
 0x21a   :  { %12 = sbr.rel (!%p10_p4) target bundleno = 1 (0x1), region = 62 }

// kernel: oles_forward.8
= control target key start
LH: loop header
LB: loop body
LE: loop exit
PB: predicated region body
PF: predicated region fallthrough
CT: control target
= control target key end

     0   :  { %vm269_vm0 = vcmask 523264   ;;  %s911_s0 = inlined_call_operand.vmem [shape: f32[288,64], index: 0, kind: input, shape index: {}]   ;;  %s912_s1 = inlined_call_operand.vmem [shape: f32[288,64], index: 1, kind: input, shape index: {}]   ;;  %s913_s2 = inlined_call_operand.vmem [shape: f32[288,64], index: 2, kind: input, shape index: {}]   ;;  %s914_s3 = inlined_call_operand.vmem [shape: f32[288,64], index: 3, kind: input, shape index: {}]   ;;  %s915_s4 = inlined_call_operand.vmem [shape: f32[288,64], index: 4, kind: output, shape index: {}]  }
   0x1   :  { %v17_v0 = vld [vmem:[%s911_s0] sm:$0xff]  ;;  %v18_v5 = vld [vmem:[%s911_s0 + $0x8] sm:$0xff]  ;;  %v19_v11 = vld [vmem:[%s911_s0 + $0x10] sm:$0xff] }
   0x2   :  { %v53_v1 = vld [vmem:[%s912_s1] sm:$0xff]  ;;  %v54_v6 = vld [vmem:[%s912_s1 + $0x8] sm:$0xff]  ;;  %v55_v13 = vld [vmem:[%s912_s1 + $0x10] sm:$0xff] }
   0x3   :  { %v125_v2 = vld [vmem:[%s913_s2] sm:$0xff]  ;;  %v89_v3 = vmax.f32 %v17_v0, %v53_v1  ;;  %v90_v8 = vmax.f32 %v18_v5, %v54_v6  ;;  %v126_v9 = vld [vmem:[%s913_s2 + $0x8] sm:$0xff]  ;;  %v127_v14 = vld [vmem:[%s913_s2 + $0x10] sm:$0xff]  ;;  %v91_v17 = vmax.f32 %v19_v11, %v55_v13 }
   0x4   :  { %v161_v4 = vld [vmem:[%s914_s3] sm:$0xff]  ;;  %v162_v10 = vld [vmem:[%s914_s3 + $0x8] sm:$0xff]  ;;  %v163_v15 = vld [vmem:[%s914_s3 + $0x10] sm:$0xff] }
   0x5   :  { %v197_v7 = vmax.f32 %v125_v2, %v161_v4  ;;  %v198_v12 = vmax.f32 %v126_v9, %v162_v10  ;;  %v199_v18 = vmax.f32 %v127_v14, %v163_v15  ;;  %v20_v19 = vld [vmem:[%s911_s0 + $0x18] sm:$0xff]  ;;  %v21_v25 = vld [vmem:[%s911_s0 + $0x20] sm:$0xff]  ;;  %v22_v32 = vld [vmem:[%s911_s0 + $0x28] sm:$0xff] }
   0x6   :  { %v56_v20 = vld [vmem:[%s912_s1 + $0x18] sm:$0xff]  ;;  %v57_v26 = vld [vmem:[%s912_s1 + $0x20] sm:$0xff]  ;;  %v58_v34 = vld [vmem:[%s912_s1 + $0x28] sm:$0xff] }
   0x7   :  { %v233_v16 = vmax.f32 %v89_v3, %v197_v7  ;;  %v128_v21 = vld [vmem:[%s913_s2 + $0x18] sm:$0xff]  ;;  %v234_v22 = vmax.f32 %v90_v8, %v198_v12  ;;  %v92_v23 = vmax.f32 %v20_v19, %v56_v20  ;;  %v235_v27 = vmax.f32 %v91_v17, %v199_v18  ;;  %v129_v30 = vld [vmem:[%s913_s2 + $0x20] sm:$0xff]  ;;  %v130_v35 = vld [vmem:[%s913_s2 + $0x28] sm:$0xff] }
   0x8   :  { %v164_v24 = vld [vmem:[%s914_s3 + $0x18] sm:$0xff]  ;;  %v93_v29 = vmax.f32 %v21_v25, %v57_v26  ;;  %v165_v31 = vld [vmem:[%s914_s3 + $0x20] sm:$0xff]  ;;  %v166_v36 = vld [vmem:[%s914_s3 + $0x28] sm:$0xff]  ;;  %v94_v38 = vmax.f32 %v22_v32, %v58_v34 }
   0x9   :  { %270 = vst.msk [vmem:[%s915_s4] sm:$0xff] %vm269_vm0, %v233_v16  ;;  %v200_v28 = vmax.f32 %v128_v21, %v164_v24  ;;  %271 = vst.msk [vmem:[%s915_s4 + $0x8] sm:$0xff] %vm269_vm0, %v234_v22  ;;  %v201_v33 = vmax.f32 %v129_v30, %v165_v31  ;;  %v202_v39 = vmax.f32 %v130_v35, %v166_v36  ;;  %v23_v40 = vld [vmem:[%s911_s0 + $0x30] sm:$0xff]  ;;  %v24_v46 = vld [vmem:[%s911_s0 + $0x38] sm:$0xff] }
   0xa   :  { %272 = vst.msk [vmem:[%s915_s4 + $0x10] sm:$0xff] %vm269_vm0, %v235_v27  ;;  %v59_v41 = vld [vmem:[%s912_s1 + $0x30] sm:$0xff]  ;;  %v60_v47 = vld [vmem:[%s912_s1 + $0x38] sm:$0xff]  ;;  %v25_v53 = vld [vmem:[%s911_s0 + $0x40] sm:$0xff] }
   0xb   :  { %v236_v37 = vmax.f32 %v92_v23, %v200_v28  ;;  %v131_v42 = vld [vmem:[%s913_s2 + $0x30] sm:$0xff]  ;;  %v237_v43 = vmax.f32 %v93_v29, %v201_v33  ;;  %v95_v44 = vmax.f32 %v23_v40, %v59_v41  ;;  %v238_v48 = vmax.f32 %v94_v38, %v202_v39  ;;  %v132_v51 = vld [vmem:[%s913_s2 + $0x38] sm:$0xff]  ;;  %v61_v55 = vld [vmem:[%s912_s1 + $0x40] sm:$0xff] }
   0xc   :  { %v167_v45 = vld [vmem:[%s914_s3 + $0x30] sm:$0xff]  ;;  %v96_v50 = vmax.f32 %v24_v46, %v60_v47  ;;  %v168_v52 = vld [vmem:[%s914_s3 + $0x38] sm:$0xff]  ;;  %v133_v56 = vld [vmem:[%s913_s2 + $0x40] sm:$0xff]  ;;  %v97_v59 = vmax.f32 %v25_v53, %v61_v55 }
   0xd   :  { %273 = vst.msk [vmem:[%s915_s4 + $0x18] sm:$0xff] %vm269_vm0, %v236_v37  ;;  %v203_v49 = vmax.f32 %v131_v42, %v167_v45  ;;  %274 = vst.msk [vmem:[%s915_s4 + $0x20] sm:$0xff] %vm269_vm0, %v237_v43  ;;  %v204_v54 = vmax.f32 %v132_v51, %v168_v52  ;;  %v169_v57 = vld [vmem:[%s914_s3 + $0x40] sm:$0xff]  ;;  %v26_v61 = vld [vmem:[%s911_s0 + $0x48] sm:$0xff] }
   0xe   :  { %275 = vst.msk [vmem:[%s915_s4 + $0x28] sm:$0xff] %vm269_vm0, %v238_v48  ;;  %v205_v60 = vmax.f32 %v133_v56, %v169_v57  ;;  %v62_v62 = vld [vmem:[%s912_s1 + $0x48] sm:$0xff]  ;;  %v27_v3 = vld [vmem:[%s911_s0 + $0x50] sm:$0xff]  ;;  %v28_v10 = vld [vmem:[%s911_s0 + $0x58] sm:$0xff] }
   0xf   :  { %v239_v58 = vmax.f32 %v95_v44, %v203_v49  ;;  %v134_v63 = vld [vmem:[%s913_s2 + $0x48] sm:$0xff]  ;;  %v240_v0 = vmax.f32 %v96_v50, %v204_v54  ;;  %v98_v1 = vmax.f32 %v26_v61, %v62_v62  ;;  %v63_v4 = vld [vmem:[%s912_s1 + $0x50] sm:$0xff]  ;;  %v64_v12 = vld [vmem:[%s912_s1 + $0x58] sm:$0xff] }
  0x10   :  { %v170_v2 = vld [vmem:[%s914_s3 + $0x48] sm:$0xff]  ;;  %v241_v5 = vmax.f32 %v97_v59, %v205_v60  ;;  %v99_v7 = vmax.f32 %v27_v3, %v63_v4  ;;  %v135_v8 = vld [vmem:[%s913_s2 + $0x50] sm:$0xff]  ;;  %v136_v13 = vld [vmem:[%s913_s2 + $0x58] sm:$0xff]  ;;  %v100_v16 = vmax.f32 %v28_v10, %v64_v12 }
  0x11   :  { %276 = vst.msk [vmem:[%s915_s4 + $0x30] sm:$0xff] %vm269_vm0, %v239_v58  ;;  %v206_v6 = vmax.f32 %v134_v63, %v170_v2  ;;  %v171_v9 = vld [vmem:[%s914_s3 + $0x50] sm:$0xff]  ;;  %277 = vst.msk [vmem:[%s915_s4 + $0x38] sm:$0xff] %vm269_vm0, %v240_v0  ;;  %v172_v14 = vld [vmem:[%s914_s3 + $0x58] sm:$0xff] }
  0x12   :  { %v207_v11 = vmax.f32 %v135_v8, %v171_v9  ;;  %278 = vst.msk [vmem:[%s915_s4 + $0x40] sm:$0xff] %vm269_vm0, %v241_v5  ;;  %v208_v17 = vmax.f32 %v136_v13, %v172_v14  ;;  %v29_v18 = vld [vmem:[%s911_s0 + $0x60] sm:$0xff]  ;;  %v30_v24 = vld [vmem:[%s911_s0 + $0x68] sm:$0xff]  ;;  %v31_v31 = vld [vmem:[%s911_s0 + $0x70] sm:$0xff] }
  0x13   :  { %v242_v15 = vmax.f32 %v98_v1, %v206_v6  ;;  %v65_v19 = vld [vmem:[%s912_s1 + $0x60] sm:$0xff]  ;;  %v66_v25 = vld [vmem:[%s912_s1 + $0x68] sm:$0xff]  ;;  %v67_v33 = vld [vmem:[%s912_s1 + $0x70] sm:$0xff] }
  0x14   :  { %v137_v20 = vld [vmem:[%s913_s2 + $0x60] sm:$0xff]  ;;  %v243_v21 = vmax.f32 %v99_v7, %v207_v11  ;;  %v101_v22 = vmax.f32 %v29_v18, %v65_v19  ;;  %v244_v26 = vmax.f32 %v100_v16, %v208_v17  ;;  %v102_v28 = vmax.f32 %v30_v24, %v66_v25  ;;  %v138_v29 = vld [vmem:[%s913_s2 + $0x68] sm:$0xff]  ;;  %v139_v34 = vld [vmem:[%s913_s2 + $0x70] sm:$0xff] }
  0x15   :  { %v173_v23 = vld [vmem:[%s914_s3 + $0x60] sm:$0xff]  ;;  %279 = vst.msk [vmem:[%s915_s4 + $0x48] sm:$0xff] %vm269_vm0, %v242_v15  ;;  %v174_v30 = vld [vmem:[%s914_s3 + $0x68] sm:$0xff]  ;;  %v175_v35 = vld [vmem:[%s914_s3 + $0x70] sm:$0xff]  ;;  %v103_v37 = vmax.f32 %v31_v31, %v67_v33 }
  0x16   :  { %v209_v27 = vmax.f32 %v137_v20, %v173_v23  ;;  %280 = vst.msk [vmem:[%s915_s4 + $0x50] sm:$0xff] %vm269_vm0, %v243_v21  ;;  %v210_v32 = vmax.f32 %v138_v29, %v174_v30  ;;  %281 = vst.msk [vmem:[%s915_s4 + $0x58] sm:$0xff] %vm269_vm0, %v244_v26  ;;  %v211_v38 = vmax.f32 %v139_v34, %v175_v35  ;;  %v32_v39 = vld [vmem:[%s911_s0 + $0x78] sm:$0xff]  ;;  %v33_v45 = vld [vmem:[%s911_s0 + $0x80] sm:$0xff] }
  0x17   :  { %v68_v40 = vld [vmem:[%s912_s1 + $0x78] sm:$0xff]  ;;  %v69_v46 = vld [vmem:[%s912_s1 + $0x80] sm:$0xff]  ;;  %v34_v52 = vld [vmem:[%s911_s0 + $0x88] sm:$0xff] }
  0x18   :  { %v245_v36 = vmax.f32 %v101_v22, %v209_v27  ;;  %v140_v41 = vld [vmem:[%s913_s2 + $0x78] sm:$0xff]  ;;  %v246_v42 = vmax.f32 %v102_v28, %v210_v32  ;;  %v104_v43 = vmax.f32 %v32_v39, %v68_v40  ;;  %v247_v47 = vmax.f32 %v103_v37, %v211_v38  ;;  %v141_v50 = vld [vmem:[%s913_s2 + $0x80] sm:$0xff]  ;;  %v70_v54 = vld [vmem:[%s912_s1 + $0x88] sm:$0xff] }
  0x19   :  { %v176_v44 = vld [vmem:[%s914_s3 + $0x78] sm:$0xff]  ;;  %v105_v49 = vmax.f32 %v33_v45, %v69_v46  ;;  %v177_v51 = vld [vmem:[%s914_s3 + $0x80] sm:$0xff]  ;;  %v142_v55 = vld [vmem:[%s913_s2 + $0x88] sm:$0xff]  ;;  %v106_v58 = vmax.f32 %v34_v52, %v70_v54 }
  0x1a   :  { %282 = vst.msk [vmem:[%s915_s4 + $0x60] sm:$0xff] %vm269_vm0, %v245_v36  ;;  %v212_v48 = vmax.f32 %v140_v41, %v176_v44  ;;  %283 = vst.msk [vmem:[%s915_s4 + $0x68] sm:$0xff] %vm269_vm0, %v246_v42  ;;  %v213_v53 = vmax.f32 %v141_v50, %v177_v51  ;;  %v178_v56 = vld [vmem:[%s914_s3 + $0x88] sm:$0xff]  ;;  %v35_v60 = vld [vmem:[%s911_s0 + $0x90] sm:$0xff] }
  0x1b   :  { %284 = vst.msk [vmem:[%s915_s4 + $0x70] sm:$0xff] %vm269_vm0, %v247_v47  ;;  %v214_v59 = vmax.f32 %v142_v55, %v178_v56  ;;  %v71_v61 = vld [vmem:[%s912_s1 + $0x90] sm:$0xff]  ;;  %v36_v2 = vld [vmem:[%s911_s0 + $0x98] sm:$0xff]  ;;  %v37_v9 = vld [vmem:[%s911_s0 + $0xa0] sm:$0xff] }
  0x1c   :  { %v248_v57 = vmax.f32 %v104_v43, %v212_v48  ;;  %v143_v62 = vld [vmem:[%s913_s2 + $0x90] sm:$0xff]  ;;  %v249_v63 = vmax.f32 %v105_v49, %v213_v53  ;;  %v107_v0 = vmax.f32 %v35_v60, %v71_v61  ;;  %v72_v3 = vld [vmem:[%s912_s1 + $0x98] sm:$0xff]  ;;  %v73_v11 = vld [vmem:[%s912_s1 + $0xa0] sm:$0xff] }
  0x1d   :  { %v179_v1 = vld [vmem:[%s914_s3 + $0x90] sm:$0xff]  ;;  %v250_v4 = vmax.f32 %v106_v58, %v214_v59  ;;  %v108_v6 = vmax.f32 %v36_v2, %v72_v3  ;;  %v144_v7 = vld [vmem:[%s913_s2 + $0x98] sm:$0xff]  ;;  %v145_v12 = vld [vmem:[%s913_s2 + $0xa0] sm:$0xff]  ;;  %v109_v15 = vmax.f32 %v37_v9, %v73_v11 }
  0x1e   :  { %285 = vst.msk [vmem:[%s915_s4 + $0x78] sm:$0xff] %vm269_vm0, %v248_v57  ;;  %v215_v5 = vmax.f32 %v143_v62, %v179_v1  ;;  %v180_v8 = vld [vmem:[%s914_s3 + $0x98] sm:$0xff]  ;;  %286 = vst.msk [vmem:[%s915_s4 + $0x80] sm:$0xff] %vm269_vm0, %v249_v63  ;;  %v181_v13 = vld [vmem:[%s914_s3 + $0xa0] sm:$0xff] }
  0x1f   :  { %v216_v10 = vmax.f32 %v144_v7, %v180_v8  ;;  %287 = vst.msk [vmem:[%s915_s4 + $0x88] sm:$0xff] %vm269_vm0, %v250_v4  ;;  %v217_v16 = vmax.f32 %v145_v12, %v181_v13  ;;  %v38_v17 = vld [vmem:[%s911_s0 + $0xa8] sm:$0xff]  ;;  %v39_v23 = vld [vmem:[%s911_s0 + $0xb0] sm:$0xff]  ;;  %v40_v30 = vld [vmem:[%s911_s0 + $0xb8] sm:$0xff] }
  0x20   :  { %v251_v14 = vmax.f32 %v107_v0, %v215_v5  ;;  %v74_v18 = vld [vmem:[%s912_s1 + $0xa8] sm:$0xff]  ;;  %v75_v24 = vld [vmem:[%s912_s1 + $0xb0] sm:$0xff]  ;;  %v76_v32 = vld [vmem:[%s912_s1 + $0xb8] sm:$0xff] }
  0x21   :  { %v146_v19 = vld [vmem:[%s913_s2 + $0xa8] sm:$0xff]  ;;  %v252_v20 = vmax.f32 %v108_v6, %v216_v10  ;;  %v110_v21 = vmax.f32 %v38_v17, %v74_v18  ;;  %v253_v25 = vmax.f32 %v109_v15, %v217_v16  ;;  %v111_v27 = vmax.f32 %v39_v23, %v75_v24  ;;  %v147_v28 = vld [vmem:[%s913_s2 + $0xb0] sm:$0xff]  ;;  %v148_v33 = vld [vmem:[%s913_s2 + $0xb8] sm:$0xff] }
  0x22   :  { %v182_v22 = vld [vmem:[%s914_s3 + $0xa8] sm:$0xff]  ;;  %288 = vst.msk [vmem:[%s915_s4 + $0x90] sm:$0xff] %vm269_vm0, %v251_v14  ;;  %v183_v29 = vld [vmem:[%s914_s3 + $0xb0] sm:$0xff]  ;;  %v184_v34 = vld [vmem:[%s914_s3 + $0xb8] sm:$0xff]  ;;  %v112_v36 = vmax.f32 %v40_v30, %v76_v32 }
  0x23   :  { %v218_v26 = vmax.f32 %v146_v19, %v182_v22  ;;  %289 = vst.msk [vmem:[%s915_s4 + $0x98] sm:$0xff] %vm269_vm0, %v252_v20  ;;  %v219_v31 = vmax.f32 %v147_v28, %v183_v29  ;;  %290 = vst.msk [vmem:[%s915_s4 + $0xa0] sm:$0xff] %vm269_vm0, %v253_v25  ;;  %v220_v37 = vmax.f32 %v148_v33, %v184_v34  ;;  %v41_v38 = vld [vmem:[%s911_s0 + $0xc0] sm:$0xff]  ;;  %v42_v44 = vld [vmem:[%s911_s0 + $0xc8] sm:$0xff] }
  0x24   :  { %v77_v39 = vld [vmem:[%s912_s1 + $0xc0] sm:$0xff]  ;;  %v78_v45 = vld [vmem:[%s912_s1 + $0xc8] sm:$0xff]  ;;  %v43_v51 = vld [vmem:[%s911_s0 + $0xd0] sm:$0xff] }
  0x25   :  { %v254_v35 = vmax.f32 %v110_v21, %v218_v26  ;;  %v149_v40 = vld [vmem:[%s913_s2 + $0xc0] sm:$0xff]  ;;  %v255_v41 = vmax.f32 %v111_v27, %v219_v31  ;;  %v113_v42 = vmax.f32 %v41_v38, %v77_v39  ;;  %v256_v46 = vmax.f32 %v112_v36, %v220_v37  ;;  %v150_v49 = vld [vmem:[%s913_s2 + $0xc8] sm:$0xff]  ;;  %v79_v53 = vld [vmem:[%s912_s1 + $0xd0] sm:$0xff] }
  0x26   :  { %v185_v43 = vld [vmem:[%s914_s3 + $0xc0] sm:$0xff]  ;;  %v114_v48 = vmax.f32 %v42_v44, %v78_v45  ;;  %v186_v50 = vld [vmem:[%s914_s3 + $0xc8] sm:$0xff]  ;;  %v151_v54 = vld [vmem:[%s913_s2 + $0xd0] sm:$0xff]  ;;  %v115_v57 = vmax.f32 %v43_v51, %v79_v53 }
  0x27   :  { %291 = vst.msk [vmem:[%s915_s4 + $0xa8] sm:$0xff] %vm269_vm0, %v254_v35  ;;  %v221_v47 = vmax.f32 %v149_v40, %v185_v43  ;;  %292 = vst.msk [vmem:[%s915_s4 + $0xb0] sm:$0xff] %vm269_vm0, %v255_v41  ;;  %v222_v52 = vmax.f32 %v150_v49, %v186_v50  ;;  %v187_v55 = vld [vmem:[%s914_s3 + $0xd0] sm:$0xff]  ;;  %v44_v59 = vld [vmem:[%s911_s0 + $0xd8] sm:$0xff] }
  0x28   :  { %293 = vst.msk [vmem:[%s915_s4 + $0xb8] sm:$0xff] %vm269_vm0, %v256_v46  ;;  %v223_v58 = vmax.f32 %v151_v54, %v187_v55  ;;  %v80_v60 = vld [vmem:[%s912_s1 + $0xd8] sm:$0xff]  ;;  %v45_v1 = vld [vmem:[%s911_s0 + $0xe0] sm:$0xff]  ;;  %v46_v8 = vld [vmem:[%s911_s0 + $0xe8] sm:$0xff] }
  0x29   :  { %v257_v56 = vmax.f32 %v113_v42, %v221_v47  ;;  %v152_v61 = vld [vmem:[%s913_s2 + $0xd8] sm:$0xff]  ;;  %v258_v62 = vmax.f32 %v114_v48, %v222_v52  ;;  %v116_v63 = vmax.f32 %v44_v59, %v80_v60  ;;  %v81_v2 = vld [vmem:[%s912_s1 + $0xe0] sm:$0xff]  ;;  %v82_v10 = vld [vmem:[%s912_s1 + $0xe8] sm:$0xff] }
  0x2a   :  { %v188_v0 = vld [vmem:[%s914_s3 + $0xd8] sm:$0xff]  ;;  %v259_v3 = vmax.f32 %v115_v57, %v223_v58  ;;  %v117_v5 = vmax.f32 %v45_v1, %v81_v2  ;;  %v153_v6 = vld [vmem:[%s913_s2 + $0xe0] sm:$0xff]  ;;  %v154_v11 = vld [vmem:[%s913_s2 + $0xe8] sm:$0xff]  ;;  %v118_v14 = vmax.f32 %v46_v8, %v82_v10 }
  0x2b   :  { %294 = vst.msk [vmem:[%s915_s4 + $0xc0] sm:$0xff] %vm269_vm0, %v257_v56  ;;  %v224_v4 = vmax.f32 %v152_v61, %v188_v0  ;;  %v189_v7 = vld [vmem:[%s914_s3 + $0xe0] sm:$0xff]  ;;  %295 = vst.msk [vmem:[%s915_s4 + $0xc8] sm:$0xff] %vm269_vm0, %v258_v62  ;;  %v190_v12 = vld [vmem:[%s914_s3 + $0xe8] sm:$0xff] }
  0x2c   :  { %v225_v9 = vmax.f32 %v153_v6, %v189_v7  ;;  %296 = vst.msk [vmem:[%s915_s4 + $0xd0] sm:$0xff] %vm269_vm0, %v259_v3  ;;  %v226_v15 = vmax.f32 %v154_v11, %v190_v12  ;;  %v47_v16 = vld [vmem:[%s911_s0 + $0xf0] sm:$0xff]  ;;  %v48_v22 = vld [vmem:[%s911_s0 + $0xf8] sm:$0xff]  ;;  %v49_v29 = vld [vmem:[%s911_s0 + $0x100] sm:$0xff] }
  0x2d   :  { %v260_v13 = vmax.f32 %v116_v63, %v224_v4  ;;  %v83_v17 = vld [vmem:[%s912_s1 + $0xf0] sm:$0xff]  ;;  %v84_v23 = vld [vmem:[%s912_s1 + $0xf8] sm:$0xff]  ;;  %v85_v31 = vld [vmem:[%s912_s1 + $0x100] sm:$0xff] }
  0x2e   :  { %v155_v18 = vld [vmem:[%s913_s2 + $0xf0] sm:$0xff]  ;;  %v261_v19 = vmax.f32 %v117_v5, %v225_v9  ;;  %v119_v20 = vmax.f32 %v47_v16, %v83_v17  ;;  %v262_v24 = vmax.f32 %v118_v14, %v226_v15  ;;  %v120_v26 = vmax.f32 %v48_v22, %v84_v23  ;;  %v156_v27 = vld [vmem:[%s913_s2 + $0xf8] sm:$0xff]  ;;  %v157_v32 = vld [vmem:[%s913_s2 + $0x100] sm:$0xff] }
  0x2f   :  { %v191_v21 = vld [vmem:[%s914_s3 + $0xf0] sm:$0xff]  ;;  %297 = vst.msk [vmem:[%s915_s4 + $0xd8] sm:$0xff] %vm269_vm0, %v260_v13  ;;  %v192_v28 = vld [vmem:[%s914_s3 + $0xf8] sm:$0xff]  ;;  %v193_v33 = vld [vmem:[%s914_s3 + $0x100] sm:$0xff]  ;;  %v121_v35 = vmax.f32 %v49_v29, %v85_v31 }
  0x30   :  { %v227_v25 = vmax.f32 %v155_v18, %v191_v21  ;;  %298 = vst.msk [vmem:[%s915_s4 + $0xe0] sm:$0xff] %vm269_vm0, %v261_v19  ;;  %v228_v30 = vmax.f32 %v156_v27, %v192_v28  ;;  %299 = vst.msk [vmem:[%s915_s4 + $0xe8] sm:$0xff] %vm269_vm0, %v262_v24  ;;  %v229_v36 = vmax.f32 %v157_v32, %v193_v33  ;;  %v50_v37 = vld [vmem:[%s911_s0 + $0x108] sm:$0xff]  ;;  %v51_v43 = vld [vmem:[%s911_s0 + $0x110] sm:$0xff] }
  0x31   :  { %v86_v38 = vld [vmem:[%s912_s1 + $0x108] sm:$0xff]  ;;  %v87_v44 = vld [vmem:[%s912_s1 + $0x110] sm:$0xff]  ;;  %v52_v50 = vld [vmem:[%s911_s0 + $0x118] sm:$0xff] }
  0x32   :  { %v263_v34 = vmax.f32 %v119_v20, %v227_v25  ;;  %v158_v39 = vld [vmem:[%s913_s2 + $0x108] sm:$0xff]  ;;  %v264_v40 = vmax.f32 %v120_v26, %v228_v30  ;;  %v122_v41 = vmax.f32 %v50_v37, %v86_v38  ;;  %v265_v45 = vmax.f32 %v121_v35, %v229_v36  ;;  %v159_v48 = vld [vmem:[%s913_s2 + $0x110] sm:$0xff]  ;;  %v88_v52 = vld [vmem:[%s912_s1 + $0x118] sm:$0xff] }
  0x33   :  { %v194_v42 = vld [vmem:[%s914_s3 + $0x108] sm:$0xff]  ;;  %v123_v47 = vmax.f32 %v51_v43, %v87_v44  ;;  %v195_v49 = vld [vmem:[%s914_s3 + $0x110] sm:$0xff]  ;;  %v160_v53 = vld [vmem:[%s913_s2 + $0x118] sm:$0xff]  ;;  %v124_v56 = vmax.f32 %v52_v50, %v88_v52 }
  0x34   :  { %300 = vst.msk [vmem:[%s915_s4 + $0xf0] sm:$0xff] %vm269_vm0, %v263_v34  ;;  %v230_v46 = vmax.f32 %v158_v39, %v194_v42  ;;  %301 = vst.msk [vmem:[%s915_s4 + $0xf8] sm:$0xff] %vm269_vm0, %v264_v40  ;;  %v231_v51 = vmax.f32 %v159_v48, %v195_v49  ;;  %v196_v54 = vld [vmem:[%s914_s3 + $0x118] sm:$0xff] }
  0x35   :  { %302 = vst.msk [vmem:[%s915_s4 + $0x100] sm:$0xff] %vm269_vm0, %v265_v45  ;;  %v232_v57 = vmax.f32 %v160_v53, %v196_v54 }
  0x36   :  { %v266_v55 = vmax.f32 %v122_v41, %v230_v46  ;;  %v267_v58 = vmax.f32 %v123_v47, %v231_v51 }
  0x37   :  { %v268_v59 = vmax.f32 %v124_v56, %v232_v57 }
  0x38   :  { %303 = vst.msk [vmem:[%s915_s4 + $0x108] sm:$0xff] %vm269_vm0, %v266_v55  ;;  %304 = vst.msk [vmem:[%s915_s4 + $0x110] sm:$0xff] %vm269_vm0, %v267_v58 }
  0x39   :  { %305 = vst.msk [vmem:[%s915_s4 + $0x118] sm:$0xff] %vm269_vm0, %v268_v59 }

// kernel: oles_forward.9
= control target key start
LH: loop header
LB: loop body
LE: loop exit
PB: predicated region body
PF: predicated region fallthrough
CT: control target
= control target key end

     0   :  { %vm6376_vm1 = vcmask 23552   ;;  %s10375_s1 = inlined_call_operand.vmem [shape: bf16[9216,3], index: 1, kind: input, shape index: {}]   ;;  %s10376_s0 = inlined_call_operand.vmem [shape: bf16[8,9216], index: 0, kind: input, shape index: {}]   ;;  %s10377_s2 = inlined_call_operand.vmem [shape: f32[1,3], index: 2, kind: input, shape index: {}]   ;;  %s10378_s3 = inlined_call_operand.<no memory space> [shape: f32[1,1], index: 3, kind: input, shape index: {}]   ;;  %s10379_s4 = inlined_call_operand.vmem [shape: f32[8,3], index: 4, kind: output, shape index: {}]  }
   0x1   :  { %v7826_v0 = vld [vmem:[%s10375_s1 + $0x40] sm:$0xff]   ;;  %v7830_v4 = vld [vmem:[%s10375_s1 + $0x48] sm:$0xff]   ;;  %v7834_v8 = vld [vmem:[%s10375_s1 + $0x50] sm:$0xff]  }
   0x2   :  { %v7827_v1 = vld [vmem:[%s10375_s1 + $0xc0] sm:$0xff]   ;;  %7032 = vmatprep.subr.bf16.mxu0 %v7826_v0  ;;  %v7831_v5 = vld [vmem:[%s10375_s1 + $0xc8] sm:$0xff]   ;;  %v7835_v9 = vld [vmem:[%s10375_s1 + $0xd0] sm:$0xff]  }
   0x3   :  { %v7828_v2 = vld [vmem:[%s10375_s1] sm:$0xff]   ;;  %7054 = vmatprep.subr.bf16.mxu1 %v7827_v1  ;;  %v7832_v6 = vld [vmem:[%s10375_s1 + $0x8] sm:$0xff]   ;;  %v7836_v10 = vld [vmem:[%s10375_s1 + $0x10] sm:$0xff]  }
   0x4   :  { %v7829_v3 = vld [vmem:[%s10375_s1 + $0x80] sm:$0xff]   ;;  %7033 = vmatpush3.bf16.msra.mxu0 %v7828_v2  ;;  %v7833_v7 = vld [vmem:[%s10375_s1 + $0x88] sm:$0xff]   ;;  %v7837_v11 = vld [vmem:[%s10375_s1 + $0x90] sm:$0xff]  }
   0x5   :  { %7055 = vmatpush3.bf16.msra.mxu1 %v7829_v3  ;;  %7034 = vmatprep.subr.bf16.mxu0 %v7830_v4  ;;  %v7838_v12 = vld [vmem:[%s10375_s1 + $0x58] sm:$0xff]   ;;  %v7842_v16 = vld [vmem:[%s10375_s1 + $0x60] sm:$0xff]   ;;  %v7846_v20 = vld [vmem:[%s10375_s1 + $0x68] sm:$0xff]  }
   0x6   :  { %7056 = vmatprep.subr.bf16.mxu1 %v7831_v5  ;;  %v7839_v13 = vld [vmem:[%s10375_s1 + $0xd8] sm:$0xff]   ;;  %v7843_v17 = vld [vmem:[%s10375_s1 + $0xe0] sm:$0xff]   ;;  %v7847_v21 = vld [vmem:[%s10375_s1 + $0xe8] sm:$0xff]  }
   0x7   :  { %v7840_v14 = vld [vmem:[%s10375_s1 + $0x18] sm:$0xff]   ;;  %v7844_v18 = vld [vmem:[%s10375_s1 + $0x20] sm:$0xff]   ;;  %v7848_v22 = vld [vmem:[%s10375_s1 + $0x28] sm:$0xff]  }
   0x8   :  { %7035 = vmatpush3.bf16.msra.mxu0 %v7832_v6  ;;  %v7841_v15 = vld [vmem:[%s10375_s1 + $0x98] sm:$0xff]   ;;  %v7845_v19 = vld [vmem:[%s10375_s1 + $0xa0] sm:$0xff]   ;;  %v7849_v23 = vld [vmem:[%s10375_s1 + $0xa8] sm:$0xff]  }
   0x9   :  { %7057 = vmatpush3.bf16.msra.mxu1 %v7833_v7  ;;  %7036 = vmatprep.subr.bf16.mxu0 %v7834_v8  ;;  %v7850_v24 = vld [vmem:[%s10375_s1 + $0x70] sm:$0xff]   ;;  %v7854_v28 = vld [vmem:[%s10375_s1 + $0x78] sm:$0xff]   ;;  %v20_v32 = vld [vmem:[%s10376_s0] sm:$0xff] }
   0xa   :  { %7058 = vmatprep.subr.bf16.mxu1 %v7835_v9  ;;  %v7851_v25 = vld [vmem:[%s10375_s1 + $0xf0] sm:$0xff]   ;;  %v7855_v29 = vld [vmem:[%s10375_s1 + $0xf8] sm:$0xff]   ;;  %v21_v33 = vld [vmem:[%s10376_s0 + $0x8] sm:$0xff]  ;;  %v6383_v34 = vcombine.low %v20_v32, %v20_v32  ;;  %v6384_v35 = vcombine.high %v20_v32, %v20_v32 }
   0xb   :  { %v7852_v26 = vld [vmem:[%s10375_s1 + $0x30] sm:$0xff]   ;;  %v7856_v30 = vld [vmem:[%s10375_s1 + $0x38] sm:$0xff]   ;;  %v6385_v36 = vcombine.low %v21_v33, %v21_v33  ;;  %v6386_v37 = vcombine.high %v21_v33, %v21_v33  ;;  %v7862_v38 = vld [vmem:[%s10375_s1 + $0x140] sm:$0xff]  }
   0xc   :  { %7037 = vmatpush3.bf16.msra.mxu0 %v7836_v10  ;;  %v7853_v27 = vld [vmem:[%s10375_s1 + $0xb0] sm:$0xff]   ;;  %v7857_v31 = vld [vmem:[%s10375_s1 + $0xb8] sm:$0xff]   ;;  %v7863_v39 = vld [vmem:[%s10375_s1 + $0x1c0] sm:$0xff]   ;;  %4955 = vmatprep.mubr.bf16.mxu0 %v6384_v35 }
   0xd   :  { %7059 = vmatpush3.bf16.msra.mxu1 %v7837_v11  ;;  %7038 = vmatprep.subr.bf16.mxu0 %v7838_v12  ;;  %v7864_v40 = vld [vmem:[%s10375_s1 + $0x100] sm:$0xff]   ;;  %v7866_v42 = vld [vmem:[%s10375_s1 + $0x148] sm:$0xff]   ;;  %v7870_v46 = vld [vmem:[%s10375_s1 + $0x150] sm:$0xff]  }
   0xe   :  { %7060 = vmatprep.subr.bf16.mxu1 %v7839_v13  ;;  %4995 = vmatprep.mubr.bf16.mxu1 %v6386_v37  ;;  %v7865_v41 = vld [vmem:[%s10375_s1 + $0x180] sm:$0xff]   ;;  %v7867_v43 = vld [vmem:[%s10375_s1 + $0x1c8] sm:$0xff]   ;;  %v7871_v47 = vld [vmem:[%s10375_s1 + $0x1d0] sm:$0xff]  }
   0xf   :  { %v7868_v44 = vld [vmem:[%s10375_s1 + $0x108] sm:$0xff]   ;;  %v7872_v48 = vld [vmem:[%s10375_s1 + $0x110] sm:$0xff]   ;;  %v7874_v50 = vld [vmem:[%s10375_s1 + $0x158] sm:$0xff]  }
  0x10   :  { %7039 = vmatpush3.bf16.msra.mxu0 %v7840_v14  ;;  %v7869_v45 = vld [vmem:[%s10375_s1 + $0x188] sm:$0xff]   ;;  %v7873_v49 = vld [vmem:[%s10375_s1 + $0x190] sm:$0xff]   ;;  %v7875_v51 = vld [vmem:[%s10375_s1 + $0x1d8] sm:$0xff]  }
  0x11   :  { %7061 = vmatpush3.bf16.msra.mxu1 %v7841_v15  ;;  %7040 = vmatprep.subr.bf16.mxu0 %v7842_v16  ;;  %v7876_v52 = vld [vmem:[%s10375_s1 + $0x118] sm:$0xff]   ;;  %v7878_v54 = vld [vmem:[%s10375_s1 + $0x160] sm:$0xff]   ;;  %v7882_v58 = vld [vmem:[%s10375_s1 + $0x168] sm:$0xff]  }
  0x12   :  { %7062 = vmatprep.subr.bf16.mxu1 %v7843_v17  ;;  %v7877_v53 = vld [vmem:[%s10375_s1 + $0x198] sm:$0xff]   ;;  %v7879_v55 = vld [vmem:[%s10375_s1 + $0x1e0] sm:$0xff]   ;;  %v7883_v59 = vld [vmem:[%s10375_s1 + $0x1e8] sm:$0xff]  }
  0x13   :  { %v7880_v56 = vld [vmem:[%s10375_s1 + $0x120] sm:$0xff]   ;;  %v7884_v60 = vld [vmem:[%s10375_s1 + $0x128] sm:$0xff]   ;;  %v7886_v62 = vld [vmem:[%s10375_s1 + $0x170] sm:$0xff]  }
  0x14   :  { %7041 = vmatpush3.bf16.msra.mxu0 %v7844_v18  ;;  %v7881_v57 = vld [vmem:[%s10375_s1 + $0x1a0] sm:$0xff]   ;;  %v7885_v61 = vld [vmem:[%s10375_s1 + $0x1a8] sm:$0xff]   ;;  %v7887_v63 = vld [vmem:[%s10375_s1 + $0x1f0] sm:$0xff]  }
  0x15   :  { %7063 = vmatpush3.bf16.msra.mxu1 %v7845_v19  ;;  %7042 = vmatprep.subr.bf16.mxu0 %v7846_v20  ;;  %v7888_v0 = vld [vmem:[%s10375_s1 + $0x130] sm:$0xff]   ;;  %v7890_v2 = vld [vmem:[%s10375_s1 + $0x178] sm:$0xff]   ;;  %v7898_v12 = vld [vmem:[%s10375_s1 + $0x240] sm:$0xff]  }
  0x16   :  { %7064 = vmatprep.subr.bf16.mxu1 %v7847_v21  ;;  %v7889_v1 = vld [vmem:[%s10375_s1 + $0x1b0] sm:$0xff]   ;;  %v7891_v3 = vld [vmem:[%s10375_s1 + $0x1f8] sm:$0xff]   ;;  %v7899_v13 = vld [vmem:[%s10375_s1 + $0x2c0] sm:$0xff]  }
  0x17   :  { %v7892_v4 = vld [vmem:[%s10375_s1 + $0x138] sm:$0xff]   ;;  %v22_v6 = vld [vmem:[%s10376_s0 + $0x10] sm:$0xff]  ;;  %v7900_v14 = vld [vmem:[%s10375_s1 + $0x200] sm:$0xff]  }
  0x18   :  { %7043 = vmatpush3.bf16.msra.mxu0 %v7848_v22  ;;  %v7893_v5 = vld [vmem:[%s10375_s1 + $0x1b8] sm:$0xff]   ;;  %v6387_v7 = vcombine.low %v22_v6, %v22_v6  ;;  %v6388_v8 = vcombine.high %v22_v6, %v22_v6  ;;  %v7901_v15 = vld [vmem:[%s10375_s1 + $0x280] sm:$0xff]   ;;  %v7902_v16 = vld [vmem:[%s10375_s1 + $0x248] sm:$0xff]  }
  0x19   :  { %7065 = vmatpush3.bf16.msra.mxu1 %v7849_v23  ;;  %7044 = vmatprep.subr.bf16.mxu0 %v7850_v24  ;;  %v23_v9 = vld [vmem:[%s10376_s0 + $0x18] sm:$0xff]  ;;  %v7903_v17 = vld [vmem:[%s10375_s1 + $0x2c8] sm:$0xff]   ;;  %v7906_v20 = vld [vmem:[%s10375_s1 + $0x250] sm:$0xff]  }
  0x1a   :  { %7066 = vmatprep.subr.bf16.mxu1 %v7851_v25  ;;  %v6389_v10 = vcombine.low %v23_v9, %v23_v9  ;;  %v6390_v11 = vcombine.high %v23_v9, %v23_v9  ;;  %v7904_v18 = vld [vmem:[%s10375_s1 + $0x208] sm:$0xff]   ;;  %v7907_v21 = vld [vmem:[%s10375_s1 + $0x2d0] sm:$0xff]   ;;  %v7910_v24 = vld [vmem:[%s10375_s1 + $0x258] sm:$0xff]  }
  0x1b   :  { %v7905_v19 = vld [vmem:[%s10375_s1 + $0x288] sm:$0xff]   ;;  %v7908_v22 = vld [vmem:[%s10375_s1 + $0x210] sm:$0xff]   ;;  %v7911_v25 = vld [vmem:[%s10375_s1 + $0x2d8] sm:$0xff]  }
  0x1c   :  { %7045 = vmatpush3.bf16.msra.mxu0 %v7852_v26  ;;  %v7909_v23 = vld [vmem:[%s10375_s1 + $0x290] sm:$0xff]   ;;  %v7912_v26 = vld [vmem:[%s10375_s1 + $0x218] sm:$0xff]   ;;  %v7918_v32 = vld [vmem:[%s10375_s1 + $0x268] sm:$0xff]  }
  0x1d   :  { %7067 = vmatpush3.bf16.msra.mxu1 %v7853_v27  ;;  %7046 = vmatprep.subr.bf16.mxu0 %v7854_v28  ;;  %v7913_v27 = vld [vmem:[%s10375_s1 + $0x298] sm:$0xff]   ;;  %v7914_v28 = vld [vmem:[%s10375_s1 + $0x260] sm:$0xff]   ;;  %v7919_v33 = vld [vmem:[%s10375_s1 + $0x2e8] sm:$0xff]  }
  0x1e   :  { %7068 = vmatprep.subr.bf16.mxu1 %v7855_v29  ;;  %v7915_v29 = vld [vmem:[%s10375_s1 + $0x2e0] sm:$0xff]   ;;  %v7921_v35 = vld [vmem:[%s10375_s1 + $0x2a8] sm:$0xff]   ;;  %v7923_v37 = vld [vmem:[%s10375_s1 + $0x2f0] sm:$0xff]  }
  0x1f   :  { %v7954_v6 = vld [vmem:[%s10375_s1 + $0x368] sm:$0xff]  }
  0x20   :  { %7047 = vmatpush3.bf16.msra.mxu0 %v7856_v30  ;;  %v7916_v30 = vld [vmem:[%s10375_s1 + $0x220] sm:$0xff]   ;;  %v7957_v9 = vld [vmem:[%s10375_s1 + $0x3a8] sm:$0xff]  }
  0x21   :  { %7069 = vmatpush3.bf16.msra.mxu1 %v7857_v31  ;;  %7076 = vmatprep.subr.bf16.mxu0 %v7862_v38  ;;  %v7917_v31 = vld [vmem:[%s10375_s1 + $0x2a0] sm:$0xff]   ;;  %v7924_v38 = vld [vmem:[%s10375_s1 + $0x230] sm:$0xff]  }
  0x22   :  { %7098 = vmatprep.subr.bf16.mxu1 %v7863_v39  ;;  %v7925_v39 = vld [vmem:[%s10375_s1 + $0x2b0] sm:$0xff]  }
  0x23   :  { %4956 = vmatmul.mubr.bf16.vlgmr.msra.gmra.mrb[0].mxu0 %v6383_v34  ;;  %v7920_v34 = vld [vmem:[%s10375_s1 + $0x228] sm:$0xff]  }
  0x24   :  { %4996 = vmatmul.mubr.bf16.vlgmr.msra.gmra.mrb[0].mxu1 %v6385_v36  ;;  %7077 = vmatpush3.bf16.msra.mxu0 %v7864_v40  ;;  %v7922_v36 = vld [vmem:[%s10375_s1 + $0x270] sm:$0xff]   ;;  %v7926_v40 = vld [vmem:[%s10375_s1 + $0x278] sm:$0xff]  }
  0x25   :  { %7099 = vmatpush3.bf16.msra.mxu1 %v7865_v41  ;;  %7078 = vmatprep.subr.bf16.mxu0 %v7866_v42  ;;  %v7927_v41 = vld [vmem:[%s10375_s1 + $0x2f8] sm:$0xff]  }
  0x26   :  { %7100 = vmatprep.subr.bf16.mxu1 %v7867_v43  ;;  %5035 = vmatprep.mubr.bf16.mxu0 %v6388_v8  ;;  %v7928_v42 = vld [vmem:[%s10375_s1 + $0x238] sm:$0xff]   ;;  %v7956_v8 = vld [vmem:[%s10375_s1 + $0x328] sm:$0xff]  }
  0x27   :  { %5075 = vmatprep.mubr.bf16.mxu1 %v6390_v11  ;;  %v7929_v43 = vld [vmem:[%s10375_s1 + $0x2b8] sm:$0xff]   ;;  %v7959_v11 = vld [vmem:[%s10375_s1 + $0x3f0] sm:$0xff]  }
  0x28   :  { %7079 = vmatpush3.bf16.msra.mxu0 %v7868_v44  ;;  %v24_v44 = vld [vmem:[%s10376_s0 + $0x20] sm:$0xff] }
  0x29   :  { %7101 = vmatpush3.bf16.msra.mxu1 %v7869_v45  ;;  %7080 = vmatprep.subr.bf16.mxu0 %v7870_v46  ;;  %v25_v45 = vld [vmem:[%s10376_s0 + $0x28] sm:$0xff]  ;;  %v6391_v46 = vcombine.low %v24_v44, %v24_v44 }
  0x2a   :  { %7102 = vmatprep.subr.bf16.mxu1 %v7871_v47  ;;  %v6392_v47 = vcombine.high %v24_v44, %v24_v44  ;;  %v7990_v44 = vld [vmem:[%s10375_s1 + $0x468] sm:$0xff]  }
  0x2c   :  { %7081 = vmatpush3.bf16.msra.mxu0 %v7872_v48  ;;  %v6393_v48 = vcombine.low %v25_v45, %v25_v45 }
  0x2d   :  { %7103 = vmatpush3.bf16.msra.mxu1 %v7873_v49  ;;  %7082 = vmatprep.subr.bf16.mxu0 %v7874_v50  ;;  %v6394_v49 = vcombine.high %v25_v45, %v25_v45  ;;  %v7934_v50 = vld [vmem:[%s10375_s1 + $0x340] sm:$0xff]   ;;  %v7991_v45 = vld [vmem:[%s10375_s1 + $0x4e8] sm:$0xff]  }
  0x2e   :  { %7104 = vmatprep.subr.bf16.mxu1 %v7875_v51  ;;  %v7935_v51 = vld [vmem:[%s10375_s1 + $0x3c0] sm:$0xff]  }
  0x30   :  { %7083 = vmatpush3.bf16.msra.mxu0 %v7876_v52  ;;  %v7936_v52 = vld [vmem:[%s10375_s1 + $0x300] sm:$0xff]  }
  0x31   :  { %7105 = vmatpush3.bf16.msra.mxu1 %v7877_v53  ;;  %7084 = vmatprep.subr.bf16.mxu0 %v7878_v54  ;;  %v7937_v53 = vld [vmem:[%s10375_s1 + $0x380] sm:$0xff]   ;;  %v7938_v54 = vld [vmem:[%s10375_s1 + $0x348] sm:$0xff]  }
  0x32   :  { %7106 = vmatprep.subr.bf16.mxu1 %v7879_v55  ;;  %v7939_v55 = vld [vmem:[%s10375_s1 + $0x3c8] sm:$0xff]  }
  0x34   :  { %7085 = vmatpush3.bf16.msra.mxu0 %v7880_v56  ;;  %v7940_v56 = vld [vmem:[%s10375_s1 + $0x308] sm:$0xff]  }
  0x35   :  { %7107 = vmatpush3.bf16.msra.mxu1 %v7881_v57  ;;  %7086 = vmatprep.subr.bf16.mxu0 %v7882_v58  ;;  %v7941_v57 = vld [vmem:[%s10375_s1 + $0x388] sm:$0xff]   ;;  %v7942_v58 = vld [vmem:[%s10375_s1 + $0x350] sm:$0xff]  }
  0x36   :  { %7108 = vmatprep.subr.bf16.mxu1 %v7883_v59  ;;  %v7943_v59 = vld [vmem:[%s10375_s1 + $0x3d0] sm:$0xff]  }
  0x38   :  { %7087 = vmatpush3.bf16.msra.mxu0 %v7884_v60  ;;  %v7944_v60 = vld [vmem:[%s10375_s1 + $0x310] sm:$0xff]  }
  0x39   :  { %7109 = vmatpush3.bf16.msra.mxu1 %v7885_v61  ;;  %7088 = vmatprep.subr.bf16.mxu0 %v7886_v62  ;;  %v7945_v61 = vld [vmem:[%s10375_s1 + $0x390] sm:$0xff]   ;;  %v7946_v62 = vld [vmem:[%s10375_s1 + $0x358] sm:$0xff]  }
  0x3a   :  { %7110 = vmatprep.subr.bf16.mxu1 %v7887_v63  ;;  %v7947_v63 = vld [vmem:[%s10375_s1 + $0x3d8] sm:$0xff]  }
  0x3c   :  { %7089 = vmatpush3.bf16.msra.mxu0 %v7888_v0  ;;  %v7948_v0 = vld [vmem:[%s10375_s1 + $0x318] sm:$0xff]  }
  0x3d   :  { %7111 = vmatpush3.bf16.msra.mxu1 %v7889_v1  ;;  %7090 = vmatprep.subr.bf16.mxu0 %v7890_v2  ;;  %v7949_v1 = vld [vmem:[%s10375_s1 + $0x398] sm:$0xff]   ;;  %v7950_v2 = vld [vmem:[%s10375_s1 + $0x360] sm:$0xff]  }
  0x3e   :  { %7112 = vmatprep.subr.bf16.mxu1 %v7891_v3  ;;  %v7951_v3 = vld [vmem:[%s10375_s1 + $0x3e0] sm:$0xff]  }
  0x40   :  { %7091 = vmatpush3.bf16.msra.mxu0 %v7892_v4  ;;  %v7952_v4 = vld [vmem:[%s10375_s1 + $0x320] sm:$0xff]  }
  0x41   :  { %7113 = vmatpush3.bf16.msra.mxu1 %v7893_v5  ;;  %7120 = vmatprep.subr.bf16.mxu0 %v7898_v12  ;;  %v7953_v5 = vld [vmem:[%s10375_s1 + $0x3a0] sm:$0xff]   ;;  %v7960_v12 = vld [vmem:[%s10375_s1 + $0x330] sm:$0xff]  }
  0x42   :  { %7142 = vmatprep.subr.bf16.mxu1 %v7899_v13  ;;  %v7961_v13 = vld [vmem:[%s10375_s1 + $0x3b0] sm:$0xff]  }
  0x43   :  { %5036 = vmatmul.mubr.bf16.vlgmr.msra.gmra.mrb[4].mxu0 %v6387_v7  ;;  %v7955_v7 = vld [vmem:[%s10375_s1 + $0x3e8] sm:$0xff]  }
  0x44   :  { %5076 = vmatmul.mubr.bf16.vlgmr.msra.gmra.mrb[4].mxu1 %v6389_v10  ;;  %7121 = vmatpush3.bf16.msra.mxu0 %v7900_v14  ;;  %v7958_v10 = vld [vmem:[%s10375_s1 + $0x370] sm:$0xff]   ;;  %v7962_v14 = vld [vmem:[%s10375_s1 + $0x378] sm:$0xff]  }
  0x45   :  { %7143 = vmatpush3.bf16.msra.mxu1 %v7901_v15  ;;  %7122 = vmatprep.subr.bf16.mxu0 %v7902_v16  ;;  %v7963_v15 = vld [vmem:[%s10375_s1 + $0x3f8] sm:$0xff]  }
  0x46   :  { %7144 = vmatprep.subr.bf16.mxu1 %v7903_v17  ;;  %5115 = vmatprep.mubr.bf16.mxu0 %v6392_v47  ;;  %v7964_v16 = vld [vmem:[%s10375_s1 + $0x338] sm:$0xff]   ;;  %v7993_v47 = vld [vmem:[%s10375_s1 + $0x4a8] sm:$0xff]  }
  0x47   :  { %5155 = vmatprep.mubr.bf16.mxu1 %v6394_v49  ;;  %v7965_v17 = vld [vmem:[%s10375_s1 + $0x3b8] sm:$0xff]   ;;  %v7995_v49 = vld [vmem:[%s10375_s1 + $0x4f0] sm:$0xff]  }
  0x48   :  { %7123 = vmatpush3.bf16.msra.mxu0 %v7904_v18  ;;  %v26_v18 = vld [vmem:[%s10376_s0 + $0x30] sm:$0xff] }
  0x49   :  { %7145 = vmatpush3.bf16.msra.mxu1 %v7905_v19  ;;  %7124 = vmatprep.subr.bf16.mxu0 %v7906_v20  ;;  %v27_v19 = vld [vmem:[%s10376_s0 + $0x38] sm:$0xff]  ;;  %v6395_v20 = vcombine.low %v26_v18, %v26_v18 }
  0x4a   :  { %7146 = vmatprep.subr.bf16.mxu1 %v7907_v21  ;;  %v6396_v21 = vcombine.high %v26_v18, %v26_v18  ;;  %v8026_v18 = vld [vmem:[%s10375_s1 + $0x568] sm:$0xff]  }
  0x4c   :  { %7125 = vmatpush3.bf16.msra.mxu0 %v7908_v22  ;;  %v6397_v22 = vcombine.low %v27_v19, %v27_v19 }
  0x4d   :  { %7147 = vmatpush3.bf16.msra.mxu1 %v7909_v23  ;;  %7126 = vmatprep.subr.bf16.mxu0 %v7910_v24  ;;  %v7970_v23 = vld [vmem:[%s10375_s1 + $0x440] sm:$0xff]   ;;  %v6398_v24 = vcombine.high %v27_v19, %v27_v19  ;;  %v8027_v19 = vld [vmem:[%s10375_s1 + $0x5e8] sm:$0xff]  }
  0x4e   :  { %7148 = vmatprep.subr.bf16.mxu1 %v7911_v25  ;;  %v7971_v25 = vld [vmem:[%s10375_s1 + $0x4c0] sm:$0xff]  }
  0x50   :  { %7127 = vmatpush3.bf16.msra.mxu0 %v7912_v26  ;;  %v7972_v26 = vld [vmem:[%s10375_s1 + $0x400] sm:$0xff]  }
  0x51   :  { %7149 = vmatpush3.bf16.msra.mxu1 %v7913_v27  ;;  %7128 = vmatprep.subr.bf16.mxu0 %v7914_v28  ;;  %v7973_v27 = vld [vmem:[%s10375_s1 + $0x480] sm:$0xff]   ;;  %v7974_v28 = vld [vmem:[%s10375_s1 + $0x448] sm:$0xff]  }
  0x52   :  { %7150 = vmatprep.subr.bf16.mxu1 %v7915_v29  ;;  %v7975_v29 = vld [vmem:[%s10375_s1 + $0x4c8] sm:$0xff]  }
  0x54   :  { %7129 = vmatpush3.bf16.msra.mxu0 %v7916_v30  ;;  %v7976_v30 = vld [vmem:[%s10375_s1 + $0x408] sm:$0xff]  }
  0x55   :  { %7151 = vmatpush3.bf16.msra.mxu1 %v7917_v31  ;;  %7130 = vmatprep.subr.bf16.mxu0 %v7918_v32  ;;  %v7977_v31 = vld [vmem:[%s10375_s1 + $0x488] sm:$0xff]   ;;  %v7978_v32 = vld [vmem:[%s10375_s1 + $0x450] sm:$0xff]  }
  0x56   :  { %7152 = vmatprep.subr.bf16.mxu1 %v7919_v33  ;;  %v7979_v33 = vld [vmem:[%s10375_s1 + $0x4d0] sm:$0xff]  }
  0x58   :  { %7131 = vmatpush3.bf16.msra.mxu0 %v7920_v34  ;;  %v7980_v34 = vld [vmem:[%s10375_s1 + $0x410] sm:$0xff]  }
  0x59   :  { %7153 = vmatpush3.bf16.msra.mxu1 %v7921_v35  ;;  %7132 = vmatprep.subr.bf16.mxu0 %v7922_v36  ;;  %v7981_v35 = vld [vmem:[%s10375_s1 + $0x490] sm:$0xff]   ;;  %v7982_v36 = vld [vmem:[%s10375_s1 + $0x458] sm:$0xff]  }
  0x5a   :  { %7154 = vmatprep.subr.bf16.mxu1 %v7923_v37  ;;  %v7983_v37 = vld [vmem:[%s10375_s1 + $0x4d8] sm:$0xff]  }
  0x5c   :  { %7133 = vmatpush3.bf16.msra.mxu0 %v7924_v38  ;;  %v7984_v38 = vld [vmem:[%s10375_s1 + $0x418] sm:$0xff]  }
  0x5d   :  { %7155 = vmatpush3.bf16.msra.mxu1 %v7925_v39  ;;  %7134 = vmatprep.subr.bf16.mxu0 %v7926_v40  ;;  %v7985_v39 = vld [vmem:[%s10375_s1 + $0x498] sm:$0xff]   ;;  %v7986_v40 = vld [vmem:[%s10375_s1 + $0x460] sm:$0xff]  }
  0x5e   :  { %7156 = vmatprep.subr.bf16.mxu1 %v7927_v41  ;;  %v7987_v41 = vld [vmem:[%s10375_s1 + $0x4e0] sm:$0xff]  }
  0x60   :  { %7135 = vmatpush3.bf16.msra.mxu0 %v7928_v42  ;;  %v7988_v42 = vld [vmem:[%s10375_s1 + $0x420] sm:$0xff]  }
  0x61   :  { %7157 = vmatpush3.bf16.msra.mxu1 %v7929_v43  ;;  %7164 = vmatprep.subr.bf16.mxu0 %v7934_v50  ;;  %v7989_v43 = vld [vmem:[%s10375_s1 + $0x4a0] sm:$0xff]   ;;  %v7996_v50 = vld [vmem:[%s10375_s1 + $0x430] sm:$0xff]  }
  0x62   :  { %7186 = vmatprep.subr.bf16.mxu1 %v7935_v51  ;;  %v7997_v51 = vld [vmem:[%s10375_s1 + $0x4b0] sm:$0xff]  }
  0x63   :  { %5116 = vmatmul.mubr.bf16.vlgmr.msra.gmra.mrb[8].mxu0 %v6391_v46  ;;  %v7992_v46 = vld [vmem:[%s10375_s1 + $0x428] sm:$0xff]  }
  0x64   :  { %5156 = vmatmul.mubr.bf16.vlgmr.msra.gmra.mrb[8].mxu1 %v6393_v48  ;;  %7165 = vmatpush3.bf16.msra.mxu0 %v7936_v52  ;;  %v7994_v48 = vld [vmem:[%s10375_s1 + $0x470] sm:$0xff]   ;;  %v7998_v52 = vld [vmem:[%s10375_s1 + $0x478] sm:$0xff]  }
  0x65   :  { %7187 = vmatpush3.bf16.msra.mxu1 %v7937_v53  ;;  %7166 = vmatprep.subr.bf16.mxu0 %v7938_v54  ;;  %v7999_v53 = vld [vmem:[%s10375_s1 + $0x4f8] sm:$0xff]  }
  0x66   :  { %7188 = vmatprep.subr.bf16.mxu1 %v7939_v55  ;;  %5195 = vmatprep.mubr.bf16.mxu0 %v6396_v21  ;;  %v8000_v54 = vld [vmem:[%s10375_s1 + $0x438] sm:$0xff]   ;;  %v8029_v21 = vld [vmem:[%s10375_s1 + $0x5a8] sm:$0xff]  }
  0x67   :  { %5235 = vmatprep.mubr.bf16.mxu1 %v6398_v24  ;;  %v8001_v55 = vld [vmem:[%s10375_s1 + $0x4b8] sm:$0xff]   ;;  %v8032_v24 = vld [vmem:[%s10375_s1 + $0x530] sm:$0xff]  }
  0x68   :  { %7167 = vmatpush3.bf16.msra.mxu0 %v7940_v56  ;;  %v28_v56 = vld [vmem:[%s10376_s0 + $0x40] sm:$0xff] }
  0x69   :  { %7189 = vmatpush3.bf16.msra.mxu1 %v7941_v57  ;;  %7168 = vmatprep.subr.bf16.mxu0 %v7942_v58  ;;  %v6399_v57 = vcombine.low %v28_v56, %v28_v56  ;;  %v6400_v58 = vcombine.high %v28_v56, %v28_v56  ;;  %v8062_v56 = vld [vmem:[%s10375_s1 + $0x668] sm:$0xff]  }
  0x6a   :  { %7190 = vmatprep.subr.bf16.mxu1 %v7943_v59  ;;  %v29_v59 = vld [vmem:[%s10376_s0 + $0x48] sm:$0xff] }
  0x6c   :  { %7169 = vmatpush3.bf16.msra.mxu0 %v7944_v60  ;;  %v6401_v60 = vcombine.low %v29_v59, %v29_v59 }
  0x6d   :  { %7191 = vmatpush3.bf16.msra.mxu1 %v7945_v61  ;;  %7170 = vmatprep.subr.bf16.mxu0 %v7946_v62  ;;  %v6402_v61 = vcombine.high %v29_v59, %v29_v59  ;;  %v8006_v62 = vld [vmem:[%s10375_s1 + $0x540] sm:$0xff]   ;;  %v8065_v59 = vld [vmem:[%s10375_s1 + $0x6a8] sm:$0xff]  }
  0x6e   :  { %7192 = vmatprep.subr.bf16.mxu1 %v7947_v63  ;;  %v8007_v63 = vld [vmem:[%s10375_s1 + $0x5c0] sm:$0xff]  }
  0x70   :  { %7171 = vmatpush3.bf16.msra.mxu0 %v7948_v0  ;;  %v8008_v0 = vld [vmem:[%s10375_s1 + $0x500] sm:$0xff]  }
  0x71   :  { %7193 = vmatpush3.bf16.msra.mxu1 %v7949_v1  ;;  %7172 = vmatprep.subr.bf16.mxu0 %v7950_v2  ;;  %v8009_v1 = vld [vmem:[%s10375_s1 + $0x580] sm:$0xff]   ;;  %v8010_v2 = vld [vmem:[%s10375_s1 + $0x548] sm:$0xff]  }
  0x72   :  { %7194 = vmatprep.subr.bf16.mxu1 %v7951_v3  ;;  %v8011_v3 = vld [vmem:[%s10375_s1 + $0x5c8] sm:$0xff]  }
  0x74   :  { %7173 = vmatpush3.bf16.msra.mxu0 %v7952_v4  ;;  %v8012_v4 = vld [vmem:[%s10375_s1 + $0x508] sm:$0xff]  }
  0x75   :  { %7195 = vmatpush3.bf16.msra.mxu1 %v7953_v5  ;;  %7174 = vmatprep.subr.bf16.mxu0 %v7954_v6  ;;  %v8013_v5 = vld [vmem:[%s10375_s1 + $0x588] sm:$0xff]   ;;  %v8014_v6 = vld [vmem:[%s10375_s1 + $0x550] sm:$0xff]  }
  0x76   :  { %7196 = vmatprep.subr.bf16.mxu1 %v7955_v7  ;;  %v8015_v7 = vld [vmem:[%s10375_s1 + $0x5d0] sm:$0xff]  }
  0x78   :  { %7175 = vmatpush3.bf16.msra.mxu0 %v7956_v8  ;;  %v8016_v8 = vld [vmem:[%s10375_s1 + $0x510] sm:$0xff]  }
  0x79   :  { %7197 = vmatpush3.bf16.msra.mxu1 %v7957_v9  ;;  %7176 = vmatprep.subr.bf16.mxu0 %v7958_v10  ;;  %v8017_v9 = vld [vmem:[%s10375_s1 + $0x590] sm:$0xff]   ;;  %v8018_v10 = vld [vmem:[%s10375_s1 + $0x558] sm:$0xff]  }
  0x7a   :  { %7198 = vmatprep.subr.bf16.mxu1 %v7959_v11  ;;  %v8019_v11 = vld [vmem:[%s10375_s1 + $0x5d8] sm:$0xff]  }
  0x7c   :  { %7177 = vmatpush3.bf16.msra.mxu0 %v7960_v12  ;;  %v8020_v12 = vld [vmem:[%s10375_s1 + $0x518] sm:$0xff]  }
  0x7d   :  { %7199 = vmatpush3.bf16.msra.mxu1 %v7961_v13  ;;  %7178 = vmatprep.subr.bf16.mxu0 %v7962_v14  ;;  %v8021_v13 = vld [vmem:[%s10375_s1 + $0x598] sm:$0xff]   ;;  %v8022_v14 = vld [vmem:[%s10375_s1 + $0x560] sm:$0xff]  }
  0x7e   :  { %7200 = vmatprep.subr.bf16.mxu1 %v7963_v15  ;;  %v8023_v15 = vld [vmem:[%s10375_s1 + $0x5e0] sm:$0xff]  }
  0x80   :  { %7179 = vmatpush3.bf16.msra.mxu0 %v7964_v16  ;;  %v8024_v16 = vld [vmem:[%s10375_s1 + $0x520] sm:$0xff]  }
  0x81   :  { %7201 = vmatpush3.bf16.msra.mxu1 %v7965_v17  ;;  %7208 = vmatprep.subr.bf16.mxu0 %v7970_v23  ;;  %v8025_v17 = vld [vmem:[%s10375_s1 + $0x5a0] sm:$0xff]   ;;  %v8031_v23 = vld [vmem:[%s10375_s1 + $0x5f0] sm:$0xff]  }
  0x82   :  { %7230 = vmatprep.subr.bf16.mxu1 %v7971_v25  ;;  %v8033_v25 = vld [vmem:[%s10375_s1 + $0x5b0] sm:$0xff]  }
  0x83   :  { %5196 = vmatmul.mubr.bf16.vlgmr.msra.gmra.mrb[12].mxu0 %v6395_v20  ;;  %v8028_v20 = vld [vmem:[%s10375_s1 + $0x528] sm:$0xff]  }
  0x84   :  { %5236 = vmatmul.mubr.bf16.vlgmr.msra.gmra.mrb[12].mxu1 %v6397_v22  ;;  %7209 = vmatpush3.bf16.msra.mxu0 %v7972_v26  ;;  %v8030_v22 = vld [vmem:[%s10375_s1 + $0x570] sm:$0xff]   ;;  %v8034_v26 = vld [vmem:[%s10375_s1 + $0x578] sm:$0xff]  }
  0x85   :  { %7231 = vmatpush3.bf16.msra.mxu1 %v7973_v27  ;;  %7210 = vmatprep.subr.bf16.mxu0 %v7974_v28  ;;  %v8035_v27 = vld [vmem:[%s10375_s1 + $0x5f8] sm:$0xff]  }
  0x86   :  { %7232 = vmatprep.subr.bf16.mxu1 %v7975_v29  ;;  %5275 = vmatprep.mubr.bf16.mxu0 %v6400_v58  ;;  %v8036_v28 = vld [vmem:[%s10375_s1 + $0x538] sm:$0xff]   ;;  %v8064_v58 = vld [vmem:[%s10375_s1 + $0x628] sm:$0xff]  }
  0x87   :  { %5315 = vmatprep.mubr.bf16.mxu1 %v6402_v61  ;;  %v8037_v29 = vld [vmem:[%s10375_s1 + $0x5b8] sm:$0xff]   ;;  %v8067_v61 = vld [vmem:[%s10375_s1 + $0x6f0] sm:$0xff]  }
  0x88   :  { %7211 = vmatpush3.bf16.msra.mxu0 %v7976_v30  ;;  %v30_v30 = vld [vmem:[%s10376_s0 + $0x50] sm:$0xff] }
  0x89   :  { %7233 = vmatpush3.bf16.msra.mxu1 %v7977_v31  ;;  %7212 = vmatprep.subr.bf16.mxu0 %v7978_v32  ;;  %v31_v31 = vld [vmem:[%s10376_s0 + $0x58] sm:$0xff]  ;;  %v6403_v32 = vcombine.low %v30_v30, %v30_v30 }
  0x8a   :  { %7234 = vmatprep.subr.bf16.mxu1 %v7979_v33  ;;  %v6404_v33 = vcombine.high %v30_v30, %v30_v30  ;;  %v8097_v30 = vld [vmem:[%s10375_s1 + $0x7a0] sm:$0xff]  }
  0x8c   :  { %7213 = vmatpush3.bf16.msra.mxu0 %v7980_v34  ;;  %v6405_v34 = vcombine.low %v31_v31, %v31_v31 }
  0x8d   :  { %7235 = vmatpush3.bf16.msra.mxu1 %v7981_v35  ;;  %7214 = vmatprep.subr.bf16.mxu0 %v7982_v36  ;;  %v6406_v35 = vcombine.high %v31_v31, %v31_v31  ;;  %v8042_v36 = vld [vmem:[%s10375_s1 + $0x640] sm:$0xff]  }
  0x8e   :  { %7236 = vmatprep.subr.bf16.mxu1 %v7983_v37  ;;  %v8043_v37 = vld [vmem:[%s10375_s1 + $0x6c0] sm:$0xff]  }
  0x90   :  { %7215 = vmatpush3.bf16.msra.mxu0 %v7984_v38  ;;  %v8044_v38 = vld [vmem:[%s10375_s1 + $0x600] sm:$0xff]  }
  0x91   :  { %7237 = vmatpush3.bf16.msra.mxu1 %v7985_v39  ;;  %7216 = vmatprep.subr.bf16.mxu0 %v7986_v40  ;;  %v8045_v39 = vld [vmem:[%s10375_s1 + $0x680] sm:$0xff]   ;;  %v8046_v40 = vld [vmem:[%s10375_s1 + $0x648] sm:$0xff]  }
  0x92   :  { %7238 = vmatprep.subr.bf16.mxu1 %v7987_v41  ;;  %v8047_v41 = vld [vmem:[%s10375_s1 + $0x6c8] sm:$0xff]  }
  0x94   :  { %7217 = vmatpush3.bf16.msra.mxu0 %v7988_v42  ;;  %v8048_v42 = vld [vmem:[%s10375_s1 + $0x608] sm:$0xff]  }
  0x95   :  { %7239 = vmatpush3.bf16.msra.mxu1 %v7989_v43  ;;  %7218 = vmatprep.subr.bf16.mxu0 %v7990_v44  ;;  %v8049_v43 = vld [vmem:[%s10375_s1 + $0x688] sm:$0xff]   ;;  %v8050_v44 = vld [vmem:[%s10375_s1 + $0x650] sm:$0xff]  }
  0x96   :  { %7240 = vmatprep.subr.bf16.mxu1 %v7991_v45  ;;  %v8051_v45 = vld [vmem:[%s10375_s1 + $0x6d0] sm:$0xff]  }
  0x98   :  { %7219 = vmatpush3.bf16.msra.mxu0 %v7992_v46  ;;  %v8052_v46 = vld [vmem:[%s10375_s1 + $0x610] sm:$0xff]  }
  0x99   :  { %7241 = vmatpush3.bf16.msra.mxu1 %v7993_v47  ;;  %7220 = vmatprep.subr.bf16.mxu0 %v7994_v48  ;;  %v8053_v47 = vld [vmem:[%s10375_s1 + $0x690] sm:$0xff]   ;;  %v8054_v48 = vld [vmem:[%s10375_s1 + $0x658] sm:$0xff]  }
  0x9a   :  { %7242 = vmatprep.subr.bf16.mxu1 %v7995_v49  ;;  %v8055_v49 = vld [vmem:[%s10375_s1 + $0x6d8] sm:$0xff]  }
  0x9c   :  { %7221 = vmatpush3.bf16.msra.mxu0 %v7996_v50  ;;  %v8056_v50 = vld [vmem:[%s10375_s1 + $0x618] sm:$0xff]  }
  0x9d   :  { %7243 = vmatpush3.bf16.msra.mxu1 %v7997_v51  ;;  %7222 = vmatprep.subr.bf16.mxu0 %v7998_v52  ;;  %v8057_v51 = vld [vmem:[%s10375_s1 + $0x698] sm:$0xff]   ;;  %v8058_v52 = vld [vmem:[%s10375_s1 + $0x660] sm:$0xff]  }
  0x9e   :  { %7244 = vmatprep.subr.bf16.mxu1 %v7999_v53  ;;  %v8059_v53 = vld [vmem:[%s10375_s1 + $0x6e0] sm:$0xff]  }
  0xa0   :  { %7223 = vmatpush3.bf16.msra.mxu0 %v8000_v54  ;;  %v8060_v54 = vld [vmem:[%s10375_s1 + $0x620] sm:$0xff]  }
  0xa1   :  { %7245 = vmatpush3.bf16.msra.mxu1 %v8001_v55  ;;  %7252 = vmatprep.subr.bf16.mxu0 %v8006_v62  ;;  %v8061_v55 = vld [vmem:[%s10375_s1 + $0x6a0] sm:$0xff]   ;;  %v8068_v62 = vld [vmem:[%s10375_s1 + $0x630] sm:$0xff]  }
  0xa2   :  { %7274 = vmatprep.subr.bf16.mxu1 %v8007_v63  ;;  %v8069_v63 = vld [vmem:[%s10375_s1 + $0x6b0] sm:$0xff]  }
  0xa3   :  { %5276 = vmatmul.mubr.bf16.vlgmr.msra.gmra.mrb[16].mxu0 %v6399_v57  ;;  %v8063_v57 = vld [vmem:[%s10375_s1 + $0x6e8] sm:$0xff]  }
  0xa4   :  { %5316 = vmatmul.mubr.bf16.vlgmr.msra.gmra.mrb[16].mxu1 %v6401_v60  ;;  %7253 = vmatpush3.bf16.msra.mxu0 %v8008_v0  ;;  %v8066_v60 = vld [vmem:[%s10375_s1 + $0x670] sm:$0xff]   ;;  %v8070_v0 = vld [vmem:[%s10375_s1 + $0x678] sm:$0xff]  }
  0xa5   :  { %7275 = vmatpush3.bf16.msra.mxu1 %v8009_v1  ;;  %7254 = vmatprep.subr.bf16.mxu0 %v8010_v2  ;;  %v8071_v1 = vld [vmem:[%s10375_s1 + $0x6f8] sm:$0xff]  }
  0xa6   :  { %7276 = vmatprep.subr.bf16.mxu1 %v8011_v3  ;;  %5355 = vmatprep.mubr.bf16.mxu0 %v6404_v33  ;;  %v8072_v2 = vld [vmem:[%s10375_s1 + $0x638] sm:$0xff]  }
  0xa7   :  { %5395 = vmatprep.mubr.bf16.mxu1 %v6406_v35  ;;  %v8073_v3 = vld [vmem:[%s10375_s1 + $0x6b8] sm:$0xff]  }
  0xa8   :  { %7255 = vmatpush3.bf16.msra.mxu0 %v8012_v4  ;;  %v32_v4 = vld [vmem:[%s10376_s0 + $0x60] sm:$0xff] }
  0xa9   :  { %7277 = vmatpush3.bf16.msra.mxu1 %v8013_v5  ;;  %7256 = vmatprep.subr.bf16.mxu0 %v8014_v6  ;;  %v33_v5 = vld [vmem:[%s10376_s0 + $0x68] sm:$0xff]  ;;  %v6407_v6 = vcombine.low %v32_v4, %v32_v4 }
  0xaa   :  { %7278 = vmatprep.subr.bf16.mxu1 %v8015_v7  ;;  %v6408_v7 = vcombine.high %v32_v4, %v32_v4  ;;  %v8121_v4 = vld [vmem:[%s10375_s1 + $0x888] sm:$0xff]  }
  0xac   :  { %7257 = vmatpush3.bf16.msra.mxu0 %v8016_v8  ;;  %v6409_v8 = vcombine.low %v33_v5, %v33_v5 }
  0xad   :  { %7279 = vmatpush3.bf16.msra.mxu1 %v8017_v9  ;;  %7258 = vmatprep.subr.bf16.mxu0 %v8018_v10  ;;  %v8078_v9 = vld [vmem:[%s10375_s1 + $0x740] sm:$0xff]   ;;  %v6410_v10 = vcombine.high %v33_v5, %v33_v5  ;;  %v8122_v5 = vld [vmem:[%s10375_s1 + $0x850] sm:$0xff]  }
  0xae   :  { %7280 = vmatprep.subr.bf16.mxu1 %v8019_v11  ;;  %v8079_v11 = vld [vmem:[%s10375_s1 + $0x7c0] sm:$0xff]  }
  0xb0   :  { %7259 = vmatpush3.bf16.msra.mxu0 %v8020_v12  ;;  %v8080_v12 = vld [vmem:[%s10375_s1 + $0x700] sm:$0xff]  }
  0xb1   :  { %7281 = vmatpush3.bf16.msra.mxu1 %v8021_v13  ;;  %7260 = vmatprep.subr.bf16.mxu0 %v8022_v14  ;;  %v8081_v13 = vld [vmem:[%s10375_s1 + $0x780] sm:$0xff]   ;;  %v8082_v14 = vld [vmem:[%s10375_s1 + $0x748] sm:$0xff]  }
  0xb2   :  { %7282 = vmatprep.subr.bf16.mxu1 %v8023_v15  ;;  %v8083_v15 = vld [vmem:[%s10375_s1 + $0x7c8] sm:$0xff]  }
  0xb4   :  { %7261 = vmatpush3.bf16.msra.mxu0 %v8024_v16  ;;  %v8084_v16 = vld [vmem:[%s10375_s1 + $0x708] sm:$0xff]  }
  0xb5   :  { %7283 = vmatpush3.bf16.msra.mxu1 %v8025_v17  ;;  %7262 = vmatprep.subr.bf16.mxu0 %v8026_v18  ;;  %v8085_v17 = vld [vmem:[%s10375_s1 + $0x788] sm:$0xff]   ;;  %v8086_v18 = vld [vmem:[%s10375_s1 + $0x750] sm:$0xff]  }
  0xb6   :  { %7284 = vmatprep.subr.bf16.mxu1 %v8027_v19  ;;  %v8087_v19 = vld [vmem:[%s10375_s1 + $0x7d0] sm:$0xff]  }
  0xb8   :  { %7263 = vmatpush3.bf16.msra.mxu0 %v8028_v20  ;;  %v8088_v20 = vld [vmem:[%s10375_s1 + $0x710] sm:$0xff]  }
  0xb9   :  { %7285 = vmatpush3.bf16.msra.mxu1 %v8029_v21  ;;  %7264 = vmatprep.subr.bf16.mxu0 %v8030_v22  ;;  %v8089_v21 = vld [vmem:[%s10375_s1 + $0x790] sm:$0xff]   ;;  %v8090_v22 = vld [vmem:[%s10375_s1 + $0x758] sm:$0xff]  }
  0xba   :  { %7286 = vmatprep.subr.bf16.mxu1 %v8031_v23  ;;  %v8091_v23 = vld [vmem:[%s10375_s1 + $0x7d8] sm:$0xff]  }
  0xbc   :  { %7265 = vmatpush3.bf16.msra.mxu0 %v8032_v24  ;;  %v8092_v24 = vld [vmem:[%s10375_s1 + $0x718] sm:$0xff]  }
  0xbd   :  { %7287 = vmatpush3.bf16.msra.mxu1 %v8033_v25  ;;  %7266 = vmatprep.subr.bf16.mxu0 %v8034_v26  ;;  %v8093_v25 = vld [vmem:[%s10375_s1 + $0x798] sm:$0xff]   ;;  %v8094_v26 = vld [vmem:[%s10375_s1 + $0x760] sm:$0xff]  }
  0xbe   :  { %7288 = vmatprep.subr.bf16.mxu1 %v8035_v27  ;;  %v8095_v27 = vld [vmem:[%s10375_s1 + $0x7e0] sm:$0xff]  }
  0xc0   :  { %7267 = vmatpush3.bf16.msra.mxu0 %v8036_v28  ;;  %v8096_v28 = vld [vmem:[%s10375_s1 + $0x720] sm:$0xff]  }
  0xc1   :  { %7289 = vmatpush3.bf16.msra.mxu1 %v8037_v29  ;;  %7296 = vmatprep.subr.bf16.mxu0 %v8042_v36 }
  0xc2   :  { %7318 = vmatprep.subr.bf16.mxu1 %v8043_v37  ;;  %v8098_v37 = vld [vmem:[%s10375_s1 + $0x768] sm:$0xff]  }
  0xc3   :  { %5356 = vmatmul.mubr.bf16.vlgmr.msra.gmra.mrb[20].mxu0 %v6403_v32  ;;  %v6382_v32 = vld [vmem:[%s10377_s2] ss:$0 sm:$0xff] }
  0xc4   :  { %5396 = vmatmul.mubr.bf16.vlgmr.msra.gmra.mrb[20].mxu1 %v6405_v34  ;;  %7297 = vmatpush3.bf16.msra.mxu0 %v8044_v38 }
  0xc5   :  { %7319 = vmatpush3.bf16.msra.mxu1 %v8045_v39  ;;  %7298 = vmatprep.subr.bf16.mxu0 %v8046_v40  ;;  %v8099_v39 = vld [vmem:[%s10375_s1 + $0x7e8] sm:$0xff]  }
  0xc6   :  { %7320 = vmatprep.subr.bf16.mxu1 %v8047_v41  ;;  %5435 = vmatprep.mubr.bf16.mxu0 %v6408_v7  ;;  %v8124_v7 = vld [vmem:[%s10375_s1 + $0x810] sm:$0xff]  }
  0xc7   :  { %5475 = vmatprep.mubr.bf16.mxu1 %v6410_v10  ;;  %v8127_v10 = vld [vmem:[%s10375_s1 + $0x8d8] sm:$0xff]  }
  0xc8   :  { %7299 = vmatpush3.bf16.msra.mxu0 %v8048_v42  ;;  %v8100_v42 = vld [vmem:[%s10375_s1 + $0x728] sm:$0xff]  }
  0xc9   :  { %7321 = vmatpush3.bf16.msra.mxu1 %v8049_v43  ;;  %7300 = vmatprep.subr.bf16.mxu0 %v8050_v44  ;;  %v8101_v44 = vld [vmem:[%s10375_s1 + $0x7a8] sm:$0xff]  }
  0xca   :  { %7322 = vmatprep.subr.bf16.mxu1 %v8051_v45 }
  0xcc   :  { %7301 = vmatpush3.bf16.msra.mxu0 %v8052_v46 }
  0xcd   :  { %7323 = vmatpush3.bf16.msra.mxu1 %v8053_v47  ;;  %7302 = vmatprep.subr.bf16.mxu0 %v8054_v48  ;;  %v8102_v47 = vld [vmem:[%s10375_s1 + $0x770] sm:$0xff]  }
  0xce   :  { %7324 = vmatprep.subr.bf16.mxu1 %v8055_v49  ;;  %v8103_v48 = vld [vmem:[%s10375_s1 + $0x7f0] sm:$0xff]  }
  0xcf   :  { %v8104_v49 = vld [vmem:[%s10375_s1 + $0x730] sm:$0xff]  }
  0xd0   :  { %7303 = vmatpush3.bf16.msra.mxu0 %v8056_v50  ;;  %v8105_v50 = vld [vmem:[%s10375_s1 + $0x7b0] sm:$0xff]  }
  0xd1   :  { %7325 = vmatpush3.bf16.msra.mxu1 %v8057_v51  ;;  %7304 = vmatprep.subr.bf16.mxu0 %v8058_v52  ;;  %v8106_v51 = vld [vmem:[%s10375_s1 + $0x778] sm:$0xff]  }
  0xd2   :  { %7326 = vmatprep.subr.bf16.mxu1 %v8059_v53  ;;  %v8107_v52 = vld [vmem:[%s10375_s1 + $0x7f8] sm:$0xff]  }
  0xd3   :  { %v8108_v53 = vld [vmem:[%s10375_s1 + $0x738] sm:$0xff]  }
  0xd4   :  { %7305 = vmatpush3.bf16.msra.mxu0 %v8060_v54  ;;  %v8109_v54 = vld [vmem:[%s10375_s1 + $0x7b8] sm:$0xff]  }
  0xd5   :  { %7327 = vmatpush3.bf16.msra.mxu1 %v8061_v55  ;;  %7306 = vmatprep.subr.bf16.mxu0 %v8062_v56  ;;  %v34_v55 = vld [vmem:[%s10376_s0 + $0x70] sm:$0xff]  ;;  %v35_v56 = vld [vmem:[%s10376_s0 + $0x78] sm:$0xff] }
  0xd6   :  { %7328 = vmatprep.subr.bf16.mxu1 %v8063_v57  ;;  %v6411_v57 = vcombine.low %v34_v55, %v34_v55 }
  0xd8   :  { %7307 = vmatpush3.bf16.msra.mxu0 %v8064_v58  ;;  %v6412_v58 = vcombine.high %v34_v55, %v34_v55  ;;  %v8158_v55 = vld [vmem:[%s10375_s1 + $0x950] sm:$0xff]  }
  0xd9   :  { %7329 = vmatpush3.bf16.msra.mxu1 %v8065_v59  ;;  %7308 = vmatprep.subr.bf16.mxu0 %v8066_v60  ;;  %v6413_v59 = vcombine.low %v35_v56, %v35_v56  ;;  %v6414_v60 = vcombine.high %v35_v56, %v35_v56  ;;  %v8159_v56 = vld [vmem:[%s10375_s1 + $0x9d0] sm:$0xff]  }
  0xda   :  { %7330 = vmatprep.subr.bf16.mxu1 %v8067_v61  ;;  %v8114_v61 = vld [vmem:[%s10375_s1 + $0x840] sm:$0xff]  }
  0xdc   :  { %7309 = vmatpush3.bf16.msra.mxu0 %v8068_v62  ;;  %v8115_v62 = vld [vmem:[%s10375_s1 + $0x8c0] sm:$0xff]  }
  0xdd   :  { %7331 = vmatpush3.bf16.msra.mxu1 %v8069_v63  ;;  %7310 = vmatprep.subr.bf16.mxu0 %v8070_v0  ;;  %v8116_v63 = vld [vmem:[%s10375_s1 + $0x800] sm:$0xff]  }
  0xde   :  { %7332 = vmatprep.subr.bf16.mxu1 %v8071_v1  ;;  %v8117_v0 = vld [vmem:[%s10375_s1 + $0x880] sm:$0xff]   ;;  %v8118_v1 = vld [vmem:[%s10375_s1 + $0x848] sm:$0xff]  }
  0xe0   :  { %7311 = vmatpush3.bf16.msra.mxu0 %v8072_v2  ;;  %v8119_v2 = vld [vmem:[%s10375_s1 + $0x8c8] sm:$0xff]  }
  0xe1   :  { %7333 = vmatpush3.bf16.msra.mxu1 %v8073_v3  ;;  %7340 = vmatprep.subr.bf16.mxu0 %v8078_v9  ;;  %v8120_v3 = vld [vmem:[%s10375_s1 + $0x808] sm:$0xff]   ;;  %v8126_v9 = vld [vmem:[%s10375_s1 + $0x858] sm:$0xff]  }
  0xe2   :  { %7362 = vmatprep.subr.bf16.mxu1 %v8079_v11  ;;  %v8128_v11 = vld [vmem:[%s10375_s1 + $0x818] sm:$0xff]  }
  0xe3   :  { %5436 = vmatmul.mubr.bf16.vlgmr.msra.gmra.mrb[24].mxu0 %v6407_v6  ;;  %v8123_v6 = vld [vmem:[%s10375_s1 + $0x8d0] sm:$0xff]  }
  0xe4   :  { %5476 = vmatmul.mubr.bf16.vlgmr.msra.gmra.mrb[24].mxu1 %v6409_v8  ;;  %7341 = vmatpush3.bf16.msra.mxu0 %v8080_v12  ;;  %v8125_v8 = vld [vmem:[%s10375_s1 + $0x890] sm:$0xff]   ;;  %v8129_v12 = vld [vmem:[%s10375_s1 + $0x898] sm:$0xff]  }
  0xe5   :  { %7363 = vmatpush3.bf16.msra.mxu1 %v8081_v13  ;;  %7342 = vmatprep.subr.bf16.mxu0 %v8082_v14  ;;  %v8130_v13 = vld [vmem:[%s10375_s1 + $0x860] sm:$0xff]  }
  0xe6   :  { %7364 = vmatprep.subr.bf16.mxu1 %v8083_v15  ;;  %5515 = vmatprep.mubr.bf16.mxu0 %v6412_v58  ;;  %v8131_v14 = vld [vmem:[%s10375_s1 + $0x8e0] sm:$0xff]   ;;  %v8161_v58 = vld [vmem:[%s10375_s1 + $0x990] sm:$0xff]  }
  0xe7   :  { %5555 = vmatprep.mubr.bf16.mxu1 %v6414_v60  ;;  %v8132_v15 = vld [vmem:[%s10375_s1 + $0x820] sm:$0xff]   ;;  %v8163_v60 = vld [vmem:[%s10375_s1 + $0x9d8] sm:$0xff]  }
  0xe8   :  { %7343 = vmatpush3.bf16.msra.mxu0 %v8084_v16 }
  0xe9   :  { %7365 = vmatpush3.bf16.msra.mxu1 %v8085_v17  ;;  %7344 = vmatprep.subr.bf16.mxu0 %v8086_v18  ;;  %v8133_v17 = vld [vmem:[%s10375_s1 + $0x8a0] sm:$0xff]  }
  0xea   :  { %7366 = vmatprep.subr.bf16.mxu1 %v8087_v19 }
  0xec   :  { %7345 = vmatpush3.bf16.msra.mxu0 %v8088_v20 }
  0xed   :  { %7367 = vmatpush3.bf16.msra.mxu1 %v8089_v21  ;;  %7346 = vmatprep.subr.bf16.mxu0 %v8090_v22 }
  0xee   :  { %7368 = vmatprep.subr.bf16.mxu1 %v8091_v23  ;;  %v8134_v23 = vld [vmem:[%s10375_s1 + $0x868] sm:$0xff]  }
  0xf0   :  { %7347 = vmatpush3.bf16.msra.mxu0 %v8092_v24 }
  0xf1   :  { %7369 = vmatpush3.bf16.msra.mxu1 %v8093_v25  ;;  %7348 = vmatprep.subr.bf16.mxu0 %v8094_v26  ;;  %v8135_v25 = vld [vmem:[%s10375_s1 + $0x8e8] sm:$0xff]  }
  0xf2   :  { %7370 = vmatprep.subr.bf16.mxu1 %v8095_v27 }
  0xf4   :  { %7349 = vmatpush3.bf16.msra.mxu0 %v8096_v28  ;;  %v8136_v28 = vld [vmem:[%s10375_s1 + $0x828] sm:$0xff]  }
  0xf5   :  { %7371 = vmatpush3.bf16.msra.mxu1 %v8097_v30  ;;  %7350 = vmatprep.subr.bf16.mxu0 %v8098_v37  ;;  %v8137_v30 = vld [vmem:[%s10375_s1 + $0x8a8] sm:$0xff]   ;;  %v8142_v37 = vld [vmem:[%s10375_s1 + $0x878] sm:$0xff]  }
  0xf6   :  { %v7048_v29 = vpop.f32.mrb[0].mxu0  ;;  %7372 = vmatprep.subr.bf16.mxu1 %v8099_v39  ;;  %v8144_v39 = vld [vmem:[%s10375_s1 + $0x838] sm:$0xff]  }
  0xf7   :  { %v7070_v31 = vpop.f32.mrb[0].mxu1  ;;  %v7049_v33 = vpop.f32.mrb[1].mxu0 }
  0xf8   :  { %v7071_v34 = vpop.f32.mrb[1].mxu1  ;;  %v7050_v35 = vadd.f32 %v7049_v33, %v7048_v29  ;;  %v7051_v38 = vpop.f32.mrb[2].mxu0  ;;  %7351 = vmatpush3.bf16.msra.mxu0 %v8100_v42  ;;  %v8138_v33 = vld [vmem:[%s10375_s1 + $0x870] sm:$0xff]   ;;  %v37_v42 = vld [vmem:[%s10376_s0 + $0x88] sm:$0xff] }
  0xf9   :  { %v7072_v36 = vadd.f32 %v7071_v34, %v7070_v31  ;;  %v7073_v40 = vpop.f32.mrb[2].mxu1  ;;  %v7052_v43 = vpop.f32.mrb[3].mxu0  ;;  %7373 = vmatpush3.bf16.msra.mxu1 %v8101_v44  ;;  %7352 = vmatprep.subr.bf16.mxu0 %v8102_v47  ;;  %v8139_v34 = vld [vmem:[%s10375_s1 + $0x8f0] sm:$0xff]   ;;  %v8143_v38 = vld [vmem:[%s10375_s1 + $0x8f8] sm:$0xff]   ;;  %v8150_v47 = vld [vmem:[%s10375_s1 + $0x940] sm:$0xff]  }
  0xfa   :  { %v4958_v41 = vadd.f32 %v7050_v35, %v6382_v32  ;;  %v7074_v45 = vpop.f32.mrb[3].mxu1  ;;  %7374 = vmatprep.subr.bf16.mxu1 %v8103_v48  ;;  %v8140_v35 = vld [vmem:[%s10375_s1 + $0x830] sm:$0xff]   ;;  %v8145_v40 = vld [vmem:[%s10375_s1 + $0x8b8] sm:$0xff]   ;;  %v8151_v48 = vld [vmem:[%s10375_s1 + $0x9c0] sm:$0xff]  }
  0xfb   :  { %v6417_v45 = vcombine.low %v37_v42, %v37_v42 }
  0xfc   :  { %v9289_v46 = vadd.f32 %v7072_v36, %v4958_v41  ;;  %7353 = vmatpush3.bf16.msra.mxu0 %v8104_v49  ;;  %v8141_v36 = vld [vmem:[%s10375_s1 + $0x8b0] sm:$0xff]   ;;  %v36_v41 = vld [vmem:[%s10376_s0 + $0x80] sm:$0xff] }
  0xfd   :  { %7375 = vmatpush3.bf16.msra.mxu1 %v8105_v50  ;;  %7354 = vmatprep.subr.bf16.mxu0 %v8106_v51  ;;  %v6415_v43 = vcombine.low %v36_v41, %v36_v41  ;;  %v6416_v44 = vcombine.high %v36_v41, %v36_v41  ;;  %v8152_v49 = vld [vmem:[%s10375_s1 + $0x900] sm:$0xff]   ;;  %v8154_v51 = vld [vmem:[%s10375_s1 + $0x948] sm:$0xff]   ;;  %v8194_v41 = vld [vmem:[%s10375_s1 + $0xa50] sm:$0xff]  }
  0xfe   :  { %7376 = vmatprep.subr.bf16.mxu1 %v8107_v52  ;;  %v8153_v50 = vld [vmem:[%s10375_s1 + $0x980] sm:$0xff]   ;;  %v8155_v52 = vld [vmem:[%s10375_s1 + $0x9c8] sm:$0xff]  }
 0x100   :  { %7355 = vmatpush3.bf16.msra.mxu0 %v8108_v53  ;;  %v8156_v53 = vld [vmem:[%s10375_s1 + $0x908] sm:$0xff]  }
 0x101   :  { %7377 = vmatpush3.bf16.msra.mxu1 %v8109_v54  ;;  %7384 = vmatprep.subr.bf16.mxu0 %v8114_v61  ;;  %v8157_v54 = vld [vmem:[%s10375_s1 + $0x988] sm:$0xff]   ;;  %v8164_v61 = vld [vmem:[%s10375_s1 + $0x918] sm:$0xff]  }
 0x102   :  { %7406 = vmatprep.subr.bf16.mxu1 %v8115_v62  ;;  %v8165_v62 = vld [vmem:[%s10375_s1 + $0x998] sm:$0xff]  }
 0x103   :  { %5516 = vmatmul.mubr.bf16.vlgmr.msra.gmra.mrb[28].mxu0 %v6411_v57  ;;  %v8160_v57 = vld [vmem:[%s10375_s1 + $0x910] sm:$0xff]  }
 0x104   :  { %5556 = vmatmul.mubr.bf16.vlgmr.msra.gmra.mrb[28].mxu1 %v6413_v59  ;;  %7385 = vmatpush3.bf16.msra.mxu0 %v8116_v63  ;;  %v8162_v59 = vld [vmem:[%s10375_s1 + $0x958] sm:$0xff]   ;;  %v8166_v63 = vld [vmem:[%s10375_s1 + $0x960] sm:$0xff]  }
 0x105   :  { %7407 = vmatpush3.bf16.msra.mxu1 %v8117_v0  ;;  %7386 = vmatprep.subr.bf16.mxu0 %v8118_v1  ;;  %v8167_v0 = vld [vmem:[%s10375_s1 + $0x9e0] sm:$0xff]  }
 0x106   :  { %7408 = vmatprep.subr.bf16.mxu1 %v8119_v2  ;;  %5595 = vmatprep.mubr.bf16.mxu0 %v6416_v44  ;;  %v8168_v2 = vld [vmem:[%s10375_s1 + $0x920] sm:$0xff]   ;;  %v8197_v44 = vld [vmem:[%s10375_s1 + $0xa90] sm:$0xff]  }
 0x108   :  { %7387 = vmatpush3.bf16.msra.mxu0 %v8120_v3 }
 0x109   :  { %7409 = vmatpush3.bf16.msra.mxu1 %v8121_v4  ;;  %7388 = vmatprep.subr.bf16.mxu0 %v8122_v5  ;;  %v8169_v4 = vld [vmem:[%s10375_s1 + $0x9a0] sm:$0xff]  }
 0x10a   :  { %7410 = vmatprep.subr.bf16.mxu1 %v8123_v6 }
 0x10c   :  { %7389 = vmatpush3.bf16.msra.mxu0 %v8124_v7 }
 0x10d   :  { %7411 = vmatpush3.bf16.msra.mxu1 %v8125_v8  ;;  %7390 = vmatprep.subr.bf16.mxu0 %v8126_v9  ;;  %v8170_v8 = vld [vmem:[%s10375_s1 + $0x968] sm:$0xff]  }
 0x10e   :  { %7412 = vmatprep.subr.bf16.mxu1 %v8127_v10  ;;  %v8171_v10 = vld [vmem:[%s10375_s1 + $0x9e8] sm:$0xff]  }
 0x110   :  { %7391 = vmatpush3.bf16.msra.mxu0 %v8128_v11 }
 0x111   :  { %7413 = vmatpush3.bf16.msra.mxu1 %v8129_v12  ;;  %7392 = vmatprep.subr.bf16.mxu0 %v8130_v13 }
 0x112   :  { %7414 = vmatprep.subr.bf16.mxu1 %v8131_v14  ;;  %v8172_v14 = vld [vmem:[%s10375_s1 + $0x928] sm:$0xff]  }
 0x114   :  { %7393 = vmatpush3.bf16.msra.mxu0 %v8132_v15  ;;  %v8173_v15 = vld [vmem:[%s10375_s1 + $0x9a8] sm:$0xff]  }
 0x115   :  { %7415 = vmatpush3.bf16.msra.mxu1 %v8133_v17  ;;  %7394 = vmatprep.subr.bf16.mxu0 %v8134_v23  ;;  %v8178_v23 = vld [vmem:[%s10375_s1 + $0x978] sm:$0xff]  }
 0x116   :  { %v7092_v16 = vpop.f32.mrb[4].mxu0  ;;  %7416 = vmatprep.subr.bf16.mxu1 %v8135_v25  ;;  %v8180_v25 = vld [vmem:[%s10375_s1 + $0x938] sm:$0xff]  }
 0x117   :  { %v7114_v18 = vpop.f32.mrb[4].mxu1  ;;  %v7093_v19 = vpop.f32.mrb[5].mxu0 }
 0x118   :  { %v7115_v20 = vpop.f32.mrb[5].mxu1  ;;  %v7094_v21 = vadd.f32 %v7093_v19, %v7092_v16  ;;  %v7095_v24 = vpop.f32.mrb[6].mxu0  ;;  %7395 = vmatpush3.bf16.msra.mxu0 %v8136_v28  ;;  %v8174_v19 = vld [vmem:[%s10375_s1 + $0x970] sm:$0xff]   ;;  %v39_v28 = vld [vmem:[%s10376_s0 + $0x98] sm:$0xff] }
 0x119   :  { %v7116_v22 = vadd.f32 %v7115_v20, %v7114_v18  ;;  %v7117_v26 = vpop.f32.mrb[6].mxu1  ;;  %v7096_v29 = vpop.f32.mrb[7].mxu0  ;;  %7417 = vmatpush3.bf16.msra.mxu1 %v8137_v30  ;;  %7396 = vmatprep.subr.bf16.mxu0 %v8138_v33  ;;  %v8175_v20 = vld [vmem:[%s10375_s1 + $0x9f0] sm:$0xff]   ;;  %v8179_v24 = vld [vmem:[%s10375_s1 + $0x9f8] sm:$0xff]   ;;  %v6422_v33 = vcombine.high %v39_v28, %v39_v28 }
 0x11a   :  { %v5038_v27 = vadd.f32 %v7094_v21, %v9289_v46  ;;  %v7118_v31 = vpop.f32.mrb[7].mxu1  ;;  %7418 = vmatprep.subr.bf16.mxu1 %v8139_v34  ;;  %v6418_v46 = vcombine.high %v37_v42, %v37_v42  ;;  %v8176_v21 = vld [vmem:[%s10375_s1 + $0x930] sm:$0xff]   ;;  %v8181_v26 = vld [vmem:[%s10375_s1 + $0x9b8] sm:$0xff]   ;;  %v8187_v34 = vld [vmem:[%s10375_s1 + $0xac0] sm:$0xff]  }
 0x11b   :  { %v6421_v31 = vcombine.low %v39_v28, %v39_v28  ;;  %v8195_v42 = vld [vmem:[%s10375_s1 + $0xad0] sm:$0xff]  }
 0x11c   :  { %v9394_v32 = vadd.f32 %v7116_v22, %v5038_v27  ;;  %7397 = vmatpush3.bf16.msra.mxu0 %v8140_v35  ;;  %5635 = vmatprep.mubr.bf16.mxu1 %v6418_v46  ;;  %v8177_v22 = vld [vmem:[%s10375_s1 + $0x9b0] sm:$0xff]   ;;  %v8188_v35 = vld [vmem:[%s10375_s1 + $0xa00] sm:$0xff]   ;;  %v8199_v46 = vld [vmem:[%s10375_s1 + $0xad8] sm:$0xff]  }
 0x11d   :  { %7419 = vmatpush3.bf16.msra.mxu1 %v8141_v36  ;;  %7398 = vmatprep.subr.bf16.mxu0 %v8142_v37  ;;  %v38_v27 = vld [vmem:[%s10376_s0 + $0x90] sm:$0xff]  ;;  %v8189_v36 = vld [vmem:[%s10375_s1 + $0xa80] sm:$0xff]   ;;  %v8190_v37 = vld [vmem:[%s10375_s1 + $0xa48] sm:$0xff]  }
 0x11e   :  { %7420 = vmatprep.subr.bf16.mxu1 %v8143_v38  ;;  %v6419_v29 = vcombine.low %v38_v27, %v38_v27  ;;  %v6420_v30 = vcombine.high %v38_v27, %v38_v27  ;;  %v8191_v38 = vld [vmem:[%s10375_s1 + $0xac8] sm:$0xff]   ;;  %v8230_v27 = vld [vmem:[%s10375_s1 + $0xb50] sm:$0xff]  }
 0x11f   :  { %v8231_v28 = vld [vmem:[%s10375_s1 + $0xbd0] sm:$0xff]  }
 0x120   :  { %7399 = vmatpush3.bf16.msra.mxu0 %v8144_v39  ;;  %v8192_v39 = vld [vmem:[%s10375_s1 + $0xa08] sm:$0xff]  }
 0x121   :  { %7421 = vmatpush3.bf16.msra.mxu1 %v8145_v40  ;;  %7428 = vmatprep.subr.bf16.mxu0 %v8150_v47  ;;  %v8193_v40 = vld [vmem:[%s10375_s1 + $0xa88] sm:$0xff]   ;;  %v8200_v47 = vld [vmem:[%s10375_s1 + $0xa18] sm:$0xff]  }
 0x122   :  { %7450 = vmatprep.subr.bf16.mxu1 %v8151_v48  ;;  %v8201_v48 = vld [vmem:[%s10375_s1 + $0xa98] sm:$0xff]  }
 0x123   :  { %5596 = vmatmul.mubr.bf16.vlgmr.msra.gmra.mrb[32].mxu0 %v6415_v43  ;;  %v8196_v43 = vld [vmem:[%s10375_s1 + $0xa10] sm:$0xff]  }
 0x124   :  { %5636 = vmatmul.mubr.bf16.vlgmr.msra.gmra.mrb[32].mxu1 %v6417_v45  ;;  %7429 = vmatpush3.bf16.msra.mxu0 %v8152_v49  ;;  %v8198_v45 = vld [vmem:[%s10375_s1 + $0xa58] sm:$0xff]   ;;  %v8202_v49 = vld [vmem:[%s10375_s1 + $0xa60] sm:$0xff]  }
 0x125   :  { %7451 = vmatpush3.bf16.msra.mxu1 %v8153_v50  ;;  %7430 = vmatprep.subr.bf16.mxu0 %v8154_v51  ;;  %v8203_v50 = vld [vmem:[%s10375_s1 + $0xae0] sm:$0xff]  }
 0x126   :  { %7452 = vmatprep.subr.bf16.mxu1 %v8155_v52  ;;  %5675 = vmatprep.mubr.bf16.mxu0 %v6420_v30  ;;  %v8204_v52 = vld [vmem:[%s10375_s1 + $0xa20] sm:$0xff]   ;;  %v8233_v30 = vld [vmem:[%s10375_s1 + $0xb90] sm:$0xff]  }
 0x127   :  { %5715 = vmatprep.mubr.bf16.mxu1 %v6422_v33  ;;  %v8236_v33 = vld [vmem:[%s10375_s1 + $0xb18] sm:$0xff]  }
 0x128   :  { %7431 = vmatpush3.bf16.msra.mxu0 %v8156_v53 }
 0x129   :  { %7453 = vmatpush3.bf16.msra.mxu1 %v8157_v54  ;;  %7432 = vmatprep.subr.bf16.mxu0 %v8158_v55  ;;  %v8205_v54 = vld [vmem:[%s10375_s1 + $0xaa0] sm:$0xff]  }
 0x12a   :  { %7454 = vmatprep.subr.bf16.mxu1 %v8159_v56 }
 0x12c   :  { %7433 = vmatpush3.bf16.msra.mxu0 %v8160_v57  ;;  %v8206_v57 = vld [vmem:[%s10375_s1 + $0xa68] sm:$0xff]  }
 0x12d   :  { %7455 = vmatpush3.bf16.msra.mxu1 %v8161_v58  ;;  %7434 = vmatprep.subr.bf16.mxu0 %v8162_v59 }
 0x12e   :  { %7456 = vmatprep.subr.bf16.mxu1 %v8163_v60  ;;  %v8207_v60 = vld [vmem:[%s10375_s1 + $0xae8] sm:$0xff]  }
 0x130   :  { %7435 = vmatpush3.bf16.msra.mxu0 %v8164_v61 }
 0x131   :  { %7457 = vmatpush3.bf16.msra.mxu1 %v8165_v62  ;;  %7436 = vmatprep.subr.bf16.mxu0 %v8166_v63  ;;  %v8208_v63 = vld [vmem:[%s10375_s1 + $0xa28] sm:$0xff]  }
 0x132   :  { %7458 = vmatprep.subr.bf16.mxu1 %v8167_v0 }
 0x134   :  { %7437 = vmatpush3.bf16.msra.mxu0 %v8168_v2 }
 0x135   :  { %7459 = vmatpush3.bf16.msra.mxu1 %v8169_v4  ;;  %7438 = vmatprep.subr.bf16.mxu0 %v8170_v8  ;;  %v8210_v4 = vld [vmem:[%s10375_s1 + $0xa70] sm:$0xff]  }
 0x136   :  { %v7136_v1 = vpop.f32.mrb[8].mxu0  ;;  %7460 = vmatprep.subr.bf16.mxu1 %v8171_v10  ;;  %v8213_v8 = vld [vmem:[%s10375_s1 + $0xab0] sm:$0xff]   ;;  %v8215_v10 = vld [vmem:[%s10375_s1 + $0xaf8] sm:$0xff]  }
 0x137   :  { %v7158_v3 = vpop.f32.mrb[8].mxu1  ;;  %v7137_v5 = vpop.f32.mrb[9].mxu0 }
 0x138   :  { %v7138_v6 = vadd.f32 %v7137_v5, %v7136_v1  ;;  %v7159_v7 = vpop.f32.mrb[9].mxu1  ;;  %v7139_v11 = vpop.f32.mrb[10].mxu0  ;;  %7439 = vmatpush3.bf16.msra.mxu0 %v8172_v14  ;;  %v8209_v1 = vld [vmem:[%s10375_s1 + $0xaa8] sm:$0xff]  }
 0x139   :  { %v7160_v9 = vadd.f32 %v7159_v7, %v7158_v3  ;;  %v7161_v13 = vpop.f32.mrb[10].mxu1  ;;  %v7140_v16 = vpop.f32.mrb[11].mxu0  ;;  %7461 = vmatpush3.bf16.msra.mxu1 %v8173_v15  ;;  %7440 = vmatprep.subr.bf16.mxu0 %v8174_v19  ;;  %v8212_v7 = vld [vmem:[%s10375_s1 + $0xa30] sm:$0xff]   ;;  %v8216_v11 = vld [vmem:[%s10375_s1 + $0xa38] sm:$0xff]   ;;  %v8222_v19 = vld [vmem:[%s10375_s1 + $0xb40] sm:$0xff]  }
 0x13a   :  { %v5118_v12 = vadd.f32 %v7138_v6, %v9394_v32  ;;  %v7162_v18 = vpop.f32.mrb[11].mxu1  ;;  %7462 = vmatprep.subr.bf16.mxu1 %v8175_v20  ;;  %v8186_v32 = vld [vmem:[%s10375_s1 + $0xa40] sm:$0xff]   ;;  %v8211_v6 = vld [vmem:[%s10375_s1 + $0xaf0] sm:$0xff]   ;;  %v41_v16 = vld [vmem:[%s10376_s0 + $0xa8] sm:$0xff] }
 0x13b   :  { %v40_v13 = vld [vmem:[%s10376_s0 + $0xa0] sm:$0xff]  ;;  %v6426_v18 = vcombine.high %v41_v16, %v41_v16 }
 0x13c   :  { %v9499_v17 = vadd.f32 %v7160_v9, %v5118_v12  ;;  %7441 = vmatpush3.bf16.msra.mxu0 %v8176_v21  ;;  %v8214_v9 = vld [vmem:[%s10375_s1 + $0xa78] sm:$0xff]   ;;  %v6423_v14 = vcombine.low %v40_v13, %v40_v13  ;;  %v6424_v15 = vcombine.high %v40_v13, %v40_v13  ;;  %v8223_v20 = vld [vmem:[%s10375_s1 + $0xbc0] sm:$0xff]   ;;  %v8266_v13 = vld [vmem:[%s10375_s1 + $0xc50] sm:$0xff]  }
 0x13d   :  { %7463 = vmatpush3.bf16.msra.mxu1 %v8177_v22  ;;  %7442 = vmatprep.subr.bf16.mxu0 %v8178_v23  ;;  %v8217_v12 = vld [vmem:[%s10375_s1 + $0xab8] sm:$0xff]   ;;  %v8224_v21 = vld [vmem:[%s10375_s1 + $0xb00] sm:$0xff]   ;;  %v8226_v23 = vld [vmem:[%s10375_s1 + $0xb48] sm:$0xff]  }
 0x13e   :  { %7464 = vmatprep.subr.bf16.mxu1 %v8179_v24  ;;  %v8225_v22 = vld [vmem:[%s10375_s1 + $0xb80] sm:$0xff]   ;;  %v8227_v24 = vld [vmem:[%s10375_s1 + $0xbc8] sm:$0xff]  }
 0x140   :  { %7443 = vmatpush3.bf16.msra.mxu0 %v8180_v25  ;;  %v8228_v25 = vld [vmem:[%s10375_s1 + $0xb08] sm:$0xff]  }
 0x141   :  { %7465 = vmatpush3.bf16.msra.mxu1 %v8181_v26  ;;  %7472 = vmatprep.subr.bf16.mxu0 %v8186_v32  ;;  %v8229_v26 = vld [vmem:[%s10375_s1 + $0xb88] sm:$0xff]   ;;  %v8235_v32 = vld [vmem:[%s10375_s1 + $0xbd8] sm:$0xff]  }
 0x142   :  { %7494 = vmatprep.subr.bf16.mxu1 %v8187_v34  ;;  %v8237_v34 = vld [vmem:[%s10375_s1 + $0xb98] sm:$0xff]  }
 0x143   :  { %5676 = vmatmul.mubr.bf16.vlgmr.msra.gmra.mrb[36].mxu0 %v6419_v29  ;;  %v8232_v29 = vld [vmem:[%s10375_s1 + $0xb10] sm:$0xff]  }
 0x144   :  { %5716 = vmatmul.mubr.bf16.vlgmr.msra.gmra.mrb[36].mxu1 %v6421_v31  ;;  %7473 = vmatpush3.bf16.msra.mxu0 %v8188_v35  ;;  %v8234_v31 = vld [vmem:[%s10375_s1 + $0xb58] sm:$0xff]   ;;  %v8238_v35 = vld [vmem:[%s10375_s1 + $0xb60] sm:$0xff]  }
 0x145   :  { %7495 = vmatpush3.bf16.msra.mxu1 %v8189_v36  ;;  %7474 = vmatprep.subr.bf16.mxu0 %v8190_v37  ;;  %v8239_v36 = vld [vmem:[%s10375_s1 + $0xbe0] sm:$0xff]  }
 0x146   :  { %7496 = vmatprep.subr.bf16.mxu1 %v8191_v38  ;;  %5755 = vmatprep.mubr.bf16.mxu0 %v6424_v15  ;;  %v8240_v38 = vld [vmem:[%s10375_s1 + $0xb20] sm:$0xff]   ;;  %v8268_v15 = vld [vmem:[%s10375_s1 + $0xc10] sm:$0xff]  }
 0x147   :  { %5795 = vmatprep.mubr.bf16.mxu1 %v6426_v18  ;;  %v8271_v18 = vld [vmem:[%s10375_s1 + $0xcd8] sm:$0xff]  }
 0x148   :  { %7475 = vmatpush3.bf16.msra.mxu0 %v8192_v39 }
 0x149   :  { %7497 = vmatpush3.bf16.msra.mxu1 %v8193_v40  ;;  %7476 = vmatprep.subr.bf16.mxu0 %v8194_v41  ;;  %v8241_v40 = vld [vmem:[%s10375_s1 + $0xba0] sm:$0xff]  }
 0x14a   :  { %7498 = vmatprep.subr.bf16.mxu1 %v8195_v42 }
 0x14c   :  { %7477 = vmatpush3.bf16.msra.mxu0 %v8196_v43  ;;  %v8242_v43 = vld [vmem:[%s10375_s1 + $0xb68] sm:$0xff]  }
 0x14d   :  { %7499 = vmatpush3.bf16.msra.mxu1 %v8197_v44  ;;  %7478 = vmatprep.subr.bf16.mxu0 %v8198_v45 }
 0x14e   :  { %7500 = vmatprep.subr.bf16.mxu1 %v8199_v46  ;;  %v8243_v46 = vld [vmem:[%s10375_s1 + $0xbe8] sm:$0xff]  }
 0x150   :  { %7479 = vmatpush3.bf16.msra.mxu0 %v8200_v47 }
 0x151   :  { %7501 = vmatpush3.bf16.msra.mxu1 %v8201_v48  ;;  %7480 = vmatprep.subr.bf16.mxu0 %v8202_v49  ;;  %v8244_v49 = vld [vmem:[%s10375_s1 + $0xb28] sm:$0xff]  }
 0x152   :  { %7502 = vmatprep.subr.bf16.mxu1 %v8203_v50 }
 0x154   :  { %7481 = vmatpush3.bf16.msra.mxu0 %v8204_v52 }
 0x155   :  { %7503 = vmatpush3.bf16.msra.mxu1 %v8205_v54  ;;  %7482 = vmatprep.subr.bf16.mxu0 %v8206_v57  ;;  %v8246_v54 = vld [vmem:[%s10375_s1 + $0xb70] sm:$0xff]  }
 0x156   :  { %v7180_v51 = vpop.f32.mrb[12].mxu0  ;;  %7504 = vmatprep.subr.bf16.mxu1 %v8207_v60  ;;  %v8248_v57 = vld [vmem:[%s10375_s1 + $0xb30] sm:$0xff]   ;;  %v8251_v60 = vld [vmem:[%s10375_s1 + $0xbf8] sm:$0xff]  }
 0x157   :  { %v7202_v53 = vpop.f32.mrb[12].mxu1  ;;  %v7181_v55 = vpop.f32.mrb[13].mxu0 }
 0x158   :  { %v7203_v56 = vpop.f32.mrb[13].mxu1  ;;  %v7182_v58 = vadd.f32 %v7181_v55, %v7180_v51  ;;  %v7183_v61 = vpop.f32.mrb[14].mxu0  ;;  %7483 = vmatpush3.bf16.msra.mxu0 %v8208_v63  ;;  %v8245_v51 = vld [vmem:[%s10375_s1 + $0xba8] sm:$0xff]   ;;  %v42_v63 = vld [vmem:[%s10376_s0 + $0xb0] sm:$0xff] }
 0x159   :  { %v7204_v59 = vadd.f32 %v7203_v56, %v7202_v53  ;;  %v7205_v62 = vpop.f32.mrb[14].mxu1  ;;  %v7184_v2 = vpop.f32.mrb[15].mxu0  ;;  %7505 = vmatpush3.bf16.msra.mxu1 %v8209_v1  ;;  %7484 = vmatprep.subr.bf16.mxu0 %v8210_v4  ;;  %v8247_v56 = vld [vmem:[%s10375_s1 + $0xbf0] sm:$0xff]   ;;  %v8252_v61 = vld [vmem:[%s10375_s1 + $0xb38] sm:$0xff]   ;;  %v6427_v1 = vcombine.low %v42_v63, %v42_v63 }
 0x15a   :  { %v5198_v0 = vadd.f32 %v7182_v58, %v9499_v17  ;;  %v7206_v3 = vpop.f32.mrb[15].mxu1  ;;  %7506 = vmatprep.subr.bf16.mxu1 %v8211_v6  ;;  %v6425_v17 = vcombine.low %v41_v16, %v41_v16  ;;  %v8249_v58 = vld [vmem:[%s10375_s1 + $0xbb0] sm:$0xff]   ;;  %v8253_v62 = vld [vmem:[%s10375_s1 + $0xbb8] sm:$0xff]   ;;  %v6428_v2 = vcombine.high %v42_v63, %v42_v63  ;;  %v8259_v6 = vld [vmem:[%s10375_s1 + $0xcc0] sm:$0xff]  }
 0x15b   :  { %v8269_v16 = vld [vmem:[%s10375_s1 + $0xc90] sm:$0xff]  }
 0x15c   :  { %v9607_v5 = vadd.f32 %v7204_v59, %v5198_v0  ;;  %7485 = vmatpush3.bf16.msra.mxu0 %v8212_v7  ;;  %v8250_v59 = vld [vmem:[%s10375_s1 + $0xb78] sm:$0xff]   ;;  %v8260_v7 = vld [vmem:[%s10375_s1 + $0xc00] sm:$0xff]   ;;  %v8302_v63 = vld [vmem:[%s10375_s1 + $0xd50] sm:$0xff]  }
 0x15d   :  { %7507 = vmatpush3.bf16.msra.mxu1 %v8213_v8  ;;  %7486 = vmatprep.subr.bf16.mxu0 %v8214_v9  ;;  %v43_v0 = vld [vmem:[%s10376_s0 + $0xb8] sm:$0xff]  ;;  %v8261_v8 = vld [vmem:[%s10375_s1 + $0xc80] sm:$0xff]   ;;  %v8262_v9 = vld [vmem:[%s10375_s1 + $0xc48] sm:$0xff]  }
 0x15e   :  { %7508 = vmatprep.subr.bf16.mxu1 %v8215_v10  ;;  %v6429_v3 = vcombine.low %v43_v0, %v43_v0  ;;  %v6430_v4 = vcombine.high %v43_v0, %v43_v0  ;;  %v8263_v10 = vld [vmem:[%s10375_s1 + $0xcc8] sm:$0xff]   ;;  %v8303_v0 = vld [vmem:[%s10375_s1 + $0xdd0] sm:$0xff]  }
 0x160   :  { %7487 = vmatpush3.bf16.msra.mxu0 %v8216_v11  ;;  %v8264_v11 = vld [vmem:[%s10375_s1 + $0xc08] sm:$0xff]  }
 0x161   :  { %7509 = vmatpush3.bf16.msra.mxu1 %v8217_v12  ;;  %7516 = vmatprep.subr.bf16.mxu0 %v8222_v19  ;;  %v8265_v12 = vld [vmem:[%s10375_s1 + $0xc88] sm:$0xff]   ;;  %v8272_v19 = vld [vmem:[%s10375_s1 + $0xc18] sm:$0xff]  }
 0x162   :  { %7538 = vmatprep.subr.bf16.mxu1 %v8223_v20  ;;  %v8273_v20 = vld [vmem:[%s10375_s1 + $0xc98] sm:$0xff]  }
 0x163   :  { %5756 = vmatmul.mubr.bf16.vlgmr.msra.gmra.mrb[40].mxu0 %v6423_v14  ;;  %v8267_v14 = vld [vmem:[%s10375_s1 + $0xcd0] sm:$0xff]  }
 0x164   :  { %5796 = vmatmul.mubr.bf16.vlgmr.msra.gmra.mrb[40].mxu1 %v6425_v17  ;;  %7517 = vmatpush3.bf16.msra.mxu0 %v8224_v21  ;;  %v8270_v17 = vld [vmem:[%s10375_s1 + $0xc58] sm:$0xff]   ;;  %v8274_v21 = vld [vmem:[%s10375_s1 + $0xc60] sm:$0xff]  }
 0x165   :  { %7539 = vmatpush3.bf16.msra.mxu1 %v8225_v22  ;;  %7518 = vmatprep.subr.bf16.mxu0 %v8226_v23  ;;  %v8275_v22 = vld [vmem:[%s10375_s1 + $0xce0] sm:$0xff]  }
 0x166   :  { %7540 = vmatprep.subr.bf16.mxu1 %v8227_v24  ;;  %5835 = vmatprep.mubr.bf16.mxu0 %v6428_v2  ;;  %v8276_v24 = vld [vmem:[%s10375_s1 + $0xc20] sm:$0xff]   ;;  %v8305_v2 = vld [vmem:[%s10375_s1 + $0xd90] sm:$0xff]  }
 0x167   :  { %5875 = vmatprep.mubr.bf16.mxu1 %v6430_v4  ;;  %v8307_v4 = vld [vmem:[%s10375_s1 + $0xdd8] sm:$0xff]  }
 0x168   :  { %7519 = vmatpush3.bf16.msra.mxu0 %v8228_v25 }
 0x169   :  { %7541 = vmatpush3.bf16.msra.mxu1 %v8229_v26  ;;  %7520 = vmatprep.subr.bf16.mxu0 %v8230_v27  ;;  %v8277_v26 = vld [vmem:[%s10375_s1 + $0xca0] sm:$0xff]  }
 0x16a   :  { %7542 = vmatprep.subr.bf16.mxu1 %v8231_v28 }
 0x16c   :  { %7521 = vmatpush3.bf16.msra.mxu0 %v8232_v29 }
 0x16d   :  { %7543 = vmatpush3.bf16.msra.mxu1 %v8233_v30  ;;  %7522 = vmatprep.subr.bf16.mxu0 %v8234_v31  ;;  %v8278_v30 = vld [vmem:[%s10375_s1 + $0xc68] sm:$0xff]  }
 0x16e   :  { %7544 = vmatprep.subr.bf16.mxu1 %v8235_v32  ;;  %v8279_v32 = vld [vmem:[%s10375_s1 + $0xce8] sm:$0xff]  }
 0x170   :  { %7523 = vmatpush3.bf16.msra.mxu0 %v8236_v33 }
 0x171   :  { %7545 = vmatpush3.bf16.msra.mxu1 %v8237_v34  ;;  %7524 = vmatprep.subr.bf16.mxu0 %v8238_v35 }
 0x172   :  { %7546 = vmatprep.subr.bf16.mxu1 %v8239_v36  ;;  %v8280_v36 = vld [vmem:[%s10375_s1 + $0xc28] sm:$0xff]  }
 0x174   :  { %7525 = vmatpush3.bf16.msra.mxu0 %v8240_v38 }
 0x175   :  { %7547 = vmatpush3.bf16.msra.mxu1 %v8241_v40  ;;  %7526 = vmatprep.subr.bf16.mxu0 %v8242_v43  ;;  %v8284_v43 = vld [vmem:[%s10375_s1 + $0xc30] sm:$0xff]  }
 0x176   :  { %v7224_v37 = vpop.f32.mrb[16].mxu0  ;;  %7548 = vmatprep.subr.bf16.mxu1 %v8243_v46  ;;  %v8287_v46 = vld [vmem:[%s10375_s1 + $0xcf8] sm:$0xff]  }
 0x177   :  { %v7246_v39 = vpop.f32.mrb[16].mxu1  ;;  %v7225_v41 = vpop.f32.mrb[17].mxu0 }
 0x178   :  { %v7247_v42 = vpop.f32.mrb[17].mxu1  ;;  %v7226_v44 = vadd.f32 %v7225_v41, %v7224_v37  ;;  %v7227_v47 = vpop.f32.mrb[18].mxu0  ;;  %7527 = vmatpush3.bf16.msra.mxu0 %v8244_v49  ;;  %v8281_v37 = vld [vmem:[%s10375_s1 + $0xca8] sm:$0xff]   ;;  %v8282_v41 = vld [vmem:[%s10375_s1 + $0xc70] sm:$0xff]   ;;  %v44_v49 = vld [vmem:[%s10376_s0 + $0xc0] sm:$0xff] }
 0x179   :  { %v7248_v45 = vadd.f32 %v7247_v42, %v7246_v39  ;;  %v7249_v48 = vpop.f32.mrb[18].mxu1  ;;  %v7228_v52 = vpop.f32.mrb[19].mxu0  ;;  %7549 = vmatpush3.bf16.msra.mxu1 %v8245_v51  ;;  %7528 = vmatprep.subr.bf16.mxu0 %v8246_v54  ;;  %v8283_v42 = vld [vmem:[%s10375_s1 + $0xcf0] sm:$0xff]   ;;  %v8288_v47 = vld [vmem:[%s10375_s1 + $0xc38] sm:$0xff]   ;;  %v6431_v51 = vcombine.low %v44_v49, %v44_v49  ;;  %v8294_v54 = vld [vmem:[%s10375_s1 + $0xd40] sm:$0xff]  }
 0x17a   :  { %v5278_v50 = vadd.f32 %v7226_v44, %v9607_v5  ;;  %v7250_v53 = vpop.f32.mrb[19].mxu1  ;;  %7550 = vmatprep.subr.bf16.mxu1 %v8247_v56  ;;  %v8258_v5 = vld [vmem:[%s10375_s1 + $0xc40] sm:$0xff]   ;;  %v8285_v44 = vld [vmem:[%s10375_s1 + $0xcb0] sm:$0xff]   ;;  %v8289_v48 = vld [vmem:[%s10375_s1 + $0xcb8] sm:$0xff]   ;;  %v6432_v52 = vcombine.high %v44_v49, %v44_v49 }
 0x17b   :  { %v8295_v56 = vld [vmem:[%s10375_s1 + $0xdc0] sm:$0xff]   ;;  %v8338_v49 = vld [vmem:[%s10375_s1 + $0xe50] sm:$0xff]  }
 0x17c   :  { %v9712_v55 = vadd.f32 %v7248_v45, %v5278_v50  ;;  %7529 = vmatpush3.bf16.msra.mxu0 %v8248_v57  ;;  %v8286_v45 = vld [vmem:[%s10375_s1 + $0xc78] sm:$0xff]   ;;  %v45_v50 = vld [vmem:[%s10376_s0 + $0xc8] sm:$0xff]  ;;  %v8296_v57 = vld [vmem:[%s10375_s1 + $0xd00] sm:$0xff]  }
 0x17d   :  { %7551 = vmatpush3.bf16.msra.mxu1 %v8249_v58  ;;  %7530 = vmatprep.subr.bf16.mxu0 %v8250_v59  ;;  %v6433_v53 = vcombine.low %v45_v50, %v45_v50  ;;  %v8297_v58 = vld [vmem:[%s10375_s1 + $0xd80] sm:$0xff]   ;;  %v8298_v59 = vld [vmem:[%s10375_s1 + $0xd48] sm:$0xff]  }
 0x17e   :  { %7552 = vmatprep.subr.bf16.mxu1 %v8251_v60  ;;  %v8299_v60 = vld [vmem:[%s10375_s1 + $0xdc8] sm:$0xff]  }
 0x180   :  { %7531 = vmatpush3.bf16.msra.mxu0 %v8252_v61  ;;  %v8300_v61 = vld [vmem:[%s10375_s1 + $0xd08] sm:$0xff]  }
 0x181   :  { %7553 = vmatpush3.bf16.msra.mxu1 %v8253_v62  ;;  %7560 = vmatprep.subr.bf16.mxu0 %v8258_v5  ;;  %v8301_v62 = vld [vmem:[%s10375_s1 + $0xd88] sm:$0xff]   ;;  %v8308_v5 = vld [vmem:[%s10375_s1 + $0xd18] sm:$0xff]  }
 0x182   :  { %7582 = vmatprep.subr.bf16.mxu1 %v8259_v6  ;;  %v8309_v6 = vld [vmem:[%s10375_s1 + $0xd98] sm:$0xff]  }
 0x183   :  { %5836 = vmatmul.mubr.bf16.vlgmr.msra.gmra.mrb[44].mxu0 %v6427_v1  ;;  %v8304_v1 = vld [vmem:[%s10375_s1 + $0xd10] sm:$0xff]  }
 0x184   :  { %5876 = vmatmul.mubr.bf16.vlgmr.msra.gmra.mrb[44].mxu1 %v6429_v3  ;;  %7561 = vmatpush3.bf16.msra.mxu0 %v8260_v7  ;;  %v8306_v3 = vld [vmem:[%s10375_s1 + $0xd58] sm:$0xff]   ;;  %v8310_v7 = vld [vmem:[%s10375_s1 + $0xd60] sm:$0xff]  }
 0x185   :  { %7583 = vmatpush3.bf16.msra.mxu1 %v8261_v8  ;;  %7562 = vmatprep.subr.bf16.mxu0 %v8262_v9  ;;  %v8311_v8 = vld [vmem:[%s10375_s1 + $0xde0] sm:$0xff]  }
 0x186   :  { %7584 = vmatprep.subr.bf16.mxu1 %v8263_v10  ;;  %5915 = vmatprep.mubr.bf16.mxu0 %v6432_v52  ;;  %v8312_v10 = vld [vmem:[%s10375_s1 + $0xd20] sm:$0xff]   ;;  %v8341_v52 = vld [vmem:[%s10375_s1 + $0xe90] sm:$0xff]  }
 0x188   :  { %7563 = vmatpush3.bf16.msra.mxu0 %v8264_v11 }
 0x189   :  { %7585 = vmatpush3.bf16.msra.mxu1 %v8265_v12  ;;  %7564 = vmatprep.subr.bf16.mxu0 %v8266_v13  ;;  %v8313_v12 = vld [vmem:[%s10375_s1 + $0xda0] sm:$0xff]  }
 0x18a   :  { %7586 = vmatprep.subr.bf16.mxu1 %v8267_v14 }
 0x18c   :  { %7565 = vmatpush3.bf16.msra.mxu0 %v8268_v15  ;;  %v8314_v15 = vld [vmem:[%s10375_s1 + $0xd68] sm:$0xff]  }
 0x18d   :  { %7587 = vmatpush3.bf16.msra.mxu1 %v8269_v16  ;;  %7566 = vmatprep.subr.bf16.mxu0 %v8270_v17 }
 0x18e   :  { %7588 = vmatprep.subr.bf16.mxu1 %v8271_v18  ;;  %v8315_v18 = vld [vmem:[%s10375_s1 + $0xde8] sm:$0xff]  }
 0x190   :  { %7567 = vmatpush3.bf16.msra.mxu0 %v8272_v19 }
 0x191   :  { %7589 = vmatpush3.bf16.msra.mxu1 %v8273_v20  ;;  %7568 = vmatprep.subr.bf16.mxu0 %v8274_v21  ;;  %v8316_v21 = vld [vmem:[%s10375_s1 + $0xd28] sm:$0xff]  }
 0x192   :  { %7590 = vmatprep.subr.bf16.mxu1 %v8275_v22 }
 0x194   :  { %7569 = vmatpush3.bf16.msra.mxu0 %v8276_v24 }
 0x195   :  { %7591 = vmatpush3.bf16.msra.mxu1 %v8277_v26  ;;  %7570 = vmatprep.subr.bf16.mxu0 %v8278_v30  ;;  %v8318_v26 = vld [vmem:[%s10375_s1 + $0xd70] sm:$0xff]  }
 0x196   :  { %v7268_v23 = vpop.f32.mrb[20].mxu0  ;;  %7592 = vmatprep.subr.bf16.mxu1 %v8279_v32  ;;  %v8321_v30 = vld [vmem:[%s10375_s1 + $0xdb0] sm:$0xff]   ;;  %v8323_v32 = vld [vmem:[%s10375_s1 + $0xdf8] sm:$0xff]  }
 0x197   :  { %v7290_v25 = vpop.f32.mrb[20].mxu1  ;;  %v7269_v27 = vpop.f32.mrb[21].mxu0 }
 0x198   :  { %v7270_v28 = vadd.f32 %v7269_v27, %v7268_v23  ;;  %v7291_v29 = vpop.f32.mrb[21].mxu1  ;;  %v7271_v33 = vpop.f32.mrb[22].mxu0  ;;  %7571 = vmatpush3.bf16.msra.mxu0 %v8280_v36  ;;  %v8317_v23 = vld [vmem:[%s10375_s1 + $0xda8] sm:$0xff]  }
 0x199   :  { %v7292_v31 = vadd.f32 %v7291_v29, %v7290_v25  ;;  %v7293_v35 = vpop.f32.mrb[22].mxu1  ;;  %v7272_v38 = vpop.f32.mrb[23].mxu0  ;;  %7593 = vmatpush3.bf16.msra.mxu1 %v8281_v37  ;;  %7572 = vmatprep.subr.bf16.mxu0 %v8282_v41  ;;  %v8320_v29 = vld [vmem:[%s10375_s1 + $0xd30] sm:$0xff]   ;;  %v8324_v33 = vld [vmem:[%s10375_s1 + $0xd38] sm:$0xff]   ;;  %v8330_v41 = vld [vmem:[%s10375_s1 + $0xe40] sm:$0xff]  }
 0x19a   :  { %v5358_v34 = vadd.f32 %v7270_v28, %v9712_v55  ;;  %v7294_v40 = vpop.f32.mrb[23].mxu1  ;;  %7594 = vmatprep.subr.bf16.mxu1 %v8283_v42  ;;  %v6434_v55 = vcombine.high %v45_v50, %v45_v50  ;;  %v8319_v28 = vld [vmem:[%s10375_s1 + $0xdf0] sm:$0xff]   ;;  %v47_v38 = vld [vmem:[%s10376_s0 + $0xd8] sm:$0xff]  ;;  %v8331_v42 = vld [vmem:[%s10375_s1 + $0xec0] sm:$0xff]  }
 0x19b   :  { %v46_v35 = vld [vmem:[%s10376_s0 + $0xd0] sm:$0xff]  ;;  %v6438_v40 = vcombine.high %v47_v38, %v47_v38 }
 0x19c   :  { %v9814_v39 = vadd.f32 %v7292_v31, %v5358_v34  ;;  %7573 = vmatpush3.bf16.msra.mxu0 %v8284_v43  ;;  %5955 = vmatprep.mubr.bf16.mxu1 %v6434_v55  ;;  %v8322_v31 = vld [vmem:[%s10375_s1 + $0xd78] sm:$0xff]   ;;  %v6435_v36 = vcombine.low %v46_v35, %v46_v35  ;;  %v6436_v37 = vcombine.high %v46_v35, %v46_v35  ;;  %v8332_v43 = vld [vmem:[%s10375_s1 + $0xe00] sm:$0xff]   ;;  %v8339_v50 = vld [vmem:[%s10375_s1 + $0xed0] sm:$0xff]  }
 0x19d   :  { %7595 = vmatpush3.bf16.msra.mxu1 %v8285_v44  ;;  %7574 = vmatprep.subr.bf16.mxu0 %v8286_v45  ;;  %v8325_v34 = vld [vmem:[%s10375_s1 + $0xdb8] sm:$0xff]   ;;  %v8333_v44 = vld [vmem:[%s10375_s1 + $0xe80] sm:$0xff]   ;;  %v8334_v45 = vld [vmem:[%s10375_s1 + $0xe48] sm:$0xff]  }
 0x19e   :  { %7596 = vmatprep.subr.bf16.mxu1 %v8287_v46  ;;  %v8335_v46 = vld [vmem:[%s10375_s1 + $0xec8] sm:$0xff]   ;;  %v8344_v55 = vld [vmem:[%s10375_s1 + $0xe18] sm:$0xff]   ;;  %v8374_v35 = vld [vmem:[%s10375_s1 + $0xf50] sm:$0xff]  }
 0x1a0   :  { %7575 = vmatpush3.bf16.msra.mxu0 %v8288_v47  ;;  %v8336_v47 = vld [vmem:[%s10375_s1 + $0xe08] sm:$0xff]  }
 0x1a1   :  { %7597 = vmatpush3.bf16.msra.mxu1 %v8289_v48  ;;  %7604 = vmatprep.subr.bf16.mxu0 %v8294_v54  ;;  %v8337_v48 = vld [vmem:[%s10375_s1 + $0xe88] sm:$0xff]   ;;  %v8343_v54 = vld [vmem:[%s10375_s1 + $0xed8] sm:$0xff]  }
 0x1a2   :  { %7626 = vmatprep.subr.bf16.mxu1 %v8295_v56  ;;  %v8345_v56 = vld [vmem:[%s10375_s1 + $0xe98] sm:$0xff]  }
 0x1a3   :  { %5916 = vmatmul.mubr.bf16.vlgmr.msra.gmra.mrb[48].mxu0 %v6431_v51  ;;  %v8340_v51 = vld [vmem:[%s10375_s1 + $0xe10] sm:$0xff]  }
 0x1a4   :  { %5956 = vmatmul.mubr.bf16.vlgmr.msra.gmra.mrb[48].mxu1 %v6433_v53  ;;  %7605 = vmatpush3.bf16.msra.mxu0 %v8296_v57  ;;  %v8342_v53 = vld [vmem:[%s10375_s1 + $0xe58] sm:$0xff]   ;;  %v8346_v57 = vld [vmem:[%s10375_s1 + $0xe60] sm:$0xff]  }
 0x1a5   :  { %7627 = vmatpush3.bf16.msra.mxu1 %v8297_v58  ;;  %7606 = vmatprep.subr.bf16.mxu0 %v8298_v59  ;;  %v8347_v58 = vld [vmem:[%s10375_s1 + $0xee0] sm:$0xff]  }
 0x1a6   :  { %7628 = vmatprep.subr.bf16.mxu1 %v8299_v60  ;;  %5995 = vmatprep.mubr.bf16.mxu0 %v6436_v37  ;;  %v8348_v60 = vld [vmem:[%s10375_s1 + $0xe20] sm:$0xff]   ;;  %v8376_v37 = vld [vmem:[%s10375_s1 + $0xf10] sm:$0xff]  }
 0x1a7   :  { %6035 = vmatprep.mubr.bf16.mxu1 %v6438_v40  ;;  %v8379_v40 = vld [vmem:[%s10375_s1 + $0xfd8] sm:$0xff]  }
 0x1a8   :  { %7607 = vmatpush3.bf16.msra.mxu0 %v8300_v61 }
 0x1a9   :  { %7629 = vmatpush3.bf16.msra.mxu1 %v8301_v62  ;;  %7608 = vmatprep.subr.bf16.mxu0 %v8302_v63  ;;  %v8349_v62 = vld [vmem:[%s10375_s1 + $0xea0] sm:$0xff]  }
 0x1aa   :  { %7630 = vmatprep.subr.bf16.mxu1 %v8303_v0 }
 0x1ac   :  { %7609 = vmatpush3.bf16.msra.mxu0 %v8304_v1  ;;  %v8350_v1 = vld [vmem:[%s10375_s1 + $0xe68] sm:$0xff]  }
 0x1ad   :  { %7631 = vmatpush3.bf16.msra.mxu1 %v8305_v2  ;;  %7610 = vmatprep.subr.bf16.mxu0 %v8306_v3 }
 0x1ae   :  { %7632 = vmatprep.subr.bf16.mxu1 %v8307_v4  ;;  %v8351_v4 = vld [vmem:[%s10375_s1 + $0xee8] sm:$0xff]  }
 0x1b0   :  { %7611 = vmatpush3.bf16.msra.mxu0 %v8308_v5 }
 0x1b1   :  { %7633 = vmatpush3.bf16.msra.mxu1 %v8309_v6  ;;  %7612 = vmatprep.subr.bf16.mxu0 %v8310_v7  ;;  %v8352_v7 = vld [vmem:[%s10375_s1 + $0xe28] sm:$0xff]  }
 0x1b2   :  { %7634 = vmatprep.subr.bf16.mxu1 %v8311_v8 }
 0x1b4   :  { %7613 = vmatpush3.bf16.msra.mxu0 %v8312_v10 }
 0x1b5   :  { %7635 = vmatpush3.bf16.msra.mxu1 %v8313_v12  ;;  %7614 = vmatprep.subr.bf16.mxu0 %v8314_v15  ;;  %v8354_v12 = vld [vmem:[%s10375_s1 + $0xe70] sm:$0xff]  }
 0x1b6   :  { %v7312_v9 = vpop.f32.mrb[24].mxu0  ;;  %7636 = vmatprep.subr.bf16.mxu1 %v8315_v18  ;;  %v8356_v15 = vld [vmem:[%s10375_s1 + $0xe30] sm:$0xff]   ;;  %v8359_v18 = vld [vmem:[%s10375_s1 + $0xef8] sm:$0xff]  }
 0x1b7   :  { %v7334_v11 = vpop.f32.mrb[24].mxu1  ;;  %v7313_v13 = vpop.f32.mrb[25].mxu0 }
 0x1b8   :  { %v7335_v14 = vpop.f32.mrb[25].mxu1  ;;  %v7314_v16 = vadd.f32 %v7313_v13, %v7312_v9  ;;  %v7315_v19 = vpop.f32.mrb[26].mxu0  ;;  %7615 = vmatpush3.bf16.msra.mxu0 %v8316_v21  ;;  %v8353_v9 = vld [vmem:[%s10375_s1 + $0xea8] sm:$0xff]   ;;  %v48_v21 = vld [vmem:[%s10376_s0 + $0xe0] sm:$0xff] }
 0x1b9   :  { %v7336_v17 = vadd.f32 %v7335_v14, %v7334_v11  ;;  %v7337_v20 = vpop.f32.mrb[26].mxu1  ;;  %v7316_v24 = vpop.f32.mrb[27].mxu0  ;;  %7637 = vmatpush3.bf16.msra.mxu1 %v8317_v23  ;;  %7616 = vmatprep.subr.bf16.mxu0 %v8318_v26  ;;  %v8355_v14 = vld [vmem:[%s10375_s1 + $0xef0] sm:$0xff]   ;;  %v8360_v19 = vld [vmem:[%s10375_s1 + $0xe38] sm:$0xff]   ;;  %v6439_v23 = vcombine.low %v48_v21, %v48_v21 }
 0x1ba   :  { %v5438_v22 = vadd.f32 %v7314_v16, %v9814_v39  ;;  %v7338_v25 = vpop.f32.mrb[27].mxu1  ;;  %7638 = vmatprep.subr.bf16.mxu1 %v8319_v28  ;;  %v6437_v39 = vcombine.low %v47_v38, %v47_v38  ;;  %v8357_v16 = vld [vmem:[%s10375_s1 + $0xeb0] sm:$0xff]   ;;  %v8361_v20 = vld [vmem:[%s10375_s1 + $0xeb8] sm:$0xff]   ;;  %v6440_v24 = vcombine.high %v48_v21, %v48_v21  ;;  %v8367_v28 = vld [vmem:[%s10375_s1 + $0xfc0] sm:$0xff]  }
 0x1bb   :  { %v8377_v38 = vld [vmem:[%s10375_s1 + $0xf90] sm:$0xff]  }
 0x1bc   :  { %v9922_v27 = vadd.f32 %v7336_v17, %v5438_v22  ;;  %7617 = vmatpush3.bf16.msra.mxu0 %v8320_v29  ;;  %v8358_v17 = vld [vmem:[%s10375_s1 + $0xe78] sm:$0xff]   ;;  %v49_v22 = vld [vmem:[%s10376_s0 + $0xe8] sm:$0xff]  ;;  %v8368_v29 = vld [vmem:[%s10375_s1 + $0xf00] sm:$0xff]  }
 0x1bd   :  { %7639 = vmatpush3.bf16.msra.mxu1 %v8321_v30  ;;  %7618 = vmatprep.subr.bf16.mxu0 %v8322_v31  ;;  %v6441_v25 = vcombine.low %v49_v22, %v49_v22  ;;  %v6442_v26 = vcombine.high %v49_v22, %v49_v22  ;;  %v8369_v30 = vld [vmem:[%s10375_s1 + $0xf80] sm:$0xff]   ;;  %v8370_v31 = vld [vmem:[%s10375_s1 + $0xf48] sm:$0xff]   ;;  %v8410_v21 = vld [vmem:[%s10375_s1 + $0x1050] sm:$0xff]  }
 0x1be   :  { %7640 = vmatprep.subr.bf16.mxu1 %v8323_v32  ;;  %v8371_v32 = vld [vmem:[%s10375_s1 + $0xfc8] sm:$0xff]   ;;  %v8411_v22 = vld [vmem:[%s10375_s1 + $0x10d0] sm:$0xff]  }
 0x1c0   :  { %7619 = vmatpush3.bf16.msra.mxu0 %v8324_v33  ;;  %v8372_v33 = vld [vmem:[%s10375_s1 + $0xf08] sm:$0xff]  }
 0x1c1   :  { %7641 = vmatpush3.bf16.msra.mxu1 %v8325_v34  ;;  %7648 = vmatprep.subr.bf16.mxu0 %v8330_v41  ;;  %v8373_v34 = vld [vmem:[%s10375_s1 + $0xf88] sm:$0xff]   ;;  %v8380_v41 = vld [vmem:[%s10375_s1 + $0xf18] sm:$0xff]  }
 0x1c2   :  { %7670 = vmatprep.subr.bf16.mxu1 %v8331_v42  ;;  %v8381_v42 = vld [vmem:[%s10375_s1 + $0xf98] sm:$0xff]  }
 0x1c3   :  { %5996 = vmatmul.mubr.bf16.vlgmr.msra.gmra.mrb[52].mxu0 %v6435_v36  ;;  %v8375_v36 = vld [vmem:[%s10375_s1 + $0xfd0] sm:$0xff]  }
 0x1c4   :  { %6036 = vmatmul.mubr.bf16.vlgmr.msra.gmra.mrb[52].mxu1 %v6437_v39  ;;  %7649 = vmatpush3.bf16.msra.mxu0 %v8332_v43  ;;  %v8378_v39 = vld [vmem:[%s10375_s1 + $0xf58] sm:$0xff]   ;;  %v8382_v43 = vld [vmem:[%s10375_s1 + $0xf60] sm:$0xff]  }
 0x1c5   :  { %7671 = vmatpush3.bf16.msra.mxu1 %v8333_v44  ;;  %7650 = vmatprep.subr.bf16.mxu0 %v8334_v45  ;;  %v8383_v44 = vld [vmem:[%s10375_s1 + $0xfe0] sm:$0xff]  }
 0x1c6   :  { %7672 = vmatprep.subr.bf16.mxu1 %v8335_v46  ;;  %6075 = vmatprep.mubr.bf16.mxu0 %v6440_v24  ;;  %v8384_v45 = vld [vmem:[%s10375_s1 + $0xf20] sm:$0xff]   ;;  %v8413_v24 = vld [vmem:[%s10375_s1 + $0x1090] sm:$0xff]  }
 0x1c7   :  { %6115 = vmatprep.mubr.bf16.mxu1 %v6442_v26  ;;  %v8415_v26 = vld [vmem:[%s10375_s1 + $0x10d8] sm:$0xff]  }
 0x1c8   :  { %7651 = vmatpush3.bf16.msra.mxu0 %v8336_v47  ;;  %v8385_v47 = vld [vmem:[%s10375_s1 + $0xfa0] sm:$0xff]  }
 0x1c9   :  { %7673 = vmatpush3.bf16.msra.mxu1 %v8337_v48  ;;  %7652 = vmatprep.subr.bf16.mxu0 %v8338_v49 }
 0x1ca   :  { %7674 = vmatprep.subr.bf16.mxu1 %v8339_v50 }
 0x1cc   :  { %7653 = vmatpush3.bf16.msra.mxu0 %v8340_v51 }
 0x1cd   :  { %7675 = vmatpush3.bf16.msra.mxu1 %v8341_v52  ;;  %7654 = vmatprep.subr.bf16.mxu0 %v8342_v53  ;;  %v8386_v53 = vld [vmem:[%s10375_s1 + $0xf68] sm:$0xff]  }
 0x1ce   :  { %7676 = vmatprep.subr.bf16.mxu1 %v8343_v54 }
 0x1d0   :  { %7655 = vmatpush3.bf16.msra.mxu0 %v8344_v55  ;;  %v8387_v55 = vld [vmem:[%s10375_s1 + $0xfe8] sm:$0xff]  }
 0x1d1   :  { %7677 = vmatpush3.bf16.msra.mxu1 %v8345_v56  ;;  %7656 = vmatprep.subr.bf16.mxu0 %v8346_v57 }
 0x1d2   :  { %7678 = vmatprep.subr.bf16.mxu1 %v8347_v58  ;;  %v8388_v58 = vld [vmem:[%s10375_s1 + $0xf28] sm:$0xff]  }
 0x1d4   :  { %7657 = vmatpush3.bf16.msra.mxu0 %v8348_v60  ;;  %v8389_v60 = vld [vmem:[%s10375_s1 + $0xfa8] sm:$0xff]  }
 0x1d5   :  { %7679 = vmatpush3.bf16.msra.mxu1 %v8349_v62  ;;  %7658 = vmatprep.subr.bf16.mxu0 %v8350_v1  ;;  %v8392_v1 = vld [vmem:[%s10375_s1 + $0xf30] sm:$0xff]  }
 0x1d6   :  { %v7356_v59 = vpop.f32.mrb[28].mxu0  ;;  %7680 = vmatprep.subr.bf16.mxu1 %v8351_v4  ;;  %v8395_v4 = vld [vmem:[%s10375_s1 + $0xff8] sm:$0xff]  }
 0x1d7   :  { %v7378_v61 = vpop.f32.mrb[28].mxu1  ;;  %v7357_v63 = vpop.f32.mrb[29].mxu0 }
 0x1d8   :  { %v7379_v0 = vpop.f32.mrb[29].mxu1  ;;  %v7358_v2 = vadd.f32 %v7357_v63, %v7356_v59  ;;  %v7359_v5 = vpop.f32.mrb[30].mxu0  ;;  %7659 = vmatpush3.bf16.msra.mxu0 %v8352_v7  ;;  %v8390_v63 = vld [vmem:[%s10375_s1 + $0xf70] sm:$0xff]  }
 0x1d9   :  { %v7380_v3 = vadd.f32 %v7379_v0, %v7378_v61  ;;  %v7381_v6 = vpop.f32.mrb[30].mxu1  ;;  %v7360_v10 = vpop.f32.mrb[31].mxu0  ;;  %7681 = vmatpush3.bf16.msra.mxu1 %v8353_v9  ;;  %7660 = vmatprep.subr.bf16.mxu0 %v8354_v12  ;;  %v8391_v0 = vld [vmem:[%s10375_s1 + $0xff0] sm:$0xff]   ;;  %v8396_v5 = vld [vmem:[%s10375_s1 + $0xf38] sm:$0xff]  }
 0x1da   :  { %v5518_v8 = vadd.f32 %v7358_v2, %v9922_v27  ;;  %v7382_v11 = vpop.f32.mrb[31].mxu1  ;;  %7682 = vmatprep.subr.bf16.mxu1 %v8355_v14  ;;  %v8366_v27 = vld [vmem:[%s10375_s1 + $0xf40] sm:$0xff]   ;;  %v8393_v2 = vld [vmem:[%s10375_s1 + $0xfb0] sm:$0xff]   ;;  %v8397_v6 = vld [vmem:[%s10375_s1 + $0xfb8] sm:$0xff]  }
 0x1db   :  { %v50_v7 = vld [vmem:[%s10376_s0 + $0xf0] sm:$0xff]  ;;  %v8403_v14 = vld [vmem:[%s10375_s1 + $0x10c0] sm:$0xff]  }
 0x1dc   :  { %v10027_v13 = vadd.f32 %v7380_v3, %v5518_v8  ;;  %7661 = vmatpush3.bf16.msra.mxu0 %v8356_v15  ;;  %v8394_v3 = vld [vmem:[%s10375_s1 + $0xf78] sm:$0xff]   ;;  %v6443_v9 = vcombine.low %v50_v7, %v50_v7  ;;  %v6444_v10 = vcombine.high %v50_v7, %v50_v7  ;;  %v8404_v15 = vld [vmem:[%s10375_s1 + $0x1000] sm:$0xff]   ;;  %v8444_v7 = vld [vmem:[%s10375_s1 + $0x1108] sm:$0xff]  }
 0x1dd   :  { %7683 = vmatpush3.bf16.msra.mxu1 %v8357_v16  ;;  %7662 = vmatprep.subr.bf16.mxu0 %v8358_v17  ;;  %v51_v8 = vld [vmem:[%s10376_s0 + $0xf8] sm:$0xff]  ;;  %v8405_v16 = vld [vmem:[%s10375_s1 + $0x1080] sm:$0xff]   ;;  %v8406_v17 = vld [vmem:[%s10375_s1 + $0x1048] sm:$0xff]  }
 0x1de   :  { %7684 = vmatprep.subr.bf16.mxu1 %v8359_v18  ;;  %v6445_v11 = vcombine.low %v51_v8, %v51_v8  ;;  %v6446_v12 = vcombine.high %v51_v8, %v51_v8  ;;  %v8407_v18 = vld [vmem:[%s10375_s1 + $0x10c8] sm:$0xff]  }
 0x1df   :  { %v8445_v8 = vld [vmem:[%s10375_s1 + $0x1188] sm:$0xff]  }
 0x1e0   :  { %7663 = vmatpush3.bf16.msra.mxu0 %v8360_v19  ;;  %v8408_v19 = vld [vmem:[%s10375_s1 + $0x1008] sm:$0xff]  }
 0x1e1   :  { %7685 = vmatpush3.bf16.msra.mxu1 %v8361_v20  ;;  %7692 = vmatprep.subr.bf16.mxu0 %v8366_v27  ;;  %v8409_v20 = vld [vmem:[%s10375_s1 + $0x1088] sm:$0xff]   ;;  %v8416_v27 = vld [vmem:[%s10375_s1 + $0x1018] sm:$0xff]  }
 0x1e2   :  { %7714 = vmatprep.subr.bf16.mxu1 %v8367_v28  ;;  %v8417_v28 = vld [vmem:[%s10375_s1 + $0x1098] sm:$0xff]  }
 0x1e3   :  { %6076 = vmatmul.mubr.bf16.vlgmr.msra.gmra.mrb[56].mxu0 %v6439_v23  ;;  %v8412_v23 = vld [vmem:[%s10375_s1 + $0x1010] sm:$0xff]  }
 0x1e4   :  { %6116 = vmatmul.mubr.bf16.vlgmr.msra.gmra.mrb[56].mxu1 %v6441_v25  ;;  %7693 = vmatpush3.bf16.msra.mxu0 %v8368_v29  ;;  %v8414_v25 = vld [vmem:[%s10375_s1 + $0x1058] sm:$0xff]   ;;  %v8418_v29 = vld [vmem:[%s10375_s1 + $0x1060] sm:$0xff]  }
 0x1e5   :  { %7715 = vmatpush3.bf16.msra.mxu1 %v8369_v30  ;;  %7694 = vmatprep.subr.bf16.mxu0 %v8370_v31  ;;  %v8419_v30 = vld [vmem:[%s10375_s1 + $0x10e0] sm:$0xff]  }
 0x1e6   :  { %7716 = vmatprep.subr.bf16.mxu1 %v8371_v32  ;;  %6155 = vmatprep.mubr.bf16.mxu0 %v6444_v10  ;;  %v8420_v31 = vld [vmem:[%s10375_s1 + $0x1020] sm:$0xff]   ;;  %v8447_v10 = vld [vmem:[%s10375_s1 + $0x11d0] sm:$0xff]  }
 0x1e7   :  { %6195 = vmatprep.mubr.bf16.mxu1 %v6446_v12  ;;  %v8449_v12 = vld [vmem:[%s10375_s1 + $0x1190] sm:$0xff]  }
 0x1e8   :  { %7695 = vmatpush3.bf16.msra.mxu0 %v8372_v33  ;;  %v8421_v33 = vld [vmem:[%s10375_s1 + $0x10a0] sm:$0xff]  }
 0x1e9   :  { %7717 = vmatpush3.bf16.msra.mxu1 %v8373_v34  ;;  %7696 = vmatprep.subr.bf16.mxu0 %v8374_v35 }
 0x1ea   :  { %7718 = vmatprep.subr.bf16.mxu1 %v8375_v36 }
 0x1ec   :  { %7697 = vmatpush3.bf16.msra.mxu0 %v8376_v37 }
 0x1ed   :  { %7719 = vmatpush3.bf16.msra.mxu1 %v8377_v38  ;;  %7698 = vmatprep.subr.bf16.mxu0 %v8378_v39  ;;  %v8422_v39 = vld [vmem:[%s10375_s1 + $0x1068] sm:$0xff]  }
 0x1ee   :  { %7720 = vmatprep.subr.bf16.mxu1 %v8379_v40 }
 0x1f0   :  { %7699 = vmatpush3.bf16.msra.mxu0 %v8380_v41  ;;  %v8423_v41 = vld [vmem:[%s10375_s1 + $0x10e8] sm:$0xff]  }
 0x1f1   :  { %7721 = vmatpush3.bf16.msra.mxu1 %v8381_v42  ;;  %7700 = vmatprep.subr.bf16.mxu0 %v8382_v43 }
 0x1f2   :  { %7722 = vmatprep.subr.bf16.mxu1 %v8383_v44  ;;  %v8424_v44 = vld [vmem:[%s10375_s1 + $0x1028] sm:$0xff]  }
 0x1f4   :  { %7701 = vmatpush3.bf16.msra.mxu0 %v8384_v45 }
 0x1f5   :  { %7723 = vmatpush3.bf16.msra.mxu1 %v8385_v47  ;;  %7702 = vmatprep.subr.bf16.mxu0 %v8386_v53  ;;  %v8429_v53 = vld [vmem:[%s10375_s1 + $0x10b0] sm:$0xff]  }
 0x1f6   :  { %v7400_v46 = vpop.f32.mrb[32].mxu0  ;;  %7724 = vmatprep.subr.bf16.mxu1 %v8387_v55  ;;  %v8430_v55 = vld [vmem:[%s10375_s1 + $0x1078] sm:$0xff]  }
 0x1f7   :  { %v7422_v48 = vpop.f32.mrb[32].mxu1  ;;  %v7401_v49 = vpop.f32.mrb[33].mxu0 }
 0x1f8   :  { %v7423_v50 = vpop.f32.mrb[33].mxu1  ;;  %v7402_v51 = vadd.f32 %v7401_v49, %v7400_v46  ;;  %v7403_v54 = vpop.f32.mrb[34].mxu0  ;;  %7703 = vmatpush3.bf16.msra.mxu0 %v8388_v58  ;;  %v8425_v46 = vld [vmem:[%s10375_s1 + $0x10a8] sm:$0xff]   ;;  %v8433_v58 = vld [vmem:[%s10375_s1 + $0x10b8] sm:$0xff]  }
 0x1f9   :  { %v7424_v52 = vadd.f32 %v7423_v50, %v7422_v48  ;;  %v7425_v56 = vpop.f32.mrb[34].mxu1  ;;  %v7404_v59 = vpop.f32.mrb[35].mxu0  ;;  %7725 = vmatpush3.bf16.msra.mxu1 %v8389_v60  ;;  %7704 = vmatprep.subr.bf16.mxu0 %v8390_v63  ;;  %v9_v48 = vstv %s10378_s3  ;;  %v8426_v50 = vld [vmem:[%s10375_s1 + $0x1070] sm:$0xff]   ;;  %v8474_v54 = vmov 0   ;;  %v53_v60 = vld [vmem:[%s10376_s0 + $0x108] sm:$0xff] }
 0x1fa   :  { %v5598_v57 = vadd.f32 %v7402_v51, %v10027_v13  ;;  %v7426_v61 = vpop.f32.mrb[35].mxu1  ;;  %7726 = vmatprep.subr.bf16.mxu1 %v8391_v0  ;;  %v8402_v13 = vld [vmem:[%s10375_s1 + $0x1040] sm:$0xff]   ;;  %10 = vst [vmem:[#allocation2] sm:$0x1] %v9_v48  ;;  %v8427_v51 = vld [vmem:[%s10375_s1 + $0x10f0] sm:$0xff]   ;;  %7825 = vset.pattern.permute.xlu0 %v8474_v54  ;;  %v8431_v56 = vld [vmem:[%s10375_s1 + $0x10f8] sm:$0xff]   ;;  %v6449_v63 = vcombine.low %v53_v60, %v53_v60 }
 0x1fb   :  { %v52_v59 = vld [vmem:[%s10376_s0 + $0x100] sm:$0xff]  ;;  %v6450_v0 = vcombine.high %v53_v60, %v53_v60 }
 0x1fc   :  { %v10129_v62 = vadd.f32 %v7424_v52, %v5598_v57  ;;  %7705 = vmatpush3.bf16.msra.mxu0 %v8392_v1  ;;  %v8428_v52 = vld [vmem:[%s10375_s1 + $0x1030] sm:$0xff]   ;;  %v8432_v57 = vld [vmem:[%s10375_s1 + $0x1038] sm:$0xff]   ;;  %v6447_v61 = vcombine.low %v52_v59, %v52_v59  ;;  %v8438_v1 = vld [vmem:[%s10375_s1 + $0x1140] sm:$0xff]  }
 0x1fd   :  { %7727 = vmatpush3.bf16.msra.mxu1 %v8393_v2  ;;  %7706 = vmatprep.subr.bf16.mxu0 %v8394_v3  ;;  %v8439_v2 = vld [vmem:[%s10375_s1 + $0x11c0] sm:$0xff]  }
 0x1fe   :  { %7728 = vmatprep.subr.bf16.mxu1 %v8395_v4  ;;  %v8440_v3 = vld [vmem:[%s10375_s1 + $0x1100] sm:$0xff]  }
 0x1ff   :  { %v8441_v4 = vld [vmem:[%s10375_s1 + $0x1180] sm:$0xff]  }
 0x200   :  { %7707 = vmatpush3.bf16.msra.mxu0 %v8396_v5  ;;  %v8442_v5 = vld [vmem:[%s10375_s1 + $0x1148] sm:$0xff]  }
 0x201   :  { %7729 = vmatpush3.bf16.msra.mxu1 %v8397_v6  ;;  %7736 = vmatprep.subr.bf16.mxu0 %v8402_v13  ;;  %v8443_v6 = vld [vmem:[%s10375_s1 + $0x11c8] sm:$0xff]   ;;  %v8450_v13 = vld [vmem:[%s10375_s1 + $0x1158] sm:$0xff]  }
 0x202   :  { %7758 = vmatprep.subr.bf16.mxu1 %v8403_v14  ;;  %v8451_v14 = vld [vmem:[%s10375_s1 + $0x11d8] sm:$0xff]  }
 0x203   :  { %6156 = vmatmul.mubr.bf16.vlgmr.msra.gmra.mrb[60].mxu0 %v6443_v9  ;;  %v8446_v9 = vld [vmem:[%s10375_s1 + $0x1150] sm:$0xff]  }
 0x204   :  { %6196 = vmatmul.mubr.bf16.vlgmr.msra.gmra.mrb[60].mxu1 %v6445_v11  ;;  %7737 = vmatpush3.bf16.msra.mxu0 %v8404_v15  ;;  %v8448_v11 = vld [vmem:[%s10375_s1 + $0x1110] sm:$0xff]   ;;  %v8452_v15 = vld [vmem:[%s10375_s1 + $0x1118] sm:$0xff]  }
 0x205   :  { %7759 = vmatpush3.bf16.msra.mxu1 %v8405_v16  ;;  %7738 = vmatprep.subr.bf16.mxu0 %v8406_v17  ;;  %v8453_v16 = vld [vmem:[%s10375_s1 + $0x1198] sm:$0xff]   ;;  %v8454_v17 = vld [vmem:[%s10375_s1 + $0x1160] sm:$0xff]  }
 0x206   :  { %7760 = vmatprep.subr.bf16.mxu1 %v8407_v18  ;;  %6275 = vmatprep.mubr.bf16.mxu1 %v6450_v0  ;;  %v8455_v18 = vld [vmem:[%s10375_s1 + $0x11e0] sm:$0xff]  }
 0x208   :  { %7739 = vmatpush3.bf16.msra.mxu0 %v8408_v19  ;;  %v8456_v19 = vld [vmem:[%s10375_s1 + $0x1120] sm:$0xff]  }
 0x209   :  { %7761 = vmatpush3.bf16.msra.mxu1 %v8409_v20  ;;  %7740 = vmatprep.subr.bf16.mxu0 %v8410_v21  ;;  %v8457_v21 = vld [vmem:[%s10375_s1 + $0x11a0] sm:$0xff]  }
 0x20a   :  { %7762 = vmatprep.subr.bf16.mxu1 %v8411_v22 }
 0x20c   :  { %7741 = vmatpush3.bf16.msra.mxu0 %v8412_v23 }
 0x20d   :  { %7763 = vmatpush3.bf16.msra.mxu1 %v8413_v24  ;;  %7742 = vmatprep.subr.bf16.mxu0 %v8414_v25 }
 0x20e   :  { %7764 = vmatprep.subr.bf16.mxu1 %v8415_v26 }
 0x210   :  { %7743 = vmatpush3.bf16.msra.mxu0 %v8416_v27  ;;  %v8458_v27 = vld [vmem:[%s10375_s1 + $0x1168] sm:$0xff]  }
 0x211   :  { %7765 = vmatpush3.bf16.msra.mxu1 %v8417_v28  ;;  %7744 = vmatprep.subr.bf16.mxu0 %v8418_v29  ;;  %v8459_v29 = vld [vmem:[%s10375_s1 + $0x11e8] sm:$0xff]  }
 0x212   :  { %7766 = vmatprep.subr.bf16.mxu1 %v8419_v30 }
 0x214   :  { %7745 = vmatpush3.bf16.msra.mxu0 %v8420_v31 }
 0x215   :  { %7767 = vmatpush3.bf16.msra.mxu1 %v8421_v33  ;;  %7746 = vmatprep.subr.bf16.mxu0 %v8422_v39  ;;  %v8464_v39 = vld [vmem:[%s10375_s1 + $0x1130] sm:$0xff]  }
 0x216   :  { %v7444_v32 = vpop.f32.mrb[36].mxu0  ;;  %7768 = vmatprep.subr.bf16.mxu1 %v8423_v41  ;;  %v8466_v41 = vld [vmem:[%s10375_s1 + $0x1178] sm:$0xff]  }
 0x217   :  { %v7466_v34 = vpop.f32.mrb[36].mxu1  ;;  %v7445_v35 = vpop.f32.mrb[37].mxu0 }
 0x218   :  { %v7467_v36 = vpop.f32.mrb[37].mxu1  ;;  %v7446_v37 = vadd.f32 %v7445_v35, %v7444_v32  ;;  %v7447_v40 = vpop.f32.mrb[38].mxu0  ;;  %7747 = vmatpush3.bf16.msra.mxu0 %v8424_v44  ;;  %v8460_v32 = vld [vmem:[%s10375_s1 + $0x1128] sm:$0xff]   ;;  %v8469_v44 = vld [vmem:[%s10375_s1 + $0x11b8] sm:$0xff]  }
 0x219   :  { %v7468_v38 = vadd.f32 %v7467_v36, %v7466_v34  ;;  %v7469_v42 = vpop.f32.mrb[38].mxu1  ;;  %v7448_v45 = vpop.f32.mrb[39].mxu0  ;;  %7769 = vmatpush3.bf16.msra.mxu1 %v8425_v46  ;;  %7748 = vmatprep.subr.bf16.mxu0 %v8426_v50  ;;  %v8461_v34 = vld [vmem:[%s10375_s1 + $0x11a8] sm:$0xff]   ;;  %v8465_v40 = vld [vmem:[%s10375_s1 + $0x11b0] sm:$0xff]   ;;  %v55_v46 = vld [vmem:[%s10376_s0 + $0x118] sm:$0xff] }
 0x21a   :  { %v5678_v43 = vadd.f32 %v7446_v37, %v10129_v62  ;;  %v7470_v47 = vpop.f32.mrb[39].mxu1  ;;  %7770 = vmatprep.subr.bf16.mxu1 %v8427_v51  ;;  %v6448_v62 = vcombine.high %v52_v59, %v52_v59  ;;  %v8462_v37 = vld [vmem:[%s10375_s1 + $0x1170] sm:$0xff]   ;;  %v8467_v42 = vld [vmem:[%s10375_s1 + $0x11f8] sm:$0xff]   ;;  %v6454_v50 = vcombine.high %v55_v46, %v55_v46  ;;  %v7031_v51 = vld [vmem:[#allocation2] ss:$0 sm:$0xff] }
 0x21b   :  { %v54_v45 = vld [vmem:[%s10376_s0 + $0x110] sm:$0xff]  ;;  %6371 = vperm.xlu0 %7825, %v7031_v51  }
 0x21c   :  { %v10237_v49 = vadd.f32 %v7468_v38, %v5678_v43  ;;  %7749 = vmatpush3.bf16.msra.mxu0 %v8428_v52  ;;  %6235 = vmatprep.mubr.bf16.mxu0 %v6448_v62  ;;  %v8463_v38 = vld [vmem:[%s10375_s1 + $0x11f0] sm:$0xff]   ;;  %v8468_v43 = vld [vmem:[%s10375_s1 + $0x1138] sm:$0xff]   ;;  %v6451_v47 = vcombine.low %v54_v45, %v54_v45  ;;  %v6452_v48 = vcombine.high %v54_v45, %v54_v45 }
 0x21d   :  { %7771 = vmatpush3.bf16.msra.mxu1 %v8429_v53  ;;  %7750 = vmatprep.subr.bf16.mxu0 %v8430_v55 }
 0x21e   :  { %7772 = vmatprep.subr.bf16.mxu1 %v8431_v56 }
 0x220   :  { %7751 = vmatpush3.bf16.msra.mxu0 %v8432_v57 }
 0x221   :  { %7773 = vmatpush3.bf16.msra.mxu1 %v8433_v58  ;;  %7780 = vmatprep.subr.bf16.mxu0 %v8438_v1 }
 0x222   :  { %7802 = vmatprep.subr.bf16.mxu1 %v8439_v2 }
 0x223   :  { %6236 = vmatmul.mubr.bf16.vlgmr.msra.gmra.mrb[64].mxu0 %v6447_v61 }
 0x224   :  { %6276 = vmatmul.mubr.bf16.vlgmr.msra.gmra.mrb[64].mxu1 %v6449_v63  ;;  %7781 = vmatpush3.bf16.msra.mxu0 %v8440_v3 }
 0x225   :  { %7803 = vmatpush3.bf16.msra.mxu1 %v8441_v4  ;;  %7782 = vmatprep.subr.bf16.mxu0 %v8442_v5 }
 0x226   :  { %7804 = vmatprep.subr.bf16.mxu1 %v8443_v6  ;;  %6315 = vmatprep.mubr.bf16.mxu0 %v6452_v48 }
 0x227   :  { %6355 = vmatprep.mubr.bf16.mxu1 %v6454_v50 }
 0x228   :  { %7783 = vmatpush3.bf16.msra.mxu0 %v8444_v7 }
 0x229   :  { %7805 = vmatpush3.bf16.msra.mxu1 %v8445_v8  ;;  %7784 = vmatprep.subr.bf16.mxu0 %v8446_v9 }
 0x22a   :  { %7806 = vmatprep.subr.bf16.mxu1 %v8447_v10 }
 0x22c   :  { %7785 = vmatpush3.bf16.msra.mxu0 %v8448_v11 }
 0x22d   :  { %7807 = vmatpush3.bf16.msra.mxu1 %v8449_v12  ;;  %7786 = vmatprep.subr.bf16.mxu0 %v8450_v13 }
 0x22e   :  { %7808 = vmatprep.subr.bf16.mxu1 %v8451_v14 }
 0x230   :  { %7787 = vmatpush3.bf16.msra.mxu0 %v8452_v15 }
 0x231   :  { %7809 = vmatpush3.bf16.msra.mxu1 %v8453_v16  ;;  %7788 = vmatprep.subr.bf16.mxu0 %v8454_v17 }
 0x232   :  { %7810 = vmatprep.subr.bf16.mxu1 %v8455_v18 }
 0x234   :  { %7789 = vmatpush3.bf16.msra.mxu0 %v8456_v19 }
 0x235   :  { %7811 = vmatpush3.bf16.msra.mxu1 %v8457_v21  ;;  %7790 = vmatprep.subr.bf16.mxu0 %v8458_v27 }
 0x236   :  { %v7488_v20 = vpop.f32.mrb[40].mxu0  ;;  %7812 = vmatprep.subr.bf16.mxu1 %v8459_v29 }
 0x237   :  { %v7510_v22 = vpop.f32.mrb[40].mxu1  ;;  %v7489_v23 = vpop.f32.mrb[41].mxu0 }
 0x238   :  { %v7511_v24 = vpop.f32.mrb[41].mxu1  ;;  %v7490_v25 = vadd.f32 %v7489_v23, %v7488_v20  ;;  %v7491_v28 = vpop.f32.mrb[42].mxu0  ;;  %7791 = vmatpush3.bf16.msra.mxu0 %v8460_v32 }
 0x239   :  { %v7512_v26 = vadd.f32 %v7511_v24, %v7510_v22  ;;  %v7513_v30 = vpop.f32.mrb[42].mxu1  ;;  %v7492_v33 = vpop.f32.mrb[43].mxu0  ;;  %7813 = vmatpush3.bf16.msra.mxu1 %v8461_v34  ;;  %7792 = vmatprep.subr.bf16.mxu0 %v8462_v37 }
 0x23a   :  { %v5758_v31 = vadd.f32 %v7490_v25, %v10237_v49  ;;  %v7514_v35 = vpop.f32.mrb[43].mxu1  ;;  %7814 = vmatprep.subr.bf16.mxu1 %v8463_v38  ;;  %v6453_v49 = vcombine.low %v55_v46, %v55_v46 }
 0x23c   :  { %v5798_v36 = vadd.f32 %v7512_v26, %v5758_v31  ;;  %7793 = vmatpush3.bf16.msra.mxu0 %v8464_v39 }
 0x23d   :  { %7815 = vmatpush3.bf16.msra.mxu1 %v8465_v40  ;;  %7794 = vmatprep.subr.bf16.mxu0 %v8466_v41 }
 0x23e   :  { %7816 = vmatprep.subr.bf16.mxu1 %v8467_v42 }
 0x240   :  { %7795 = vmatpush3.bf16.msra.mxu0 %v8468_v43 }
 0x241   :  { %7817 = vmatpush3.bf16.msra.mxu1 %v8469_v44 }
 0x243   :  { %6316 = vmatmul.mubr.bf16.vlgmr.msra.gmra.mrb[68].mxu0 %v6451_v47 }
 0x244   :  { %6356 = vmatmul.mubr.bf16.vlgmr.msra.gmra.mrb[68].mxu1 %v6453_v49 }
 0x256   :  { %v7532_v52 = vpop.f32.mrb[44].mxu0 }
 0x257   :  { %v7554_v53 = vpop.f32.mrb[44].mxu1  ;;  %v7533_v54 = vpop.f32.mrb[45].mxu0 }
 0x258   :  { %v7534_v55 = vadd.f32 %v7533_v54, %v7532_v52  ;;  %v7555_v56 = vpop.f32.mrb[45].mxu1  ;;  %v7535_v57 = vpop.f32.mrb[46].mxu0 }
 0x259   :  { %v7556_v58 = vadd.f32 %v7555_v56, %v7554_v53  ;;  %v7557_v59 = vpop.f32.mrb[46].mxu1  ;;  %v7536_v60 = vpop.f32.mrb[47].mxu0 }
 0x25a   :  { %v5838_v61 = vadd.f32 %v7534_v55, %v5798_v36  ;;  %v7558_v62 = vpop.f32.mrb[47].mxu1 }
 0x25c   :  { %v5878_v63 = vadd.f32 %v7556_v58, %v5838_v61 }
 0x276   :  { %v7576_v0 = vpop.f32.mrb[48].mxu0 }
 0x277   :  { %v7598_v1 = vpop.f32.mrb[48].mxu1  ;;  %v7577_v2 = vpop.f32.mrb[49].mxu0 }
 0x278   :  { %v7578_v3 = vadd.f32 %v7577_v2, %v7576_v0  ;;  %v7599_v4 = vpop.f32.mrb[49].mxu1  ;;  %v7579_v5 = vpop.f32.mrb[50].mxu0 }
 0x279   :  { %v7600_v6 = vadd.f32 %v7599_v4, %v7598_v1  ;;  %v7601_v7 = vpop.f32.mrb[50].mxu1  ;;  %v7580_v8 = vpop.f32.mrb[51].mxu0 }
 0x27a   :  { %v5918_v9 = vadd.f32 %v7578_v3, %v5878_v63  ;;  %v7602_v10 = vpop.f32.mrb[51].mxu1 }
 0x27c   :  { %v5958_v11 = vadd.f32 %v7600_v6, %v5918_v9 }
 0x296   :  { %v7620_v12 = vpop.f32.mrb[52].mxu0 }
 0x297   :  { %v7642_v13 = vpop.f32.mrb[52].mxu1  ;;  %v7621_v14 = vpop.f32.mrb[53].mxu0 }
 0x298   :  { %v7643_v15 = vpop.f32.mrb[53].mxu1  ;;  %v7622_v16 = vadd.f32 %v7621_v14, %v7620_v12  ;;  %v7623_v18 = vpop.f32.mrb[54].mxu0 }
 0x299   :  { %v7644_v17 = vadd.f32 %v7643_v15, %v7642_v13  ;;  %v7645_v19 = vpop.f32.mrb[54].mxu1  ;;  %v7624_v20 = vpop.f32.mrb[55].mxu0 }
 0x29a   :  { %v7646_v21 = vpop.f32.mrb[55].mxu1  ;;  %v5998_v22 = vadd.f32 %v7622_v16, %v5958_v11  ;;  %v6372_v7 = vpop.permute.xlu0 %6371 }
 0x29c   :  { %v6038_v23 = vadd.f32 %v7644_v17, %v5998_v22 }
 0x2b6   :  { %v7664_v24 = vpop.f32.mrb[56].mxu0 }
 0x2b7   :  { %v7686_v25 = vpop.f32.mrb[56].mxu1  ;;  %v7665_v26 = vpop.f32.mrb[57].mxu0 }
 0x2b8   :  { %v7666_v27 = vadd.f32 %v7665_v26, %v7664_v24  ;;  %v7687_v28 = vpop.f32.mrb[57].mxu1  ;;  %v7667_v29 = vpop.f32.mrb[58].mxu0 }
 0x2b9   :  { %v7688_v30 = vadd.f32 %v7687_v28, %v7686_v25  ;;  %v7689_v31 = vpop.f32.mrb[58].mxu1  ;;  %v7668_v32 = vpop.f32.mrb[59].mxu0 }
 0x2ba   :  { %v6078_v33 = vadd.f32 %v7666_v27, %v6038_v23  ;;  %v7690_v34 = vpop.f32.mrb[59].mxu1 }
 0x2bc   :  { %v6118_v35 = vadd.f32 %v7688_v30, %v6078_v33 }
 0x2d6   :  { %v7708_v36 = vpop.f32.mrb[60].mxu0 }
 0x2d7   :  { %v7730_v37 = vpop.f32.mrb[60].mxu1  ;;  %v7709_v38 = vpop.f32.mrb[61].mxu0 }
 0x2d8   :  { %v7710_v39 = vadd.f32 %v7709_v38, %v7708_v36  ;;  %v7731_v40 = vpop.f32.mrb[61].mxu1  ;;  %v7711_v41 = vpop.f32.mrb[62].mxu0 }
 0x2d9   :  { %v7732_v42 = vadd.f32 %v7731_v40, %v7730_v37  ;;  %v7733_v43 = vpop.f32.mrb[62].mxu1  ;;  %v7712_v44 = vpop.f32.mrb[63].mxu0 }
 0x2da   :  { %v6158_v45 = vadd.f32 %v7710_v39, %v6118_v35  ;;  %v7734_v46 = vpop.f32.mrb[63].mxu1 }
 0x2dc   :  { %v6198_v47 = vadd.f32 %v7732_v42, %v6158_v45 }
 0x2f6   :  { %v7752_v48 = vpop.f32.mrb[64].mxu0 }
 0x2f7   :  { %v7774_v49 = vpop.f32.mrb[64].mxu1  ;;  %v7753_v50 = vpop.f32.mrb[65].mxu0 }
 0x2f8   :  { %v7754_v51 = vadd.f32 %v7753_v50, %v7752_v48  ;;  %v7775_v52 = vpop.f32.mrb[65].mxu1  ;;  %v7755_v53 = vpop.f32.mrb[66].mxu0 }
 0x2f9   :  { %v7776_v54 = vadd.f32 %v7775_v52, %v7774_v49  ;;  %v7777_v55 = vpop.f32.mrb[66].mxu1  ;;  %v7756_v56 = vpop.f32.mrb[67].mxu0 }
 0x2fa   :  { %v6238_v57 = vadd.f32 %v7754_v51, %v6198_v47  ;;  %v7778_v58 = vpop.f32.mrb[67].mxu1 }
 0x2fc   :  { %v6278_v59 = vadd.f32 %v7776_v54, %v6238_v57 }
 0x316   :  { %v7796_v60 = vpop.f32.mrb[68].mxu0 }
 0x317   :  { %v7818_v61 = vpop.f32.mrb[68].mxu1  ;;  %v7797_v62 = vpop.f32.mrb[69].mxu0 }
 0x318   :  { %v7798_v63 = vadd.f32 %v7797_v62, %v7796_v60  ;;  %v7819_v0 = vpop.f32.mrb[69].mxu1  ;;  %v7799_v1 = vpop.f32.mrb[70].mxu0 }
 0x319   :  { %v7820_v2 = vadd.f32 %v7819_v0, %v7818_v61  ;;  %v7821_v3 = vpop.f32.mrb[70].mxu1  ;;  %v7800_v4 = vpop.f32.mrb[71].mxu0 }
 0x31a   :  { %v6318_v5 = vadd.f32 %v7798_v63, %v6278_v59  ;;  %v7822_v6 = vpop.f32.mrb[71].mxu1 }
 0x31c   :  { %v6358_v8 = vadd.f32 %v7820_v2, %v6318_v5 }
 0x31e   :  { %vm6363_vm0 = vcmp.ge.f32.partialorder %v6358_v8, 0.0  ;;  %v6374_v9 = vmul.f32 %v6372_v7, %v6358_v8 }
 0x320   :  { %v6375_v10 = vsel %vm6363_vm0, %v6358_v8, %v6374_v9 }
 0x321   :  { %6377 = vst.msk [vmem:[%s10379_s4] sm:$0xff] %vm6376_vm1, %v6375_v10 }

</bundles_post_ra>
